<compile_context>
chip_gen: v6e
topology: v6e:2x2x1
jax: 0.10.0
libtpu: 0.0.40
codegen_flags: <defaults>
</compile_context>

<pallas_src>
import jax
import jax.numpy as jnp
import numpy as np
from jax.experimental import pallas as pl
from jax.experimental.pallas import tpu as pltpu


# ----------------------------------------------------------------------------
# Fused whole-network kernel
# ----------------------------------------------------------------------------
def _net_kernel(x_ref,                 # (B, H+2, W+2, Ch) f32, pre-padded input
                cw_ref, cb_ref,        # (L, 9*Ch, Ch) bf16, (L, 1, Ch) f32
                pvw_ref, pvb_ref,      # (Ch, 3) bf16, (1, 3) f32  merged 1x1 heads
                whT_ref,               # (2*M+F1, HW) bf16  merged policyFC/valueFC1 (transposed)
                pfb_ref, v1b_ref,      # (M, 1) f32, (F1, 1) f32
                v2wT_ref, v2b_ref,     # (F2, F1) f32, (F2, 1) f32
                vowT_ref, vob_ref,     # (1, F2) f32, (1, 1) f32
                out_ref,               # (M+1, B) f32: policy rows 0..M-1, value row M
                buf0, buf1,            # scratch halo buffers (B, H+2, W+2, Ch) f32
                patch):                # scratch im2col patch (B*H*W, 9*Ch) bf16
    f32 = jnp.float32
    bf16 = jnp.bfloat16
    B, Hp, Wp, Ch = x_ref.shape
    H, W = Hp - 2, Wp - 2
    HW = H * W
    R = B * HW                          # rows fed to the MXU (batch folded)
    L = cw_ref.shape[0]
    nblocks = (L - 1) // 2
    M = pfb_ref.shape[0]
    F1 = v1b_ref.shape[0]

    # Zero the halo buffers ONCE; interior stores below never touch the 1-wide
    # borders, so the conv padding stays zero for every layer.
    buf0[...] = jnp.zeros(buf0.shape, f32)
    buf1[...] = jnp.zeros(buf1.shape, f32)

    def conv3x3(src, layer, residual=None):
        """3x3 conv (pad=1) as ONE im2col matmul + folded-BN bias (+res) + ReLU."""
        # Build the (R, 9*Ch) bf16 im2col patch in VMEM (tap t -> K-slot t*Ch).
        for dh in range(3):
            for dw in range(3):
                t = dh * 3 + dw
                tap = src[:, dh:dh + H, dw:dw + W, :].reshape(R, Ch)
                patch[:, t * Ch:(t + 1) * Ch] = tap.astype(bf16)
        acc = jnp.dot(patch[...], cw_ref[layer],            # (R,288)x(288,Ch)
                      preferred_element_type=f32)
        acc = acc + cb_ref[layer]                            # (1, Ch) broadcast
        if residual is not None:
            acc = acc + residual
        return jnp.maximum(acc, 0.0)                         # (R, Ch) f32

    def store_interior(buf, act):
        buf[:, 1:H + 1, 1:W + 1, :] = act.reshape(B, H, W, Ch)

    # --- input conv + ReLU: reads the pre-padded input directly ---------------
    a = conv3x3(x_ref, 0)
    if nblocks:
        store_interior(buf0, a)

    # --- residual tower (eval-mode BN folded into weights/bias) ---------------
    for i in range(nblocks):
        h = conv3x3(buf0, 1 + 2 * i)                         # conv1+bn1+relu
        store_interior(buf1, h)
        res = buf0[:, 1:H + 1, 1:W + 1, :].reshape(R, Ch)    # block input (residual)
        a = conv3x3(buf1, 2 + 2 * i, residual=res)           # conv2+bn2+res+relu
        if i < nblocks - 1:
            store_interior(buf0, a)                          # input of next block

    # --- heads -----------------------------------------------------------------
    # Merged policy(2ch)/value(1ch) 1x1 convs as one MXU matmul.
    pv = jnp.dot(a.astype(bf16), pvw_ref[...], preferred_element_type=f32)
    pv = jnp.maximum(pv + pvb_ref[...], 0.0)                 # (R, 3) f32

    w_headT = whT_ref[...]                                   # (2M+F1, HW) bf16
    v2wT = v2wT_ref[...]
    vowT = vowT_ref[...]
    for b in range(B):
        pv_b = pv[b * HW:(b + 1) * HW, :].astype(bf16)       # (HW, 3)
        # One MXU dot covers the policy FC (both channels) and value FC1:
        #   resT[j, c] = sum_hw w_headT[j, hw] * pv_b[hw, c]
        resT = jnp.dot(w_headT, pv_b, preferred_element_type=f32)   # (2M+F1, 3)
        pol = resT[0:M, 0:1] + resT[M:2 * M, 1:2] + pfb_ref[...]    # (M, 1)
        v1 = jnp.maximum(resT[2 * M:2 * M + F1, 2:3] + v1b_ref[...], 0.0)   # (F1,1)
        v2 = jnp.maximum(jnp.dot(v2wT, v1, preferred_element_type=f32)
                         + v2b_ref[...], 0.0)                # (F2, 1)
        val = jnp.tanh(jnp.dot(vowT, v2, preferred_element_type=f32)
                       + vob_ref[...])                       # (1, 1)
        out_ref[0:M, b:b + 1] = pol.astype(out_ref.dtype)
        out_ref[M:M + 1, b:b + 1] = val.astype(out_ref.dtype)


# ----------------------------------------------------------------------------
# Parameter packing for the kernel (im2col layout, transposed heads, bf16)
# ----------------------------------------------------------------------------
def _pack_params(p):
    bf16 = jnp.bfloat16
    L = p["conv_w"].shape[0]
    Ch = p["conv_w"].shape[-1]
    HW = p["value_fc1_w"].shape[0]
    M = p["policy_fc_w"].shape[1]
    kp = {}
    # conv weights: (L,3,3,Ch,Ch) -> (L, 9*Ch, Ch), row index = (dh*3+dw)*Ch + cin
    kp["cw"] = p["conv_w"].reshape(L, 9 * Ch, Ch).astype(bf16)
    kp["cb"] = p["conv_b"].reshape(L, 1, Ch).astype(jnp.float32)
    # merged 1x1 policy/value convs: (Ch, 3), columns [pol0, pol1, val]
    kp["pvw"] = jnp.concatenate([p["policy_conv_w"], p["value_conv_w"]],
                                axis=1).astype(bf16)
    kp["pvb"] = jnp.concatenate([p["policy_conv_b"],
                                 p["value_conv_b"]]).reshape(1, 3)
    # merged transposed head FCs: rows [0:M]=policy ch0, [M:2M]=policy ch1,
    # [2M:2M+F1]=value fc1  (torch flatten index is c*HW + hw)
    w0 = p["policy_fc_w"][:HW, :].T              # (M, HW)   channel 0
    w1 = p["policy_fc_w"][HW:2 * HW, :].T        # (M, HW)   channel 1
    v1t = p["value_fc1_w"].T                     # (F1, HW)
    kp["whT"] = jnp.concatenate([w0, w1, v1t], axis=0).astype(bf16)
    kp["pfb"] = p["policy_fc_b"].reshape(M, 1)
    kp["v1b"] = p["value_fc1_b"].reshape(-1, 1)
    kp["v2wT"] = p["value_fc2_w"].T              # (F2, F1)
    kp["v2b"] = p["value_fc2_b"].reshape(-1, 1)
    kp["vowT"] = p["value_out_w"].T              # (1, F2)
    kp["vob"] = p["value_out_b"].reshape(1, 1)
    return kp


# ----------------------------------------------------------------------------
# Wrapper: one pallas_call for the whole net
# ----------------------------------------------------------------------------
def net_forward_pallas(params, x_nchw):
    kp = _pack_params(params)
    x = jnp.transpose(x_nchw, (0, 2, 3, 1)).astype(jnp.float32)   # NCHW -> NHWC
    B, H, W, cin = x.shape
    Ch = params["conv_w"].shape[-1]
    M = params["policy_fc_w"].shape[1]
    # One-time boundary layout work on the host/XLA side:
    # channel zero-pad cin->Ch and 1-px spatial halo.
    x = jnp.pad(x, ((0, 0), (1, 1), (1, 1), (0, Ch - cin)))

    out = pl.pallas_call(
        _net_kernel,
        out_shape=jax.ShapeDtypeStruct((M + 1, B), jnp.float32),
        scratch_shapes=[
            pltpu.VMEM((B, H + 2, W + 2, Ch), jnp.float32),   # halo buffer 0
            pltpu.VMEM((B, H + 2, W + 2, Ch), jnp.float32),   # halo buffer 1
            pltpu.VMEM((B * H * W, 9 * Ch), jnp.bfloat16),    # im2col patch
        ],
        # NOTE(v7x): at B=2 a grid-less call already fills the MXU rows (R=128);
        # for B>=8 add a leading batch-block grid axis with
        # compiler_params=pltpu.CompilerParams(dimension_semantics=("parallel",)).
    )(x, kp["cw"], kp["cb"], kp["pvw"], kp["pvb"], kp["whT"],
      kp["pfb"], kp["v1b"], kp["v2wT"], kp["v2b"], kp["vowT"], kp["vob"])

    policy = out[:M, :].T          # (B, num_moves)
    value = out[M:, :].T           # (B, 1)
    return policy, value


# ----------------------------------------------------------------------------
# Pure-JAX reference (same folded params; mirrors the kernel's bf16 matmul
# operands + f32 accumulation, so a tight tolerance can be used)
# ----------------------------------------------------------------------------
def net_forward_ref(params, x_nchw):
    f32, bf16 = jnp.float32, jnp.bfloat16
    x = jnp.transpose(x_nchw, (0, 2, 3, 1)).astype(f32)
    B, H, W, cin = x.shape
    Ch = params["conv_w"].shape[-1]
    x = jnp.pad(x, ((0, 0), (0, 0), (0, 0), (0, Ch - cin)))

    def conv(a, w, b):
        y = jax.lax.conv_general_dilated(
            a.astype(bf16), w.astype(bf16), (1, 1), "SAME",
            dimension_numbers=("NHWC", "HWIO", "NHWC"),
            preferred_element_type=f32)
        return y + b.reshape(1, 1, 1, Ch)

    def mm(a, w):
        return jnp.dot(a.astype(bf16), w.astype(bf16), preferred_element_type=f32)

    a = jnp.maximum(conv(x, params["conv_w"][0], params["conv_b"][0]), 0.0)
    nblocks = (params["conv_w"].shape[0] - 1) // 2
    for i in range(nblocks):
        h = jnp.maximum(conv(a, params["conv_w"][1 + 2 * i],
                             params["conv_b"][1 + 2 * i]), 0.0)
        a = jnp.maximum(conv(h, params["conv_w"][2 + 2 * i],
                             params["conv_b"][2 + 2 * i]) + a, 0.0)

    A = a.reshape(B * H * W, Ch)
    p = jnp.maximum(mm(A, params["policy_conv_w"]) + params["policy_conv_b"], 0.0)
    v = jnp.maximum(mm(A, params["value_conv_w"]) + params["value_conv_b"], 0.0)
    # torch NCHW flatten: index = c*HW + hw
    p = p.reshape(B, H * W, 2).transpose(0, 2, 1).reshape(B, 2 * H * W)
    pol = mm(p, params["policy_fc_w"]) + params["policy_fc_b"]
    v = v.reshape(B, H * W)
    v = jnp.maximum(mm(v, params["value_fc1_w"]) + params["value_fc1_b"], 0.0)
    v = jnp.maximum(v @ params["value_fc2_w"] + params["value_fc2_b"], 0.0)
    val = jnp.tanh(v @ params["value_out_w"] + params["value_out_b"])
    return pol, val


# ----------------------------------------------------------------------------
# Deterministic params (eval-mode BN folded into conv weight/bias)
# ----------------------------------------------------------------------------
def init_params(key, in_ch, hidden, num_moves, fc_dims, num_blocks, H=8, W=8):
    keys = iter(jax.random.split(key, 64))

    def nrm(shape, scale):
        return jax.random.normal(next(keys), shape, jnp.float32) * scale

    def uni(shape, lo, hi):
        return jax.random.uniform(next(keys), shape, jnp.float32, minval=lo, maxval=hi)

    conv_ws, conv_bs = [], []
    # input conv (no BN); zero-pad cin -> hidden so every conv shares one layout
    w = nrm((3, 3, in_ch, hidden), 0.1)
    b = nrm((hidden,), 0.1)
    w = jnp.pad(w, ((0, 0), (0, 0), (0, hidden - in_ch), (0, 0)))
    conv_ws.append(w)
    conv_bs.append(b)

    # residual blocks: conv + BN folded (eval mode)
    for _ in range(num_blocks):
        for _ in range(2):
            w = nrm((3, 3, hidden, hidden), 0.05)
            b = nrm((hidden,), 0.05)
            gamma = uni((hidden,), 0.8, 1.2)
            beta = nrm((hidden,), 0.05)
            mean = nrm((hidden,), 0.05)
            var = uni((hidden,), 0.5, 1.5)
            scale = gamma / jnp.sqrt(var + 1e-5)
            conv_ws.append(w * scale)
            conv_bs.append(b * scale + beta - mean * scale)

    p = {"conv_w": jnp.stack(conv_ws),          # (1+2*nb, 3, 3, hidden, hidden)
         "conv_b": jnp.stack(conv_bs)}          # (1+2*nb, hidden)

    p["policy_conv_w"] = nrm((hidden, 2), 0.1)
    p["policy_conv_b"] = nrm((2,), 0.1)
    p["value_conv_w"] = nrm((hidden, 1), 0.1)
    p["value_conv_b"] = nrm((1,), 0.1)

    fc1, fc2 = fc_dims
    p["policy_fc_w"] = nrm((2 * H * W, num_moves), 0.1)
    p["policy_fc_b"] = nrm((num_moves,), 0.1)
    p["value_fc1_w"] = nrm((H * W, fc1), 0.1)
    p["value_fc1_b"] = nrm((fc1,), 0.1)
    p["value_fc2_w"] = nrm((fc1, fc2), 0.1)
    p["value_fc2_b"] = nrm((fc2,), 0.1)
    p["value_out_w"] = nrm((fc2, 1), 0.1)
    p["value_out_b"] = nrm((1,), 0.1)
    return p


# ----------------------------------------------------------------------------
if __name__ == "__main__":
    B, IN_CH, H, W = 2, 4, 8, 8            # board is 8x8 (fixed by the FC dims)
    HIDDEN, NUM_MOVES = 32, 16
    NUM_BLOCKS, FC_DIMS = 2, (32, 16)

    key = jax.random.PRNGKey(0)
    k_par, k_x = jax.random.split(key)
    params = init_params(k_par, IN_CH, HIDDEN, NUM_MOVES, FC_DIMS, NUM_BLOCKS, H, W)
    x = jax.random.normal(k_x, (B, IN_CH, H, W), jnp.float32)   # NCHW like PyTorch

    fwd = jax.jit(net_forward_pallas)
    policy, value = jax.block_until_ready(fwd(params, x))
    assert policy.shape == (B, NUM_MOVES) and value.shape == (B, 1)

    # Reference uses the same bf16-operand / f32-accumulation matmuls, so only
    # summation-order differences remain -> tight tolerance (kernel-logic check).
    pol_ref, val_ref = net_forward_ref(params, x)
    np.testing.assert_allclose(np.asarray(policy), np.asarray(pol_ref),
                               atol=5e-3, rtol=5e-3)
    np.testing.assert_allclose(np.asarray(value), np.asarray(val_ref),
                               atol=5e-3, rtol=5e-3)

    print("KERNEL_OK")
</pallas_src>

<mosaic_0001>
module attributes {stable_mosaic.version = 11 : i64} {
  func.func @_net_kernel(%arg0: memref<2x10x10x32xf32, #tpu.memory_space<vmem>>, %arg1: memref<5x288x32xbf16, #tpu.memory_space<vmem>>, %arg2: memref<5x1x32xf32, #tpu.memory_space<vmem>>, %arg3: memref<32x3xbf16, #tpu.memory_space<vmem>>, %arg4: memref<1x3xf32, #tpu.memory_space<vmem>>, %arg5: memref<64x64xbf16, #tpu.memory_space<vmem>>, %arg6: memref<16x1xf32, #tpu.memory_space<vmem>>, %arg7: memref<32x1xf32, #tpu.memory_space<vmem>>, %arg8: memref<16x32xf32, #tpu.memory_space<vmem>>, %arg9: memref<16x1xf32, #tpu.memory_space<vmem>>, %arg10: memref<1x16xf32, #tpu.memory_space<vmem>>, %arg11: memref<1x1xf32, #tpu.memory_space<vmem>>, %arg12: memref<17x2xf32, #tpu.memory_space<vmem>>, %arg13: memref<2x10x10x32xf32, #tpu.memory_space<vmem>>, %arg14: memref<2x10x10x32xf32, #tpu.memory_space<vmem>>, %arg15: memref<128x288xbf16, #tpu.memory_space<vmem>>) attributes {dimension_semantics = [], scalar_prefetch = 0 : i64, scratch_operands = 3 : i64, tpu.core_type = #tpu.core_type<tc>} {
    %cst = arith.constant 0.000000e+00 : f32
    %0 = vector.broadcast %cst : f32 to vector<2x10x10x32xf32>
    %c0 = arith.constant 0 : index
    %c0_0 = arith.constant 0 : index
    %c0_1 = arith.constant 0 : index
    %c0_2 = arith.constant 0 : index
    %1 = vector.load %arg13[%c0, %c0_0, %c0_1, %c0_2] : memref<2x10x10x32xf32, #tpu.memory_space<vmem>>, vector<2x10x10x32xf32>
    tpu.vector_store %arg13[%c0, %c0_0, %c0_1, %c0_2], %0 {strides = array<i32>} : memref<2x10x10x32xf32, #tpu.memory_space<vmem>>, vector<2x10x10x32xf32>,
    %cst_3 = arith.constant 0.000000e+00 : f32
    %2 = vector.broadcast %cst_3 : f32 to vector<2x10x10x32xf32>
    %c0_4 = arith.constant 0 : index
    %c0_5 = arith.constant 0 : index
    %c0_6 = arith.constant 0 : index
    %c0_7 = arith.constant 0 : index
    %3 = vector.load %arg14[%c0_4, %c0_5, %c0_6, %c0_7] : memref<2x10x10x32xf32, #tpu.memory_space<vmem>>, vector<2x10x10x32xf32>
    tpu.vector_store %arg14[%c0_4, %c0_5, %c0_6, %c0_7], %2 {strides = array<i32>} : memref<2x10x10x32xf32, #tpu.memory_space<vmem>>, vector<2x10x10x32xf32>,
    %c0_8 = arith.constant 0 : index
    %c0_9 = arith.constant 0 : index
    %c0_10 = arith.constant 0 : index
    %c0_11 = arith.constant 0 : index
    %4 = vector.load %arg0[%c0_8, %c0_9, %c0_10, %c0_11] : memref<2x10x10x32xf32, #tpu.memory_space<vmem>>, vector<2x8x8x32xf32>
    %5 = vector.shape_cast %4 : vector<2x8x8x32xf32> to vector<128x32xf32>
    %6 = arith.truncf %5 : vector<128x32xf32> to vector<128x32xbf16>
    %c0_12 = arith.constant 0 : index
    %c0_13 = arith.constant 0 : index
    %7 = vector.load %arg15[%c0_12, %c0_13] : memref<128x288xbf16, #tpu.memory_space<vmem>>, vector<128x32xbf16>
    tpu.vector_store %arg15[%c0_12, %c0_13], %6 {strides = array<i32>} : memref<128x288xbf16, #tpu.memory_space<vmem>>, vector<128x32xbf16>,
    %c0_14 = arith.constant 0 : index
    %c0_15 = arith.constant 0 : index
    %c1 = arith.constant 1 : index
    %c0_16 = arith.constant 0 : index
    %8 = vector.load %arg0[%c0_14, %c0_15, %c1, %c0_16] : memref<2x10x10x32xf32, #tpu.memory_space<vmem>>, vector<2x8x8x32xf32>
    %9 = vector.shape_cast %8 : vector<2x8x8x32xf32> to vector<128x32xf32>
    %10 = arith.truncf %9 : vector<128x32xf32> to vector<128x32xbf16>
    %c0_17 = arith.constant 0 : index
    %c32 = arith.constant 32 : index
    %11 = vector.load %arg15[%c0_17, %c32] : memref<128x288xbf16, #tpu.memory_space<vmem>>, vector<128x32xbf16>
    tpu.vector_store %arg15[%c0_17, %c32], %10 {strides = array<i32>} : memref<128x288xbf16, #tpu.memory_space<vmem>>, vector<128x32xbf16>,
    %c0_18 = arith.constant 0 : index
    %c0_19 = arith.constant 0 : index
    %c2 = arith.constant 2 : index
    %c0_20 = arith.constant 0 : index
    %12 = vector.load %arg0[%c0_18, %c0_19, %c2, %c0_20] : memref<2x10x10x32xf32, #tpu.memory_space<vmem>>, vector<2x8x8x32xf32>
    %13 = vector.shape_cast %12 : vector<2x8x8x32xf32> to vector<128x32xf32>
    %14 = arith.truncf %13 : vector<128x32xf32> to vector<128x32xbf16>
    %c0_21 = arith.constant 0 : index
    %c64 = arith.constant 64 : index
    %15 = vector.load %arg15[%c0_21, %c64] : memref<128x288xbf16, #tpu.memory_space<vmem>>, vector<128x32xbf16>
    tpu.vector_store %arg15[%c0_21, %c64], %14 {strides = array<i32>} : memref<128x288xbf16, #tpu.memory_space<vmem>>, vector<128x32xbf16>,
    %c0_22 = arith.constant 0 : index
    %c1_23 = arith.constant 1 : index
    %c0_24 = arith.constant 0 : index
    %c0_25 = arith.constant 0 : index
    %16 = vector.load %arg0[%c0_22, %c1_23, %c0_24, %c0_25] : memref<2x10x10x32xf32, #tpu.memory_space<vmem>>, vector<2x8x8x32xf32>
    %17 = vector.shape_cast %16 : vector<2x8x8x32xf32> to vector<128x32xf32>
    %18 = arith.truncf %17 : vector<128x32xf32> to vector<128x32xbf16>
    %c0_26 = arith.constant 0 : index
    %c96 = arith.constant 96 : index
    %19 = vector.load %arg15[%c0_26, %c96] : memref<128x288xbf16, #tpu.memory_space<vmem>>, vector<128x32xbf16>
    tpu.vector_store %arg15[%c0_26, %c96], %18 {strides = array<i32>} : memref<128x288xbf16, #tpu.memory_space<vmem>>, vector<128x32xbf16>,
    %c0_27 = arith.constant 0 : index
    %c1_28 = arith.constant 1 : index
    %c1_29 = arith.constant 1 : index
    %c0_30 = arith.constant 0 : index
    %20 = vector.load %arg0[%c0_27, %c1_28, %c1_29, %c0_30] : memref<2x10x10x32xf32, #tpu.memory_space<vmem>>, vector<2x8x8x32xf32>
    %21 = vector.shape_cast %20 : vector<2x8x8x32xf32> to vector<128x32xf32>
    %22 = arith.truncf %21 : vector<128x32xf32> to vector<128x32xbf16>
    %c0_31 = arith.constant 0 : index
    %c128 = arith.constant 128 : index
    %23 = vector.load %arg15[%c0_31, %c128] : memref<128x288xbf16, #tpu.memory_space<vmem>>, vector<128x32xbf16>
    tpu.vector_store %arg15[%c0_31, %c128], %22 {strides = array<i32>} : memref<128x288xbf16, #tpu.memory_space<vmem>>, vector<128x32xbf16>,
    %c0_32 = arith.constant 0 : index
    %c1_33 = arith.constant 1 : index
    %c2_34 = arith.constant 2 : index
    %c0_35 = arith.constant 0 : index
    %24 = vector.load %arg0[%c0_32, %c1_33, %c2_34, %c0_35] : memref<2x10x10x32xf32, #tpu.memory_space<vmem>>, vector<2x8x8x32xf32>
    %25 = vector.shape_cast %24 : vector<2x8x8x32xf32> to vector<128x32xf32>
    %26 = arith.truncf %25 : vector<128x32xf32> to vector<128x32xbf16>
    %c0_36 = arith.constant 0 : index
    %c160 = arith.constant 160 : index
    %27 = vector.load %arg15[%c0_36, %c160] : memref<128x288xbf16, #tpu.memory_space<vmem>>, vector<128x32xbf16>
    tpu.vector_store %arg15[%c0_36, %c160], %26 {strides = array<i32>} : memref<128x288xbf16, #tpu.memory_space<vmem>>, vector<128x32xbf16>,
    %c0_37 = arith.constant 0 : index
    %c2_38 = arith.constant 2 : index
    %c0_39 = arith.constant 0 : index
    %c0_40 = arith.constant 0 : index
    %28 = vector.load %arg0[%c0_37, %c2_38, %c0_39, %c0_40] : memref<2x10x10x32xf32, #tpu.memory_space<vmem>>, vector<2x8x8x32xf32>
    %29 = vector.shape_cast %28 : vector<2x8x8x32xf32> to vector<128x32xf32>
    %30 = arith.truncf %29 : vector<128x32xf32> to vector<128x32xbf16>
    %c0_41 = arith.constant 0 : index
    %c192 = arith.constant 192 : index
    %31 = vector.load %arg15[%c0_41, %c192] : memref<128x288xbf16, #tpu.memory_space<vmem>>, vector<128x32xbf16>
    tpu.vector_store %arg15[%c0_41, %c192], %30 {strides = array<i32>} : memref<128x288xbf16, #tpu.memory_space<vmem>>, vector<128x32xbf16>,
    %c0_42 = arith.constant 0 : index
    %c2_43 = arith.constant 2 : index
    %c1_44 = arith.constant 1 : index
    %c0_45 = arith.constant 0 : index
    %32 = vector.load %arg0[%c0_42, %c2_43, %c1_44, %c0_45] : memref<2x10x10x32xf32, #tpu.memory_space<vmem>>, vector<2x8x8x32xf32>
    %33 = vector.shape_cast %32 : vector<2x8x8x32xf32> to vector<128x32xf32>
    %34 = arith.truncf %33 : vector<128x32xf32> to vector<128x32xbf16>
    %c0_46 = arith.constant 0 : index
    %c224 = arith.constant 224 : index
    %35 = vector.load %arg15[%c0_46, %c224] : memref<128x288xbf16, #tpu.memory_space<vmem>>, vector<128x32xbf16>
    tpu.vector_store %arg15[%c0_46, %c224], %34 {strides = array<i32>} : memref<128x288xbf16, #tpu.memory_space<vmem>>, vector<128x32xbf16>,
    %c0_47 = arith.constant 0 : index
    %c2_48 = arith.constant 2 : index
    %c2_49 = arith.constant 2 : index
    %c0_50 = arith.constant 0 : index
    %36 = vector.load %arg0[%c0_47, %c2_48, %c2_49, %c0_50] : memref<2x10x10x32xf32, #tpu.memory_space<vmem>>, vector<2x8x8x32xf32>
    %37 = vector.shape_cast %36 : vector<2x8x8x32xf32> to vector<128x32xf32>
    %38 = arith.truncf %37 : vector<128x32xf32> to vector<128x32xbf16>
    %c0_51 = arith.constant 0 : index
    %c256 = arith.constant 256 : index
    %39 = vector.load %arg15[%c0_51, %c256] : memref<128x288xbf16, #tpu.memory_space<vmem>>, vector<128x32xbf16>
    tpu.vector_store %arg15[%c0_51, %c256], %38 {strides = array<i32>} : memref<128x288xbf16, #tpu.memory_space<vmem>>, vector<128x32xbf16>,
    %c0_52 = arith.constant 0 : index
    %c0_53 = arith.constant 0 : index
    %40 = vector.load %arg15[%c0_52, %c0_53] : memref<128x288xbf16, #tpu.memory_space<vmem>>, vector<128x288xbf16>
    %c0_54 = arith.constant 0 : index
    %c0_55 = arith.constant 0 : index
    %c0_56 = arith.constant 0 : index
    %41 = vector.load %arg1[%c0_54, %c0_55, %c0_56] : memref<5x288x32xbf16, #tpu.memory_space<vmem>>, vector<1x288x32xbf16>
    %42 = vector.shape_cast %41 : vector<1x288x32xbf16> to vector<288x32xbf16>
    %cst_57 = arith.constant dense<0.000000e+00> : vector<128x32xf32>
    %43 = tpu.matmul %40, %42, %cst_57 {dimension_numbers = #tpu.dot_dimension_numbers<[1], [0], [0], [1], [0, 0, 1, 1], [], []>} : vector<128x288xbf16>, vector<288x32xbf16>, vector<128x32xf32> -> vector<128x32xf32>
    %c0_58 = arith.constant 0 : index
    %c0_59 = arith.constant 0 : index
    %c0_60 = arith.constant 0 : index
    %44 = vector.load %arg2[%c0_58, %c0_59, %c0_60] : memref<5x1x32xf32, #tpu.memory_space<vmem>>, vector<1x1x32xf32>
    %45 = vector.shape_cast %44 : vector<1x1x32xf32> to vector<1x32xf32>
    %46 = vector.broadcast %45 : vector<1x32xf32> to vector<128x32xf32>
    %47 = arith.addf %43, %46 : vector<128x32xf32>
    %cst_61 = arith.constant 0.000000e+00 : f32
    %48 = vector.broadcast %cst_61 : f32 to vector<128x32xf32>
    %49 = arith.maximumf %47, %48 : vector<128x32xf32>
    %50 = vector.shape_cast %49 : vector<128x32xf32> to vector<2x8x8x32xf32>
    %c0_62 = arith.constant 0 : index
    %c1_63 = arith.constant 1 : index
    %c1_64 = arith.constant 1 : index
    %c0_65 = arith.constant 0 : index
    %51 = vector.load %arg13[%c0_62, %c1_63, %c1_64, %c0_65] : memref<2x10x10x32xf32, #tpu.memory_space<vmem>>, vector<2x8x8x32xf32>
    tpu.vector_store %arg13[%c0_62, %c1_63, %c1_64, %c0_65], %50 {strides = array<i32>} : memref<2x10x10x32xf32, #tpu.memory_space<vmem>>, vector<2x8x8x32xf32>,
    %c0_66 = arith.constant 0 : index
    %c0_67 = arith.constant 0 : index
    %c0_68 = arith.constant 0 : index
    %c0_69 = arith.constant 0 : index
    %52 = vector.load %arg13[%c0_66, %c0_67, %c0_68, %c0_69] : memref<2x10x10x32xf32, #tpu.memory_space<vmem>>, vector<2x8x8x32xf32>
    %53 = vector.shape_cast %52 : vector<2x8x8x32xf32> to vector<128x32xf32>
    %54 = arith.truncf %53 : vector<128x32xf32> to vector<128x32xbf16>
    %c0_70 = arith.constant 0 : index
    %c0_71 = arith.constant 0 : index
    %55 = vector.load %arg15[%c0_70, %c0_71] : memref<128x288xbf16, #tpu.memory_space<vmem>>, vector<128x32xbf16>
    tpu.vector_store %arg15[%c0_70, %c0_71], %54 {strides = array<i32>} : memref<128x288xbf16, #tpu.memory_space<vmem>>, vector<128x32xbf16>,
    %c0_72 = arith.constant 0 : index
    %c0_73 = arith.constant 0 : index
    %c1_74 = arith.constant 1 : index
    %c0_75 = arith.constant 0 : index
    %56 = vector.load %arg13[%c0_72, %c0_73, %c1_74, %c0_75] : memref<2x10x10x32xf32, #tpu.memory_space<vmem>>, vector<2x8x8x32xf32>
    %57 = vector.shape_cast %56 : vector<2x8x8x32xf32> to vector<128x32xf32>
    %58 = arith.truncf %57 : vector<128x32xf32> to vector<128x32xbf16>
    %c0_76 = arith.constant 0 : index
    %c32_77 = arith.constant 32 : index
    %59 = vector.load %arg15[%c0_76, %c32_77] : memref<128x288xbf16, #tpu.memory_space<vmem>>, vector<128x32xbf16>
    tpu.vector_store %arg15[%c0_76, %c32_77], %58 {strides = array<i32>} : memref<128x288xbf16, #tpu.memory_space<vmem>>, vector<128x32xbf16>,
    %c0_78 = arith.constant 0 : index
    %c0_79 = arith.constant 0 : index
    %c2_80 = arith.constant 2 : index
    %c0_81 = arith.constant 0 : index
    %60 = vector.load %arg13[%c0_78, %c0_79, %c2_80, %c0_81] : memref<2x10x10x32xf32, #tpu.memory_space<vmem>>, vector<2x8x8x32xf32>
    %61 = vector.shape_cast %60 : vector<2x8x8x32xf32> to vector<128x32xf32>
    %62 = arith.truncf %61 : vector<128x32xf32> to vector<128x32xbf16>
    %c0_82 = arith.constant 0 : index
    %c64_83 = arith.constant 64 : index
    %63 = vector.load %arg15[%c0_82, %c64_83] : memref<128x288xbf16, #tpu.memory_space<vmem>>, vector<128x32xbf16>
    tpu.vector_store %arg15[%c0_82, %c64_83], %62 {strides = array<i32>} : memref<128x288xbf16, #tpu.memory_space<vmem>>, vector<128x32xbf16>,
    %c0_84 = arith.constant 0 : index
    %c1_85 = arith.constant 1 : index
    %c0_86 = arith.constant 0 : index
    %c0_87 = arith.constant 0 : index
    %64 = vector.load %arg13[%c0_84, %c1_85, %c0_86, %c0_87] : memref<2x10x10x32xf32, #tpu.memory_space<vmem>>, vector<2x8x8x32xf32>
    %65 = vector.shape_cast %64 : vector<2x8x8x32xf32> to vector<128x32xf32>
    %66 = arith.truncf %65 : vector<128x32xf32> to vector<128x32xbf16>
    %c0_88 = arith.constant 0 : index
    %c96_89 = arith.constant 96 : index
    %67 = vector.load %arg15[%c0_88, %c96_89] : memref<128x288xbf16, #tpu.memory_space<vmem>>, vector<128x32xbf16>
    tpu.vector_store %arg15[%c0_88, %c96_89], %66 {strides = array<i32>} : memref<128x288xbf16, #tpu.memory_space<vmem>>, vector<128x32xbf16>,
    %c0_90 = arith.constant 0 : index
    %c1_91 = arith.constant 1 : index
    %c1_92 = arith.constant 1 : index
    %c0_93 = arith.constant 0 : index
    %68 = vector.load %arg13[%c0_90, %c1_91, %c1_92, %c0_93] : memref<2x10x10x32xf32, #tpu.memory_space<vmem>>, vector<2x8x8x32xf32>
    %69 = vector.shape_cast %68 : vector<2x8x8x32xf32> to vector<128x32xf32>
    %70 = arith.truncf %69 : vector<128x32xf32> to vector<128x32xbf16>
    %c0_94 = arith.constant 0 : index
    %c128_95 = arith.constant 128 : index
    %71 = vector.load %arg15[%c0_94, %c128_95] : memref<128x288xbf16, #tpu.memory_space<vmem>>, vector<128x32xbf16>
    tpu.vector_store %arg15[%c0_94, %c128_95], %70 {strides = array<i32>} : memref<128x288xbf16, #tpu.memory_space<vmem>>, vector<128x32xbf16>,
    %c0_96 = arith.constant 0 : index
    %c1_97 = arith.constant 1 : index
    %c2_98 = arith.constant 2 : index
    %c0_99 = arith.constant 0 : index
    %72 = vector.load %arg13[%c0_96, %c1_97, %c2_98, %c0_99] : memref<2x10x10x32xf32, #tpu.memory_space<vmem>>, vector<2x8x8x32xf32>
    %73 = vector.shape_cast %72 : vector<2x8x8x32xf32> to vector<128x32xf32>
    %74 = arith.truncf %73 : vector<128x32xf32> to vector<128x32xbf16>
    %c0_100 = arith.constant 0 : index
    %c160_101 = arith.constant 160 : index
    %75 = vector.load %arg15[%c0_100, %c160_101] : memref<128x288xbf16, #tpu.memory_space<vmem>>, vector<128x32xbf16>
    tpu.vector_store %arg15[%c0_100, %c160_101], %74 {strides = array<i32>} : memref<128x288xbf16, #tpu.memory_space<vmem>>, vector<128x32xbf16>,
    %c0_102 = arith.constant 0 : index
    %c2_103 = arith.constant 2 : index
    %c0_104 = arith.constant 0 : index
    %c0_105 = arith.constant 0 : index
    %76 = vector.load %arg13[%c0_102, %c2_103, %c0_104, %c0_105] : memref<2x10x10x32xf32, #tpu.memory_space<vmem>>, vector<2x8x8x32xf32>
    %77 = vector.shape_cast %76 : vector<2x8x8x32xf32> to vector<128x32xf32>
    %78 = arith.truncf %77 : vector<128x32xf32> to vector<128x32xbf16>
    %c0_106 = arith.constant 0 : index
    %c192_107 = arith.constant 192 : index
    %79 = vector.load %arg15[%c0_106, %c192_107] : memref<128x288xbf16, #tpu.memory_space<vmem>>, vector<128x32xbf16>
    tpu.vector_store %arg15[%c0_106, %c192_107], %78 {strides = array<i32>} : memref<128x288xbf16, #tpu.memory_space<vmem>>, vector<128x32xbf16>,
    %c0_108 = arith.constant 0 : index
    %c2_109 = arith.constant 2 : index
    %c1_110 = arith.constant 1 : index
    %c0_111 = arith.constant 0 : index
    %80 = vector.load %arg13[%c0_108, %c2_109, %c1_110, %c0_111] : memref<2x10x10x32xf32, #tpu.memory_space<vmem>>, vector<2x8x8x32xf32>
    %81 = vector.shape_cast %80 : vector<2x8x8x32xf32> to vector<128x32xf32>
    %82 = arith.truncf %81 : vector<128x32xf32> to vector<128x32xbf16>
    %c0_112 = arith.constant 0 : index
    %c224_113 = arith.constant 224 : index
    %83 = vector.load %arg15[%c0_112, %c224_113] : memref<128x288xbf16, #tpu.memory_space<vmem>>, vector<128x32xbf16>
    tpu.vector_store %arg15[%c0_112, %c224_113], %82 {strides = array<i32>} : memref<128x288xbf16, #tpu.memory_space<vmem>>, vector<128x32xbf16>,
    %c0_114 = arith.constant 0 : index
    %c2_115 = arith.constant 2 : index
    %c2_116 = arith.constant 2 : index
    %c0_117 = arith.constant 0 : index
    %84 = vector.load %arg13[%c0_114, %c2_115, %c2_116, %c0_117] : memref<2x10x10x32xf32, #tpu.memory_space<vmem>>, vector<2x8x8x32xf32>
    %85 = vector.shape_cast %84 : vector<2x8x8x32xf32> to vector<128x32xf32>
    %86 = arith.truncf %85 : vector<128x32xf32> to vector<128x32xbf16>
    %c0_118 = arith.constant 0 : index
    %c256_119 = arith.constant 256 : index
    %87 = vector.load %arg15[%c0_118, %c256_119] : memref<128x288xbf16, #tpu.memory_space<vmem>>, vector<128x32xbf16>
    tpu.vector_store %arg15[%c0_118, %c256_119], %86 {strides = array<i32>} : memref<128x288xbf16, #tpu.memory_space<vmem>>, vector<128x32xbf16>,
    %c0_120 = arith.constant 0 : index
    %c0_121 = arith.constant 0 : index
    %88 = vector.load %arg15[%c0_120, %c0_121] : memref<128x288xbf16, #tpu.memory_space<vmem>>, vector<128x288xbf16>
    %c1_122 = arith.constant 1 : index
    %c0_123 = arith.constant 0 : index
    %c0_124 = arith.constant 0 : index
    %89 = vector.load %arg1[%c1_122, %c0_123, %c0_124] : memref<5x288x32xbf16, #tpu.memory_space<vmem>>, vector<1x288x32xbf16>
    %90 = vector.shape_cast %89 : vector<1x288x32xbf16> to vector<288x32xbf16>
    %cst_125 = arith.constant dense<0.000000e+00> : vector<128x32xf32>
    %91 = tpu.matmul %88, %90, %cst_125 {dimension_numbers = #tpu.dot_dimension_numbers<[1], [0], [0], [1], [0, 0, 1, 1], [], []>} : vector<128x288xbf16>, vector<288x32xbf16>, vector<128x32xf32> -> vector<128x32xf32>
    %c1_126 = arith.constant 1 : index
    %c0_127 = arith.constant 0 : index
    %c0_128 = arith.constant 0 : index
    %92 = vector.load %arg2[%c1_126, %c0_127, %c0_128] : memref<5x1x32xf32, #tpu.memory_space<vmem>>, vector<1x1x32xf32>
    %93 = vector.shape_cast %92 : vector<1x1x32xf32> to vector<1x32xf32>
    %94 = vector.broadcast %93 : vector<1x32xf32> to vector<128x32xf32>
    %95 = arith.addf %91, %94 : vector<128x32xf32>
    %cst_129 = arith.constant 0.000000e+00 : f32
    %96 = vector.broadcast %cst_129 : f32 to vector<128x32xf32>
    %97 = arith.maximumf %95, %96 : vector<128x32xf32>
    %98 = vector.shape_cast %97 : vector<128x32xf32> to vector<2x8x8x32xf32>
    %c0_130 = arith.constant 0 : index
    %c1_131 = arith.constant 1 : index
    %c1_132 = arith.constant 1 : index
    %c0_133 = arith.constant 0 : index
    %99 = vector.load %arg14[%c0_130, %c1_131, %c1_132, %c0_133] : memref<2x10x10x32xf32, #tpu.memory_space<vmem>>, vector<2x8x8x32xf32>
    tpu.vector_store %arg14[%c0_130, %c1_131, %c1_132, %c0_133], %98 {strides = array<i32>} : memref<2x10x10x32xf32, #tpu.memory_space<vmem>>, vector<2x8x8x32xf32>,
    %c0_134 = arith.constant 0 : index
    %c1_135 = arith.constant 1 : index
    %c1_136 = arith.constant 1 : index
    %c0_137 = arith.constant 0 : index
    %100 = vector.load %arg13[%c0_134, %c1_135, %c1_136, %c0_137] : memref<2x10x10x32xf32, #tpu.memory_space<vmem>>, vector<2x8x8x32xf32>
    %101 = vector.shape_cast %100 : vector<2x8x8x32xf32> to vector<128x32xf32>
    %c0_138 = arith.constant 0 : index
    %c0_139 = arith.constant 0 : index
    %c0_140 = arith.constant 0 : index
    %c0_141 = arith.constant 0 : index
    %102 = vector.load %arg14[%c0_138, %c0_139, %c0_140, %c0_141] : memref<2x10x10x32xf32, #tpu.memory_space<vmem>>, vector<2x8x8x32xf32>
    %103 = vector.shape_cast %102 : vector<2x8x8x32xf32> to vector<128x32xf32>
    %104 = arith.truncf %103 : vector<128x32xf32> to vector<128x32xbf16>
    %c0_142 = arith.constant 0 : index
    %c0_143 = arith.constant 0 : index
    %105 = vector.load %arg15[%c0_142, %c0_143] : memref<128x288xbf16, #tpu.memory_space<vmem>>, vector<128x32xbf16>
    tpu.vector_store %arg15[%c0_142, %c0_143], %104 {strides = array<i32>} : memref<128x288xbf16, #tpu.memory_space<vmem>>, vector<128x32xbf16>,
    %c0_144 = arith.constant 0 : index
    %c0_145 = arith.constant 0 : index
    %c1_146 = arith.constant 1 : index
    %c0_147 = arith.constant 0 : index
    %106 = vector.load %arg14[%c0_144, %c0_145, %c1_146, %c0_147] : memref<2x10x10x32xf32, #tpu.memory_space<vmem>>, vector<2x8x8x32xf32>
    %107 = vector.shape_cast %106 : vector<2x8x8x32xf32> to vector<128x32xf32>
    %108 = arith.truncf %107 : vector<128x32xf32> to vector<128x32xbf16>
    %c0_148 = arith.constant 0 : index
    %c32_149 = arith.constant 32 : index
    %109 = vector.load %arg15[%c0_148, %c32_149] : memref<128x288xbf16, #tpu.memory_space<vmem>>, vector<128x32xbf16>
    tpu.vector_store %arg15[%c0_148, %c32_149], %108 {strides = array<i32>} : memref<128x288xbf16, #tpu.memory_space<vmem>>, vector<128x32xbf16>,
    %c0_150 = arith.constant 0 : index
    %c0_151 = arith.constant 0 : index
    %c2_152 = arith.constant 2 : index
    %c0_153 = arith.constant 0 : index
    %110 = vector.load %arg14[%c0_150, %c0_151, %c2_152, %c0_153] : memref<2x10x10x32xf32, #tpu.memory_space<vmem>>, vector<2x8x8x32xf32>
    %111 = vector.shape_cast %110 : vector<2x8x8x32xf32> to vector<128x32xf32>
    %112 = arith.truncf %111 : vector<128x32xf32> to vector<128x32xbf16>
    %c0_154 = arith.constant 0 : index
    %c64_155 = arith.constant 64 : index
    %113 = vector.load %arg15[%c0_154, %c64_155] : memref<128x288xbf16, #tpu.memory_space<vmem>>, vector<128x32xbf16>
    tpu.vector_store %arg15[%c0_154, %c64_155], %112 {strides = array<i32>} : memref<128x288xbf16, #tpu.memory_space<vmem>>, vector<128x32xbf16>,
    %c0_156 = arith.constant 0 : index
    %c1_157 = arith.constant 1 : index
    %c0_158 = arith.constant 0 : index
    %c0_159 = arith.constant 0 : index
    %114 = vector.load %arg14[%c0_156, %c1_157, %c0_158, %c0_159] : memref<2x10x10x32xf32, #tpu.memory_space<vmem>>, vector<2x8x8x32xf32>
    %115 = vector.shape_cast %114 : vector<2x8x8x32xf32> to vector<128x32xf32>
    %116 = arith.truncf %115 : vector<128x32xf32> to vector<128x32xbf16>
    %c0_160 = arith.constant 0 : index
    %c96_161 = arith.constant 96 : index
    %117 = vector.load %arg15[%c0_160, %c96_161] : memref<128x288xbf16, #tpu.memory_space<vmem>>, vector<128x32xbf16>
    tpu.vector_store %arg15[%c0_160, %c96_161], %116 {strides = array<i32>} : memref<128x288xbf16, #tpu.memory_space<vmem>>, vector<128x32xbf16>,
    %c0_162 = arith.constant 0 : index
    %c1_163 = arith.constant 1 : index
    %c1_164 = arith.constant 1 : index
    %c0_165 = arith.constant 0 : index
    %118 = vector.load %arg14[%c0_162, %c1_163, %c1_164, %c0_165] : memref<2x10x10x32xf32, #tpu.memory_space<vmem>>, vector<2x8x8x32xf32>
    %119 = vector.shape_cast %118 : vector<2x8x8x32xf32> to vector<128x32xf32>
    %120 = arith.truncf %119 : vector<128x32xf32> to vector<128x32xbf16>
    %c0_166 = arith.constant 0 : index
    %c128_167 = arith.constant 128 : index
    %121 = vector.load %arg15[%c0_166, %c128_167] : memref<128x288xbf16, #tpu.memory_space<vmem>>, vector<128x32xbf16>
    tpu.vector_store %arg15[%c0_166, %c128_167], %120 {strides = array<i32>} : memref<128x288xbf16, #tpu.memory_space<vmem>>, vector<128x32xbf16>,
    %c0_168 = arith.constant 0 : index
    %c1_169 = arith.constant 1 : index
    %c2_170 = arith.constant 2 : index
    %c0_171 = arith.constant 0 : index
    %122 = vector.load %arg14[%c0_168, %c1_169, %c2_170, %c0_171] : memref<2x10x10x32xf32, #tpu.memory_space<vmem>>, vector<2x8x8x32xf32>
    %123 = vector.shape_cast %122 : vector<2x8x8x32xf32> to vector<128x32xf32>
    %124 = arith.truncf %123 : vector<128x32xf32> to vector<128x32xbf16>
    %c0_172 = arith.constant 0 : index
    %c160_173 = arith.constant 160 : index
    %125 = vector.load %arg15[%c0_172, %c160_173] : memref<128x288xbf16, #tpu.memory_space<vmem>>, vector<128x32xbf16>
    tpu.vector_store %arg15[%c0_172, %c160_173], %124 {strides = array<i32>} : memref<128x288xbf16, #tpu.memory_space<vmem>>, vector<128x32xbf16>,
    %c0_174 = arith.constant 0 : index
    %c2_175 = arith.constant 2 : index
    %c0_176 = arith.constant 0 : index
    %c0_177 = arith.constant 0 : index
    %126 = vector.load %arg14[%c0_174, %c2_175, %c0_176, %c0_177] : memref<2x10x10x32xf32, #tpu.memory_space<vmem>>, vector<2x8x8x32xf32>
    %127 = vector.shape_cast %126 : vector<2x8x8x32xf32> to vector<128x32xf32>
    %128 = arith.truncf %127 : vector<128x32xf32> to vector<128x32xbf16>
    %c0_178 = arith.constant 0 : index
    %c192_179 = arith.constant 192 : index
    %129 = vector.load %arg15[%c0_178, %c192_179] : memref<128x288xbf16, #tpu.memory_space<vmem>>, vector<128x32xbf16>
    tpu.vector_store %arg15[%c0_178, %c192_179], %128 {strides = array<i32>} : memref<128x288xbf16, #tpu.memory_space<vmem>>, vector<128x32xbf16>,
    %c0_180 = arith.constant 0 : index
    %c2_181 = arith.constant 2 : index
    %c1_182 = arith.constant 1 : index
    %c0_183 = arith.constant 0 : index
    %130 = vector.load %arg14[%c0_180, %c2_181, %c1_182, %c0_183] : memref<2x10x10x32xf32, #tpu.memory_space<vmem>>, vector<2x8x8x32xf32>
    %131 = vector.shape_cast %130 : vector<2x8x8x32xf32> to vector<128x32xf32>
    %132 = arith.truncf %131 : vector<128x32xf32> to vector<128x32xbf16>
    %c0_184 = arith.constant 0 : index
    %c224_185 = arith.constant 224 : index
    %133 = vector.load %arg15[%c0_184, %c224_185] : memref<128x288xbf16, #tpu.memory_space<vmem>>, vector<128x32xbf16>
    tpu.vector_store %arg15[%c0_184, %c224_185], %132 {strides = array<i32>} : memref<128x288xbf16, #tpu.memory_space<vmem>>, vector<128x32xbf16>,
    %c0_186 = arith.constant 0 : index
    %c2_187 = arith.constant 2 : index
    %c2_188 = arith.constant 2 : index
    %c0_189 = arith.constant 0 : index
    %134 = vector.load %arg14[%c0_186, %c2_187, %c2_188, %c0_189] : memref<2x10x10x32xf32, #tpu.memory_space<vmem>>, vector<2x8x8x32xf32>
    %135 = vector.shape_cast %134 : vector<2x8x8x32xf32> to vector<128x32xf32>
    %136 = arith.truncf %135 : vector<128x32xf32> to vector<128x32xbf16>
    %c0_190 = arith.constant 0 : index
    %c256_191 = arith.constant 256 : index
    %137 = vector.load %arg15[%c0_190, %c256_191] : memref<128x288xbf16, #tpu.memory_space<vmem>>, vector<128x32xbf16>
    tpu.vector_store %arg15[%c0_190, %c256_191], %136 {strides = array<i32>} : memref<128x288xbf16, #tpu.memory_space<vmem>>, vector<128x32xbf16>,
    %c0_192 = arith.constant 0 : index
    %c0_193 = arith.constant 0 : index
    %138 = vector.load %arg15[%c0_192, %c0_193] : memref<128x288xbf16, #tpu.memory_space<vmem>>, vector<128x288xbf16>
    %c2_194 = arith.constant 2 : index
    %c0_195 = arith.constant 0 : index
    %c0_196 = arith.constant 0 : index
    %139 = vector.load %arg1[%c2_194, %c0_195, %c0_196] : memref<5x288x32xbf16, #tpu.memory_space<vmem>>, vector<1x288x32xbf16>
    %140 = vector.shape_cast %139 : vector<1x288x32xbf16> to vector<288x32xbf16>
    %cst_197 = arith.constant dense<0.000000e+00> : vector<128x32xf32>
    %141 = tpu.matmul %138, %140, %cst_197 {dimension_numbers = #tpu.dot_dimension_numbers<[1], [0], [0], [1], [0, 0, 1, 1], [], []>} : vector<128x288xbf16>, vector<288x32xbf16>, vector<128x32xf32> -> vector<128x32xf32>
    %c2_198 = arith.constant 2 : index
    %c0_199 = arith.constant 0 : index
    %c0_200 = arith.constant 0 : index
    %142 = vector.load %arg2[%c2_198, %c0_199, %c0_200] : memref<5x1x32xf32, #tpu.memory_space<vmem>>, vector<1x1x32xf32>
    %143 = vector.shape_cast %142 : vector<1x1x32xf32> to vector<1x32xf32>
    %144 = vector.broadcast %143 : vector<1x32xf32> to vector<128x32xf32>
    %145 = arith.addf %141, %144 : vector<128x32xf32>
    %146 = arith.addf %145, %101 : vector<128x32xf32>
    %cst_201 = arith.constant 0.000000e+00 : f32
    %147 = vector.broadcast %cst_201 : f32 to vector<128x32xf32>
    %148 = arith.maximumf %146, %147 : vector<128x32xf32>
    %149 = vector.shape_cast %148 : vector<128x32xf32> to vector<2x8x8x32xf32>
    %c0_202 = arith.constant 0 : index
    %c1_203 = arith.constant 1 : index
    %c1_204 = arith.constant 1 : index
    %c0_205 = arith.constant 0 : index
    %150 = vector.load %arg13[%c0_202, %c1_203, %c1_204, %c0_205] : memref<2x10x10x32xf32, #tpu.memory_space<vmem>>, vector<2x8x8x32xf32>
    tpu.vector_store %arg13[%c0_202, %c1_203, %c1_204, %c0_205], %149 {strides = array<i32>} : memref<2x10x10x32xf32, #tpu.memory_space<vmem>>, vector<2x8x8x32xf32>,
    %c0_206 = arith.constant 0 : index
    %c0_207 = arith.constant 0 : index
    %c0_208 = arith.constant 0 : index
    %c0_209 = arith.constant 0 : index
    %151 = vector.load %arg13[%c0_206, %c0_207, %c0_208, %c0_209] : memref<2x10x10x32xf32, #tpu.memory_space<vmem>>, vector<2x8x8x32xf32>
    %152 = vector.shape_cast %151 : vector<2x8x8x32xf32> to vector<128x32xf32>
    %153 = arith.truncf %152 : vector<128x32xf32> to vector<128x32xbf16>
    %c0_210 = arith.constant 0 : index
    %c0_211 = arith.constant 0 : index
    %154 = vector.load %arg15[%c0_210, %c0_211] : memref<128x288xbf16, #tpu.memory_space<vmem>>, vector<128x32xbf16>
    tpu.vector_store %arg15[%c0_210, %c0_211], %153 {strides = array<i32>} : memref<128x288xbf16, #tpu.memory_space<vmem>>, vector<128x32xbf16>,
    %c0_212 = arith.constant 0 : index
    %c0_213 = arith.constant 0 : index
    %c1_214 = arith.constant 1 : index
    %c0_215 = arith.constant 0 : index
    %155 = vector.load %arg13[%c0_212, %c0_213, %c1_214, %c0_215] : memref<2x10x10x32xf32, #tpu.memory_space<vmem>>, vector<2x8x8x32xf32>
    %156 = vector.shape_cast %155 : vector<2x8x8x32xf32> to vector<128x32xf32>
    %157 = arith.truncf %156 : vector<128x32xf32> to vector<128x32xbf16>
    %c0_216 = arith.constant 0 : index
    %c32_217 = arith.constant 32 : index
    %158 = vector.load %arg15[%c0_216, %c32_217] : memref<128x288xbf16, #tpu.memory_space<vmem>>, vector<128x32xbf16>
    tpu.vector_store %arg15[%c0_216, %c32_217], %157 {strides = array<i32>} : memref<128x288xbf16, #tpu.memory_space<vmem>>, vector<128x32xbf16>,
    %c0_218 = arith.constant 0 : index
    %c0_219 = arith.constant 0 : index
    %c2_220 = arith.constant 2 : index
    %c0_221 = arith.constant 0 : index
    %159 = vector.load %arg13[%c0_218, %c0_219, %c2_220, %c0_221] : memref<2x10x10x32xf32, #tpu.memory_space<vmem>>, vector<2x8x8x32xf32>
    %160 = vector.shape_cast %159 : vector<2x8x8x32xf32> to vector<128x32xf32>
    %161 = arith.truncf %160 : vector<128x32xf32> to vector<128x32xbf16>
    %c0_222 = arith.constant 0 : index
    %c64_223 = arith.constant 64 : index
    %162 = vector.load %arg15[%c0_222, %c64_223] : memref<128x288xbf16, #tpu.memory_space<vmem>>, vector<128x32xbf16>
    tpu.vector_store %arg15[%c0_222, %c64_223], %161 {strides = array<i32>} : memref<128x288xbf16, #tpu.memory_space<vmem>>, vector<128x32xbf16>,
    %c0_224 = arith.constant 0 : index
    %c1_225 = arith.constant 1 : index
    %c0_226 = arith.constant 0 : index
    %c0_227 = arith.constant 0 : index
    %163 = vector.load %arg13[%c0_224, %c1_225, %c0_226, %c0_227] : memref<2x10x10x32xf32, #tpu.memory_space<vmem>>, vector<2x8x8x32xf32>
    %164 = vector.shape_cast %163 : vector<2x8x8x32xf32> to vector<128x32xf32>
    %165 = arith.truncf %164 : vector<128x32xf32> to vector<128x32xbf16>
    %c0_228 = arith.constant 0 : index
    %c96_229 = arith.constant 96 : index
    %166 = vector.load %arg15[%c0_228, %c96_229] : memref<128x288xbf16, #tpu.memory_space<vmem>>, vector<128x32xbf16>
    tpu.vector_store %arg15[%c0_228, %c96_229], %165 {strides = array<i32>} : memref<128x288xbf16, #tpu.memory_space<vmem>>, vector<128x32xbf16>,
    %c0_230 = arith.constant 0 : index
    %c1_231 = arith.constant 1 : index
    %c1_232 = arith.constant 1 : index
    %c0_233 = arith.constant 0 : index
    %167 = vector.load %arg13[%c0_230, %c1_231, %c1_232, %c0_233] : memref<2x10x10x32xf32, #tpu.memory_space<vmem>>, vector<2x8x8x32xf32>
    %168 = vector.shape_cast %167 : vector<2x8x8x32xf32> to vector<128x32xf32>
    %169 = arith.truncf %168 : vector<128x32xf32> to vector<128x32xbf16>
    %c0_234 = arith.constant 0 : index
    %c128_235 = arith.constant 128 : index
    %170 = vector.load %arg15[%c0_234, %c128_235] : memref<128x288xbf16, #tpu.memory_space<vmem>>, vector<128x32xbf16>
    tpu.vector_store %arg15[%c0_234, %c128_235], %169 {strides = array<i32>} : memref<128x288xbf16, #tpu.memory_space<vmem>>, vector<128x32xbf16>,
    %c0_236 = arith.constant 0 : index
    %c1_237 = arith.constant 1 : index
    %c2_238 = arith.constant 2 : index
    %c0_239 = arith.constant 0 : index
    %171 = vector.load %arg13[%c0_236, %c1_237, %c2_238, %c0_239] : memref<2x10x10x32xf32, #tpu.memory_space<vmem>>, vector<2x8x8x32xf32>
    %172 = vector.shape_cast %171 : vector<2x8x8x32xf32> to vector<128x32xf32>
    %173 = arith.truncf %172 : vector<128x32xf32> to vector<128x32xbf16>
    %c0_240 = arith.constant 0 : index
    %c160_241 = arith.constant 160 : index
    %174 = vector.load %arg15[%c0_240, %c160_241] : memref<128x288xbf16, #tpu.memory_space<vmem>>, vector<128x32xbf16>
    tpu.vector_store %arg15[%c0_240, %c160_241], %173 {strides = array<i32>} : memref<128x288xbf16, #tpu.memory_space<vmem>>, vector<128x32xbf16>,
    %c0_242 = arith.constant 0 : index
    %c2_243 = arith.constant 2 : index
    %c0_244 = arith.constant 0 : index
    %c0_245 = arith.constant 0 : index
    %175 = vector.load %arg13[%c0_242, %c2_243, %c0_244, %c0_245] : memref<2x10x10x32xf32, #tpu.memory_space<vmem>>, vector<2x8x8x32xf32>
    %176 = vector.shape_cast %175 : vector<2x8x8x32xf32> to vector<128x32xf32>
    %177 = arith.truncf %176 : vector<128x32xf32> to vector<128x32xbf16>
    %c0_246 = arith.constant 0 : index
    %c192_247 = arith.constant 192 : index
    %178 = vector.load %arg15[%c0_246, %c192_247] : memref<128x288xbf16, #tpu.memory_space<vmem>>, vector<128x32xbf16>
    tpu.vector_store %arg15[%c0_246, %c192_247], %177 {strides = array<i32>} : memref<128x288xbf16, #tpu.memory_space<vmem>>, vector<128x32xbf16>,
    %c0_248 = arith.constant 0 : index
    %c2_249 = arith.constant 2 : index
    %c1_250 = arith.constant 1 : index
    %c0_251 = arith.constant 0 : index
    %179 = vector.load %arg13[%c0_248, %c2_249, %c1_250, %c0_251] : memref<2x10x10x32xf32, #tpu.memory_space<vmem>>, vector<2x8x8x32xf32>
    %180 = vector.shape_cast %179 : vector<2x8x8x32xf32> to vector<128x32xf32>
    %181 = arith.truncf %180 : vector<128x32xf32> to vector<128x32xbf16>
    %c0_252 = arith.constant 0 : index
    %c224_253 = arith.constant 224 : index
    %182 = vector.load %arg15[%c0_252, %c224_253] : memref<128x288xbf16, #tpu.memory_space<vmem>>, vector<128x32xbf16>
    tpu.vector_store %arg15[%c0_252, %c224_253], %181 {strides = array<i32>} : memref<128x288xbf16, #tpu.memory_space<vmem>>, vector<128x32xbf16>,
    %c0_254 = arith.constant 0 : index
    %c2_255 = arith.constant 2 : index
    %c2_256 = arith.constant 2 : index
    %c0_257 = arith.constant 0 : index
    %183 = vector.load %arg13[%c0_254, %c2_255, %c2_256, %c0_257] : memref<2x10x10x32xf32, #tpu.memory_space<vmem>>, vector<2x8x8x32xf32>
    %184 = vector.shape_cast %183 : vector<2x8x8x32xf32> to vector<128x32xf32>
    %185 = arith.truncf %184 : vector<128x32xf32> to vector<128x32xbf16>
    %c0_258 = arith.constant 0 : index
    %c256_259 = arith.constant 256 : index
    %186 = vector.load %arg15[%c0_258, %c256_259] : memref<128x288xbf16, #tpu.memory_space<vmem>>, vector<128x32xbf16>
    tpu.vector_store %arg15[%c0_258, %c256_259], %185 {strides = array<i32>} : memref<128x288xbf16, #tpu.memory_space<vmem>>, vector<128x32xbf16>,
    %c0_260 = arith.constant 0 : index
    %c0_261 = arith.constant 0 : index
    %187 = vector.load %arg15[%c0_260, %c0_261] : memref<128x288xbf16, #tpu.memory_space<vmem>>, vector<128x288xbf16>
    %c3 = arith.constant 3 : index
    %c0_262 = arith.constant 0 : index
    %c0_263 = arith.constant 0 : index
    %188 = vector.load %arg1[%c3, %c0_262, %c0_263] : memref<5x288x32xbf16, #tpu.memory_space<vmem>>, vector<1x288x32xbf16>
    %189 = vector.shape_cast %188 : vector<1x288x32xbf16> to vector<288x32xbf16>
    %cst_264 = arith.constant dense<0.000000e+00> : vector<128x32xf32>
    %190 = tpu.matmul %187, %189, %cst_264 {dimension_numbers = #tpu.dot_dimension_numbers<[1], [0], [0], [1], [0, 0, 1, 1], [], []>} : vector<128x288xbf16>, vector<288x32xbf16>, vector<128x32xf32> -> vector<128x32xf32>
    %c3_265 = arith.constant 3 : index
    %c0_266 = arith.constant 0 : index
    %c0_267 = arith.constant 0 : index
    %191 = vector.load %arg2[%c3_265, %c0_266, %c0_267] : memref<5x1x32xf32, #tpu.memory_space<vmem>>, vector<1x1x32xf32>
    %192 = vector.shape_cast %191 : vector<1x1x32xf32> to vector<1x32xf32>
    %193 = vector.broadcast %192 : vector<1x32xf32> to vector<128x32xf32>
    %194 = arith.addf %190, %193 : vector<128x32xf32>
    %cst_268 = arith.constant 0.000000e+00 : f32
    %195 = vector.broadcast %cst_268 : f32 to vector<128x32xf32>
    %196 = arith.maximumf %194, %195 : vector<128x32xf32>
    %197 = vector.shape_cast %196 : vector<128x32xf32> to vector<2x8x8x32xf32>
    %c0_269 = arith.constant 0 : index
    %c1_270 = arith.constant 1 : index
    %c1_271 = arith.constant 1 : index
    %c0_272 = arith.constant 0 : index
    %198 = vector.load %arg14[%c0_269, %c1_270, %c1_271, %c0_272] : memref<2x10x10x32xf32, #tpu.memory_space<vmem>>, vector<2x8x8x32xf32>
    tpu.vector_store %arg14[%c0_269, %c1_270, %c1_271, %c0_272], %197 {strides = array<i32>} : memref<2x10x10x32xf32, #tpu.memory_space<vmem>>, vector<2x8x8x32xf32>,
    %c0_273 = arith.constant 0 : index
    %c1_274 = arith.constant 1 : index
    %c1_275 = arith.constant 1 : index
    %c0_276 = arith.constant 0 : index
    %199 = vector.load %arg13[%c0_273, %c1_274, %c1_275, %c0_276] : memref<2x10x10x32xf32, #tpu.memory_space<vmem>>, vector<2x8x8x32xf32>
    %200 = vector.shape_cast %199 : vector<2x8x8x32xf32> to vector<128x32xf32>
    %c0_277 = arith.constant 0 : index
    %c0_278 = arith.constant 0 : index
    %c0_279 = arith.constant 0 : index
    %c0_280 = arith.constant 0 : index
    %201 = vector.load %arg14[%c0_277, %c0_278, %c0_279, %c0_280] : memref<2x10x10x32xf32, #tpu.memory_space<vmem>>, vector<2x8x8x32xf32>
    %202 = vector.shape_cast %201 : vector<2x8x8x32xf32> to vector<128x32xf32>
    %203 = arith.truncf %202 : vector<128x32xf32> to vector<128x32xbf16>
    %c0_281 = arith.constant 0 : index
    %c0_282 = arith.constant 0 : index
    %204 = vector.load %arg15[%c0_281, %c0_282] : memref<128x288xbf16, #tpu.memory_space<vmem>>, vector<128x32xbf16>
    tpu.vector_store %arg15[%c0_281, %c0_282], %203 {strides = array<i32>} : memref<128x288xbf16, #tpu.memory_space<vmem>>, vector<128x32xbf16>,
    %c0_283 = arith.constant 0 : index
    %c0_284 = arith.constant 0 : index
    %c1_285 = arith.constant 1 : index
    %c0_286 = arith.constant 0 : index
    %205 = vector.load %arg14[%c0_283, %c0_284, %c1_285, %c0_286] : memref<2x10x10x32xf32, #tpu.memory_space<vmem>>, vector<2x8x8x32xf32>
    %206 = vector.shape_cast %205 : vector<2x8x8x32xf32> to vector<128x32xf32>
    %207 = arith.truncf %206 : vector<128x32xf32> to vector<128x32xbf16>
    %c0_287 = arith.constant 0 : index
    %c32_288 = arith.constant 32 : index
    %208 = vector.load %arg15[%c0_287, %c32_288] : memref<128x288xbf16, #tpu.memory_space<vmem>>, vector<128x32xbf16>
    tpu.vector_store %arg15[%c0_287, %c32_288], %207 {strides = array<i32>} : memref<128x288xbf16, #tpu.memory_space<vmem>>, vector<128x32xbf16>,
    %c0_289 = arith.constant 0 : index
    %c0_290 = arith.constant 0 : index
    %c2_291 = arith.constant 2 : index
    %c0_292 = arith.constant 0 : index
    %209 = vector.load %arg14[%c0_289, %c0_290, %c2_291, %c0_292] : memref<2x10x10x32xf32, #tpu.memory_space<vmem>>, vector<2x8x8x32xf32>
    %210 = vector.shape_cast %209 : vector<2x8x8x32xf32> to vector<128x32xf32>
    %211 = arith.truncf %210 : vector<128x32xf32> to vector<128x32xbf16>
    %c0_293 = arith.constant 0 : index
    %c64_294 = arith.constant 64 : index
    %212 = vector.load %arg15[%c0_293, %c64_294] : memref<128x288xbf16, #tpu.memory_space<vmem>>, vector<128x32xbf16>
    tpu.vector_store %arg15[%c0_293, %c64_294], %211 {strides = array<i32>} : memref<128x288xbf16, #tpu.memory_space<vmem>>, vector<128x32xbf16>,
    %c0_295 = arith.constant 0 : index
    %c1_296 = arith.constant 1 : index
    %c0_297 = arith.constant 0 : index
    %c0_298 = arith.constant 0 : index
    %213 = vector.load %arg14[%c0_295, %c1_296, %c0_297, %c0_298] : memref<2x10x10x32xf32, #tpu.memory_space<vmem>>, vector<2x8x8x32xf32>
    %214 = vector.shape_cast %213 : vector<2x8x8x32xf32> to vector<128x32xf32>
    %215 = arith.truncf %214 : vector<128x32xf32> to vector<128x32xbf16>
    %c0_299 = arith.constant 0 : index
    %c96_300 = arith.constant 96 : index
    %216 = vector.load %arg15[%c0_299, %c96_300] : memref<128x288xbf16, #tpu.memory_space<vmem>>, vector<128x32xbf16>
    tpu.vector_store %arg15[%c0_299, %c96_300], %215 {strides = array<i32>} : memref<128x288xbf16, #tpu.memory_space<vmem>>, vector<128x32xbf16>,
    %c0_301 = arith.constant 0 : index
    %c1_302 = arith.constant 1 : index
    %c1_303 = arith.constant 1 : index
    %c0_304 = arith.constant 0 : index
    %217 = vector.load %arg14[%c0_301, %c1_302, %c1_303, %c0_304] : memref<2x10x10x32xf32, #tpu.memory_space<vmem>>, vector<2x8x8x32xf32>
    %218 = vector.shape_cast %217 : vector<2x8x8x32xf32> to vector<128x32xf32>
    %219 = arith.truncf %218 : vector<128x32xf32> to vector<128x32xbf16>
    %c0_305 = arith.constant 0 : index
    %c128_306 = arith.constant 128 : index
    %220 = vector.load %arg15[%c0_305, %c128_306] : memref<128x288xbf16, #tpu.memory_space<vmem>>, vector<128x32xbf16>
    tpu.vector_store %arg15[%c0_305, %c128_306], %219 {strides = array<i32>} : memref<128x288xbf16, #tpu.memory_space<vmem>>, vector<128x32xbf16>,
    %c0_307 = arith.constant 0 : index
    %c1_308 = arith.constant 1 : index
    %c2_309 = arith.constant 2 : index
    %c0_310 = arith.constant 0 : index
    %221 = vector.load %arg14[%c0_307, %c1_308, %c2_309, %c0_310] : memref<2x10x10x32xf32, #tpu.memory_space<vmem>>, vector<2x8x8x32xf32>
    %222 = vector.shape_cast %221 : vector<2x8x8x32xf32> to vector<128x32xf32>
    %223 = arith.truncf %222 : vector<128x32xf32> to vector<128x32xbf16>
    %c0_311 = arith.constant 0 : index
    %c160_312 = arith.constant 160 : index
    %224 = vector.load %arg15[%c0_311, %c160_312] : memref<128x288xbf16, #tpu.memory_space<vmem>>, vector<128x32xbf16>
    tpu.vector_store %arg15[%c0_311, %c160_312], %223 {strides = array<i32>} : memref<128x288xbf16, #tpu.memory_space<vmem>>, vector<128x32xbf16>,
    %c0_313 = arith.constant 0 : index
    %c2_314 = arith.constant 2 : index
    %c0_315 = arith.constant 0 : index
    %c0_316 = arith.constant 0 : index
    %225 = vector.load %arg14[%c0_313, %c2_314, %c0_315, %c0_316] : memref<2x10x10x32xf32, #tpu.memory_space<vmem>>, vector<2x8x8x32xf32>
    %226 = vector.shape_cast %225 : vector<2x8x8x32xf32> to vector<128x32xf32>
    %227 = arith.truncf %226 : vector<128x32xf32> to vector<128x32xbf16>
    %c0_317 = arith.constant 0 : index
    %c192_318 = arith.constant 192 : index
    %228 = vector.load %arg15[%c0_317, %c192_318] : memref<128x288xbf16, #tpu.memory_space<vmem>>, vector<128x32xbf16>
    tpu.vector_store %arg15[%c0_317, %c192_318], %227 {strides = array<i32>} : memref<128x288xbf16, #tpu.memory_space<vmem>>, vector<128x32xbf16>,
    %c0_319 = arith.constant 0 : index
    %c2_320 = arith.constant 2 : index
    %c1_321 = arith.constant 1 : index
    %c0_322 = arith.constant 0 : index
    %229 = vector.load %arg14[%c0_319, %c2_320, %c1_321, %c0_322] : memref<2x10x10x32xf32, #tpu.memory_space<vmem>>, vector<2x8x8x32xf32>
    %230 = vector.shape_cast %229 : vector<2x8x8x32xf32> to vector<128x32xf32>
    %231 = arith.truncf %230 : vector<128x32xf32> to vector<128x32xbf16>
    %c0_323 = arith.constant 0 : index
    %c224_324 = arith.constant 224 : index
    %232 = vector.load %arg15[%c0_323, %c224_324] : memref<128x288xbf16, #tpu.memory_space<vmem>>, vector<128x32xbf16>
    tpu.vector_store %arg15[%c0_323, %c224_324], %231 {strides = array<i32>} : memref<128x288xbf16, #tpu.memory_space<vmem>>, vector<128x32xbf16>,
    %c0_325 = arith.constant 0 : index
    %c2_326 = arith.constant 2 : index
    %c2_327 = arith.constant 2 : index
    %c0_328 = arith.constant 0 : index
    %233 = vector.load %arg14[%c0_325, %c2_326, %c2_327, %c0_328] : memref<2x10x10x32xf32, #tpu.memory_space<vmem>>, vector<2x8x8x32xf32>
    %234 = vector.shape_cast %233 : vector<2x8x8x32xf32> to vector<128x32xf32>
    %235 = arith.truncf %234 : vector<128x32xf32> to vector<128x32xbf16>
    %c0_329 = arith.constant 0 : index
    %c256_330 = arith.constant 256 : index
    %236 = vector.load %arg15[%c0_329, %c256_330] : memref<128x288xbf16, #tpu.memory_space<vmem>>, vector<128x32xbf16>
    tpu.vector_store %arg15[%c0_329, %c256_330], %235 {strides = array<i32>} : memref<128x288xbf16, #tpu.memory_space<vmem>>, vector<128x32xbf16>,
    %c0_331 = arith.constant 0 : index
    %c0_332 = arith.constant 0 : index
    %237 = vector.load %arg15[%c0_331, %c0_332] : memref<128x288xbf16, #tpu.memory_space<vmem>>, vector<128x288xbf16>
    %c4 = arith.constant 4 : index
    %c0_333 = arith.constant 0 : index
    %c0_334 = arith.constant 0 : index
    %238 = vector.load %arg1[%c4, %c0_333, %c0_334] : memref<5x288x32xbf16, #tpu.memory_space<vmem>>, vector<1x288x32xbf16>
    %239 = vector.shape_cast %238 : vector<1x288x32xbf16> to vector<288x32xbf16>
    %cst_335 = arith.constant dense<0.000000e+00> : vector<128x32xf32>
    %240 = tpu.matmul %237, %239, %cst_335 {dimension_numbers = #tpu.dot_dimension_numbers<[1], [0], [0], [1], [0, 0, 1, 1], [], []>} : vector<128x288xbf16>, vector<288x32xbf16>, vector<128x32xf32> -> vector<128x32xf32>
    %c4_336 = arith.constant 4 : index
    %c0_337 = arith.constant 0 : index
    %c0_338 = arith.constant 0 : index
    %241 = vector.load %arg2[%c4_336, %c0_337, %c0_338] : memref<5x1x32xf32, #tpu.memory_space<vmem>>, vector<1x1x32xf32>
    %242 = vector.shape_cast %241 : vector<1x1x32xf32> to vector<1x32xf32>
    %243 = vector.broadcast %242 : vector<1x32xf32> to vector<128x32xf32>
    %244 = arith.addf %240, %243 : vector<128x32xf32>
    %245 = arith.addf %244, %200 : vector<128x32xf32>
    %cst_339 = arith.constant 0.000000e+00 : f32
    %246 = vector.broadcast %cst_339 : f32 to vector<128x32xf32>
    %247 = arith.maximumf %245, %246 : vector<128x32xf32>
    %248 = arith.truncf %247 : vector<128x32xf32> to vector<128x32xbf16>
    %c0_340 = arith.constant 0 : index
    %c0_341 = arith.constant 0 : index
    %249 = vector.load %arg3[%c0_340, %c0_341] : memref<32x3xbf16, #tpu.memory_space<vmem>>, vector<32x3xbf16>
    %cst_342 = arith.constant dense<0.000000e+00> : vector<128x3xf32>
    %250 = tpu.matmul %248, %249, %cst_342 {dimension_numbers = #tpu.dot_dimension_numbers<[1], [0], [0], [1], [0, 0, 1, 1], [], []>} : vector<128x32xbf16>, vector<32x3xbf16>, vector<128x3xf32> -> vector<128x3xf32>
    %c0_343 = arith.constant 0 : index
    %c0_344 = arith.constant 0 : index
    %251 = vector.load %arg4[%c0_343, %c0_344] : memref<1x3xf32, #tpu.memory_space<vmem>>, vector<1x3xf32>
    %252 = vector.broadcast %251 : vector<1x3xf32> to vector<128x3xf32>
    %253 = arith.addf %250, %252 : vector<128x3xf32>
    %cst_345 = arith.constant 0.000000e+00 : f32
    %254 = vector.broadcast %cst_345 : f32 to vector<128x3xf32>
    %255 = arith.maximumf %253, %254 : vector<128x3xf32>
    %c0_346 = arith.constant 0 : index
    %c0_347 = arith.constant 0 : index
    %256 = vector.load %arg5[%c0_346, %c0_347] : memref<64x64xbf16, #tpu.memory_space<vmem>>, vector<64x64xbf16>
    %c0_348 = arith.constant 0 : index
    %c0_349 = arith.constant 0 : index
    %257 = vector.load %arg8[%c0_348, %c0_349] : memref<16x32xf32, #tpu.memory_space<vmem>>, vector<16x32xf32>
    %c0_350 = arith.constant 0 : index
    %c0_351 = arith.constant 0 : index
    %258 = vector.load %arg10[%c0_350, %c0_351] : memref<1x16xf32, #tpu.memory_space<vmem>>, vector<1x16xf32>
    %259 = vector.extract_strided_slice %255 {offsets = [0, 0], sizes = [64, 3], strides = [1, 1]} : vector<128x3xf32> to vector<64x3xf32>
    %260 = arith.truncf %259 : vector<64x3xf32> to vector<64x3xbf16>
    %cst_352 = arith.constant dense<0.000000e+00> : vector<64x3xf32>
    %261 = tpu.matmul %256, %260, %cst_352 {dimension_numbers = #tpu.dot_dimension_numbers<[1], [0], [0], [1], [0, 0, 1, 1], [], []>} : vector<64x64xbf16>, vector<64x3xbf16>, vector<64x3xf32> -> vector<64x3xf32>
    %262 = vector.extract_strided_slice %261 {offsets = [0, 0], sizes = [16, 1], strides = [1, 1]} : vector<64x3xf32> to vector<16x1xf32>
    %263 = vector.extract_strided_slice %261 {offsets = [16, 1], sizes = [16, 1], strides = [1, 1]} : vector<64x3xf32> to vector<16x1xf32>
    %264 = arith.addf %262, %263 : vector<16x1xf32>
    %c0_353 = arith.constant 0 : index
    %c0_354 = arith.constant 0 : index
    %265 = vector.load %arg6[%c0_353, %c0_354] : memref<16x1xf32, #tpu.memory_space<vmem>>, vector<16x1xf32>
    %266 = arith.addf %264, %265 : vector<16x1xf32>
    %267 = vector.extract_strided_slice %261 {offsets = [32, 2], sizes = [32, 1], strides = [1, 1]} : vector<64x3xf32> to vector<32x1xf32>
    %c0_355 = arith.constant 0 : index
    %c0_356 = arith.constant 0 : index
    %268 = vector.load %arg7[%c0_355, %c0_356] : memref<32x1xf32, #tpu.memory_space<vmem>>, vector<32x1xf32>
    %269 = arith.addf %267, %268 : vector<32x1xf32>
    %cst_357 = arith.constant 0.000000e+00 : f32
    %270 = vector.broadcast %cst_357 : f32 to vector<32x1xf32>
    %271 = arith.maximumf %269, %270 : vector<32x1xf32>
    %cst_358 = arith.constant dense<0.000000e+00> : vector<16x1xf32>
    %272 = tpu.matmul %257, %271, %cst_358 {dimension_numbers = #tpu.dot_dimension_numbers<[1], [0], [0], [1], [0, 0, 1, 1], [], []>} : vector<16x32xf32>, vector<32x1xf32>, vector<16x1xf32> -> vector<16x1xf32>
    %c0_359 = arith.constant 0 : index
    %c0_360 = arith.constant 0 : index
    %273 = vector.load %arg9[%c0_359, %c0_360] : memref<16x1xf32, #tpu.memory_space<vmem>>, vector<16x1xf32>
    %274 = arith.addf %272, %273 : vector<16x1xf32>
    %cst_361 = arith.constant 0.000000e+00 : f32
    %275 = vector.broadcast %cst_361 : f32 to vector<16x1xf32>
    %276 = arith.maximumf %274, %275 : vector<16x1xf32>
    %cst_362 = arith.constant dense<0.000000e+00> : vector<1x1xf32>
    %277 = tpu.matmul %258, %276, %cst_362 {dimension_numbers = #tpu.dot_dimension_numbers<[1], [0], [0], [1], [0, 0, 1, 1], [], []>} : vector<1x16xf32>, vector<16x1xf32>, vector<1x1xf32> -> vector<1x1xf32>
    %c0_363 = arith.constant 0 : index
    %c0_364 = arith.constant 0 : index
    %278 = vector.load %arg11[%c0_363, %c0_364] : memref<1x1xf32, #tpu.memory_space<vmem>>, vector<1x1xf32>
    %279 = arith.addf %277, %278 : vector<1x1xf32>
    %280 = math.tanh %279 : vector<1x1xf32>
    %c0_365 = arith.constant 0 : index
    %c0_366 = arith.constant 0 : index
    %281 = vector.load %arg12[%c0_365, %c0_366] : memref<17x2xf32, #tpu.memory_space<vmem>>, vector<16x1xf32>
    tpu.vector_store %arg12[%c0_365, %c0_366], %266 {strides = array<i32>} : memref<17x2xf32, #tpu.memory_space<vmem>>, vector<16x1xf32>,
    %c16 = arith.constant 16 : index
    %c0_367 = arith.constant 0 : index
    %282 = vector.load %arg12[%c16, %c0_367] : memref<17x2xf32, #tpu.memory_space<vmem>>, vector<1x1xf32>
    tpu.vector_store %arg12[%c16, %c0_367], %280 {strides = array<i32>} : memref<17x2xf32, #tpu.memory_space<vmem>>, vector<1x1xf32>,
    %283 = vector.extract_strided_slice %255 {offsets = [64, 0], sizes = [64, 3], strides = [1, 1]} : vector<128x3xf32> to vector<64x3xf32>
    %284 = arith.truncf %283 : vector<64x3xf32> to vector<64x3xbf16>
    %cst_368 = arith.constant dense<0.000000e+00> : vector<64x3xf32>
    %285 = tpu.matmul %256, %284, %cst_368 {dimension_numbers = #tpu.dot_dimension_numbers<[1], [0], [0], [1], [0, 0, 1, 1], [], []>} : vector<64x64xbf16>, vector<64x3xbf16>, vector<64x3xf32> -> vector<64x3xf32>
    %286 = vector.extract_strided_slice %285 {offsets = [0, 0], sizes = [16, 1], strides = [1, 1]} : vector<64x3xf32> to vector<16x1xf32>
    %287 = vector.extract_strided_slice %285 {offsets = [16, 1], sizes = [16, 1], strides = [1, 1]} : vector<64x3xf32> to vector<16x1xf32>
    %288 = arith.addf %286, %287 : vector<16x1xf32>
    %c0_369 = arith.constant 0 : index
    %c0_370 = arith.constant 0 : index
    %289 = vector.load %arg6[%c0_369, %c0_370] : memref<16x1xf32, #tpu.memory_space<vmem>>, vector<16x1xf32>
    %290 = arith.addf %288, %289 : vector<16x1xf32>
    %291 = vector.extract_strided_slice %285 {offsets = [32, 2], sizes = [32, 1], strides = [1, 1]} : vector<64x3xf32> to vector<32x1xf32>
    %c0_371 = arith.constant 0 : index
    %c0_372 = arith.constant 0 : index
    %292 = vector.load %arg7[%c0_371, %c0_372] : memref<32x1xf32, #tpu.memory_space<vmem>>, vector<32x1xf32>
    %293 = arith.addf %291, %292 : vector<32x1xf32>
    %cst_373 = arith.constant 0.000000e+00 : f32
    %294 = vector.broadcast %cst_373 : f32 to vector<32x1xf32>
    %295 = arith.maximumf %293, %294 : vector<32x1xf32>
    %cst_374 = arith.constant dense<0.000000e+00> : vector<16x1xf32>
    %296 = tpu.matmul %257, %295, %cst_374 {dimension_numbers = #tpu.dot_dimension_numbers<[1], [0], [0], [1], [0, 0, 1, 1], [], []>} : vector<16x32xf32>, vector<32x1xf32>, vector<16x1xf32> -> vector<16x1xf32>
    %c0_375 = arith.constant 0 : index
    %c0_376 = arith.constant 0 : index
    %297 = vector.load %arg9[%c0_375, %c0_376] : memref<16x1xf32, #tpu.memory_space<vmem>>, vector<16x1xf32>
    %298 = arith.addf %296, %297 : vector<16x1xf32>
    %cst_377 = arith.constant 0.000000e+00 : f32
    %299 = vector.broadcast %cst_377 : f32 to vector<16x1xf32>
    %300 = arith.maximumf %298, %299 : vector<16x1xf32>
    %cst_378 = arith.constant dense<0.000000e+00> : vector<1x1xf32>
    %301 = tpu.matmul %258, %300, %cst_378 {dimension_numbers = #tpu.dot_dimension_numbers<[1], [0], [0], [1], [0, 0, 1, 1], [], []>} : vector<1x16xf32>, vector<16x1xf32>, vector<1x1xf32> -> vector<1x1xf32>
    %c0_379 = arith.constant 0 : index
    %c0_380 = arith.constant 0 : index
    %302 = vector.load %arg11[%c0_379, %c0_380] : memref<1x1xf32, #tpu.memory_space<vmem>>, vector<1x1xf32>
    %303 = arith.addf %301, %302 : vector<1x1xf32>
    %304 = math.tanh %303 : vector<1x1xf32>
    %c0_381 = arith.constant 0 : index
    %c1_382 = arith.constant 1 : index
    %305 = vector.load %arg12[%c0_381, %c1_382] : memref<17x2xf32, #tpu.memory_space<vmem>>, vector<16x1xf32>
    tpu.vector_store %arg12[%c0_381, %c1_382], %290 {strides = array<i32>} : memref<17x2xf32, #tpu.memory_space<vmem>>, vector<16x1xf32>,
    %c16_383 = arith.constant 16 : index
    %c1_384 = arith.constant 1 : index
    %306 = vector.load %arg12[%c16_383, %c1_384] : memref<17x2xf32, #tpu.memory_space<vmem>>, vector<1x1xf32>
    tpu.vector_store %arg12[%c16_383, %c1_384], %304 {strides = array<i32>} : memref<17x2xf32, #tpu.memory_space<vmem>>, vector<1x1xf32>,
    return
  }
}

</mosaic_0001>

<bundles_post_ra>
// kernel: net_forward_pallas.1
= control target key start
LH: loop header
LB: loop body
LE: loop exit
PB: predicated region body
PF: predicated region fallthrough
CT: control target
= control target key end

     0   :  { %vm206_vm0 = vcmask 257024   ;;  %s11798_s21 = smov 32   ;;  %vm44_vm1 = vcmask 261120   ;;  %v11799_v46 = vmov 0.0   ;;  %s11800_s19 = smov 64   ;;  %vm46_vm2 = vcmask 254976   ;;  %s14448_s0 = inlined_call_operand.vmem [shape: f32[2,10,10,32], index: 0, kind: input, shape index: {}]   ;;  %s14449_s1 = inlined_call_operand.vmem [shape: bf16[5,288,32], index: 1, kind: input, shape index: {}]   ;;  %s14450_s2 = inlined_call_operand.vmem [shape: f32[5,1,32], index: 2, kind: input, shape index: {}]   ;;  %s14451_s3 = inlined_call_operand.vmem [shape: bf16[32,3], index: 3, kind: input, shape index: {}]   ;;  %s14452_s5 = inlined_call_operand.vmem [shape: bf16[64,64], index: 5, kind: input, shape index: {}]   ;;  %s14453_s7 = inlined_call_operand.vmem [shape: f32[32,1], index: 7, kind: input, shape index: {}]   ;;  %s14454_s4 = inlined_call_operand.vmem [shape: f32[1,3], index: 4, kind: input, shape index: {}]   ;;  %s14455_s8 = inlined_call_operand.vmem [shape: f32[16,32], index: 8, kind: input, shape index: {}]   ;;  %s14456_s11 = inlined_call_operand.<no memory space> [shape: f32[1,1], index: 11, kind: input, shape index: {}]   ;;  %s14457_s6 = inlined_call_operand.vmem [shape: f32[16,1], index: 6, kind: input, shape index: {}]   ;;  %s14458_s12 = inlined_call_operand.vmem [shape: f32[17,2], index: 12, kind: output, shape index: {}]   ;;  %s14459_s9 = inlined_call_operand.vmem [shape: f32[16,1], index: 9, kind: input, shape index: {}]   ;;  %s14460_s10 = inlined_call_operand.vmem [shape: f32[1,16], index: 10, kind: input, shape index: {}]  }
   0x1   :  { %v9153_v0 = vld [vmem:[%s14448_s0 + $0x12] sm:$0xff]  ;;  %v223_v1 = vld [vmem:[%s14448_s0 + $0x1] sm:$0xff]  ;;  %45 = vst.msk [vmem:[#allocation2] sm:$0xff] %vm44_vm1, %v11799_v46  ;;  %48 = vst.msk [vmem:[#allocation2 + $0x10] sm:$0xff] %vm44_vm1, %v11799_v46  ;;  %s11801_s17 = smov 96   ;;  %vm335_vm3 = vcmask 519424  }
   0x2   :  { %v9154_v2 = vld [vmem:[%s14448_s0 + $0x22] sm:$0xff]  ;;  %v11881_v3 = vpack.c.bf16 %v9153_v0, %v9153_v0  ;;  %v10305_v4 = vpack.c.bf16 %v223_v1, %v223_v1  ;;  %v224_v6 = vld [vmem:[%s14448_s0 + $0x11] sm:$0xff]  ;;  %50 = vst.msk [vmem:[#allocation2 + $0x20] sm:$0xff] %vm44_vm1, %v11799_v46  ;;  %52 = vst.msk [vmem:[#allocation2 + $0x30] sm:$0xff] %vm44_vm1, %v11799_v46  ;;  %vm464_vm4 = vcmask 781824   ;;  %vm594_vm5 = vcmask 1044224  }
   0x3   :  { %v11883_v5 = vpack.c.bf16 %v9154_v2, %v9154_v2  ;;  %v11891_v7 = vld [vmem:[%s14448_s0 + $0x2] sm:$0xff]  ;;  %v9186_v8 = vld [vmem:[%s14448_s0 + $0x30] sm:$0xff]  ;;  %v10306_v9 = vpack.c.bf16 %v224_v6, %v224_v6  ;;  %54 = vst.msk [vmem:[#allocation2 + $0x40] sm:$0xff] %vm44_vm1, %v11799_v46  ;;  %56 = vst.msk [vmem:[#allocation2 + $0x50] sm:$0xff] %vm44_vm1, %v11799_v46  ;;  %vm8440_vm6 = vcmask 523264   ;;  %s11802_s26 = smov 2  }
   0x4   :  { %v11896_v10 = vpack.c.bf16 %v9186_v8, %v9186_v8  ;;  %v9185_v11 = vld [vmem:[%s14448_s0 + $0x20] sm:$0xff]  ;;  %v9089_v12 = vld [vmem:[%s14448_s0 + $0x10] sm:$0xff]  ;;  %771 = vrot.lane.b32.xlu1 %v11881_v3, %s11798_s21  ;;  %287 = vrot.lane.b32.xlu0 %v10305_v4, %s11798_s21  ;;  %v10321_v24 = vpack.c.bf16 %v11891_v7, %v11891_v7  ;;  %58 = vst.msk [vmem:[#allocation2 + $0x60] sm:$0xff] %vm44_vm1, %v11799_v46  ;;  %60 = vst.msk [vmem:[#allocation2 + $0x70] sm:$0xff] %vm44_vm1, %v11799_v46  ;;  %vm11805_vm7 = vmmov 0   ;;  %s11806_s27 = smov 1  }
   0x5   :  { %v9218_v13 = vld [vmem:[%s14448_s0 + $0x31] sm:$0xff]  ;;  %v11910_v14 = vpack.c.bf16 %v9185_v11, %v9185_v11  ;;  %v11912_v15 = vpack.c.bf16 %v9089_v12, %v9089_v12  ;;  %v9217_v17 = vld [vmem:[%s14448_s0 + $0x21] sm:$0xff]  ;;  %1172 = vst.msk [vmem:[#allocation4 + $0x8] sm:$0xf] %vm206_vm0, %v11883_v5  ;;  %691 = vst.msk [vmem:[#allocation4 + $0x4] sm:$0xf] %vm206_vm0, %v10306_v9 }
   0x6   :  { %v11914_v16 = vpack.c.bf16 %v9218_v13, %v9218_v13  ;;  %v9156_v18 = vld [vmem:[%s14448_s0 + $0x42] sm:$0xff]  ;;  %v11924_v19 = vpack.c.bf16 %v9217_v17, %v9217_v17  ;;  %v9155_v21 = vld [vmem:[%s14448_s0 + $0x32] sm:$0xff]  ;;  %210 = vst.msk [vmem:[#allocation4 + $0x24] sm:$0xf] %vm206_vm0, %v11896_v10  ;;  %vm8737_vm8 = vcmask 7168   ;;  %vm8662_vm9 = vcmask 130048  }
   0x7   :  { %v11926_v20 = vpack.c.bf16 %v9156_v18, %v9156_v18  ;;  %v9188_v22 = vld [vmem:[%s14448_s0 + $0x50] sm:$0xff]  ;;  %v9187_v23 = vld [vmem:[%s14448_s0 + $0x40] sm:$0xff]  ;;  %v11942_v25 = vpack.c.bf16 %v9155_v21, %v9155_v21  ;;  %208 = vst.msk [vmem:[#allocation4 + $0xc] sm:$0xf] %vm206_vm0, %v11912_v15  ;;  %209 = vst.msk [vmem:[#allocation4 + $0x18] sm:$0xf] %vm206_vm0, %v11910_v14 }
   0x8   :  { %v11944_v26 = vpack.c.bf16 %v9188_v22, %v9188_v22  ;;  %v11946_v27 = vpack.c.bf16 %v9187_v23, %v9187_v23  ;;  %v9220_v28 = vld [vmem:[%s14448_s0 + $0x51] sm:$0xff]  ;;  %v9219_v29 = vld [vmem:[%s14448_s0 + $0x41] sm:$0xff]  ;;  %693 = vst.msk [vmem:[#allocation4 + $0x1c] sm:$0xf] %vm206_vm0, %v11914_v16  ;;  %692 = vst.msk [vmem:[#allocation4 + $0x10] sm:$0xf] %vm206_vm0, %v11924_v19  ;;  %773 = vrot.lane.b32.xlu1 %v11883_v5, %s11798_s21  ;;  %289 = vrot.lane.b32.xlu0 %v10306_v9, %s11798_s21 }
   0x9   :  { %v9158_v30 = vld [vmem:[%s14448_s0 + $0x62] sm:$0xff]  ;;  %v11963_v31 = vpack.c.bf16 %v9220_v28, %v9220_v28  ;;  %v11965_v32 = vpack.c.bf16 %v9219_v29, %v9219_v29  ;;  %v9157_v34 = vld [vmem:[%s14448_s0 + $0x52] sm:$0xff]  ;;  %1174 = vst.msk [vmem:[#allocation4 + $0x20] sm:$0xf] %vm206_vm0, %v11926_v20  ;;  %1173 = vst.msk [vmem:[#allocation4 + $0x14] sm:$0xf] %vm206_vm0, %v11942_v25 }
   0xa   :  { %v11967_v33 = vpack.c.bf16 %v9158_v30, %v9158_v30  ;;  %v9190_v35 = vld [vmem:[%s14448_s0 + $0x70] sm:$0xff]  ;;  %v9189_v36 = vld [vmem:[%s14448_s0 + $0x60] sm:$0xff]  ;;  %v11985_v37 = vpack.c.bf16 %v9157_v34, %v9157_v34  ;;  %212 = vst.msk [vmem:[#allocation4 + $0x3c] sm:$0xf] %vm206_vm0, %v11944_v26  ;;  %211 = vst.msk [vmem:[#allocation4 + $0x30] sm:$0xf] %vm206_vm0, %v11946_v27 }
   0xb   :  { %v11987_v38 = vpack.c.bf16 %v9190_v35, %v9190_v35  ;;  %v11989_v39 = vpack.c.bf16 %v9189_v36, %v9189_v36  ;;  %v9222_v40 = vld [vmem:[%s14448_s0 + $0x71] sm:$0xff]  ;;  %v9221_v41 = vld [vmem:[%s14448_s0 + $0x61] sm:$0xff]  ;;  %62 = vst.msk [vmem:[#allocation2 + $0x80] sm:$0xff] %vm44_vm1, %v11799_v46  ;;  %64 = vst.msk [vmem:[#allocation2 + $0x90] sm:$0xff] %vm44_vm1, %v11799_v46  ;;  %vm9028_vm10 = vcmask 15368   ;;  %vm8740_vm11 = vcmask 0  }
   0xc   :  { %v12003_v42 = vpack.c.bf16 %v9222_v40, %v9222_v40  ;;  %v12005_v43 = vpack.c.bf16 %v9221_v41, %v9221_v41  ;;  %v9160_v44 = vld [vmem:[%s14448_s0 + $0x82] sm:$0xff]  ;;  %v9159_v45 = vld [vmem:[%s14448_s0 + $0x72] sm:$0xff]  ;;  %66 = vst.msk [vmem:[#allocation2 + $0xa0] sm:$0xff] %vm44_vm1, %v11799_v46  ;;  %68 = vst.msk [vmem:[#allocation2 + $0xb0] sm:$0xff] %vm44_vm1, %v11799_v46  ;;  %418 = vrot.lane.b32.xlu1 %v11881_v3, %s11800_s19  ;;  %416 = vrot.lane.b32.xlu0 %v10321_v24, %s11800_s19  ;;  %vm9035_vm12 = vcmask 8200  }
   0xd   :  { %70 = vst.msk [vmem:[#allocation2 + $0xc0] sm:$0xff] %vm44_vm1, %v11799_v46  ;;  %72 = vst.msk [vmem:[#allocation2 + $0xd0] sm:$0xff] %vm44_vm1, %v11799_v46  ;;  %v12099_v47 = vpack.c.bf16 %v9160_v44, %v9160_v44  ;;  %v12101_v48 = vpack.c.bf16 %v9159_v45, %v9159_v45  ;;  %v9223_v49 = vld [vmem:[%s14448_s0 + $0x81] sm:$0xff]  ;;  %v11620_v51 = vld [vmem:[%s14449_s1 + $0x78] sm:$0xff]  }
   0xe   :  { %74 = vst.msk [vmem:[#allocation2 + $0xe0] sm:$0xff] %vm44_vm1, %v11799_v46  ;;  %76 = vst.msk [vmem:[#allocation2 + $0xf0] sm:$0xff] %vm44_vm1, %v11799_v46  ;;  %v12112_v50 = vpack.c.bf16 %v9223_v49, %v9223_v49  ;;  %v126_v52 = vld [vmem:[%s14448_s0] sm:$0xff]  ;;  %11009 = vmatprep.subr.bf16.mxu0 %v11620_v51  ;;  %v11621_v54 = vld [vmem:[%s14449_s1 + $0x38] sm:$0xff]  }
   0xf   :  { %78 = vst.msk [vmem:[#allocation2 + $0x100] sm:$0xff] %vm44_vm1, %v11799_v46  ;;  %80 = vst.msk [vmem:[#allocation2 + $0x110] sm:$0xff] %vm44_vm1, %v11799_v46  ;;  %v10289_v53 = vpack.c.bf16 %v126_v52, %v126_v52  ;;  %11010 = vmatpush3.bf16.msra.mxu0 %v11621_v54  ;;  %v11622_v55 = vld [vmem:[%s14449_s1 + $0x70] sm:$0xff]   ;;  %v11624_v59 = vld [vmem:[%s14449_s1 + $0x68] sm:$0xff]  }
  0x10   :  { %82 = vst.msk [vmem:[#allocation2 + $0x120] sm:$0xff] %vm44_vm1, %v11799_v46  ;;  %84 = vst.msk [vmem:[#allocation2 + $0x130] sm:$0xff] %vm44_vm1, %v11799_v46  ;;  %902 = vrot.lane.b32.xlu1 %v11896_v10, %s11800_s19  ;;  %900 = vrot.lane.b32.xlu0 %v11910_v14, %s11800_s19  ;;  %v11623_v56 = vld [vmem:[%s14449_s1 + $0x30] sm:$0xff]   ;;  %v11625_v60 = vld [vmem:[%s14449_s1 + $0x28] sm:$0xff]  }
  0x11   :  { %86 = vst.msk [vmem:[#allocation3] sm:$0xff] %vm44_vm1, %v11799_v46  ;;  %88 = vst.msk [vmem:[#allocation3 + $0x10] sm:$0xff] %vm44_vm1, %v11799_v46  ;;  %v9097_v57 = vld [vmem:[%s14448_s0 + $0xb0] sm:$0xff]  ;;  %11011 = vmatprep.subr.bf16.mxu0 %v11622_v55  ;;  %v9225_v62 = vld [vmem:[%s14448_s0 + $0xc1] sm:$0xff] }
  0x12   :  { %90 = vst.msk [vmem:[#allocation3 + $0x20] sm:$0xff] %vm44_vm1, %v11799_v46  ;;  %92 = vst.msk [vmem:[#allocation3 + $0x30] sm:$0xff] %vm44_vm1, %v11799_v46  ;;  %v12153_v58 = vpack.c.bf16 %v9097_v57, %v9097_v57  ;;  %v9226_v61 = vld [vmem:[%s14448_s0 + $0xd1] sm:$0xff]  ;;  %v12175_v0 = vpack.c.bf16 %v9225_v62, %v9225_v62  ;;  %v11626_v1 = vld [vmem:[%s14449_s1 + $0x60] sm:$0xff]  }
  0x13   :  { %94 = vst.msk [vmem:[#allocation3 + $0x40] sm:$0xff] %vm44_vm1, %v11799_v46  ;;  %96 = vst.msk [vmem:[#allocation3 + $0x50] sm:$0xff] %vm44_vm1, %v11799_v46  ;;  %11012 = vmatpush3.bf16.msra.mxu0 %v11623_v56  ;;  %v12173_v63 = vpack.c.bf16 %v9226_v61, %v9226_v61  ;;  %v11627_v2 = vld [vmem:[%s14449_s1 + $0x20] sm:$0xff]   ;;  %v11638_v3 = vld [vmem:[#allocation4 + $0x8] ss:$12 sps:$4 sm:$0xff]  }
  0x14   :  { %98 = vst.msk [vmem:[#allocation3 + $0x60] sm:$0xff] %vm44_vm1, %v11799_v46  ;;  %100 = vst.msk [vmem:[#allocation3 + $0x70] sm:$0xff] %vm44_vm1, %v11799_v46  ;;  %548 = vrot.lane.b32.xlu1 %v11910_v14, %s11801_s17  ;;  %546 = vrot.lane.b32.xlu0 %v11912_v15, %s11801_s17  ;;  %v11628_v4 = vld [vmem:[%s14449_s1 + $0x58] sm:$0xff]   ;;  %v9164_v6 = vld [vmem:[%s14448_s0 + $0xe2] sm:$0xff] }
  0x15   :  { %102 = vst.msk [vmem:[#allocation3 + $0x80] sm:$0xff] %vm44_vm1, %v11799_v46  ;;  %104 = vst.msk [vmem:[#allocation3 + $0x90] sm:$0xff] %vm44_vm1, %v11799_v46  ;;  %11013 = vmatprep.subr.bf16.mxu0 %v11624_v59  ;;  %v9163_v7 = vld [vmem:[%s14448_s0 + $0xd2] sm:$0xff]  ;;  %11427 = vmatprep.mubr.msk.bf16.mxu1 %vm44_vm1, %v11638_v3  ;;  %v12201_v8 = vpack.c.bf16 %v9164_v6, %v9164_v6  ;;  %v9195_v14 = vld [vmem:[%s14448_s0 + $0xe0] sm:$0xff] }
  0x16   :  { %106 = vst.msk [vmem:[#allocation3 + $0xa0] sm:$0xff] %vm44_vm1, %v11799_v46  ;;  %108 = vst.msk [vmem:[#allocation3 + $0xb0] sm:$0xff] %vm44_vm1, %v11799_v46  ;;  %v12203_v9 = vpack.c.bf16 %v9163_v7, %v9163_v7  ;;  %v11629_v11 = vld [vmem:[%s14449_s1 + $0x18] sm:$0xff]   ;;  %v11630_v12 = vld [vmem:[%s14449_s1 + $0x50] sm:$0xff]   ;;  %v12234_v17 = vpack.c.bf16 %v9195_v14, %v9195_v14 }
  0x17   :  { %110 = vst.msk [vmem:[#allocation3 + $0xc0] sm:$0xff] %vm44_vm1, %v11799_v46  ;;  %112 = vst.msk [vmem:[#allocation3 + $0xd0] sm:$0xff] %vm44_vm1, %v11799_v46  ;;  %11014 = vmatpush3.bf16.msra.mxu0 %v11625_v60  ;;  %v9196_v13 = vld [vmem:[%s14448_s0 + $0xf0] sm:$0xff]  ;;  %v11635_v18 = vld [vmem:[%s14449_s1 + $0x88] sm:$0xff]  }
  0x18   :  { %114 = vst.msk [vmem:[#allocation3 + $0xe0] sm:$0xff] %vm44_vm1, %v11799_v46  ;;  %116 = vst.msk [vmem:[#allocation3 + $0xf0] sm:$0xff] %vm44_vm1, %v11799_v46  ;;  %1030 = vrot.lane.b32.xlu1 %v11914_v16, %s11801_s17  ;;  %1028 = vrot.lane.b32.xlu0 %v11924_v19, %s11801_s17  ;;  %v11631_v15 = vld [vmem:[%s14449_s1 + $0x10] sm:$0xff]   ;;  %v11633_v21 = vld [vmem:[%s14449_s1 + $0x8] sm:$0xff]  }
  0x19   :  { %118 = vst.msk [vmem:[#allocation3 + $0x100] sm:$0xff] %vm44_vm1, %v11799_v46  ;;  %120 = vst.msk [vmem:[#allocation3 + $0x110] sm:$0xff] %vm44_vm1, %v11799_v46  ;;  %11015 = vmatprep.subr.bf16.mxu0 %v11626_v1  ;;  %11423 = vmatprep.subr.bf16.mxu1 %v11635_v18  ;;  %v11637_v22 = vld [vmem:[%s14449_s1 + $0x80] sm:$0xff]   ;;  %v9228_v24 = vld [vmem:[%s14448_s0 + $0xf1] sm:$0xff] }
  0x1a   :  { %122 = vst.msk [vmem:[#allocation3 + $0x120] sm:$0xff] %vm44_vm1, %v11799_v46  ;;  %124 = vst.msk [vmem:[#allocation3 + $0x130] sm:$0xff] %vm44_vm1, %v11799_v46  ;;  %v11634_v23 = vld [vmem:[%s14449_s1 + $0x40] sm:$0xff]   ;;  %11424 = vmatpush3.bf16.msra.mxu1 %v11635_v18  ;;  %v12265_v29 = vpack.c.bf16 %v9228_v24, %v9228_v24  ;;  %v9165_v30 = vld [vmem:[%s14448_s0 + $0xf2] sm:$0xff] }
  0x1b   :  { %694 = vst.msk [vmem:[#allocation4 + $0x28] sm:$0xf] %vm206_vm0, %v11965_v32  ;;  %695 = vst.msk [vmem:[#allocation4 + $0x34] sm:$0xf] %vm206_vm0, %v11963_v31  ;;  %11016 = vmatpush3.bf16.msra.mxu0 %v11627_v2  ;;  %v9227_v28 = vld [vmem:[%s14448_s0 + $0xe1] sm:$0xff]  ;;  %v9198_v34 = vld [vmem:[%s14448_s0 + $0x110] sm:$0xff]  ;;  %11425 = vmatprep.subr.bf16.mxu1 %v11637_v22  ;;  %v12280_v36 = vpack.c.bf16 %v9165_v30, %v9165_v30 }
  0x1c   :  { %1176 = vst.msk [vmem:[#allocation4 + $0x38] sm:$0xf] %vm206_vm0, %v11967_v33  ;;  %1175 = vst.msk [vmem:[#allocation4 + $0x2c] sm:$0xf] %vm206_vm0, %v11985_v37  ;;  %293 = vrot.lane.b32.xlu1 %v11914_v16, %s11798_s21  ;;  %291 = vrot.lane.b32.xlu0 %v11924_v19, %s11798_s21  ;;  %v12232_v16 = vpack.c.bf16 %v9196_v13, %v9196_v13  ;;  %v11632_v19 = vld [vmem:[%s14449_s1 + $0x48] sm:$0xff]   ;;  %v12282_v40 = vpack.c.bf16 %v9198_v34, %v9198_v34  ;;  %v9197_v41 = vld [vmem:[%s14448_s0 + $0x100] sm:$0xff] }
  0x1d   :  { %214 = vst.msk [vmem:[#allocation4 + $0x54] sm:$0xf] %vm206_vm0, %v11987_v38  ;;  %213 = vst.msk [vmem:[#allocation4 + $0x48] sm:$0xf] %vm206_vm0, %v11989_v39  ;;  %11017 = vmatprep.subr.bf16.mxu0 %v11628_v4  ;;  %v11636_v44 = vld [vmem:[%s14449_s1] sm:$0xff]   ;;  %v12290_v45 = vpack.c.bf16 %v9197_v41, %v9197_v41  ;;  %v9230_v51 = vld [vmem:[%s14448_s0 + $0x111] sm:$0xff] }
  0x1e   :  { %696 = vst.msk [vmem:[#allocation4 + $0x40] sm:$0xf] %vm206_vm0, %v12005_v43  ;;  %697 = vst.msk [vmem:[#allocation4 + $0x4c] sm:$0xf] %vm206_vm0, %v12003_v42  ;;  %11426 = vmatpush3.bf16.msra.mxu1 %v11637_v22  ;;  %v9229_v52 = vld [vmem:[%s14448_s0 + $0x101] sm:$0xff]  ;;  %v9192_v60 = vld [vmem:[%s14448_s0 + $0x90] sm:$0xff] }
  0x1f   :  { %1177 = vst.msk [vmem:[#allocation4 + $0x44] sm:$0xf] %vm206_vm0, %v12101_v48  ;;  %1178 = vst.msk [vmem:[#allocation4 + $0x50] sm:$0xf] %vm206_vm0, %v12099_v47  ;;  %11018 = vmatpush3.bf16.msra.mxu0 %v11629_v11  ;;  %v12321_v54 = vpack.c.bf16 %v9229_v52, %v9229_v52  ;;  %v9191_v61 = vld [vmem:[%s14448_s0 + $0x80] sm:$0xff]  ;;  %v9224_v62 = vld [vmem:[%s14448_s0 + $0x91] sm:$0xff] }
  0x20   :  { %698 = vst.msk [vmem:[#allocation4 + $0x58] sm:$0xf] %vm206_vm0, %v12112_v50  ;;  %207 = vst.msk [vmem:[#allocation4] sm:$0xf] %vm206_vm0, %v10289_v53  ;;  %777 = vrot.lane.b32.xlu1 %v11926_v20, %s11798_s21  ;;  %775 = vrot.lane.b32.xlu0 %v11942_v25, %s11798_s21  ;;  %v12319_v53 = vpack.c.bf16 %v9230_v51, %v9230_v51  ;;  %v134_v1 = vld [vmem:[%s14448_s0 + $0xa0] sm:$0xff]  ;;  %v9129_v3 = vld [vmem:[%s14448_s0 + $0xb1] sm:$0xff] }
  0x21   :  { %216 = vst.msk [vmem:[#allocation4 + $0x6c] sm:$0xf] %vm206_vm0, %v12153_v58  ;;  %700 = vst.msk [vmem:[#allocation4 + $0x70] sm:$0xf] %vm206_vm0, %v12175_v0  ;;  %11019 = vmatprep.subr.bf16.mxu0 %v11630_v12  ;;  %v10297_v2 = vpack.c.bf16 %v134_v1, %v134_v1  ;;  %v9162_v4 = vld [vmem:[%s14448_s0 + $0xc2] sm:$0xff]  ;;  %v9161_v6 = vld [vmem:[%s14448_s0 + $0xb2] sm:$0xff]  ;;  %v10361_v7 = vpack.c.bf16 %v9129_v3, %v9129_v3 }
  0x22   :  { %701 = vst.msk [vmem:[#allocation4 + $0x7c] sm:$0xf] %vm206_vm0, %v12173_v63  ;;  %1181 = vst.msk [vmem:[#allocation4 + $0x74] sm:$0xf] %vm206_vm0, %v12203_v9  ;;  %v10378_v12 = vpack.c.bf16 %v9162_v4, %v9162_v4  ;;  %v10377_v13 = vpack.c.bf16 %v9161_v6, %v9161_v6  ;;  %v360_v14 = vld [vmem:[%s14448_s0 + $0xa2] sm:$0xff]  ;;  %v137_v22 = vld [vmem:[%s14448_s0 + $0xd0] sm:$0xff] }
  0x23   :  { %1182 = vst.msk [vmem:[#allocation4 + $0x80] sm:$0xf] %vm206_vm0, %v12201_v8  ;;  %220 = vst.msk [vmem:[#allocation4 + $0x9c] sm:$0xf] %vm206_vm0, %v12232_v16  ;;  %11020 = vmatpush3.bf16.msra.mxu0 %v11631_v15  ;;  %v11639_v49 = vld [vmem:[#allocation4 + $0x20] ss:$12 sps:$4 sm:$0xff]   ;;  %v10300_v24 = vpack.c.bf16 %v137_v22, %v137_v22 }
  0x24   :  { %219 = vst.msk [vmem:[#allocation4 + $0x90] sm:$0xf] %vm206_vm0, %v12234_v17  ;;  %422 = vrot.lane.b32.xlu1 %v11942_v25, %s11800_s19  ;;  %420 = vrot.lane.b32.xlu0 %v11883_v5, %s11800_s19  ;;  %v12267_v25 = vpack.c.bf16 %v9227_v28, %v9227_v28  ;;  %v9166_v5 = vld [vmem:[%s14448_s0 + $0x102] sm:$0xff]  ;;  %703 = vst.msk [vmem:[#allocation4 + $0x94] sm:$0xf] %vm206_vm0, %v12265_v29  ;;  %v9194_v15 = vld [vmem:[%s14448_s0 + $0xd0] sm:$0xff] }
  0x25   :  { %11021 = vmatprep.subr.bf16.mxu0 %v11632_v19  ;;  %v12278_v35 = vpack.c.bf16 %v9166_v5, %v9166_v5  ;;  %1183 = vst.msk [vmem:[#allocation4 + $0x8c] sm:$0xf] %vm206_vm0, %v12280_v36  ;;  %222 = vst.msk [vmem:[#allocation4 + $0xb4] sm:$0xf] %vm206_vm0, %v12282_v40  ;;  %11428 = vmatmul.mubr.msk.bf16.vlgmr.msra.gmra.mxu1 %vm44_vm1, %v11639_v49  ;;  %v9193_v18 = vld [vmem:[%s14448_s0 + $0xc0] sm:$0xff]  ;;  %v10394_v19 = vpack.c.bf16 %v9194_v15, %v9194_v15  ;;  %v9264_v3 = vld [vmem:[%s14448_s0 + $0x132] sm:$0xff] }
  0x26   :  { %702 = vst.msk [vmem:[#allocation4 + $0x88] sm:$0xf] %vm206_vm0, %v12267_v25  ;;  %221 = vst.msk [vmem:[#allocation4 + $0xa8] sm:$0xf] %vm206_vm0, %v12290_v45  ;;  %v11640_v57 = vld [vmem:[#allocation4 + $0x38] ss:$12 sps:$4 sm:$0xff]   ;;  %v10432_v6 = vpack.c.bf16 %v9264_v3, %v9264_v3 }
  0x27   :  { %1184 = vst.msk [vmem:[#allocation4 + $0x98] sm:$0xf] %vm206_vm0, %v12278_v35  ;;  %11022 = vmatpush3.bf16.msra.mxu0 %v11633_v21  ;;  %704 = vst.msk [vmem:[#allocation4 + $0xa0] sm:$0xf] %vm206_vm0, %v12321_v54  ;;  %11431 = vmatprep.mubr.msk.bf16.mxu1 %vm44_vm1, %v11640_v57  ;;  %v10393_v21 = vpack.c.bf16 %v9193_v18, %v9193_v18  ;;  %v9257_v41 = vld [vmem:[%s14448_s0 + $0xc2] sm:$0xff] }
  0x28   :  { %906 = vrot.lane.b32.xlu1 %v11944_v26, %s11800_s19  ;;  %904 = vrot.lane.b32.xlu0 %v11946_v27, %s11800_s19  ;;  %705 = vst.msk [vmem:[#allocation4 + $0xac] sm:$0xf] %vm206_vm0, %v12319_v53  ;;  %215 = vst.msk [vmem:[#allocation4 + $0x60] sm:$0xf] %vm206_vm0, %v10297_v2  ;;  %v10425_v51 = vpack.c.bf16 %v9257_v41, %v9257_v41  ;;  %v1742_v57 = vld [vmem:[#allocation2] sm:$0xff] }
  0x29   :  { %11023 = vmatprep.subr.bf16.mxu0 %v11634_v23  ;;  %65 = vst.msk [vmem:[#allocation2 + $0x98] sm:$0x3] %vm46_vm2, %v11799_v46  ;;  %47 = vst.msk [vmem:[#allocation2 + $0x8] sm:$0x3] %vm46_vm2, %v11799_v46  ;;  %v136_v23 = vld [vmem:[%s14448_s0 + $0xc0] sm:$0xff] }
  0x2a   :  { %49 = vst.msk [vmem:[#allocation2 + $0x18] sm:$0x3] %vm46_vm2, %v11799_v46  ;;  %51 = vst.msk [vmem:[#allocation2 + $0x28] sm:$0x3] %vm46_vm2, %v11799_v46  ;;  %v10299_v28 = vpack.c.bf16 %v136_v23, %v136_v23 }
  0x2b   :  { %11024 = vmatpush3.bf16.msra.mxu0 %v11636_v44  ;;  %53 = vst.msk [vmem:[#allocation2 + $0x38] sm:$0x3] %vm46_vm2, %v11799_v46  ;;  %55 = vst.msk [vmem:[#allocation2 + $0x48] sm:$0x3] %vm46_vm2, %v11799_v46 }
  0x2c   :  { %552 = vrot.lane.b32.xlu1 %v11946_v27, %s11801_s17  ;;  %550 = vrot.lane.b32.xlu0 %v11896_v10, %s11801_s17  ;;  %v9168_v10 = vld [vmem:[%s14448_s0 + $0x122] sm:$0xff]  ;;  %v9167_v27 = vld [vmem:[%s14448_s0 + $0x112] sm:$0xff]  ;;  %57 = vst.msk [vmem:[#allocation2 + $0x58] sm:$0x3] %vm46_vm2, %v11799_v46  ;;  %59 = vst.msk [vmem:[#allocation2 + $0x68] sm:$0x3] %vm46_vm2, %v11799_v46 }
  0x2d   :  { %v12341_v55 = vpack.c.bf16 %v9168_v10, %v9168_v10  ;;  %v12343_v56 = vpack.c.bf16 %v9167_v27, %v9167_v27  ;;  %61 = vst.msk [vmem:[#allocation2 + $0x78] sm:$0x3] %vm46_vm2, %v11799_v46  ;;  %63 = vst.msk [vmem:[#allocation2 + $0x88] sm:$0x3] %vm46_vm2, %v11799_v46  ;;  %v11643_v27 = vld [vmem:[#allocation4 + $0x80] ss:$12 sps:$4 sm:$0xff]  }
  0x2e   :  { %67 = vst.msk [vmem:[#allocation2 + $0xa8] sm:$0x3] %vm46_vm2, %v11799_v46  ;;  %69 = vst.msk [vmem:[#allocation2 + $0xb8] sm:$0x3] %vm46_vm2, %v11799_v46 }
  0x2f   :  { %1185 = vst.msk [vmem:[#allocation4 + $0xa4] sm:$0xf] %vm206_vm0, %v12343_v56  ;;  %1186 = vst.msk [vmem:[#allocation4 + $0xb0] sm:$0xf] %vm206_vm0, %v12341_v55 }
  0x30   :  { %1034 = vrot.lane.b32.xlu1 %v11963_v31, %s11801_s17  ;;  %1032 = vrot.lane.b32.xlu0 %v11965_v32, %s11801_s17  ;;  %71 = vst.msk [vmem:[#allocation2 + $0xc8] sm:$0x3] %vm46_vm2, %v11799_v46  ;;  %73 = vst.msk [vmem:[#allocation2 + $0xd8] sm:$0x3] %vm46_vm2, %v11799_v46 }
  0x31   :  { %75 = vst.msk [vmem:[#allocation2 + $0xe8] sm:$0x3] %vm46_vm2, %v11799_v46  ;;  %77 = vst.msk [vmem:[#allocation2 + $0xf8] sm:$0x3] %vm46_vm2, %v11799_v46 }
  0x32   :  { %79 = vst.msk [vmem:[#allocation2 + $0x108] sm:$0x3] %vm46_vm2, %v11799_v46  ;;  %81 = vst.msk [vmem:[#allocation2 + $0x118] sm:$0x3] %vm46_vm2, %v11799_v46 }
  0x33   :  { %83 = vst.msk [vmem:[#allocation2 + $0x128] sm:$0x3] %vm46_vm2, %v11799_v46  ;;  %85 = vst.msk [vmem:[#allocation2 + $0x138] sm:$0x3] %vm46_vm2, %v11799_v46 }
  0x34   :  { %297 = vrot.lane.b32.xlu1 %v11963_v31, %s11798_s21  ;;  %295 = vrot.lane.b32.xlu0 %v11965_v32, %s11798_s21  ;;  %v9256_v31 = vld [vmem:[%s14448_s0 + $0x92] sm:$0xff]  ;;  %87 = vst.msk [vmem:[#allocation3 + $0x8] sm:$0x3] %vm46_vm2, %v11799_v46  ;;  %89 = vst.msk [vmem:[#allocation3 + $0x18] sm:$0x3] %vm46_vm2, %v11799_v46 }
  0x35   :  { %v10424_v32 = vpack.c.bf16 %v9256_v31, %v9256_v31  ;;  %91 = vst.msk [vmem:[#allocation3 + $0x28] sm:$0x3] %vm46_vm2, %v11799_v46  ;;  %93 = vst.msk [vmem:[#allocation3 + $0x38] sm:$0x3] %vm46_vm2, %v11799_v46 }
  0x36   :  { %95 = vst.msk [vmem:[#allocation3 + $0x48] sm:$0x3] %vm46_vm2, %v11799_v46  ;;  %97 = vst.msk [vmem:[#allocation3 + $0x58] sm:$0x3] %vm46_vm2, %v11799_v46  ;;  %v11644_v4 = vld [vmem:[#allocation4 + $0x98] ss:$12 sps:$4 sm:$0xff]  }
  0x37   :  { %1179 = vst.msk [vmem:[#allocation4 + $0x5c] sm:$0xf] %vm206_vm0, %v10424_v32  ;;  %699 = vst.msk [vmem:[#allocation4 + $0x64] sm:$0xf] %vm206_vm0, %v10361_v7 }
  0x38   :  { %781 = vrot.lane.b32.xlu1 %v11967_v33, %s11798_s21  ;;  %779 = vrot.lane.b32.xlu0 %v11985_v37, %s11798_s21  ;;  %99 = vst.msk [vmem:[#allocation3 + $0x68] sm:$0x3] %vm46_vm2, %v11799_v46  ;;  %101 = vst.msk [vmem:[#allocation3 + $0x78] sm:$0x3] %vm46_vm2, %v11799_v46 }
  0x39   :  { %103 = vst.msk [vmem:[#allocation3 + $0x88] sm:$0x3] %vm46_vm2, %v11799_v46  ;;  %105 = vst.msk [vmem:[#allocation3 + $0x98] sm:$0x3] %vm46_vm2, %v11799_v46 }
  0x3a   :  { %107 = vst.msk [vmem:[#allocation3 + $0xa8] sm:$0x3] %vm46_vm2, %v11799_v46  ;;  %109 = vst.msk [vmem:[#allocation3 + $0xb8] sm:$0x3] %vm46_vm2, %v11799_v46 }
  0x3b   :  { %111 = vst.msk [vmem:[#allocation3 + $0xc8] sm:$0x3] %vm46_vm2, %v11799_v46  ;;  %113 = vst.msk [vmem:[#allocation3 + $0xd8] sm:$0x3] %vm46_vm2, %v11799_v46 }
  0x3c   :  { %426 = vrot.lane.b32.xlu1 %v11985_v37, %s11800_s19  ;;  %424 = vrot.lane.b32.xlu0 %v11926_v20, %s11800_s19  ;;  %115 = vst.msk [vmem:[#allocation3 + $0xe8] sm:$0x3] %vm46_vm2, %v11799_v46  ;;  %117 = vst.msk [vmem:[#allocation3 + $0xf8] sm:$0x3] %vm46_vm2, %v11799_v46  ;;  %v9231_v20 = vld [vmem:[%s14448_s0 + $0x121] sm:$0xff]  ;;  %v2710_v37 = vld [vmem:[#allocation2 + $0x92] sm:$0xff] }
  0x3d   :  { %119 = vst.msk [vmem:[#allocation3 + $0x108] sm:$0x3] %vm46_vm2, %v11799_v46  ;;  %121 = vst.msk [vmem:[#allocation3 + $0x118] sm:$0x3] %vm46_vm2, %v11799_v46 }
  0x3e   :  { %v11641_v59 = vld [vmem:[#allocation4 + $0x50] ss:$12 sps:$4 sm:$0xff]   ;;  %123 = vst.msk [vmem:[#allocation3 + $0x128] sm:$0x3] %vm46_vm2, %v11799_v46  ;;  %125 = vst.msk [vmem:[#allocation3 + $0x138] sm:$0x3] %vm46_vm2, %v11799_v46 }
  0x3f   :  { %11432 = vmatmul.mubr.msk.bf16.gmra.mxu1 %vm44_vm1, %v11641_v59  ;;  %218 = vst.msk [vmem:[#allocation4 + $0x84] sm:$0xf] %vm206_vm0, %v10300_v24  ;;  %217 = vst.msk [vmem:[#allocation4 + $0x78] sm:$0xf] %vm206_vm0, %v10299_v28  ;;  %v9232_v28 = vld [vmem:[%s14448_s0 + $0x131] sm:$0xff] }
  0x40   :  { %910 = vrot.lane.b32.xlu1 %v11987_v38, %s11800_s19  ;;  %908 = vrot.lane.b32.xlu0 %v11989_v39, %s11800_s19  ;;  %1180 = vst.msk [vmem:[#allocation4 + $0x68] sm:$0xf] %vm206_vm0, %v10425_v51  ;;  %1187 = vst.msk [vmem:[#allocation4 + $0xbc] sm:$0xf] %vm206_vm0, %v10432_v6 }
  0x44   :  { %556 = vrot.lane.b32.xlu1 %v11989_v39, %s11801_s17  ;;  %554 = vrot.lane.b32.xlu0 %v11944_v26, %s11801_s17  ;;  %v12454_v26 = vpack.c.bf16 %v9231_v20, %v9231_v20  ;;  %v10568_v39 = vpack.c.bf16 %v2710_v37, %v2710_v37  ;;  %v10433_v37 = vpack.c.bf16 %v1742_v57, %v1742_v57 }
  0x46   :  { %706 = vst.msk [vmem:[#allocation4 + $0xb8] sm:$0xf] %vm206_vm0, %v12454_v26  ;;  %2790 = vst.msk [vmem:[#allocation4 + $0x5c] sm:$0xf] %vm206_vm0, %v10568_v39 }
  0x47   :  { %v11642_v31 = vld [vmem:[#allocation4 + $0x68] ss:$12 sps:$4 sm:$0xff]   ;;  %v11645_v18 = vld [vmem:[#allocation4 + $0xb0] ss:$12 sps:$4 sm:$0xff]  }
  0x48   :  { %1038 = vrot.lane.b32.xlu1 %v12003_v42, %s11801_s17  ;;  %1036 = vrot.lane.b32.xlu0 %v12005_v43, %s11801_s17 }
  0x49   :  { %11435 = vmatprep.mubr.msk.bf16.mxu1 %vm44_vm1, %v11642_v31 }
  0x4a   :  { %11436 = vmatmul.mubr.msk.bf16.gmra.mxu1 %vm44_vm1, %v11643_v27 }
  0x4b   :  { %11439 = vmatprep.mubr.msk.bf16.mxu1 %vm44_vm1, %v11644_v4  ;;  %v1750_v4 = vld [vmem:[#allocation2 + $0xa0] sm:$0xff] }
  0x4c   :  { %301 = vrot.lane.b32.xlu1 %v12003_v42, %s11798_s21  ;;  %299 = vrot.lane.b32.xlu0 %v12005_v43, %s11798_s21  ;;  %v10392_v42 = vpack.c.bf16 %v9192_v60, %v9192_v60  ;;  %v10391_v43 = vpack.c.bf16 %v9191_v61, %v9191_v61 }
  0x50   :  { %785 = vrot.lane.b32.xlu1 %v12099_v47, %s11798_s21  ;;  %783 = vrot.lane.b32.xlu0 %v12101_v48, %s11798_s21  ;;  %v232_v47 = vld [vmem:[%s14448_s0 + $0xb1] sm:$0xff] }
  0x52   :  { %11440 = vmatmul.mubr.msk.bf16.gmra.mxu1 %vm44_vm1, %v11645_v18 }
  0x54   :  { %430 = vrot.lane.b32.xlu1 %v12101_v48, %s11800_s19  ;;  %428 = vrot.lane.b32.xlu0 %v11967_v33, %s11800_s19  ;;  %v231_v48 = vld [vmem:[%s14448_s0 + $0xa1] sm:$0xff]  ;;  %v10408_v33 = vpack.c.bf16 %v9224_v62, %v9224_v62 }
  0x55   :  { %v10313_v11 = vpack.c.bf16 %v231_v48, %v231_v48 }
  0x58   :  { %914 = vrot.lane.b32.xlu1 %v10392_v42, %s11800_s19  ;;  %912 = vrot.lane.b32.xlu0 %v10391_v43, %s11800_s19 }
  0x5c   :  { %560 = vrot.lane.b32.xlu1 %v10391_v43, %s11801_s17  ;;  %558 = vrot.lane.b32.xlu0 %v11987_v38, %s11801_s17  ;;  %v10314_v38 = vpack.c.bf16 %v232_v47, %v232_v47 }
  0x60   :  { %1042 = vrot.lane.b32.xlu1 %v10408_v33, %s11801_s17  ;;  %1040 = vrot.lane.b32.xlu0 %v12112_v50, %s11801_s17  ;;  %v10329_v50 = vpack.c.bf16 %v360_v14, %v360_v14 }
  0x64   :  { %305 = vrot.lane.b32.xlu1 %v10314_v38, %s11798_s21  ;;  %303 = vrot.lane.b32.xlu0 %v10313_v11, %s11798_s21  ;;  %v2718_v11 = vld [vmem:[#allocation2 + $0x132] sm:$0xff] }
  0x65   :  { %v10576_v14 = vpack.c.bf16 %v2718_v11, %v2718_v11 }
  0x67   :  { %2798 = vst.msk [vmem:[#allocation4 + $0xbc] sm:$0xf] %vm206_vm0, %v10576_v14 }
  0x68   :  { %789 = vrot.lane.b32.xlu1 %v10378_v12, %s11798_s21  ;;  %787 = vrot.lane.b32.xlu0 %v10377_v13, %s11798_s21 }
  0x6c   :  { %434 = vrot.lane.b32.xlu1 %v10377_v13, %s11800_s19  ;;  %432 = vrot.lane.b32.xlu0 %v10329_v50, %s11800_s19 }
  0x70   :  { %918 = vrot.lane.b32.xlu1 %v10394_v19, %s11800_s19  ;;  %916 = vrot.lane.b32.xlu0 %v10393_v21, %s11800_s19 }
  0x74   :  { %564 = vrot.lane.b32.xlu1 %v10393_v21, %s11801_s17  ;;  %562 = vrot.lane.b32.xlu0 %v12153_v58, %s11801_s17 }
  0x76   :  { %v772_v5 = vpop.permute.xlu1 %771  ;;  %v288_v30 = vpop.permute.xlu0 %287 }
  0x77   :  { %819 = vst.msk [vmem:[#allocation4 + $0x4] sm:$0xf] %vm335_vm3, %v772_v5  ;;  %336 = vst.msk [vmem:[#allocation4] sm:$0xf] %vm335_vm3, %v288_v30 }
  0x78   :  { %1046 = vrot.lane.b32.xlu1 %v12173_v63, %s11801_s17  ;;  %1044 = vrot.lane.b32.xlu0 %v12175_v0, %s11801_s17 }
  0x7a   :  { %v774_v34 = vpop.permute.xlu1 %773  ;;  %v290_v58 = vpop.permute.xlu0 %289 }
  0x7b   :  { %820 = vst.msk [vmem:[#allocation4 + $0x10] sm:$0xf] %vm335_vm3, %v774_v34  ;;  %337 = vst.msk [vmem:[#allocation4 + $0xc] sm:$0xf] %vm335_vm3, %v290_v58 }
  0x7c   :  { %309 = vrot.lane.b32.xlu1 %v12173_v63, %s11798_s21  ;;  %307 = vrot.lane.b32.xlu0 %v12175_v0, %s11798_s21 }
  0x7e   :  { %v419_v44 = vpop.permute.xlu1 %418  ;;  %v417_v49 = vpop.permute.xlu0 %416 }
  0x7f   :  { %466 = vst.msk [vmem:[#allocation4 + $0xc] sm:$0xf] %vm464_vm4, %v419_v44  ;;  %465 = vst.msk [vmem:[#allocation4] sm:$0xf] %vm464_vm4, %v417_v49 }
  0x80   :  { %793 = vrot.lane.b32.xlu1 %v12201_v8, %s11798_s21  ;;  %791 = vrot.lane.b32.xlu0 %v12203_v9, %s11798_s21 }
  0x82   :  { %v903_v63 = vpop.permute.xlu1 %902  ;;  %v901_v0 = vpop.permute.xlu0 %900 }
  0x83   :  { %949 = vst.msk [vmem:[#allocation4 + $0x10] sm:$0xf] %vm464_vm4, %v903_v63  ;;  %948 = vst.msk [vmem:[#allocation4 + $0x4] sm:$0xf] %vm464_vm4, %v901_v0 }
  0x84   :  { %438 = vrot.lane.b32.xlu1 %v12203_v9, %s11800_s19  ;;  %436 = vrot.lane.b32.xlu0 %v10378_v12, %s11800_s19 }
  0x86   :  { %v549_v52 = vpop.permute.xlu1 %548  ;;  %v547_v10 = vpop.permute.xlu0 %546 }
  0x87   :  { %596 = vst.msk [vmem:[#allocation4 + $0xc] sm:$0xf] %vm594_vm5, %v549_v52  ;;  %595 = vst.msk [vmem:[#allocation4] sm:$0xf] %vm594_vm5, %v547_v10 }
  0x88   :  { %922 = vrot.lane.b32.xlu1 %v12232_v16, %s11800_s19  ;;  %920 = vrot.lane.b32.xlu0 %v12234_v17, %s11800_s19 }
  0x8a   :  { %v1031_v32 = vpop.permute.xlu1 %1030  ;;  %v1029_v9 = vpop.permute.xlu0 %1028 }
  0x8b   :  { %1077 = vst.msk [vmem:[#allocation4 + $0x10] sm:$0xf] %vm594_vm5, %v1031_v32  ;;  %1076 = vst.msk [vmem:[#allocation4 + $0x4] sm:$0xf] %vm594_vm5, %v1029_v9 }
  0x8c   :  { %568 = vrot.lane.b32.xlu1 %v12234_v17, %s11801_s17  ;;  %566 = vrot.lane.b32.xlu0 %v10394_v19, %s11801_s17 }
  0x8e   :  { %v294_v59 = vpop.permute.xlu1 %293  ;;  %v292_v20 = vpop.permute.xlu0 %291 }
  0x8f   :  { %339 = vst.msk [vmem:[#allocation4 + $0x24] sm:$0xf] %vm335_vm3, %v294_v59  ;;  %338 = vst.msk [vmem:[#allocation4 + $0x18] sm:$0xf] %vm335_vm3, %v292_v20 }
  0x90   :  { %1050 = vrot.lane.b32.xlu1 %v12265_v29, %s11801_s17  ;;  %1048 = vrot.lane.b32.xlu0 %v12267_v25, %s11801_s17 }
  0x92   :  { %v1190_v39 = vld [vmem:[#allocation4 + $0xc] sm:$0xff]  ;;  %v1188_v60 = vld [vmem:[#allocation4] sm:$0xff]  ;;  %v778_v61 = vpop.permute.xlu1 %777  ;;  %v776_v42 = vpop.permute.xlu0 %775 }
  0x93   :  { %1822 = vst.msk [vmem:[#allocation4] sm:$0xf] %vm206_vm0, %v10433_v37  ;;  %v9283_v17 = vcombine.high %v1188_v60, %v1190_v39  ;;  %v9282_v43 = vcombine.low %v1188_v60, %v1190_v39 }
  0x94   :  { %822 = vst.msk [vmem:[#allocation4 + $0x28] sm:$0xf] %vm335_vm3, %v778_v61  ;;  %821 = vst.msk [vmem:[#allocation4 + $0x1c] sm:$0xf] %vm335_vm3, %v776_v42  ;;  %313 = vrot.lane.b32.xlu1 %v12265_v29, %s11798_s21  ;;  %311 = vrot.lane.b32.xlu0 %v12267_v25, %s11798_s21 }
  0x95   :  { %1547 = vmatprep.mubr.bf16.mxu0 %v9283_v17 }
  0x96   :  { %v423_v62 = vpop.permute.xlu1 %422  ;;  %v421_v47 = vpop.permute.xlu0 %420  ;;  %1548 = vmatmul.mubr.bf16.vlgmr.msra.gmra.mxu0 %v9282_v43  ;;  %v1838_v43 = vld [vmem:[#allocation2 + $0x1] sm:$0xff] }
  0x97   :  { %468 = vst.msk [vmem:[#allocation4 + $0x24] sm:$0xf] %vm464_vm4, %v423_v62  ;;  %467 = vst.msk [vmem:[#allocation4 + $0x18] sm:$0xf] %vm464_vm4, %v421_v47  ;;  %v10449_v62 = vpack.c.bf16 %v1838_v43, %v1838_v43 }
  0x98   :  { %797 = vrot.lane.b32.xlu1 %v12278_v35, %s11798_s21  ;;  %795 = vrot.lane.b32.xlu0 %v12280_v36, %s11798_s21 }
  0x9a   :  { %v907_v48 = vpop.permute.xlu1 %906  ;;  %v905_v33 = vpop.permute.xlu0 %904 }
  0x9b   :  { %951 = vst.msk [vmem:[#allocation4 + $0x28] sm:$0xf] %vm464_vm4, %v907_v48  ;;  %950 = vst.msk [vmem:[#allocation4 + $0x1c] sm:$0xf] %vm464_vm4, %v905_v33  ;;  %v2454_v33 = vld [vmem:[#allocation2 + $0x90] sm:$0xff] }
  0x9c   :  { %442 = vrot.lane.b32.xlu1 %v12280_v36, %s11800_s19  ;;  %440 = vrot.lane.b32.xlu0 %v12201_v8, %s11800_s19 }
  0x9e   :  { %v553_v29 = vpop.permute.xlu1 %552  ;;  %v551_v25 = vpop.permute.xlu0 %550 }
  0x9f   :  { %598 = vst.msk [vmem:[#allocation4 + $0x24] sm:$0xf] %vm594_vm5, %v553_v29  ;;  %597 = vst.msk [vmem:[#allocation4 + $0x18] sm:$0xf] %vm594_vm5, %v551_v25  ;;  %v1966_v29 = vld [vmem:[#allocation2 + $0x2] sm:$0xff]  ;;  %v10536_v25 = vpack.c.bf16 %v2454_v33, %v2454_v33 }
  0xa0   :  { %926 = vrot.lane.b32.xlu1 %v12282_v40, %s11800_s19  ;;  %924 = vrot.lane.b32.xlu0 %v12290_v45, %s11800_s19 }
  0xa2   :  { %v1035_v1 = vpop.permute.xlu1 %1034  ;;  %v1033_v2 = vpop.permute.xlu0 %1032 }
  0xa3   :  { %1079 = vst.msk [vmem:[#allocation4 + $0x28] sm:$0xf] %vm594_vm5, %v1035_v1  ;;  %1078 = vst.msk [vmem:[#allocation4 + $0x1c] sm:$0xf] %vm594_vm5, %v1033_v2  ;;  %v10465_v1 = vpack.c.bf16 %v1966_v29, %v1966_v29 }
  0xa4   :  { %572 = vrot.lane.b32.xlu1 %v12290_v45, %s11801_s17  ;;  %570 = vrot.lane.b32.xlu0 %v12232_v16, %s11801_s17 }
  0xa6   :  { %v298_v8 = vpop.permute.xlu1 %297  ;;  %v296_v36 = vpop.permute.xlu0 %295 }
  0xa7   :  { %341 = vst.msk [vmem:[#allocation4 + $0x3c] sm:$0xf] %vm335_vm3, %v298_v8  ;;  %340 = vst.msk [vmem:[#allocation4 + $0x30] sm:$0xf] %vm335_vm3, %v296_v36 }
  0xa8   :  { %1054 = vrot.lane.b32.xlu1 %v12319_v53, %s11801_s17  ;;  %1052 = vrot.lane.b32.xlu0 %v12321_v54, %s11801_s17 }
  0xaa   :  { %v1194_v16 = vld [vmem:[#allocation4 + $0x24] sm:$0xff]  ;;  %v1192_v45 = vld [vmem:[#allocation4 + $0x18] sm:$0xff]  ;;  %v782_v7 = vpop.permute.xlu1 %781  ;;  %v780_v38 = vpop.permute.xlu0 %779 }
  0xab   :  { %824 = vst.msk [vmem:[#allocation4 + $0x40] sm:$0xf] %vm335_vm3, %v782_v7  ;;  %823 = vst.msk [vmem:[#allocation4 + $0x34] sm:$0xf] %vm335_vm3, %v780_v38  ;;  %v9286_v12 = vcombine.high %v1192_v45, %v1194_v16  ;;  %v9285_v13 = vcombine.low %v1192_v45, %v1194_v16  ;;  %v10441_v45 = vpack.c.bf16 %v1750_v4, %v1750_v4 }
  0xac   :  { %317 = vrot.lane.b32.xlu1 %v12319_v53, %s11798_s21  ;;  %315 = vrot.lane.b32.xlu0 %v12321_v54, %s11798_s21  ;;  %v9200_v53 = vld [vmem:[%s14448_s0 + $0x130] sm:$0xff]  ;;  %v9199_v54 = vld [vmem:[%s14448_s0 + $0x120] sm:$0xff] }
  0xad   :  { %1555 = vmatprep.mubr.bf16.mxu0 %v9286_v12  ;;  %v10399_v22 = vpack.c.bf16 %v9199_v54, %v9199_v54 }
  0xae   :  { %v427_v50 = vpop.permute.xlu1 %426  ;;  %v425_v15 = vpop.permute.xlu0 %424  ;;  %1556 = vmatmul.mubr.bf16.gmra.mxu0 %v9285_v13 }
  0xaf   :  { %470 = vst.msk [vmem:[#allocation4 + $0x3c] sm:$0xf] %vm464_vm4, %v427_v50  ;;  %469 = vst.msk [vmem:[#allocation4 + $0x30] sm:$0xf] %vm464_vm4, %v425_v15 }
  0xb0   :  { %801 = vrot.lane.b32.xlu1 %v12341_v55, %s11798_s21  ;;  %799 = vrot.lane.b32.xlu0 %v12343_v56, %s11798_s21  ;;  %v10400_v55 = vpack.c.bf16 %v9200_v53, %v9200_v53 }
  0xb2   :  { %v911_v19 = vpop.permute.xlu1 %910  ;;  %v909_v21 = vpop.permute.xlu0 %908 }
  0xb3   :  { %953 = vst.msk [vmem:[#allocation4 + $0x40] sm:$0xf] %vm464_vm4, %v911_v19  ;;  %952 = vst.msk [vmem:[#allocation4 + $0x34] sm:$0xf] %vm464_vm4, %v909_v21 }
  0xb4   :  { %446 = vrot.lane.b32.xlu1 %v12343_v56, %s11800_s19  ;;  %444 = vrot.lane.b32.xlu0 %v12278_v35, %s11800_s19  ;;  %v10416_v35 = vpack.c.bf16 %v9232_v28, %v9232_v28 }
  0xb6   :  { %v557_v23 = vpop.permute.xlu1 %556  ;;  %v555_v24 = vpop.permute.xlu0 %554 }
  0xb7   :  { %600 = vst.msk [vmem:[#allocation4 + $0x3c] sm:$0xf] %vm594_vm5, %v557_v23  ;;  %599 = vst.msk [vmem:[#allocation4 + $0x30] sm:$0xf] %vm594_vm5, %v555_v24 }
  0xb8   :  { %930 = vrot.lane.b32.xlu1 %v10400_v55, %s11800_s19  ;;  %928 = vrot.lane.b32.xlu0 %v10399_v22, %s11800_s19 }
  0xba   :  { %v1039_v56 = vpop.permute.xlu1 %1038  ;;  %v1037_v5 = vpop.permute.xlu0 %1036 }
  0xbb   :  { %1081 = vst.msk [vmem:[#allocation4 + $0x40] sm:$0xf] %vm594_vm5, %v1039_v56  ;;  %1080 = vst.msk [vmem:[#allocation4 + $0x34] sm:$0xf] %vm594_vm5, %v1037_v5 }
  0xbc   :  { %576 = vrot.lane.b32.xlu1 %v10399_v22, %s11801_s17  ;;  %574 = vrot.lane.b32.xlu0 %v12282_v40, %s11801_s17 }
  0xbe   :  { %v302_v30 = vpop.permute.xlu1 %301  ;;  %v300_v34 = vpop.permute.xlu0 %299 }
  0xbf   :  { %343 = vst.msk [vmem:[#allocation4 + $0x54] sm:$0xf] %vm335_vm3, %v302_v30  ;;  %342 = vst.msk [vmem:[#allocation4 + $0x48] sm:$0xf] %vm335_vm3, %v300_v34 }
  0xc0   :  { %1058 = vrot.lane.b32.xlu1 %v10416_v35, %s11801_s17  ;;  %1056 = vrot.lane.b32.xlu0 %v12454_v26, %s11801_s17 }
  0xc2   :  { %v1198_v58 = vld [vmem:[#allocation4 + $0x3c] sm:$0xff]  ;;  %v1196_v41 = vld [vmem:[#allocation4 + $0x30] sm:$0xff]  ;;  %v786_v44 = vpop.permute.xlu1 %785  ;;  %v784_v49 = vpop.permute.xlu0 %783 }
  0xc3   :  { %826 = vst.msk [vmem:[#allocation4 + $0x58] sm:$0xf] %vm335_vm3, %v786_v44  ;;  %825 = vst.msk [vmem:[#allocation4 + $0x4c] sm:$0xf] %vm335_vm3, %v784_v49  ;;  %v9289_v40 = vcombine.high %v1196_v41, %v1198_v58  ;;  %v9288_v51 = vcombine.low %v1196_v41, %v1198_v58 }
  0xc4   :  { %1902 = vrot.lane.b32.xlu0 %v10449_v62, %s11798_s21  ;;  %2525 = vrot.lane.b32.xlu1 %v10536_v25, %s11800_s19 }
  0xc5   :  { %1563 = vmatprep.mubr.bf16.mxu0 %v9289_v40 }
  0xc6   :  { %v431_v63 = vpop.permute.xlu1 %430  ;;  %v429_v0 = vpop.permute.xlu0 %428  ;;  %1564 = vmatmul.mubr.bf16.gmra.mxu0 %v9288_v51 }
  0xc7   :  { %472 = vst.msk [vmem:[#allocation4 + $0x54] sm:$0xf] %vm464_vm4, %v431_v63  ;;  %471 = vst.msk [vmem:[#allocation4 + $0x48] sm:$0xf] %vm464_vm4, %v429_v0  ;;  %v11647_v0 = vld [vmem:[%s14449_s1 + $0x118] sm:$0xff]  }
  0xc8   :  { %2030 = vrot.lane.b32.xlu0 %v10465_v1, %s11800_s19  ;;  %11443 = vmatprep.subr.bf16.mxu0 %v11647_v0 }
  0xc9   :  { %11444 = vmatpush3.bf16.msra.mxu0 %v11647_v0 }
  0xca   :  { %v915_v52 = vpop.permute.xlu1 %914  ;;  %v913_v26 = vpop.permute.xlu0 %912 }
  0xcb   :  { %955 = vst.msk [vmem:[#allocation4 + $0x58] sm:$0xf] %vm464_vm4, %v915_v52  ;;  %954 = vst.msk [vmem:[#allocation4 + $0x4c] sm:$0xf] %vm464_vm4, %v913_v26 }
  0xce   :  { %v561_v10 = vpop.permute.xlu1 %560  ;;  %v559_v27 = vpop.permute.xlu0 %558 }
  0xcf   :  { %602 = vst.msk [vmem:[#allocation4 + $0x54] sm:$0xf] %vm594_vm5, %v561_v10  ;;  %601 = vst.msk [vmem:[#allocation4 + $0x48] sm:$0xf] %vm594_vm5, %v559_v27  ;;  %v11648_v10 = vld [vmem:[%s14449_s1 + $0x110] sm:$0xff]  }
  0xd0   :  { %11445 = vmatprep.subr.bf16.mxu0 %v11648_v10 }
  0xd1   :  { %11446 = vmatpush3.bf16.msra.mxu0 %v11648_v10  ;;  %v11660_v10 = vld [vmem:[%s14449_s1 + $0xe8] sm:$0xff]  }
  0xd2   :  { %v1043_v31 = vpop.permute.xlu1 %1042  ;;  %v1041_v32 = vpop.permute.xlu0 %1040 }
  0xd3   :  { %1083 = vst.msk [vmem:[#allocation4 + $0x58] sm:$0xf] %vm594_vm5, %v1043_v31  ;;  %1082 = vst.msk [vmem:[#allocation4 + $0x4c] sm:$0xf] %vm594_vm5, %v1041_v32 }
  0xd6   :  { %v306_v9 = vpop.permute.xlu1 %305  ;;  %v304_v57 = vpop.permute.xlu0 %303 }
  0xd7   :  { %345 = vst.msk [vmem:[#allocation4 + $0x6c] sm:$0xf] %vm335_vm3, %v306_v9  ;;  %344 = vst.msk [vmem:[#allocation4 + $0x60] sm:$0xf] %vm335_vm3, %v304_v57 }
  0xda   :  { %v1202_v59 = vld [vmem:[#allocation4 + $0x54] sm:$0xff]  ;;  %v1200_v20 = vld [vmem:[#allocation4 + $0x48] sm:$0xff]  ;;  %v790_v37 = vpop.permute.xlu1 %789  ;;  %v788_v39 = vpop.permute.xlu0 %787 }
  0xdb   :  { %v9292_v60 = vcombine.high %v1200_v20, %v1202_v59  ;;  %v9291_v61 = vcombine.low %v1200_v20, %v1202_v59  ;;  %828 = vst.msk [vmem:[#allocation4 + $0x70] sm:$0xf] %vm335_vm3, %v790_v37  ;;  %827 = vst.msk [vmem:[#allocation4 + $0x64] sm:$0xf] %vm335_vm3, %v788_v39 }
  0xdd   :  { %1571 = vmatprep.mubr.bf16.mxu0 %v9292_v60 }
  0xde   :  { %1572 = vmatmul.mubr.bf16.gmra.mxu0 %v9291_v61  ;;  %v435_v42 = vpop.permute.xlu1 %434  ;;  %v433_v17 = vpop.permute.xlu0 %432 }
  0xdf   :  { %474 = vst.msk [vmem:[#allocation4 + $0x6c] sm:$0xf] %vm464_vm4, %v435_v42  ;;  %473 = vst.msk [vmem:[#allocation4 + $0x60] sm:$0xf] %vm464_vm4, %v433_v17 }
  0xe2   :  { %v919_v47 = vpop.permute.xlu1 %918  ;;  %v917_v48 = vpop.permute.xlu0 %916 }
  0xe3   :  { %957 = vst.msk [vmem:[#allocation4 + $0x70] sm:$0xf] %vm464_vm4, %v919_v47  ;;  %956 = vst.msk [vmem:[#allocation4 + $0x64] sm:$0xf] %vm464_vm4, %v917_v48 }
  0xe5   :  { %v12739_v29 = vpop.f32.mrf.mxu1 }
  0xe6   :  { %v565_v2 = vpop.permute.xlu1 %564  ;;  %v563_v8 = vpop.permute.xlu0 %562 }
  0xe7   :  { %604 = vst.msk [vmem:[#allocation4 + $0x6c] sm:$0xf] %vm594_vm5, %v565_v2  ;;  %603 = vst.msk [vmem:[#allocation4 + $0x60] sm:$0xf] %vm594_vm5, %v563_v8  ;;  %v1646_v2 = vpop.f32.mrf.mxu1 }
  0xea   :  { %v1047_v36 = vpop.permute.xlu1 %1046  ;;  %v1045_v3 = vpop.permute.xlu0 %1044 }
  0xeb   :  { %1085 = vst.msk [vmem:[#allocation4 + $0x70] sm:$0xf] %vm594_vm5, %v1047_v36  ;;  %1084 = vst.msk [vmem:[#allocation4 + $0x64] sm:$0xf] %vm594_vm5, %v1045_v3  ;;  %v12745_v36 = vld [vmem:[%s14450_s2] ss:$0 sm:$0xff] }
  0xee   :  { %v310_v6 = vpop.permute.xlu1 %309  ;;  %v308_v16 = vpop.permute.xlu0 %307 }
  0xef   :  { %347 = vst.msk [vmem:[#allocation4 + $0x84] sm:$0xf] %vm335_vm3, %v310_v6  ;;  %346 = vst.msk [vmem:[#allocation4 + $0x78] sm:$0xf] %vm335_vm3, %v308_v16  ;;  %v12747_v16 = vpop.f32.mrf.mxu1 }
  0xf2   :  { %v1206_v7 = vld [vmem:[#allocation4 + $0x6c] sm:$0xff]  ;;  %v1204_v38 = vld [vmem:[#allocation4 + $0x60] sm:$0xff]  ;;  %v794_v11 = vpop.permute.xlu1 %793  ;;  %v792_v12 = vpop.permute.xlu0 %791 }
  0xf3   :  { %1830 = vst.msk [vmem:[#allocation4 + $0x60] sm:$0xf] %vm206_vm0, %v10441_v45  ;;  %v9295_v13 = vcombine.high %v1204_v38, %v1206_v7  ;;  %v9294_v14 = vcombine.low %v1204_v38, %v1206_v7 }
  0xf4   :  { %830 = vst.msk [vmem:[#allocation4 + $0x88] sm:$0xf] %vm335_vm3, %v794_v11  ;;  %829 = vst.msk [vmem:[#allocation4 + $0x7c] sm:$0xf] %vm335_vm3, %v792_v12  ;;  %v1649_v12 = vpop.f32.mrf.mxu1 }
  0xf5   :  { %1579 = vmatprep.mubr.bf16.mxu0 %v9295_v13 }
  0xf6   :  { %v439_v50 = vpop.permute.xlu1 %438  ;;  %v437_v15 = vpop.permute.xlu0 %436  ;;  %1580 = vmatmul.mubr.bf16.gmra.mxu0 %v9294_v14 }
  0xf7   :  { %476 = vst.msk [vmem:[#allocation4 + $0x84] sm:$0xf] %vm464_vm4, %v439_v50  ;;  %475 = vst.msk [vmem:[#allocation4 + $0x78] sm:$0xf] %vm464_vm4, %v437_v15 }
  0xfa   :  { %v923_v18 = vpop.permute.xlu1 %922  ;;  %v921_v53 = vpop.permute.xlu0 %920 }
  0xfb   :  { %959 = vst.msk [vmem:[#allocation4 + $0x88] sm:$0xf] %vm464_vm4, %v923_v18  ;;  %958 = vst.msk [vmem:[#allocation4 + $0x7c] sm:$0xf] %vm464_vm4, %v921_v53  ;;  %v11652_v18 = vld [vmem:[%s14449_s1 + $0x108] sm:$0xff]  }
  0xfc   :  { %v11653_v53 = vld [vmem:[%s14449_s1 + $0xc8] sm:$0xff]   ;;  %11083 = vmatprep.subr.bf16.mxu1 %v11652_v18 }
  0xfd   :  { %11084 = vmatpush3.bf16.msra.mxu1 %v11653_v53 }
  0xfe   :  { %v569_v54 = vpop.permute.xlu1 %568  ;;  %v567_v19 = vpop.permute.xlu0 %566 }
  0xff   :  { %606 = vst.msk [vmem:[#allocation4 + $0x84] sm:$0xf] %vm594_vm5, %v569_v54  ;;  %605 = vst.msk [vmem:[#allocation4 + $0x78] sm:$0xf] %vm594_vm5, %v567_v19  ;;  %v11654_v54 = vld [vmem:[%s14449_s1 + $0x100] sm:$0xff]  }
 0x100   :  { %11085 = vmatprep.subr.bf16.mxu1 %v11654_v54 }
 0x102   :  { %v1051_v21 = vpop.permute.xlu1 %1050  ;;  %v1049_v55 = vpop.permute.xlu0 %1048 }
 0x103   :  { %1087 = vst.msk [vmem:[#allocation4 + $0x88] sm:$0xf] %vm594_vm5, %v1051_v21  ;;  %1086 = vst.msk [vmem:[#allocation4 + $0x7c] sm:$0xf] %vm594_vm5, %v1049_v55 }
 0x106   :  { %v314_v22 = vpop.permute.xlu1 %313  ;;  %v312_v23 = vpop.permute.xlu0 %311 }
 0x107   :  { %349 = vst.msk [vmem:[#allocation4 + $0x9c] sm:$0xf] %vm335_vm3, %v314_v22  ;;  %348 = vst.msk [vmem:[#allocation4 + $0x90] sm:$0xf] %vm335_vm3, %v312_v23 }
 0x10a   :  { %v1210_v24 = vld [vmem:[#allocation4 + $0x84] sm:$0xff]  ;;  %v1208_v28 = vld [vmem:[#allocation4 + $0x78] sm:$0xff]  ;;  %v798_v56 = vpop.permute.xlu1 %797  ;;  %v796_v5 = vpop.permute.xlu0 %795 }
 0x10b   :  { %832 = vst.msk [vmem:[#allocation4 + $0xa0] sm:$0xf] %vm335_vm3, %v798_v56  ;;  %831 = vst.msk [vmem:[#allocation4 + $0x94] sm:$0xf] %vm335_vm3, %v796_v5  ;;  %v9298_v35 = vcombine.high %v1208_v28, %v1210_v24  ;;  %v9297_v30 = vcombine.low %v1208_v28, %v1210_v24  ;;  %v11655_v28 = vld [vmem:[%s14449_s1 + $0xc0] sm:$0xff]   ;;  %v11656_v56 = vld [vmem:[%s14449_s1 + $0xf8] sm:$0xff]  }
 0x10c   :  { %11086 = vmatpush3.bf16.msra.mxu1 %v11655_v28 }
 0x10d   :  { %1587 = vmatprep.mubr.bf16.mxu0 %v9298_v35  ;;  %11087 = vmatprep.subr.bf16.mxu1 %v11656_v56 }
 0x10e   :  { %v443_v34 = vpop.permute.xlu1 %442  ;;  %v441_v58 = vpop.permute.xlu0 %440  ;;  %1588 = vmatmul.mubr.bf16.gmra.mxu0 %v9297_v30 }
 0x10f   :  { %478 = vst.msk [vmem:[#allocation4 + $0x9c] sm:$0xf] %vm464_vm4, %v443_v34  ;;  %477 = vst.msk [vmem:[#allocation4 + $0x90] sm:$0xf] %vm464_vm4, %v441_v58 }
 0x112   :  { %v927_v41 = vpop.permute.xlu1 %926  ;;  %v925_v44 = vpop.permute.xlu0 %924 }
 0x113   :  { %961 = vst.msk [vmem:[#allocation4 + $0xa0] sm:$0xf] %vm464_vm4, %v927_v41  ;;  %960 = vst.msk [vmem:[#allocation4 + $0x94] sm:$0xf] %vm464_vm4, %v925_v44  ;;  %v11657_v44 = vld [vmem:[%s14449_s1 + $0xb8] sm:$0xff]  }
 0x114   :  { %11088 = vmatpush3.bf16.msra.mxu1 %v11657_v44 }
 0x116   :  { %v573_v49 = vpop.permute.xlu1 %572  ;;  %v571_v40 = vpop.permute.xlu0 %570 }
 0x117   :  { %608 = vst.msk [vmem:[#allocation4 + $0x9c] sm:$0xf] %vm594_vm5, %v573_v49  ;;  %607 = vst.msk [vmem:[#allocation4 + $0x90] sm:$0xf] %vm594_vm5, %v571_v40  ;;  %v11658_v40 = vld [vmem:[%s14449_s1 + $0xf0] sm:$0xff]  }
 0x118   :  { %11089 = vmatprep.subr.bf16.mxu1 %v11658_v40 }
 0x11a   :  { %v1055_v51 = vpop.permute.xlu1 %1054  ;;  %v1053_v63 = vpop.permute.xlu0 %1052 }
 0x11b   :  { %1089 = vst.msk [vmem:[#allocation4 + $0xa0] sm:$0xf] %vm594_vm5, %v1055_v51  ;;  %1088 = vst.msk [vmem:[#allocation4 + $0x94] sm:$0xf] %vm594_vm5, %v1053_v63  ;;  %v11659_v63 = vld [vmem:[%s14449_s1 + $0xb0] sm:$0xff]  }
 0x11c   :  { %11090 = vmatpush3.bf16.msra.mxu1 %v11659_v63 }
 0x11d   :  { %11091 = vmatprep.subr.bf16.mxu1 %v11660_v10 }
 0x11e   :  { %v318_v52 = vpop.permute.xlu1 %317  ;;  %v316_v26 = vpop.permute.xlu0 %315 }
 0x11f   :  { %351 = vst.msk [vmem:[#allocation4 + $0xb4] sm:$0xf] %vm335_vm3, %v318_v52  ;;  %350 = vst.msk [vmem:[#allocation4 + $0xa8] sm:$0xf] %vm335_vm3, %v316_v26 }
 0x122   :  { %v1214_v27 = vld [vmem:[#allocation4 + $0x9c] sm:$0xff]  ;;  %v1212_v31 = vld [vmem:[#allocation4 + $0x90] sm:$0xff]  ;;  %v802_v32 = vpop.permute.xlu1 %801  ;;  %v800_v9 = vpop.permute.xlu0 %799 }
 0x123   :  { %834 = vst.msk [vmem:[#allocation4 + $0xb8] sm:$0xf] %vm335_vm3, %v802_v32  ;;  %833 = vst.msk [vmem:[#allocation4 + $0xac] sm:$0xf] %vm335_vm3, %v800_v9  ;;  %v9301_v57 = vcombine.high %v1212_v31, %v1214_v27  ;;  %v9300_v59 = vcombine.low %v1212_v31, %v1214_v27  ;;  %v11661_v31 = vld [vmem:[%s14449_s1 + $0xa8] sm:$0xff]  }
 0x124   :  { %11092 = vmatpush3.bf16.msra.mxu1 %v11661_v31 }
 0x125   :  { %1595 = vmatprep.mubr.bf16.mxu0 %v9301_v57 }
 0x126   :  { %v447_v20 = vpop.permute.xlu1 %446  ;;  %v445_v37 = vpop.permute.xlu0 %444  ;;  %1596 = vmatmul.mubr.bf16.gmra.mxu0 %v9300_v59 }
 0x127   :  { %480 = vst.msk [vmem:[#allocation4 + $0xb4] sm:$0xf] %vm464_vm4, %v447_v20  ;;  %479 = vst.msk [vmem:[#allocation4 + $0xa8] sm:$0xf] %vm464_vm4, %v445_v37  ;;  %v11662_v20 = vld [vmem:[%s14449_s1 + $0xe0] sm:$0xff]  }
 0x128   :  { %v11663_v37 = vld [vmem:[%s14449_s1 + $0xa0] sm:$0xff]   ;;  %11093 = vmatprep.subr.bf16.mxu1 %v11662_v20 }
 0x129   :  { %11094 = vmatpush3.bf16.msra.mxu1 %v11663_v37 }
 0x12a   :  { %v931_v39 = vpop.permute.xlu1 %930  ;;  %v929_v60 = vpop.permute.xlu0 %928 }
 0x12b   :  { %963 = vst.msk [vmem:[#allocation4 + $0xb8] sm:$0xf] %vm464_vm4, %v931_v39  ;;  %962 = vst.msk [vmem:[#allocation4 + $0xac] sm:$0xf] %vm464_vm4, %v929_v60 }
 0x12e   :  { %v577_v61 = vpop.permute.xlu1 %576  ;;  %v575_v42 = vpop.permute.xlu0 %574 }
 0x12f   :  { %610 = vst.msk [vmem:[#allocation4 + $0xb4] sm:$0xf] %vm594_vm5, %v577_v61  ;;  %609 = vst.msk [vmem:[#allocation4 + $0xa8] sm:$0xf] %vm594_vm5, %v575_v42  ;;  %v11664_v61 = vld [vmem:[%s14449_s1 + $0xd8] sm:$0xff]  }
 0x130   :  { %v11665_v42 = vld [vmem:[%s14449_s1 + $0x98] sm:$0xff]   ;;  %11095 = vmatprep.subr.bf16.mxu1 %v11664_v61 }
 0x131   :  { %11096 = vmatpush3.bf16.msra.mxu1 %v11665_v42 }
 0x132   :  { %v1059_v17 = vpop.permute.xlu1 %1058  ;;  %v1057_v43 = vpop.permute.xlu0 %1056 }
 0x133   :  { %1091 = vst.msk [vmem:[#allocation4 + $0xb8] sm:$0xf] %vm594_vm5, %v1059_v17  ;;  %1090 = vst.msk [vmem:[#allocation4 + $0xac] sm:$0xf] %vm594_vm5, %v1057_v43  ;;  %v11666_v17 = vld [vmem:[%s14449_s1 + $0xd0] sm:$0xff]  }
 0x134   :  { %11097 = vmatprep.subr.bf16.mxu1 %v11666_v17 }
 0x136   :  { %v1903_v25 = vpop.permute.xlu0 %1902 }
 0x137   :  { %1950 = vst.msk [vmem:[#allocation4] sm:$0xf] %vm335_vm3, %v1903_v25  ;;  %v11667_v25 = vld [vmem:[%s14449_s1 + $0x90] sm:$0xff]  }
 0x138   :  { %11098 = vmatpush3.bf16.msra.mxu1 %v11667_v25  ;;  %v4339_v25 = vld [vmem:[#allocation3 + $0x92] sm:$0xff] }
 0x13a   :  { %v1218_v62 = vld [vmem:[#allocation4 + $0xb4] sm:$0xff]  ;;  %v1216_v47 = vld [vmem:[#allocation4 + $0xa8] sm:$0xff]  ;;  %v2031_v4 = vpop.permute.xlu0 %2030 }
 0x13b   :  { %v9304_v48 = vcombine.high %v1216_v47, %v1218_v62  ;;  %v9303_v33 = vcombine.low %v1216_v47, %v1218_v62  ;;  %2078 = vst.msk [vmem:[#allocation4] sm:$0xf] %vm464_vm4, %v2031_v4 }
 0x13d   :  { %1603 = vmatprep.mubr.bf16.mxu0 %v9304_v48 }
 0x13e   :  { %1604 = vmatmul.mubr.bf16.gmra.mxu0 %v9303_v33 }
 0x156   :  { %v11025_v1 = vpop.f32.mrf.mxu0 }
 0x158   :  { %v11026_v8 = vpop.f32.mrf.mxu0 }
 0x159   :  { %v11027_v3 = vadd.f32 %v11026_v8, %v11025_v1 }
 0x15a   :  { %v11028_v6 = vpop.f32.mrf.mxu0 }
 0x15b   :  { %v1550_v45 = vadd.f32 %v11027_v3, %v12745_v36 }
 0x15c   :  { %v11029_v7 = vpop.f32.mrf.mxu0 }
 0x15d   :  { %v11030_v38 = vadd.f32 %v11029_v7, %v11028_v6  ;;  %v1647_v11 = vadd.f32 %v1646_v2, %v1550_v45  ;;  %v12828_v2 = vpop.f32.mrf.mxu1 }
 0x15f   :  { %v1709_v13 = vmax.f32 %v1647_v11, 0.0  ;;  %v1553_v14 = vadd.f32 %v11030_v38, %v12745_v36  ;;  %v1662_v7 = vpop.f32.mrf.mxu1 }
 0x161   :  { %1726 = vst.msk [vmem:[#allocation2 + $0x11] sm:$0xff] %vm44_vm1, %v1709_v13  ;;  %v1650_v50 = vadd.f32 %v1649_v12, %v1553_v14 }
 0x163   :  { %v1710_v15 = vmax.f32 %v1650_v50, 0.0  ;;  %v11434_v50 = vpop.f32.mrf.mxu1 }
 0x165   :  { %1727 = vst.msk [vmem:[#allocation2 + $0x21] sm:$0xff] %vm44_vm1, %v1710_v15 }
 0x168   :  { %v2318_v19 = vld [vmem:[#allocation2 + $0x12] sm:$0xff] }
 0x169   :  { %v1839_v21 = vld [vmem:[#allocation2 + $0x11] sm:$0xff]  ;;  %v10513_v22 = vpack.c.bf16 %v2318_v19, %v2318_v19 }
 0x16a   :  { %v2094_v55 = vld [vmem:[#allocation2 + $0x10] sm:$0xff]  ;;  %v10450_v23 = vpack.c.bf16 %v1839_v21, %v1839_v21  ;;  %v1665_v21 = vpop.f32.mrf.mxu1 }
 0x16b   :  { %v10481_v24 = vpack.c.bf16 %v2094_v55, %v2094_v55  ;;  %2382 = vrot.lane.b32.xlu0 %v10513_v22, %s11798_s21 }
 0x16c   :  { %1904 = vrot.lane.b32.xlu1 %v10450_v23, %s11798_s21  ;;  %2302 = vst.msk [vmem:[#allocation4 + $0x4] sm:$0xf] %vm206_vm0, %v10450_v23  ;;  %v2703_v5 = vld [vmem:[#allocation2 + $0x22] sm:$0xff] }
 0x16d   :  { %1823 = vst.msk [vmem:[#allocation4 + $0xc] sm:$0xf] %vm206_vm0, %v10481_v24  ;;  %v2447_v35 = vld [vmem:[#allocation2 + $0x20] sm:$0xff]  ;;  %v10561_v34 = vpack.c.bf16 %v2703_v5, %v2703_v5 }
 0x16e   :  { %v2575_v30 = vld [vmem:[#allocation2 + $0x21] sm:$0xff]  ;;  %v10529_v58 = vpack.c.bf16 %v2447_v35, %v2447_v35  ;;  %v11031_v49 = vpop.f32.mrf.mxu0 }
 0x16f   :  { %v10545_v41 = vpack.c.bf16 %v2575_v30, %v2575_v30  ;;  %2783 = vst.msk [vmem:[#allocation4 + $0x8] sm:$0xf] %vm206_vm0, %v10561_v34  ;;  %2158 = vrot.lane.b32.xlu0 %v10481_v24, %s11801_s17 }
 0x170   :  { %2032 = vrot.lane.b32.xlu1 %v10513_v22, %s11800_s19  ;;  %1824 = vst.msk [vmem:[#allocation4 + $0x18] sm:$0xf] %vm206_vm0, %v10529_v58  ;;  %v11032_v51 = vpop.f32.mrf.mxu0 }
 0x171   :  { %2303 = vst.msk [vmem:[#allocation4 + $0x10] sm:$0xf] %vm206_vm0, %v10545_v41  ;;  %v11033_v0 = vadd.f32 %v11032_v51, %v11031_v49 }
 0x172   :  { %v11034_v52 = vpop.f32.mrf.mxu0 }
 0x173   :  { %v1558_v26 = vadd.f32 %v11033_v0, %v12745_v36  ;;  %2511 = vrot.lane.b32.xlu0 %v10529_v58, %s11800_s19 }
 0x174   :  { %2384 = vrot.lane.b32.xlu1 %v10561_v34, %s11798_s21  ;;  %v11035_v27 = vpop.f32.mrf.mxu0 }
 0x175   :  { %v1655_v32 = vadd.f32 %v12739_v29, %v1558_v26  ;;  %v11036_v9 = vadd.f32 %v11035_v27, %v11034_v52 }
 0x177   :  { %v1711_v57 = vmax.f32 %v1655_v32, 0.0  ;;  %v1561_v59 = vadd.f32 %v11036_v9, %v12745_v36  ;;  %2639 = vrot.lane.b32.xlu0 %v10545_v41, %s11801_s17 }
 0x178   :  { %2160 = vrot.lane.b32.xlu1 %v10529_v58, %s11801_s17 }
 0x179   :  { %1728 = vst.msk [vmem:[#allocation2 + $0x31] sm:$0xff] %vm44_vm1, %v1711_v57  ;;  %v1658_v39 = vadd.f32 %v12747_v16, %v1561_v59 }
 0x17b   :  { %v1712_v60 = vmax.f32 %v1658_v39, 0.0  ;;  %1906 = vrot.lane.b32.xlu0 %v10545_v41, %s11798_s21 }
 0x17d   :  { %1729 = vst.msk [vmem:[#allocation2 + $0x41] sm:$0xff] %vm44_vm1, %v1712_v60 }
 0x17f   :  { %2034 = vrot.lane.b32.xlu0 %v10561_v34, %s11800_s19 }
 0x180   :  { %v2704_v43 = vld [vmem:[#allocation2 + $0x32] sm:$0xff] }
 0x181   :  { %v2448_v62 = vld [vmem:[#allocation2 + $0x30] sm:$0xff]  ;;  %v10562_v48 = vpack.c.bf16 %v2704_v43, %v2704_v43 }
 0x182   :  { %v2576_v47 = vld [vmem:[#allocation2 + $0x31] sm:$0xff]  ;;  %v10530_v33 = vpack.c.bf16 %v2448_v62, %v2448_v62  ;;  %v12877_v62 = vpop.f32.mrf.mxu1 }
 0x183   :  { %v10546_v29 = vpack.c.bf16 %v2576_v47, %v2576_v47  ;;  %2784 = vst.msk [vmem:[#allocation4 + $0x14] sm:$0xf] %vm206_vm0, %v10562_v48  ;;  %2386 = vrot.lane.b32.xlu0 %v10562_v48, %s11798_s21 }
 0x184   :  { %2513 = vrot.lane.b32.xlu1 %v10530_v33, %s11800_s19  ;;  %1825 = vst.msk [vmem:[#allocation4 + $0x24] sm:$0xf] %vm206_vm0, %v10530_v33  ;;  %v2705_v1 = vld [vmem:[#allocation2 + $0x42] sm:$0xff] }
 0x185   :  { %2304 = vst.msk [vmem:[#allocation4 + $0x1c] sm:$0xf] %vm206_vm0, %v10546_v29  ;;  %v2449_v8 = vld [vmem:[#allocation2 + $0x40] sm:$0xff]  ;;  %v10563_v4 = vpack.c.bf16 %v2705_v1, %v2705_v1 }
 0x186   :  { %v2577_v3 = vld [vmem:[#allocation2 + $0x41] sm:$0xff]  ;;  %v10531_v6 = vpack.c.bf16 %v2449_v8, %v2449_v8  ;;  %v11037_v45 = vpop.f32.mrf.mxu0 }
 0x187   :  { %v10547_v16 = vpack.c.bf16 %v2577_v3, %v2577_v3  ;;  %2785 = vst.msk [vmem:[#allocation4 + $0x20] sm:$0xf] %vm206_vm0, %v10563_v4  ;;  %2162 = vrot.lane.b32.xlu0 %v10530_v33, %s11801_s17 }
 0x188   :  { %2641 = vrot.lane.b32.xlu1 %v10546_v29, %s11801_s17  ;;  %1826 = vst.msk [vmem:[#allocation4 + $0x30] sm:$0xf] %vm206_vm0, %v10531_v6  ;;  %v11038_v38 = vpop.f32.mrf.mxu0 }
 0x189   :  { %2305 = vst.msk [vmem:[#allocation4 + $0x28] sm:$0xf] %vm206_vm0, %v10547_v16  ;;  %v11039_v11 = vadd.f32 %v11038_v38, %v11037_v45  ;;  %v10712_v45 = vpack.c.bf16 %v4339_v25, %v4339_v25  ;;  %v1846_v38 = vld [vmem:[#allocation2 + $0xa1] sm:$0xff] }
 0x18a   :  { %v11040_v12 = vpop.f32.mrf.mxu0  ;;  %v11646_v13 = vld [vmem:[#allocation4 + $0x8] ss:$12 sps:$4 sm:$0xff]  }
 0x18b   :  { %v1566_v14 = vadd.f32 %v11039_v11, %v12745_v36  ;;  %2515 = vrot.lane.b32.xlu0 %v10531_v6, %s11800_s19  ;;  %11447 = vmatprep.mubr.msk.bf16.mxu0 %vm44_vm1, %v11646_v13 }
 0x18c   :  { %1908 = vrot.lane.b32.xlu1 %v10546_v29, %s11798_s21  ;;  %v11041_v15 = vpop.f32.mrf.mxu0 }
 0x18d   :  { %v1663_v18 = vadd.f32 %v1662_v7, %v1566_v14  ;;  %v11042_v53 = vadd.f32 %v11041_v15, %v11040_v12  ;;  %v10457_v15 = vpack.c.bf16 %v1846_v38, %v1846_v38 }
 0x18f   :  { %v1713_v54 = vmax.f32 %v1663_v18, 0.0  ;;  %v1569_v19 = vadd.f32 %v11042_v53, %v12745_v36  ;;  %2643 = vrot.lane.b32.xlu0 %v10547_v16, %s11801_s17 }
 0x190   :  { %2036 = vrot.lane.b32.xlu1 %v10562_v48, %s11800_s19 }
 0x191   :  { %1730 = vst.msk [vmem:[#allocation2 + $0x51] sm:$0xff] %vm44_vm1, %v1713_v54  ;;  %v1666_v55 = vadd.f32 %v1665_v21, %v1569_v19  ;;  %v1974_v54 = vld [vmem:[#allocation2 + $0xa2] sm:$0xff] }
 0x192   :  { %v10473_v21 = vpack.c.bf16 %v1974_v54, %v1974_v54 }
 0x193   :  { %v1714_v22 = vmax.f32 %v1666_v55, 0.0  ;;  %1910 = vrot.lane.b32.xlu0 %v10547_v16, %s11798_s21 }
 0x194   :  { %2388 = vrot.lane.b32.xlu1 %v10563_v4, %s11798_s21 }
 0x195   :  { %1731 = vst.msk [vmem:[#allocation2 + $0x61] sm:$0xff] %vm44_vm1, %v1714_v22  ;;  %v2582_v22 = vld [vmem:[#allocation2 + $0x91] sm:$0xff] }
 0x197   :  { %2038 = vrot.lane.b32.xlu0 %v10563_v4, %s11800_s19 }
 0x198   :  { %2164 = vrot.lane.b32.xlu1 %v10531_v6, %s11801_s17  ;;  %v2706_v23 = vld [vmem:[#allocation2 + $0x52] sm:$0xff] }
 0x199   :  { %v2450_v24 = vld [vmem:[#allocation2 + $0x50] sm:$0xff]  ;;  %v10564_v56 = vpack.c.bf16 %v2706_v23, %v2706_v23  ;;  %v3467_v23 = vld [vmem:[#allocation3 + $0x1] sm:$0xff] }
 0x19a   :  { %v2578_v28 = vld [vmem:[#allocation2 + $0x51] sm:$0xff]  ;;  %v10532_v5 = vpack.c.bf16 %v2450_v24, %v2450_v24  ;;  %v10552_v24 = vpack.c.bf16 %v2582_v22, %v2582_v22 }
 0x19b   :  { %v10548_v35 = vpack.c.bf16 %v2578_v28, %v2578_v28  ;;  %2786 = vst.msk [vmem:[#allocation4 + $0x2c] sm:$0xf] %vm206_vm0, %v10564_v56  ;;  %2390 = vrot.lane.b32.xlu0 %v10564_v56, %s11798_s21  ;;  %v2462_v28 = vld [vmem:[#allocation2 + $0x130] sm:$0xff] }
 0x19c   :  { %2517 = vrot.lane.b32.xlu1 %v10532_v5, %s11800_s19  ;;  %1827 = vst.msk [vmem:[#allocation4 + $0x3c] sm:$0xf] %vm206_vm0, %v10532_v5  ;;  %v2707_v30 = vld [vmem:[#allocation2 + $0x62] sm:$0xff] }
 0x19d   :  { %2306 = vst.msk [vmem:[#allocation4 + $0x34] sm:$0xf] %vm206_vm0, %v10548_v35  ;;  %v2451_v34 = vld [vmem:[#allocation2 + $0x60] sm:$0xff]  ;;  %v10565_v41 = vpack.c.bf16 %v2707_v30, %v2707_v30 }
 0x19e   :  { %v2579_v58 = vld [vmem:[#allocation2 + $0x61] sm:$0xff]  ;;  %v10533_v44 = vpack.c.bf16 %v2451_v34, %v2451_v34  ;;  %v11043_v40 = vpop.f32.mrf.mxu0 }
 0x19f   :  { %v10549_v49 = vpack.c.bf16 %v2579_v58, %v2579_v58  ;;  %2787 = vst.msk [vmem:[#allocation4 + $0x38] sm:$0xf] %vm206_vm0, %v10565_v41  ;;  %2166 = vrot.lane.b32.xlu0 %v10532_v5, %s11801_s17  ;;  %v3595_v5 = vld [vmem:[#allocation3 + $0x2] sm:$0xff] }
 0x1a0   :  { %2645 = vrot.lane.b32.xlu1 %v10548_v35, %s11801_s17  ;;  %1828 = vst.msk [vmem:[#allocation4 + $0x48] sm:$0xf] %vm206_vm0, %v10533_v44  ;;  %v11044_v51 = vpop.f32.mrf.mxu0 }
 0x1a1   :  { %2307 = vst.msk [vmem:[#allocation4 + $0x40] sm:$0xf] %vm206_vm0, %v10549_v49  ;;  %v11045_v63 = vadd.f32 %v11044_v51, %v11043_v40 }
 0x1a2   :  { %v11046_v0 = vpop.f32.mrf.mxu0  ;;  %v11649_v52 = vld [vmem:[#allocation4 + $0x20] ss:$12 sps:$4 sm:$0xff]  }
 0x1a3   :  { %v1574_v26 = vadd.f32 %v11045_v63, %v12745_v36  ;;  %2519 = vrot.lane.b32.xlu0 %v10533_v44, %s11800_s19  ;;  %11448 = vmatmul.mubr.msk.bf16.vlgmr.msra.gmra.mxu0 %vm44_vm1, %v11649_v52 }
 0x1a4   :  { %1912 = vrot.lane.b32.xlu1 %v10548_v35, %s11798_s21  ;;  %v11047_v10 = vpop.f32.mrf.mxu0 }
 0x1a5   :  { %v1671_v27 = vadd.f32 %v12828_v2, %v1574_v26  ;;  %v11048_v31 = vadd.f32 %v11047_v10, %v11046_v0  ;;  %v1678_v2 = vpop.f32.mrf.mxu1 }
 0x1a7   :  { %v1715_v32 = vmax.f32 %v1671_v27, 0.0  ;;  %v1577_v9 = vadd.f32 %v11048_v31, %v12745_v36  ;;  %2647 = vrot.lane.b32.xlu0 %v10549_v49, %s11801_s17  ;;  %v12883_v16 = vpop.f32.mrf.mxu1 }
 0x1a8   :  { %2040 = vrot.lane.b32.xlu1 %v10564_v56, %s11800_s19  ;;  %v10593_v56 = vpack.c.bf16 %v3467_v23, %v3467_v23 }
 0x1a9   :  { %1732 = vst.msk [vmem:[#allocation2 + $0x71] sm:$0xff] %vm44_vm1, %v1715_v32  ;;  %v1674_v57 = vadd.f32 %v11434_v50, %v1577_v9  ;;  %v1681_v50 = vpop.f32.mrf.mxu1  ;;  %v4083_v9 = vld [vmem:[#allocation3 + $0x90] sm:$0xff] }
 0x1ab   :  { %v1716_v59 = vmax.f32 %v1674_v57, 0.0  ;;  %1914 = vrot.lane.b32.xlu0 %v10549_v49, %s11798_s21  ;;  %v10609_v49 = vpack.c.bf16 %v3595_v5, %v3595_v5 }
 0x1ac   :  { %2392 = vrot.lane.b32.xlu1 %v10565_v41, %s11798_s21 }
 0x1ad   :  { %1733 = vst.msk [vmem:[#allocation2 + $0x81] sm:$0xff] %vm44_vm1, %v1716_v59 }
 0x1af   :  { %2042 = vrot.lane.b32.xlu0 %v10565_v41, %s11800_s19  ;;  %v10544_v41 = vpack.c.bf16 %v2462_v28, %v2462_v28 }
 0x1b0   :  { %2168 = vrot.lane.b32.xlu1 %v10533_v44, %s11801_s17  ;;  %v2708_v20 = vld [vmem:[#allocation2 + $0x72] sm:$0xff] }
 0x1b1   :  { %v2452_v37 = vld [vmem:[#allocation2 + $0x70] sm:$0xff]  ;;  %v10566_v60 = vpack.c.bf16 %v2708_v20, %v2708_v20 }
 0x1b2   :  { %v2580_v39 = vld [vmem:[#allocation2 + $0x71] sm:$0xff]  ;;  %v10534_v61 = vpack.c.bf16 %v2452_v37, %v2452_v37  ;;  %v10680_v37 = vpack.c.bf16 %v4083_v9, %v4083_v9 }
 0x1b3   :  { %v10550_v42 = vpack.c.bf16 %v2580_v39, %v2580_v39  ;;  %2788 = vst.msk [vmem:[#allocation4 + $0x44] sm:$0xf] %vm206_vm0, %v10566_v60  ;;  %2394 = vrot.lane.b32.xlu0 %v10566_v60, %s11798_s21  ;;  %v2590_v44 = vld [vmem:[#allocation2 + $0x131] sm:$0xff] }
 0x1b4   :  { %2521 = vrot.lane.b32.xlu1 %v10534_v61, %s11800_s19  ;;  %1829 = vst.msk [vmem:[#allocation4 + $0x54] sm:$0xf] %vm206_vm0, %v10534_v61  ;;  %v2709_v17 = vld [vmem:[#allocation2 + $0x82] sm:$0xff]  ;;  %v10560_v31 = vpack.c.bf16 %v2590_v44, %v2590_v44 }
 0x1b5   :  { %2308 = vst.msk [vmem:[#allocation4 + $0x4c] sm:$0xf] %vm206_vm0, %v10550_v42  ;;  %v2581_v43 = vld [vmem:[#allocation2 + $0x81] sm:$0xff]  ;;  %v10567_v47 = vpack.c.bf16 %v2709_v17, %v2709_v17 }
 0x1b6   :  { %v10551_v48 = vpack.c.bf16 %v2581_v43, %v2581_v43  ;;  %v2453_v33 = vld [vmem:[#allocation2 + $0x80] sm:$0xff]  ;;  %v11049_v29 = vpop.f32.mrf.mxu0  ;;  %v12920_v43 = vpop.permute.xlu1 %2525 }
 0x1b7   :  { %2789 = vst.msk [vmem:[#allocation4 + $0x50] sm:$0xf] %vm206_vm0, %v10567_v47  ;;  %2170 = vrot.lane.b32.xlu0 %v10534_v61, %s11801_s17  ;;  %v10535_v8 = vpack.c.bf16 %v2453_v33, %v2453_v33 }
 0x1b8   :  { %2649 = vrot.lane.b32.xlu1 %v10550_v42, %s11801_s17  ;;  %2309 = vst.msk [vmem:[#allocation4 + $0x58] sm:$0xf] %vm206_vm0, %v10551_v48  ;;  %v11050_v1 = vpop.f32.mrf.mxu0 }
 0x1b9   :  { %v11051_v3 = vadd.f32 %v11050_v1, %v11049_v29 }
 0x1ba   :  { %v11650_v4 = vld [vmem:[#allocation4 + $0x38] ss:$12 sps:$4 sm:$0xff]   ;;  %v11052_v6 = vpop.f32.mrf.mxu0 }
 0x1bb   :  { %2523 = vrot.lane.b32.xlu0 %v10535_v8, %s11800_s19  ;;  %v1582_v7 = vadd.f32 %v11051_v3, %v12745_v36  ;;  %11451 = vmatprep.mubr.msk.bf16.mxu0 %vm44_vm1, %v11650_v4 }
 0x1bc   :  { %1916 = vrot.lane.b32.xlu1 %v10550_v42, %s11798_s21  ;;  %v11053_v11 = vpop.f32.mrf.mxu0 }
 0x1bd   :  { %v1679_v12 = vadd.f32 %v1678_v2, %v1582_v7  ;;  %v11054_v13 = vadd.f32 %v11053_v11, %v11052_v6  ;;  %v12945_v7 = vpop.f32.mrf.mxu1 }
 0x1be   :  { %v11651_v14 = vld [vmem:[#allocation4 + $0x50] ss:$12 sps:$4 sm:$0xff]  }
 0x1bf   :  { %2651 = vrot.lane.b32.xlu0 %v10551_v48, %s11801_s17  ;;  %4419 = vst.msk [vmem:[#allocation4 + $0x5c] sm:$0xf] %vm206_vm0, %v10712_v45  ;;  %v1717_v18 = vmax.f32 %v1679_v12, 0.0  ;;  %v1585_v53 = vadd.f32 %v11054_v13, %v12745_v36  ;;  %11452 = vmatmul.mubr.msk.bf16.gmra.mxu0 %vm44_vm1, %v11651_v14  ;;  %v1694_v54 = vpop.f32.mrf.mxu1 }
 0x1c0   :  { %2044 = vrot.lane.b32.xlu1 %v10566_v60, %s11800_s19 }
 0x1c1   :  { %1734 = vst.msk [vmem:[#allocation2 + $0xb1] sm:$0xff] %vm44_vm1, %v1717_v18  ;;  %v1682_v19 = vadd.f32 %v1681_v50, %v1585_v53  ;;  %v12964_v23 = vpop.f32.mrf.mxu1 }
 0x1c3   :  { %1918 = vrot.lane.b32.xlu0 %v10457_v15, %s11798_s21  ;;  %v1718_v55 = vmax.f32 %v1682_v19, 0.0 }
 0x1c4   :  { %2396 = vrot.lane.b32.xlu1 %v10567_v47, %s11798_s21 }
 0x1c5   :  { %1735 = vst.msk [vmem:[#allocation2 + $0xc1] sm:$0xff] %vm44_vm1, %v1718_v55 }
 0x1c7   :  { %2046 = vrot.lane.b32.xlu0 %v10473_v21, %s11800_s19 }
 0x1c8   :  { %2172 = vrot.lane.b32.xlu1 %v10535_v8, %s11801_s17  ;;  %v1847_v35 = vld [vmem:[#allocation2 + $0xb1] sm:$0xff] }
 0x1c9   :  { %v2102_v30 = vld [vmem:[#allocation2 + $0xb0] sm:$0xff]  ;;  %v10458_v34 = vpack.c.bf16 %v1847_v35, %v1847_v35 }
 0x1ca   :  { %v10489_v58 = vpack.c.bf16 %v2102_v30, %v2102_v30  ;;  %v2326_v40 = vld [vmem:[#allocation2 + $0xb2] sm:$0xff] }
 0x1cb   :  { %3531 = vrot.lane.b32.xlu0 %v10593_v56, %s11798_s21  ;;  %2310 = vst.msk [vmem:[#allocation4 + $0x64] sm:$0xf] %vm206_vm0, %v10458_v34  ;;  %v10521_v32 = vpack.c.bf16 %v2326_v40, %v2326_v40  ;;  %v3371_v56 = vld [vmem:[#allocation3] sm:$0xff] }
 0x1cc   :  { %2653 = vrot.lane.b32.xlu1 %v10552_v24, %s11801_s17  ;;  %1831 = vst.msk [vmem:[#allocation4 + $0x6c] sm:$0xf] %vm206_vm0, %v10489_v58  ;;  %v2711_v51 = vld [vmem:[#allocation2 + $0xc2] sm:$0xff] }
 0x1cd   :  { %v2455_v63 = vld [vmem:[#allocation2 + $0xc0] sm:$0xff]  ;;  %v12904_v52 = vpack.c.bf16 %v2711_v51, %v2711_v51 }
 0x1ce   :  { %v2583_v0 = vld [vmem:[#allocation2 + $0xc1] sm:$0xff]  ;;  %v12906_v26 = vpack.c.bf16 %v2455_v63, %v2455_v63  ;;  %v11055_v27 = vpop.f32.mrf.mxu0 }
 0x1cf   :  { %v10553_v10 = vpack.c.bf16 %v2583_v0, %v2583_v0  ;;  %2791 = vst.msk [vmem:[#allocation4 + $0x68] sm:$0xf] %vm206_vm0, %v12904_v52  ;;  %3659 = vrot.lane.b32.xlu0 %v10609_v49, %s11800_s19 }
 0x1d0   :  { %2541 = vrot.lane.b32.xlu1 %v10544_v41, %s11800_s19  ;;  %1832 = vst.msk [vmem:[#allocation4 + $0x78] sm:$0xf] %vm206_vm0, %v12906_v26  ;;  %v11056_v57 = vpop.f32.mrf.mxu0  ;;  %v10577_v41 = vpack.c.bf16 %v3371_v56, %v3371_v56 }
 0x1d1   :  { %2311 = vst.msk [vmem:[#allocation4 + $0x70] sm:$0xf] %vm206_vm0, %v10553_v10  ;;  %v11057_v59 = vadd.f32 %v11056_v57, %v11055_v27 }
 0x1d2   :  { %v11058_v20 = vpop.f32.mrf.mxu0 }
 0x1d3   :  { %v1590_v39 = vadd.f32 %v11057_v59, %v12745_v36  ;;  %2398 = vrot.lane.b32.xlu0 %v10521_v32, %s11798_s21 }
 0x1d4   :  { %2669 = vrot.lane.b32.xlu1 %v10560_v31, %s11801_s17  ;;  %v11059_v60 = vpop.f32.mrf.mxu0 }
 0x1d5   :  { %v1687_v61 = vadd.f32 %v12877_v62, %v1590_v39  ;;  %v11060_v42 = vadd.f32 %v11059_v60, %v11058_v20 }
 0x1d7   :  { %v1719_v17 = vmax.f32 %v1687_v61, 0.0  ;;  %2174 = vrot.lane.b32.xlu0 %v10489_v58, %s11801_s17  ;;  %v1593_v47 = vadd.f32 %v11060_v42, %v12745_v36  ;;  %v1697_v58 = vpop.f32.mrf.mxu1 }
 0x1d8   :  { %4154 = vrot.lane.b32.xlu1 %v10680_v37, %s11800_s19 }
 0x1d9   :  { %1736 = vst.msk [vmem:[#allocation2 + $0xd1] sm:$0xff] %vm44_vm1, %v1719_v17  ;;  %v1690_v48 = vadd.f32 %v12883_v16, %v1593_v47 }
 0x1db   :  { %2527 = vrot.lane.b32.xlu0 %v12906_v26, %s11800_s19  ;;  %v1720_v62 = vmax.f32 %v1690_v48, 0.0 }
 0x1dc   :  { %1920 = vrot.lane.b32.xlu1 %v10458_v34, %s11798_s21 }
 0x1dd   :  { %v2383_v33 = vpop.permute.xlu0 %2382  ;;  %1737 = vst.msk [vmem:[#allocation2 + $0xe1] sm:$0xff] %vm44_vm1, %v1720_v62 }
 0x1de   :  { %v1905_v29 = vpop.permute.xlu1 %1904  ;;  %2430 = vst.msk [vmem:[#allocation4 + $0x4] sm:$0xf] %vm335_vm3, %v2383_v33 }
 0x1df   :  { %1951 = vst.msk [vmem:[#allocation4 + $0xc] sm:$0xf] %vm335_vm3, %v1905_v29  ;;  %2655 = vrot.lane.b32.xlu0 %v10553_v10, %s11801_s17 }
 0x1e0   :  { %2048 = vrot.lane.b32.xlu1 %v10521_v32, %s11800_s19  ;;  %v2712_v25 = vld [vmem:[#allocation2 + $0xd2] sm:$0xff] }
 0x1e1   :  { %v2456_v1 = vld [vmem:[#allocation2 + $0xd0] sm:$0xff]  ;;  %v12934_v8 = vpack.c.bf16 %v2712_v25, %v2712_v25  ;;  %v2159_v3 = vpop.permute.xlu0 %2158 }
 0x1e2   :  { %v2584_v2 = vld [vmem:[#allocation2 + $0xd1] sm:$0xff]  ;;  %v2033_v4 = vpop.permute.xlu1 %2032  ;;  %v10538_v6 = vpack.c.bf16 %v2456_v1, %v2456_v1  ;;  %2206 = vst.msk [vmem:[#allocation4] sm:$0xf] %vm594_vm5, %v2159_v3 }
 0x1e3   :  { %v10554_v16 = vpack.c.bf16 %v2584_v2, %v2584_v2  ;;  %2079 = vst.msk [vmem:[#allocation4 + $0xc] sm:$0xf] %vm464_vm4, %v2033_v4  ;;  %1922 = vrot.lane.b32.xlu0 %v10553_v10, %s11798_s21 }
 0x1e4   :  { %2792 = vst.msk [vmem:[#allocation4 + $0x74] sm:$0xf] %vm206_vm0, %v12934_v8  ;;  %2400 = vrot.lane.b32.xlu1 %v12904_v52, %s11798_s21  ;;  %1833 = vst.msk [vmem:[#allocation4 + $0x84] sm:$0xf] %vm206_vm0, %v10538_v6  ;;  %v2713_v45 = vld [vmem:[#allocation2 + $0xe2] sm:$0xff] }
 0x1e5   :  { %2312 = vst.msk [vmem:[#allocation4 + $0x7c] sm:$0xf] %vm206_vm0, %v10554_v16  ;;  %v2457_v38 = vld [vmem:[#allocation2 + $0xe0] sm:$0xff]  ;;  %v2512_v12 = vpop.permute.xlu0 %2511  ;;  %v12947_v14 = vpack.c.bf16 %v2713_v45, %v2713_v45 }
 0x1e6   :  { %v2585_v11 = vld [vmem:[#allocation2 + $0xe1] sm:$0xff]  ;;  %v2385_v13 = vpop.permute.xlu1 %2384  ;;  %v12949_v50 = vpack.c.bf16 %v2457_v38, %v2457_v38  ;;  %2559 = vst.msk [vmem:[#allocation4 + $0x4] sm:$0xf] %vm464_vm4, %v2512_v12  ;;  %v11061_v18 = vpop.f32.mrf.mxu0 }
 0x1e7   :  { %v10555_v15 = vpack.c.bf16 %v2585_v11, %v2585_v11  ;;  %2431 = vst.msk [vmem:[#allocation4 + $0x10] sm:$0xf] %vm335_vm3, %v2385_v13  ;;  %2050 = vrot.lane.b32.xlu0 %v12904_v52, %s11800_s19 }
 0x1e8   :  { %2176 = vrot.lane.b32.xlu1 %v12906_v26, %s11801_s17  ;;  %2793 = vst.msk [vmem:[#allocation4 + $0x80] sm:$0xf] %vm206_vm0, %v12947_v14  ;;  %1834 = vst.msk [vmem:[#allocation4 + $0x90] sm:$0xf] %vm206_vm0, %v12949_v50  ;;  %v11062_v53 = vpop.f32.mrf.mxu0 }
 0x1e9   :  { %2313 = vst.msk [vmem:[#allocation4 + $0x88] sm:$0xf] %vm206_vm0, %v10555_v15  ;;  %v2640_v19 = vpop.permute.xlu0 %2639  ;;  %v11063_v55 = vadd.f32 %v11062_v53, %v11061_v18 }
 0x1ea   :  { %v2161_v21 = vpop.permute.xlu1 %2160  ;;  %2687 = vst.msk [vmem:[#allocation4 + $0x4] sm:$0xf] %vm594_vm5, %v2640_v19  ;;  %v11064_v22 = vpop.f32.mrf.mxu0 }
 0x1eb   :  { %2207 = vst.msk [vmem:[#allocation4 + $0xc] sm:$0xf] %vm594_vm5, %v2161_v21  ;;  %v11668_v24 = vld [vmem:[#allocation4 + $0x68] ss:$12 sps:$4 sm:$0xff]   ;;  %2402 = vrot.lane.b32.xlu0 %v12934_v8, %s11798_s21  ;;  %v1598_v28 = vadd.f32 %v11063_v55, %v12745_v36 }
 0x1ec   :  { %2529 = vrot.lane.b32.xlu1 %v10538_v6, %s11800_s19  ;;  %v11065_v5 = vpop.f32.mrf.mxu0  ;;  %11455 = vmatprep.mubr.msk.bf16.mxu0 %vm44_vm1, %v11668_v24 }
 0x1ed   :  { %v1907_v35 = vpop.permute.xlu0 %1906  ;;  %v1695_v30 = vadd.f32 %v1694_v54, %v1598_v28  ;;  %v11066_v34 = vadd.f32 %v11065_v5, %v11064_v22 }
 0x1ee   :  { %1952 = vst.msk [vmem:[#allocation4 + $0x18] sm:$0xf] %vm335_vm3, %v1907_v35 }
 0x1ef   :  { %v1721_v44 = vmax.f32 %v1695_v30, 0.0  ;;  %2178 = vrot.lane.b32.xlu0 %v10538_v6, %s11801_s17  ;;  %v1601_v49 = vadd.f32 %v11066_v34, %v12745_v36 }
 0x1f0   :  { %2657 = vrot.lane.b32.xlu1 %v10554_v16, %s11801_s17 }
 0x1f1   :  { %v12975_v40 = vld [vmem:[#allocation4] sm:$0xff]  ;;  %v2035_v51 = vpop.permute.xlu0 %2034  ;;  %1738 = vst.msk [vmem:[#allocation2 + $0xf1] sm:$0xff] %vm44_vm1, %v1721_v44  ;;  %v1698_v63 = vadd.f32 %v1697_v58, %v1601_v49  ;;  %v4347_v44 = vld [vmem:[#allocation3 + $0x132] sm:$0xff] }
 0x1f2   :  { %2080 = vst.msk [vmem:[#allocation4 + $0x18] sm:$0xf] %vm464_vm4, %v2035_v51 }
 0x1f3   :  { %3451 = vst.msk [vmem:[#allocation4] sm:$0xf] %vm206_vm0, %v10577_v41  ;;  %2531 = vrot.lane.b32.xlu0 %v12949_v50, %s11800_s19  ;;  %v1722_v0 = vmax.f32 %v1698_v63, 0.0 }
 0x1f4   :  { %1924 = vrot.lane.b32.xlu1 %v10554_v16, %s11798_s21 }
 0x1f5   :  { %v2387_v52 = vpop.permute.xlu0 %2386  ;;  %1739 = vst.msk [vmem:[#allocation2 + $0x101] sm:$0xff] %vm44_vm1, %v1722_v0 }
 0x1f6   :  { %v2514_v26 = vpop.permute.xlu1 %2513  ;;  %2432 = vst.msk [vmem:[#allocation4 + $0x1c] sm:$0xf] %vm335_vm3, %v2387_v52 }
 0x1f7   :  { %2560 = vst.msk [vmem:[#allocation4 + $0x10] sm:$0xf] %vm464_vm4, %v2514_v26  ;;  %2659 = vrot.lane.b32.xlu0 %v10555_v15, %s11801_s17 }
 0x1f8   :  { %2052 = vrot.lane.b32.xlu1 %v12934_v8, %s11800_s19  ;;  %v2714_v10 = vld [vmem:[#allocation2 + $0xf2] sm:$0xff] }
 0x1f9   :  { %v2458_v27 = vld [vmem:[#allocation2 + $0xf0] sm:$0xff]  ;;  %v12989_v32 = vpack.c.bf16 %v2714_v10, %v2714_v10  ;;  %v2163_v9 = vpop.permute.xlu0 %2162  ;;  %v10720_v10 = vpack.c.bf16 %v4347_v44, %v4347_v44 }
 0x1fa   :  { %v2586_v31 = vld [vmem:[#allocation2 + $0xf1] sm:$0xff]  ;;  %v2642_v57 = vpop.permute.xlu1 %2641  ;;  %v10540_v59 = vpack.c.bf16 %v2458_v27, %v2458_v27  ;;  %2208 = vst.msk [vmem:[#allocation4 + $0x18] sm:$0xf] %vm594_vm5, %v2163_v9 }
 0x1fb   :  { %v10556_v20 = vpack.c.bf16 %v2586_v31, %v2586_v31  ;;  %2688 = vst.msk [vmem:[#allocation4 + $0x10] sm:$0xf] %vm594_vm5, %v2642_v57  ;;  %1926 = vrot.lane.b32.xlu0 %v10555_v15, %s11798_s21 }
 0x1fc   :  { %2794 = vst.msk [vmem:[#allocation4 + $0x8c] sm:$0xf] %vm206_vm0, %v12989_v32  ;;  %2404 = vrot.lane.b32.xlu1 %v12947_v14, %s11798_s21  ;;  %1835 = vst.msk [vmem:[#allocation4 + $0x9c] sm:$0xf] %vm206_vm0, %v10540_v59  ;;  %v2715_v37 = vld [vmem:[#allocation2 + $0x102] sm:$0xff] }
 0x1fd   :  { %2314 = vst.msk [vmem:[#allocation4 + $0x94] sm:$0xf] %vm206_vm0, %v10556_v20  ;;  %v2459_v39 = vld [vmem:[#allocation2 + $0x100] sm:$0xff]  ;;  %v2516_v61 = vpop.permute.xlu0 %2515  ;;  %v13000_v17 = vpack.c.bf16 %v2715_v37, %v2715_v37 }
 0x1fe   :  { %v2587_v60 = vld [vmem:[#allocation2 + $0x101] sm:$0xff]  ;;  %v1909_v42 = vpop.permute.xlu1 %1908  ;;  %v13002_v47 = vpack.c.bf16 %v2459_v39, %v2459_v39  ;;  %2561 = vst.msk [vmem:[#allocation4 + $0x1c] sm:$0xf] %vm464_vm4, %v2516_v61  ;;  %v11067_v62 = vpop.f32.mrf.mxu0 }
 0x1ff   :  { %v13004_v48 = vpack.c.bf16 %v2587_v60, %v2587_v60  ;;  %1953 = vst.msk [vmem:[#allocation4 + $0x24] sm:$0xf] %vm335_vm3, %v1909_v42  ;;  %2054 = vrot.lane.b32.xlu0 %v12947_v14, %s11800_s19 }
 0x200   :  { %2180 = vrot.lane.b32.xlu1 %v12949_v50, %s11801_s17  ;;  %2795 = vst.msk [vmem:[#allocation4 + $0x98] sm:$0xf] %vm206_vm0, %v13000_v17  ;;  %1836 = vst.msk [vmem:[#allocation4 + $0xa8] sm:$0xf] %vm206_vm0, %v13002_v47  ;;  %v11068_v33 = vpop.f32.mrf.mxu0 }
 0x201   :  { %2315 = vst.msk [vmem:[#allocation4 + $0xa0] sm:$0xf] %vm206_vm0, %v13004_v48  ;;  %v2644_v25 = vpop.permute.xlu0 %2643  ;;  %v11069_v2 = vadd.f32 %v11068_v33, %v11067_v62 }
 0x202   :  { %v2801_v29 = vld [vmem:[#allocation4 + $0xc] sm:$0xff]  ;;  %v2037_v1 = vpop.permute.xlu1 %2036  ;;  %2689 = vst.msk [vmem:[#allocation4 + $0x1c] sm:$0xf] %vm594_vm5, %v2644_v25  ;;  %v11070_v4 = vpop.f32.mrf.mxu0 }
 0x203   :  { %2081 = vst.msk [vmem:[#allocation4 + $0x24] sm:$0xf] %vm464_vm4, %v2037_v1  ;;  %v9515_v8 = vcombine.high %v12975_v40, %v2801_v29  ;;  %v9514_v3 = vcombine.low %v12975_v40, %v2801_v29  ;;  %v11669_v6 = vld [vmem:[#allocation4 + $0x80] ss:$12 sps:$4 sm:$0xff]   ;;  %v1606_v16 = vadd.f32 %v11069_v2, %v12745_v36  ;;  %2406 = vrot.lane.b32.xlu0 %v12989_v32, %s11798_s21 }
 0x204   :  { %2533 = vrot.lane.b32.xlu1 %v10540_v59, %s11800_s19  ;;  %v11071_v45 = vpop.f32.mrf.mxu0  ;;  %11456 = vmatmul.mubr.msk.bf16.gmra.mxu0 %vm44_vm1, %v11669_v6 }
 0x205   :  { %3160 = vmatprep.mubr.bf16.mxu1 %v9515_v8  ;;  %v1911_v38 = vpop.permute.xlu0 %1910  ;;  %v1703_v12 = vadd.f32 %v12945_v7, %v1606_v16  ;;  %v11072_v13 = vadd.f32 %v11071_v45, %v11070_v4 }
 0x206   :  { %v2389_v11 = vpop.permute.xlu1 %2388  ;;  %3161 = vmatmul.mubr.bf16.vlgmr.msra.gmra.mxu1 %v9514_v3  ;;  %1954 = vst.msk [vmem:[#allocation4 + $0x30] sm:$0xf] %vm335_vm3, %v1911_v38 }
 0x207   :  { %2433 = vst.msk [vmem:[#allocation4 + $0x28] sm:$0xf] %vm335_vm3, %v2389_v11  ;;  %v1723_v14 = vmax.f32 %v1703_v12, 0.0  ;;  %2182 = vrot.lane.b32.xlu0 %v10540_v59, %s11801_s17  ;;  %v1609_v50 = vadd.f32 %v11072_v13, %v12745_v36 }
 0x208   :  { %2661 = vrot.lane.b32.xlu1 %v10556_v20, %s11801_s17 }
 0x209   :  { %1740 = vst.msk [vmem:[#allocation2 + $0x111] sm:$0xff] %vm44_vm1, %v1723_v14  ;;  %v2039_v15 = vpop.permute.xlu0 %2038  ;;  %v1706_v53 = vadd.f32 %v12964_v23, %v1609_v50  ;;  %v2803_v49 = vld [vmem:[#allocation4 + $0x18] sm:$0xff] }
 0x20a   :  { %v2165_v18 = vpop.permute.xlu1 %2164  ;;  %2082 = vst.msk [vmem:[#allocation4 + $0x30] sm:$0xf] %vm464_vm4, %v2039_v15 }
 0x20b   :  { %2209 = vst.msk [vmem:[#allocation4 + $0x24] sm:$0xf] %vm594_vm5, %v2165_v18  ;;  %2535 = vrot.lane.b32.xlu0 %v13002_v47, %s11800_s19  ;;  %v1724_v7 = vmax.f32 %v1706_v53, 0.0 }
 0x20c   :  { %1928 = vrot.lane.b32.xlu1 %v10556_v20, %s11798_s21 }
 0x20d   :  { %v2391_v54 = vpop.permute.xlu0 %2390  ;;  %1741 = vst.msk [vmem:[#allocation2 + $0x121] sm:$0xff] %vm44_vm1, %v1724_v7 }
 0x20e   :  { %v2518_v19 = vpop.permute.xlu1 %2517  ;;  %2434 = vst.msk [vmem:[#allocation4 + $0x34] sm:$0xf] %vm335_vm3, %v2391_v54 }
 0x20f   :  { %2562 = vst.msk [vmem:[#allocation4 + $0x28] sm:$0xf] %vm464_vm4, %v2518_v19  ;;  %2663 = vrot.lane.b32.xlu0 %v13004_v48, %s11801_s17 }
 0x210   :  { %2056 = vrot.lane.b32.xlu1 %v12989_v32, %s11800_s19  ;;  %v2716_v36 = vld [vmem:[#allocation2 + $0x112] sm:$0xff] }
 0x211   :  { %v2460_v21 = vld [vmem:[#allocation2 + $0x110] sm:$0xff]  ;;  %v10574_v22 = vpack.c.bf16 %v2716_v36, %v2716_v36  ;;  %v2167_v23 = vpop.permute.xlu0 %2166 }
 0x212   :  { %v2588_v55 = vld [vmem:[#allocation2 + $0x111] sm:$0xff]  ;;  %v2646_v24 = vpop.permute.xlu1 %2645  ;;  %v10542_v28 = vpack.c.bf16 %v2460_v21, %v2460_v21  ;;  %2210 = vst.msk [vmem:[#allocation4 + $0x30] sm:$0xf] %vm594_vm5, %v2167_v23 }
 0x213   :  { %v10558_v56 = vpack.c.bf16 %v2588_v55, %v2588_v55  ;;  %2690 = vst.msk [vmem:[#allocation4 + $0x28] sm:$0xf] %vm594_vm5, %v2646_v24  ;;  %1930 = vrot.lane.b32.xlu0 %v13004_v48, %s11798_s21 }
 0x214   :  { %2796 = vst.msk [vmem:[#allocation4 + $0xa4] sm:$0xf] %vm206_vm0, %v10574_v22  ;;  %2408 = vrot.lane.b32.xlu1 %v13000_v17, %s11798_s21  ;;  %1837 = vst.msk [vmem:[#allocation4 + $0xb4] sm:$0xf] %vm206_vm0, %v10542_v28  ;;  %v2717_v5 = vld [vmem:[#allocation2 + $0x122] sm:$0xff] }
 0x215   :  { %2316 = vst.msk [vmem:[#allocation4 + $0xac] sm:$0xf] %vm206_vm0, %v10558_v56  ;;  %v2589_v35 = vld [vmem:[#allocation2 + $0x121] sm:$0xff]  ;;  %v2520_v30 = vpop.permute.xlu0 %2519  ;;  %v10575_v58 = vpack.c.bf16 %v2717_v5, %v2717_v5 }
 0x216   :  { %v1913_v34 = vpop.permute.xlu1 %1912  ;;  %v10559_v41 = vpack.c.bf16 %v2589_v35, %v2589_v35  ;;  %2563 = vst.msk [vmem:[#allocation4 + $0x34] sm:$0xf] %vm464_vm4, %v2520_v30  ;;  %v2461_v27 = vld [vmem:[#allocation2 + $0x120] sm:$0xff] }
 0x217   :  { %1955 = vst.msk [vmem:[#allocation4 + $0x3c] sm:$0xf] %vm335_vm3, %v1913_v34  ;;  %2058 = vrot.lane.b32.xlu0 %v13000_v17, %s11800_s19  ;;  %v10543_v57 = vpack.c.bf16 %v2461_v27, %v2461_v27 }
 0x218   :  { %2184 = vrot.lane.b32.xlu1 %v13002_v47, %s11801_s17  ;;  %2797 = vst.msk [vmem:[#allocation4 + $0xb0] sm:$0xf] %vm206_vm0, %v10575_v58  ;;  %2317 = vst.msk [vmem:[#allocation4 + $0xb8] sm:$0xf] %vm206_vm0, %v10559_v41 }
 0x219   :  { %v2648_v51 = vpop.permute.xlu0 %2647 }
 0x21a   :  { %v2805_v40 = vld [vmem:[#allocation4 + $0x24] sm:$0xff]  ;;  %v2041_v63 = vpop.permute.xlu1 %2040  ;;  %2691 = vst.msk [vmem:[#allocation4 + $0x34] sm:$0xf] %vm594_vm5, %v2648_v51 }
 0x21b   :  { %2083 = vst.msk [vmem:[#allocation4 + $0x3c] sm:$0xf] %vm464_vm4, %v2041_v63  ;;  %v9518_v0 = vcombine.high %v2803_v49, %v2805_v40  ;;  %v9517_v52 = vcombine.low %v2803_v49, %v2805_v40  ;;  %v11670_v26 = vld [vmem:[#allocation4 + $0x98] ss:$12 sps:$4 sm:$0xff]   ;;  %2410 = vrot.lane.b32.xlu0 %v10574_v22, %s11798_s21 }
 0x21c   :  { %2537 = vrot.lane.b32.xlu1 %v10542_v28, %s11800_s19  ;;  %11459 = vmatprep.mubr.msk.bf16.mxu0 %vm44_vm1, %v11670_v26 }
 0x21d   :  { %3168 = vmatprep.mubr.bf16.mxu1 %v9518_v0  ;;  %v1915_v31 = vpop.permute.xlu0 %1914 }
 0x21e   :  { %v2393_v32 = vpop.permute.xlu1 %2392  ;;  %3169 = vmatmul.mubr.bf16.gmra.mxu1 %v9517_v52  ;;  %1956 = vst.msk [vmem:[#allocation4 + $0x48] sm:$0xf] %vm335_vm3, %v1915_v31 }
 0x21f   :  { %2435 = vst.msk [vmem:[#allocation4 + $0x40] sm:$0xf] %vm335_vm3, %v2393_v32  ;;  %v11671_v9 = vld [vmem:[#allocation4 + $0xb0] ss:$12 sps:$4 sm:$0xff]   ;;  %2186 = vrot.lane.b32.xlu0 %v10542_v28, %s11801_s17 }
 0x220   :  { %2665 = vrot.lane.b32.xlu1 %v10558_v56, %s11801_s17  ;;  %4427 = vst.msk [vmem:[#allocation4 + $0xbc] sm:$0xf] %vm206_vm0, %v10720_v10  ;;  %11460 = vmatmul.mubr.msk.bf16.gmra.mxu0 %vm44_vm1, %v11671_v9 }
 0x221   :  { %v2043_v59 = vpop.permute.xlu0 %2042  ;;  %v2807_v47 = vld [vmem:[#allocation4 + $0x30] sm:$0xff] }
 0x222   :  { %v2169_v20 = vpop.permute.xlu1 %2168  ;;  %2084 = vst.msk [vmem:[#allocation4 + $0x48] sm:$0xf] %vm464_vm4, %v2043_v59 }
 0x223   :  { %2211 = vst.msk [vmem:[#allocation4 + $0x3c] sm:$0xf] %vm594_vm5, %v2169_v20  ;;  %2539 = vrot.lane.b32.xlu0 %v10543_v57, %s11800_s19 }
 0x224   :  { %1932 = vrot.lane.b32.xlu1 %v10558_v56, %s11798_s21 }
 0x225   :  { %v2395_v37 = vpop.permute.xlu0 %2394 }
 0x226   :  { %v2522_v39 = vpop.permute.xlu1 %2521  ;;  %2436 = vst.msk [vmem:[#allocation4 + $0x4c] sm:$0xf] %vm335_vm3, %v2395_v37 }
 0x227   :  { %2564 = vst.msk [vmem:[#allocation4 + $0x40] sm:$0xf] %vm464_vm4, %v2522_v39  ;;  %2667 = vrot.lane.b32.xlu0 %v10559_v41, %s11801_s17 }
 0x228   :  { %2060 = vrot.lane.b32.xlu1 %v10574_v22, %s11800_s19 }
 0x229   :  { %v2171_v60 = vpop.permute.xlu0 %2170 }
 0x22a   :  { %v2650_v61 = vpop.permute.xlu1 %2649  ;;  %2212 = vst.msk [vmem:[#allocation4 + $0x48] sm:$0xf] %vm594_vm5, %v2171_v60 }
 0x22b   :  { %2692 = vst.msk [vmem:[#allocation4 + $0x40] sm:$0xf] %vm594_vm5, %v2650_v61 }
 0x22c   :  { %2412 = vrot.lane.b32.xlu1 %v10575_v58, %s11798_s21 }
 0x22d   :  { %v2524_v42 = vpop.permute.xlu0 %2523 }
 0x22e   :  { %v1917_v17 = vpop.permute.xlu1 %1916  ;;  %2565 = vst.msk [vmem:[#allocation4 + $0x4c] sm:$0xf] %vm464_vm4, %v2524_v42 }
 0x22f   :  { %1957 = vst.msk [vmem:[#allocation4 + $0x54] sm:$0xf] %vm335_vm3, %v1917_v17  ;;  %v11673_v17 = vld [vmem:[%s14449_s1 + $0x1a8] sm:$0xff]  }
 0x230   :  { %2188 = vrot.lane.b32.xlu1 %v10543_v57, %s11801_s17  ;;  %11463 = vmatprep.subr.bf16.mxu0 %v11673_v17 }
 0x231   :  { %v2652_v62 = vpop.permute.xlu0 %2651  ;;  %11464 = vmatpush3.bf16.msra.mxu0 %v11673_v17  ;;  %v11686_v17 = vld [vmem:[%s14449_s1 + $0x178] sm:$0xff]  }
 0x232   :  { %v2809_v48 = vld [vmem:[#allocation4 + $0x3c] sm:$0xff]  ;;  %v2045_v33 = vpop.permute.xlu1 %2044  ;;  %2693 = vst.msk [vmem:[#allocation4 + $0x4c] sm:$0xf] %vm594_vm5, %v2652_v62 }
 0x233   :  { %2085 = vst.msk [vmem:[#allocation4 + $0x54] sm:$0xf] %vm464_vm4, %v2045_v33  ;;  %v9521_v29 = vcombine.high %v2807_v47, %v2809_v48  ;;  %v9520_v25 = vcombine.low %v2807_v47, %v2809_v48  ;;  %v11674_v62 = vld [vmem:[%s14449_s1 + $0x1a0] sm:$0xff]  }
 0x234   :  { %11465 = vmatprep.subr.bf16.mxu0 %v11674_v62 }
 0x235   :  { %3176 = vmatprep.mubr.bf16.mxu1 %v9521_v29  ;;  %v1919_v2 = vpop.permute.xlu0 %1918  ;;  %11466 = vmatpush3.bf16.msra.mxu0 %v11674_v62 }
 0x236   :  { %v2397_v1 = vpop.permute.xlu1 %2396  ;;  %3177 = vmatmul.mubr.bf16.gmra.mxu1 %v9520_v25  ;;  %1958 = vst.msk [vmem:[#allocation4 + $0x60] sm:$0xf] %vm335_vm3, %v1919_v2 }
 0x237   :  { %2437 = vst.msk [vmem:[#allocation4 + $0x58] sm:$0xf] %vm335_vm3, %v2397_v1 }
 0x238   :  { %2566 = vst.msk [vmem:[#allocation4 + $0x58] sm:$0xf] %vm464_vm4, %v12920_v43 }
 0x239   :  { %v2047_v3 = vpop.permute.xlu0 %2046  ;;  %v2811_v38 = vld [vmem:[#allocation4 + $0x48] sm:$0xff] }
 0x23a   :  { %v2173_v8 = vpop.permute.xlu1 %2172  ;;  %2086 = vst.msk [vmem:[#allocation4 + $0x60] sm:$0xf] %vm464_vm4, %v2047_v3 }
 0x23b   :  { %2213 = vst.msk [vmem:[#allocation4 + $0x54] sm:$0xf] %vm594_vm5, %v2173_v8 }
 0x23d   :  { %v3532_v6 = vpop.permute.xlu0 %3531 }
 0x23e   :  { %v2654_v4 = vpop.permute.xlu1 %2653  ;;  %3579 = vst.msk [vmem:[#allocation4] sm:$0xf] %vm335_vm3, %v3532_v6 }
 0x23f   :  { %2694 = vst.msk [vmem:[#allocation4 + $0x58] sm:$0xf] %vm594_vm5, %v2654_v4 }
 0x241   :  { %v3660_v45 = vpop.permute.xlu0 %3659 }
 0x242   :  { %v13099_v16 = vpop.permute.xlu1 %2541  ;;  %3707 = vst.msk [vmem:[#allocation4] sm:$0xf] %vm464_vm4, %v3660_v45 }
 0x245   :  { %v2399_v12 = vpop.permute.xlu0 %2398 }
 0x246   :  { %v2813_v11 = vld [vmem:[#allocation4 + $0x54] sm:$0xff]  ;;  %v13102_v43 = vpop.permute.xlu1 %2669  ;;  %2438 = vst.msk [vmem:[#allocation4 + $0x64] sm:$0xf] %vm335_vm3, %v2399_v12 }
 0x247   :  { %v9524_v13 = vcombine.high %v2811_v38, %v2813_v11  ;;  %v9523_v14 = vcombine.low %v2811_v38, %v2813_v11 }
 0x249   :  { %3184 = vmatprep.mubr.bf16.mxu1 %v9524_v13  ;;  %v2175_v15 = vpop.permute.xlu0 %2174 }
 0x24a   :  { %v13105_v50 = vpop.permute.xlu1 %4154  ;;  %3185 = vmatmul.mubr.bf16.gmra.mxu1 %v9523_v14  ;;  %2214 = vst.msk [vmem:[#allocation4 + $0x60] sm:$0xf] %vm594_vm5, %v2175_v15 }
 0x24d   :  { %v2528_v53 = vpop.permute.xlu0 %2527 }
 0x24e   :  { %v1921_v18 = vpop.permute.xlu1 %1920  ;;  %2567 = vst.msk [vmem:[#allocation4 + $0x64] sm:$0xf] %vm464_vm4, %v2528_v53 }
 0x24f   :  { %1959 = vst.msk [vmem:[#allocation4 + $0x6c] sm:$0xf] %vm335_vm3, %v1921_v18 }
 0x251   :  { %v2656_v54 = vpop.permute.xlu0 %2655 }
 0x252   :  { %v2049_v7 = vpop.permute.xlu1 %2048  ;;  %2695 = vst.msk [vmem:[#allocation4 + $0x64] sm:$0xf] %vm594_vm5, %v2656_v54 }
 0x253   :  { %2087 = vst.msk [vmem:[#allocation4 + $0x6c] sm:$0xf] %vm464_vm4, %v2049_v7 }
 0x255   :  { %v1923_v36 = vpop.permute.xlu0 %1922 }
 0x256   :  { %v2401_v19 = vpop.permute.xlu1 %2400  ;;  %1960 = vst.msk [vmem:[#allocation4 + $0x78] sm:$0xf] %vm335_vm3, %v1923_v36 }
 0x257   :  { %2439 = vst.msk [vmem:[#allocation4 + $0x70] sm:$0xf] %vm335_vm3, %v2401_v19 }
 0x259   :  { %v2051_v55 = vpop.permute.xlu0 %2050  ;;  %v2815_v35 = vld [vmem:[#allocation4 + $0x60] sm:$0xff] }
 0x25a   :  { %v2177_v21 = vpop.permute.xlu1 %2176  ;;  %2088 = vst.msk [vmem:[#allocation4 + $0x78] sm:$0xf] %vm464_vm4, %v2051_v55 }
 0x25b   :  { %2215 = vst.msk [vmem:[#allocation4 + $0x6c] sm:$0xf] %vm594_vm5, %v2177_v21 }
 0x25d   :  { %v2403_v23 = vpop.permute.xlu0 %2402 }
 0x25e   :  { %v2530_v22 = vpop.permute.xlu1 %2529  ;;  %2440 = vst.msk [vmem:[#allocation4 + $0x7c] sm:$0xf] %vm335_vm3, %v2403_v23 }
 0x25f   :  { %2568 = vst.msk [vmem:[#allocation4 + $0x70] sm:$0xf] %vm464_vm4, %v2530_v22 }
 0x261   :  { %v2179_v28 = vpop.permute.xlu0 %2178 }
 0x262   :  { %v2658_v24 = vpop.permute.xlu1 %2657  ;;  %2216 = vst.msk [vmem:[#allocation4 + $0x78] sm:$0xf] %vm594_vm5, %v2179_v28 }
 0x263   :  { %2696 = vst.msk [vmem:[#allocation4 + $0x70] sm:$0xf] %vm594_vm5, %v2658_v24  ;;  %v13160_v18 = vpop.f32.mrf.mxu0 }
 0x265   :  { %v2532_v5 = vpop.permute.xlu0 %2531  ;;  %v3259_v7 = vpop.f32.mrf.mxu0 }
 0x266   :  { %v1925_v56 = vpop.permute.xlu1 %1924  ;;  %2569 = vst.msk [vmem:[#allocation4 + $0x7c] sm:$0xf] %vm464_vm4, %v2532_v5 }
 0x267   :  { %1961 = vst.msk [vmem:[#allocation4 + $0x84] sm:$0xf] %vm335_vm3, %v1925_v56  ;;  %v13168_v21 = vpop.f32.mrf.mxu0 }
 0x269   :  { %v2660_v58 = vpop.permute.xlu0 %2659  ;;  %v3262_v56 = vpop.f32.mrf.mxu0 }
 0x26a   :  { %v2817_v30 = vld [vmem:[#allocation4 + $0x6c] sm:$0xff]  ;;  %v2053_v34 = vpop.permute.xlu1 %2052  ;;  %2697 = vst.msk [vmem:[#allocation4 + $0x7c] sm:$0xf] %vm594_vm5, %v2660_v58 }
 0x26b   :  { %2089 = vst.msk [vmem:[#allocation4 + $0x84] sm:$0xf] %vm464_vm4, %v2053_v34  ;;  %v9527_v41 = vcombine.high %v2815_v35, %v2817_v30  ;;  %v9526_v44 = vcombine.low %v2815_v35, %v2817_v30  ;;  %v11678_v30 = vld [vmem:[%s14449_s1 + $0x198] sm:$0xff]   ;;  %v11680_v58 = vld [vmem:[%s14449_s1 + $0x190] sm:$0xff]  }
 0x26c   :  { %v11679_v34 = vld [vmem:[%s14449_s1 + $0x158] sm:$0xff]   ;;  %11157 = vmatprep.subr.bf16.mxu1 %v11678_v30 }
 0x26d   :  { %3192 = vmatprep.mubr.bf16.mxu1 %v9527_v41  ;;  %v1927_v40 = vpop.permute.xlu0 %1926  ;;  %11158 = vmatpush3.bf16.msra.mxu1 %v11679_v34 }
 0x26e   :  { %v2405_v49 = vpop.permute.xlu1 %2404  ;;  %3193 = vmatmul.mubr.bf16.gmra.mxu1 %v9526_v44  ;;  %1962 = vst.msk [vmem:[#allocation4 + $0x90] sm:$0xf] %vm335_vm3, %v1927_v40  ;;  %11159 = vmatprep.subr.bf16.mxu1 %v11680_v58 }
 0x26f   :  { %2441 = vst.msk [vmem:[#allocation4 + $0x88] sm:$0xf] %vm335_vm3, %v2405_v49 }
 0x271   :  { %v2055_v63 = vpop.permute.xlu0 %2054  ;;  %v2819_v32 = vld [vmem:[#allocation4 + $0x78] sm:$0xff] }
 0x272   :  { %v2181_v51 = vpop.permute.xlu1 %2180  ;;  %2090 = vst.msk [vmem:[#allocation4 + $0x90] sm:$0xf] %vm464_vm4, %v2055_v63 }
 0x273   :  { %2217 = vst.msk [vmem:[#allocation4 + $0x84] sm:$0xf] %vm594_vm5, %v2181_v51 }
 0x275   :  { %v2407_v52 = vpop.permute.xlu0 %2406 }
 0x276   :  { %v2534_v0 = vpop.permute.xlu1 %2533  ;;  %2442 = vst.msk [vmem:[#allocation4 + $0x94] sm:$0xf] %vm335_vm3, %v2407_v52  ;;  %v11682_v52 = vld [vmem:[%s14449_s1 + $0x188] sm:$0xff]  }
 0x277   :  { %2570 = vst.msk [vmem:[#allocation4 + $0x88] sm:$0xf] %vm464_vm4, %v2534_v0  ;;  %v11681_v0 = vld [vmem:[%s14449_s1 + $0x150] sm:$0xff]  }
 0x278   :  { %11160 = vmatpush3.bf16.msra.mxu1 %v11681_v0 }
 0x279   :  { %v2183_v10 = vpop.permute.xlu0 %2182  ;;  %11161 = vmatprep.subr.bf16.mxu1 %v11682_v52 }
 0x27a   :  { %v2662_v26 = vpop.permute.xlu1 %2661  ;;  %2218 = vst.msk [vmem:[#allocation4 + $0x90] sm:$0xf] %vm594_vm5, %v2183_v10 }
 0x27b   :  { %2698 = vst.msk [vmem:[#allocation4 + $0x88] sm:$0xf] %vm594_vm5, %v2662_v26 }
 0x27d   :  { %v2536_v31 = vpop.permute.xlu0 %2535 }
 0x27e   :  { %v1929_v27 = vpop.permute.xlu1 %1928  ;;  %2571 = vst.msk [vmem:[#allocation4 + $0x94] sm:$0xf] %vm464_vm4, %v2536_v31 }
 0x27f   :  { %1963 = vst.msk [vmem:[#allocation4 + $0x9c] sm:$0xf] %vm335_vm3, %v1929_v27 }
 0x281   :  { %v2664_v59 = vpop.permute.xlu0 %2663 }
 0x282   :  { %v2821_v9 = vld [vmem:[#allocation4 + $0x84] sm:$0xff]  ;;  %v2057_v57 = vpop.permute.xlu1 %2056  ;;  %2699 = vst.msk [vmem:[#allocation4 + $0x94] sm:$0xf] %vm594_vm5, %v2664_v59 }
 0x283   :  { %2091 = vst.msk [vmem:[#allocation4 + $0x9c] sm:$0xf] %vm464_vm4, %v2057_v57  ;;  %v9530_v20 = vcombine.high %v2819_v32, %v2821_v9  ;;  %v9529_v37 = vcombine.low %v2819_v32, %v2821_v9  ;;  %v11683_v57 = vld [vmem:[%s14449_s1 + $0x148] sm:$0xff]  }
 0x284   :  { %11162 = vmatpush3.bf16.msra.mxu1 %v11683_v57 }
 0x285   :  { %3200 = vmatprep.mubr.bf16.mxu1 %v9530_v20  ;;  %v1931_v60 = vpop.permute.xlu0 %1930  ;;  %v11684_v20 = vld [vmem:[%s14449_s1 + $0x180] sm:$0xff]  }
 0x286   :  { %v2409_v39 = vpop.permute.xlu1 %2408  ;;  %3201 = vmatmul.mubr.bf16.gmra.mxu1 %v9529_v37  ;;  %1964 = vst.msk [vmem:[#allocation4 + $0xa8] sm:$0xf] %vm335_vm3, %v1931_v60  ;;  %11163 = vmatprep.subr.bf16.mxu1 %v11684_v20 }
 0x287   :  { %2443 = vst.msk [vmem:[#allocation4 + $0xa0] sm:$0xf] %vm335_vm3, %v2409_v39  ;;  %v11685_v39 = vld [vmem:[%s14449_s1 + $0x140] sm:$0xff]  }
 0x288   :  { %11164 = vmatpush3.bf16.msra.mxu1 %v11685_v39 }
 0x289   :  { %v2059_v42 = vpop.permute.xlu0 %2058  ;;  %v2823_v2 = vld [vmem:[#allocation4 + $0x90] sm:$0xff]  ;;  %11165 = vmatprep.subr.bf16.mxu1 %v11686_v17 }
 0x28a   :  { %v2185_v61 = vpop.permute.xlu1 %2184  ;;  %2092 = vst.msk [vmem:[#allocation4 + $0xa8] sm:$0xf] %vm464_vm4, %v2059_v42 }
 0x28b   :  { %2219 = vst.msk [vmem:[#allocation4 + $0x9c] sm:$0xf] %vm594_vm5, %v2185_v61 }
 0x28d   :  { %v2411_v48 = vpop.permute.xlu0 %2410 }
 0x28e   :  { %v2538_v47 = vpop.permute.xlu1 %2537  ;;  %2444 = vst.msk [vmem:[#allocation4 + $0xac] sm:$0xf] %vm335_vm3, %v2411_v48  ;;  %v11688_v48 = vld [vmem:[%s14449_s1 + $0x138] sm:$0xff]  }
 0x28f   :  { %2572 = vst.msk [vmem:[#allocation4 + $0xa0] sm:$0xf] %vm464_vm4, %v2538_v47  ;;  %11166 = vmatpush3.bf16.msra.mxu1 %v11688_v48 }
 0x291   :  { %v2187_v29 = vpop.permute.xlu0 %2186 }
 0x292   :  { %v2666_v33 = vpop.permute.xlu1 %2665  ;;  %2220 = vst.msk [vmem:[#allocation4 + $0xa8] sm:$0xf] %vm594_vm5, %v2187_v29 }
 0x293   :  { %2700 = vst.msk [vmem:[#allocation4 + $0xa0] sm:$0xf] %vm594_vm5, %v2666_v33 }
 0x295   :  { %v2540_v1 = vpop.permute.xlu0 %2539 }
 0x296   :  { %v1933_v25 = vpop.permute.xlu1 %1932  ;;  %2573 = vst.msk [vmem:[#allocation4 + $0xac] sm:$0xf] %vm464_vm4, %v2540_v1  ;;  %v11689_v1 = vld [vmem:[%s14449_s1 + $0x170] sm:$0xff]  }
 0x297   :  { %1965 = vst.msk [vmem:[#allocation4 + $0xb4] sm:$0xf] %vm335_vm3, %v1933_v25  ;;  %11167 = vmatprep.subr.bf16.mxu1 %v11689_v1 }
 0x299   :  { %v2668_v4 = vpop.permute.xlu0 %2667 }
 0x29a   :  { %v2825_v8 = vld [vmem:[#allocation4 + $0x9c] sm:$0xff]  ;;  %v2061_v3 = vpop.permute.xlu1 %2060  ;;  %2701 = vst.msk [vmem:[#allocation4 + $0xac] sm:$0xf] %vm594_vm5, %v2668_v4  ;;  %v11691_v4 = vld [vmem:[%s14449_s1 + $0x168] sm:$0xff]  }
 0x29b   :  { %2093 = vst.msk [vmem:[#allocation4 + $0xb4] sm:$0xf] %vm464_vm4, %v2061_v3  ;;  %v9533_v6 = vcombine.high %v2823_v2, %v2825_v8  ;;  %v9532_v45 = vcombine.low %v2823_v2, %v2825_v8  ;;  %v11690_v2 = vld [vmem:[%s14449_s1 + $0x130] sm:$0xff]  }
 0x29c   :  { %11168 = vmatpush3.bf16.msra.mxu1 %v11690_v2 }
 0x29d   :  { %3208 = vmatprep.mubr.bf16.mxu1 %v9533_v6  ;;  %v11692_v6 = vld [vmem:[%s14449_s1 + $0x128] sm:$0xff]   ;;  %11169 = vmatprep.subr.bf16.mxu1 %v11691_v4 }
 0x29e   :  { %v2413_v38 = vpop.permute.xlu1 %2412  ;;  %3209 = vmatmul.mubr.bf16.gmra.mxu1 %v9532_v45  ;;  %v11693_v45 = vld [vmem:[%s14449_s1 + $0x160] sm:$0xff]  }
 0x29f   :  { %2445 = vst.msk [vmem:[#allocation4 + $0xb8] sm:$0xf] %vm335_vm3, %v2413_v38 }
 0x2a0   :  { %2574 = vst.msk [vmem:[#allocation4 + $0xb8] sm:$0xf] %vm464_vm4, %v13099_v16  ;;  %v13165_v16 = vld [vmem:[%s14450_s2 + $0x1] ss:$0 sm:$0xff]  ;;  %11170 = vmatpush3.bf16.msra.mxu1 %v11692_v6 }
 0x2a1   :  { %2702 = vst.msk [vmem:[#allocation4 + $0xb8] sm:$0xf] %vm594_vm5, %v13102_v43  ;;  %v2827_v12 = vld [vmem:[#allocation4 + $0xa8] sm:$0xff]  ;;  %11171 = vmatprep.subr.bf16.mxu1 %v11693_v45 }
 0x2a2   :  { %v2189_v11 = vpop.permute.xlu1 %2188 }
 0x2a3   :  { %2221 = vst.msk [vmem:[#allocation4 + $0xb4] sm:$0xf] %vm594_vm5, %v2189_v11 }
 0x2aa   :  { %v2829_v13 = vld [vmem:[#allocation4 + $0xb4] sm:$0xff] }
 0x2ab   :  { %v9536_v14 = vcombine.high %v2827_v12, %v2829_v13  ;;  %v9535_v15 = vcombine.low %v2827_v12, %v2829_v13 }
 0x2ad   :  { %3216 = vmatprep.mubr.bf16.mxu1 %v9536_v14 }
 0x2ae   :  { %3217 = vmatmul.mubr.bf16.gmra.mxu1 %v9535_v15 }
 0x2c6   :  { %v11099_v53 = vpop.f32.mrf.mxu1 }
 0x2c8   :  { %v11100_v54 = vpop.f32.mrf.mxu1 }
 0x2c9   :  { %v11101_v43 = vadd.f32 %v11100_v54, %v11099_v53  ;;  %v13247_v53 = vpop.f32.mrf.mxu0 }
 0x2ca   :  { %v11102_v19 = vpop.f32.mrf.mxu1 }
 0x2cb   :  { %v3163_v36 = vadd.f32 %v11101_v43, %v13165_v16 }
 0x2cc   :  { %v11103_v55 = vpop.f32.mrf.mxu1 }
 0x2cd   :  { %v3260_v22 = vadd.f32 %v3259_v7, %v3163_v36  ;;  %v11104_v23 = vadd.f32 %v11103_v55, %v11102_v19 }
 0x2cf   :  { %v3322_v24 = vmax.f32 %v3260_v22, 0.0  ;;  %v3166_v28 = vadd.f32 %v11104_v23, %v13165_v16  ;;  %v3275_v22 = vpop.f32.mrf.mxu0 }
 0x2d1   :  { %3339 = vst.msk [vmem:[#allocation3 + $0x11] sm:$0xff] %vm44_vm1, %v3322_v24  ;;  %v3263_v5 = vadd.f32 %v3262_v56, %v3166_v28 }
 0x2d3   :  { %v3323_v35 = vmax.f32 %v3263_v5, 0.0 }
 0x2d5   :  { %3340 = vst.msk [vmem:[#allocation3 + $0x21] sm:$0xff] %vm44_vm1, %v3323_v35  ;;  %v11454_v35 = vpop.f32.mrf.mxu0 }
 0x2d8   :  { %v3947_v41 = vld [vmem:[#allocation3 + $0x12] sm:$0xff] }
 0x2d9   :  { %v3468_v44 = vld [vmem:[#allocation3 + $0x11] sm:$0xff]  ;;  %v10657_v40 = vpack.c.bf16 %v3947_v41, %v3947_v41 }
 0x2da   :  { %v3723_v49 = vld [vmem:[#allocation3 + $0x10] sm:$0xff]  ;;  %v10594_v51 = vpack.c.bf16 %v3468_v44, %v3468_v44 }
 0x2db   :  { %v10625_v63 = vpack.c.bf16 %v3723_v49, %v3723_v49  ;;  %4011 = vrot.lane.b32.xlu0 %v10657_v40, %s11798_s21  ;;  %v3278_v49 = vpop.f32.mrf.mxu0 }
 0x2dc   :  { %3533 = vrot.lane.b32.xlu1 %v10594_v51, %s11798_s21  ;;  %3931 = vst.msk [vmem:[#allocation4 + $0x4] sm:$0xf] %vm206_vm0, %v10594_v51  ;;  %v4332_v26 = vld [vmem:[#allocation3 + $0x22] sm:$0xff] }
 0x2dd   :  { %3452 = vst.msk [vmem:[#allocation4 + $0xc] sm:$0xf] %vm206_vm0, %v10625_v63  ;;  %v4076_v10 = vld [vmem:[#allocation3 + $0x20] sm:$0xff]  ;;  %v10705_v31 = vpack.c.bf16 %v4332_v26, %v4332_v26 }
 0x2de   :  { %v4204_v27 = vld [vmem:[#allocation3 + $0x21] sm:$0xff]  ;;  %v10673_v32 = vpack.c.bf16 %v4076_v10, %v4076_v10  ;;  %v11105_v59 = vpop.f32.mrf.mxu1 }
 0x2df   :  { %v10689_v9 = vpack.c.bf16 %v4204_v27, %v4204_v27  ;;  %4412 = vst.msk [vmem:[#allocation4 + $0x8] sm:$0xf] %vm206_vm0, %v10705_v31  ;;  %3787 = vrot.lane.b32.xlu0 %v10625_v63, %s11801_s17 }
 0x2e0   :  { %3661 = vrot.lane.b32.xlu1 %v10657_v40, %s11800_s19  ;;  %3453 = vst.msk [vmem:[#allocation4 + $0x18] sm:$0xf] %vm206_vm0, %v10673_v32  ;;  %v11106_v37 = vpop.f32.mrf.mxu1 }
 0x2e1   :  { %3932 = vst.msk [vmem:[#allocation4 + $0x10] sm:$0xf] %vm206_vm0, %v10689_v9  ;;  %v11107_v60 = vadd.f32 %v11106_v37, %v11105_v59 }
 0x2e2   :  { %v11108_v61 = vpop.f32.mrf.mxu1 }
 0x2e3   :  { %v3171_v42 = vadd.f32 %v11107_v60, %v13165_v16  ;;  %4140 = vrot.lane.b32.xlu0 %v10673_v32, %s11800_s19 }
 0x2e4   :  { %4013 = vrot.lane.b32.xlu1 %v10705_v31, %s11798_s21  ;;  %v11109_v47 = vpop.f32.mrf.mxu1 }
 0x2e5   :  { %v3268_v62 = vadd.f32 %v13160_v18, %v3171_v42  ;;  %v11110_v33 = vadd.f32 %v11109_v47, %v11108_v61  ;;  %v11694_v18 = vld [vmem:[%s14449_s1 + $0x120] sm:$0xff]  }
 0x2e6   :  { %11172 = vmatpush3.bf16.msra.mxu1 %v11694_v18 }
 0x2e7   :  { %v3324_v29 = vmax.f32 %v3268_v62, 0.0  ;;  %v3174_v25 = vadd.f32 %v11110_v33, %v13165_v16  ;;  %4268 = vrot.lane.b32.xlu0 %v10689_v9, %s11801_s17 }
 0x2e8   :  { %3789 = vrot.lane.b32.xlu1 %v10673_v32, %s11801_s17 }
 0x2e9   :  { %3341 = vst.msk [vmem:[#allocation3 + $0x31] sm:$0xff] %vm44_vm1, %v3324_v29  ;;  %v3271_v8 = vadd.f32 %v13168_v21, %v3174_v25 }
 0x2eb   :  { %v3325_v3 = vmax.f32 %v3271_v8, 0.0  ;;  %3535 = vrot.lane.b32.xlu0 %v10689_v9, %s11798_s21 }
 0x2ed   :  { %3342 = vst.msk [vmem:[#allocation3 + $0x41] sm:$0xff] %vm44_vm1, %v3325_v3 }
 0x2ef   :  { %3663 = vrot.lane.b32.xlu0 %v10705_v31, %s11800_s19 }
 0x2f0   :  { %v4333_v38 = vld [vmem:[#allocation3 + $0x32] sm:$0xff] }
 0x2f1   :  { %v4077_v11 = vld [vmem:[#allocation3 + $0x30] sm:$0xff]  ;;  %v10706_v13 = vpack.c.bf16 %v4333_v38, %v4333_v38 }
 0x2f2   :  { %v4205_v12 = vld [vmem:[#allocation3 + $0x31] sm:$0xff]  ;;  %v10674_v14 = vpack.c.bf16 %v4077_v11, %v4077_v11 }
 0x2f3   :  { %v10690_v15 = vpack.c.bf16 %v4205_v12, %v4205_v12  ;;  %4413 = vst.msk [vmem:[#allocation4 + $0x14] sm:$0xf] %vm206_vm0, %v10706_v13  ;;  %4015 = vrot.lane.b32.xlu0 %v10706_v13, %s11798_s21 }
 0x2f4   :  { %4142 = vrot.lane.b32.xlu1 %v10674_v14, %s11800_s19  ;;  %3454 = vst.msk [vmem:[#allocation4 + $0x24] sm:$0xf] %vm206_vm0, %v10674_v14  ;;  %v4334_v7 = vld [vmem:[#allocation3 + $0x42] sm:$0xff] }
 0x2f5   :  { %3933 = vst.msk [vmem:[#allocation4 + $0x1c] sm:$0xf] %vm206_vm0, %v10690_v15  ;;  %v4078_v54 = vld [vmem:[#allocation3 + $0x40] sm:$0xff]  ;;  %v10707_v19 = vpack.c.bf16 %v4334_v7, %v4334_v7 }
 0x2f6   :  { %v4206_v43 = vld [vmem:[#allocation3 + $0x41] sm:$0xff]  ;;  %v10675_v36 = vpack.c.bf16 %v4078_v54, %v4078_v54  ;;  %v11111_v55 = vpop.f32.mrf.mxu1 }
 0x2f7   :  { %v10691_v21 = vpack.c.bf16 %v4206_v43, %v4206_v43  ;;  %4414 = vst.msk [vmem:[#allocation4 + $0x20] sm:$0xf] %vm206_vm0, %v10707_v19  ;;  %3791 = vrot.lane.b32.xlu0 %v10674_v14, %s11801_s17  ;;  %v5966_v14 = vld [vmem:[#allocation2 + $0x92] sm:$0xff]  ;;  %v3379_v54 = vld [vmem:[#allocation3 + $0xa0] sm:$0xff] }
 0x2f8   :  { %4270 = vrot.lane.b32.xlu1 %v10690_v15, %s11801_s17  ;;  %3455 = vst.msk [vmem:[#allocation4 + $0x30] sm:$0xf] %vm206_vm0, %v10675_v36  ;;  %v11112_v23 = vpop.f32.mrf.mxu1 }
 0x2f9   :  { %3934 = vst.msk [vmem:[#allocation4 + $0x28] sm:$0xf] %vm206_vm0, %v10691_v21  ;;  %v11113_v24 = vadd.f32 %v11112_v23, %v11111_v55 }
 0x2fa   :  { %v11114_v28 = vpop.f32.mrf.mxu1  ;;  %v11672_v56 = vld [vmem:[#allocation4 + $0x8] ss:$12 sps:$4 sm:$0xff]  }
 0x2fb   :  { %v3179_v5 = vadd.f32 %v11113_v24, %v13165_v16  ;;  %4144 = vrot.lane.b32.xlu0 %v10675_v36, %s11800_s19  ;;  %11467 = vmatprep.mubr.msk.bf16.mxu0 %vm44_vm1, %v11672_v56 }
 0x2fc   :  { %3537 = vrot.lane.b32.xlu1 %v10690_v15, %s11798_s21  ;;  %v11115_v30 = vpop.f32.mrf.mxu1 }
 0x2fd   :  { %v3276_v34 = vadd.f32 %v3275_v22, %v3179_v5  ;;  %v11116_v58 = vadd.f32 %v11115_v30, %v11114_v28  ;;  %v3603_v28 = vld [vmem:[#allocation3 + $0xa2] sm:$0xff] }
 0x2fe   :  { %v10617_v30 = vpack.c.bf16 %v3603_v28, %v3603_v28 }
 0x2ff   :  { %v3326_v41 = vmax.f32 %v3276_v34, 0.0  ;;  %v3182_v44 = vadd.f32 %v11116_v58, %v13165_v16  ;;  %4272 = vrot.lane.b32.xlu0 %v10691_v21, %s11801_s17 }
 0x300   :  { %3665 = vrot.lane.b32.xlu1 %v10706_v13, %s11800_s19 }
 0x301   :  { %3343 = vst.msk [vmem:[#allocation3 + $0x51] sm:$0xff] %vm44_vm1, %v3326_v41  ;;  %v3279_v40 = vadd.f32 %v3278_v49, %v3182_v44  ;;  %v5095_v41 = vld [vmem:[#allocation2 + $0x1] sm:$0xff]  ;;  %v4211_v44 = vld [vmem:[#allocation3 + $0x91] sm:$0xff] }
 0x303   :  { %v3327_v51 = vmax.f32 %v3279_v40, 0.0  ;;  %3539 = vrot.lane.b32.xlu0 %v10691_v21, %s11798_s21  ;;  %v3475_v21 = vld [vmem:[#allocation3 + $0xa1] sm:$0xff] }
 0x304   :  { %4017 = vrot.lane.b32.xlu1 %v10707_v19, %s11798_s21  ;;  %v10601_v22 = vpack.c.bf16 %v3475_v21, %v3475_v21 }
 0x305   :  { %3344 = vst.msk [vmem:[#allocation3 + $0x61] sm:$0xff] %vm44_vm1, %v3327_v51 }
 0x307   :  { %3667 = vrot.lane.b32.xlu0 %v10707_v19, %s11800_s19  ;;  %v10585_v19 = vpack.c.bf16 %v3379_v54, %v3379_v54 }
 0x308   :  { %3793 = vrot.lane.b32.xlu1 %v10675_v36, %s11801_s17  ;;  %v4335_v63 = vld [vmem:[#allocation3 + $0x52] sm:$0xff]  ;;  %v13304_v36 = vpop.f32.mrf.mxu0 }
 0x309   :  { %v4079_v0 = vld [vmem:[#allocation3 + $0x50] sm:$0xff]  ;;  %v10708_v26 = vpack.c.bf16 %v4335_v63, %v4335_v63  ;;  %3459 = vst.msk [vmem:[#allocation4 + $0x60] sm:$0xf] %vm206_vm0, %v10585_v19 }
 0x30a   :  { %v4207_v52 = vld [vmem:[#allocation3 + $0x51] sm:$0xff]  ;;  %v10676_v10 = vpack.c.bf16 %v4079_v0, %v4079_v0  ;;  %v11117_v31 = vpop.f32.mrf.mxu1  ;;  %v3291_v23 = vpop.f32.mrf.mxu0  ;;  %v10737_v0 = vpack.c.bf16 %v5095_v41, %v5095_v41 }
 0x30b   :  { %v10692_v27 = vpack.c.bf16 %v4207_v52, %v4207_v52  ;;  %4415 = vst.msk [vmem:[#allocation4 + $0x2c] sm:$0xf] %vm206_vm0, %v10708_v26  ;;  %4019 = vrot.lane.b32.xlu0 %v10708_v26, %s11798_s21  ;;  %v10696_v52 = vpack.c.bf16 %v4211_v44, %v4211_v44 }
 0x30c   :  { %4146 = vrot.lane.b32.xlu1 %v10676_v10, %s11800_s19  ;;  %3456 = vst.msk [vmem:[#allocation4 + $0x3c] sm:$0xf] %vm206_vm0, %v10676_v10  ;;  %v4336_v32 = vld [vmem:[#allocation3 + $0x62] sm:$0xff]  ;;  %v11118_v9 = vpop.f32.mrf.mxu1  ;;  %v13313_v34 = vpop.f32.mrf.mxu0 }
 0x30d   :  { %3935 = vst.msk [vmem:[#allocation4 + $0x34] sm:$0xf] %vm206_vm0, %v10692_v27  ;;  %v4080_v57 = vld [vmem:[#allocation3 + $0x60] sm:$0xff]  ;;  %v10709_v20 = vpack.c.bf16 %v4336_v32, %v4336_v32  ;;  %v11119_v37 = vadd.f32 %v11118_v9, %v11117_v31 }
 0x30e   :  { %v4208_v59 = vld [vmem:[#allocation3 + $0x61] sm:$0xff]  ;;  %v10677_v39 = vpack.c.bf16 %v4080_v57, %v4080_v57  ;;  %v11120_v61 = vpop.f32.mrf.mxu1 }
 0x30f   :  { %v10693_v60 = vpack.c.bf16 %v4208_v59, %v4208_v59  ;;  %4416 = vst.msk [vmem:[#allocation4 + $0x38] sm:$0xf] %vm206_vm0, %v10709_v20  ;;  %v3187_v42 = vadd.f32 %v11119_v37, %v13165_v16  ;;  %3795 = vrot.lane.b32.xlu0 %v10676_v10, %s11801_s17  ;;  %v5223_v10 = vld [vmem:[#allocation2 + $0x2] sm:$0xff]  ;;  %v4219_v59 = vld [vmem:[#allocation3 + $0x131] sm:$0xff] }
 0x310   :  { %4274 = vrot.lane.b32.xlu1 %v10692_v27, %s11801_s17  ;;  %3457 = vst.msk [vmem:[#allocation4 + $0x48] sm:$0xf] %vm206_vm0, %v10677_v39  ;;  %v11121_v17 = vpop.f32.mrf.mxu1  ;;  %v10753_v9 = vpack.c.bf16 %v5223_v10, %v5223_v10  ;;  %v5710_v37 = vld [vmem:[#allocation2 + $0x90] sm:$0xff] }
 0x311   :  { %3936 = vst.msk [vmem:[#allocation4 + $0x40] sm:$0xf] %vm206_vm0, %v10693_v60  ;;  %v3284_v47 = vadd.f32 %v13247_v53, %v3187_v42  ;;  %v11122_v48 = vadd.f32 %v11121_v17, %v11120_v61  ;;  %v10856_v53 = vpack.c.bf16 %v5966_v14, %v5966_v14 }
 0x312   :  { %v11675_v62 = vld [vmem:[#allocation4 + $0x20] ss:$12 sps:$4 sm:$0xff]  }
 0x313   :  { %v3328_v33 = vmax.f32 %v3284_v47, 0.0  ;;  %v3190_v29 = vadd.f32 %v11122_v48, %v13165_v16  ;;  %4148 = vrot.lane.b32.xlu0 %v10677_v39, %s11800_s19  ;;  %11468 = vmatmul.mubr.msk.bf16.vlgmr.msra.gmra.mxu0 %vm44_vm1, %v11675_v62  ;;  %v10824_v48 = vpack.c.bf16 %v5710_v37, %v5710_v37 }
 0x314   :  { %3541 = vrot.lane.b32.xlu1 %v10692_v27, %s11798_s21  ;;  %v4091_v27 = vld [vmem:[#allocation3 + $0x130] sm:$0xff] }
 0x315   :  { %3345 = vst.msk [vmem:[#allocation3 + $0x71] sm:$0xff] %vm44_vm1, %v3328_v33  ;;  %v3287_v25 = vadd.f32 %v11454_v35, %v3190_v29  ;;  %v10688_v57 = vpack.c.bf16 %v4091_v27, %v4091_v27 }
 0x317   :  { %v3329_v1 = vmax.f32 %v3287_v25, 0.0  ;;  %4276 = vrot.lane.b32.xlu0 %v10693_v60, %s11801_s17 }
 0x318   :  { %3669 = vrot.lane.b32.xlu1 %v10708_v26, %s11800_s19  ;;  %v3294_v26 = vpop.f32.mrf.mxu0 }
 0x319   :  { %3346 = vst.msk [vmem:[#allocation3 + $0x81] sm:$0xff] %vm44_vm1, %v3329_v1 }
 0x31b   :  { %3543 = vrot.lane.b32.xlu0 %v10693_v60, %s11798_s21 }
 0x31c   :  { %4021 = vrot.lane.b32.xlu1 %v10709_v20, %s11798_s21  ;;  %v4337_v2 = vld [vmem:[#allocation3 + $0x72] sm:$0xff] }
 0x31d   :  { %v4081_v8 = vld [vmem:[#allocation3 + $0x70] sm:$0xff]  ;;  %v10710_v4 = vpack.c.bf16 %v4337_v2, %v4337_v2 }
 0x31e   :  { %v4209_v3 = vld [vmem:[#allocation3 + $0x71] sm:$0xff]  ;;  %v10678_v6 = vpack.c.bf16 %v4081_v8, %v4081_v8 }
 0x31f   :  { %v10694_v45 = vpack.c.bf16 %v4209_v3, %v4209_v3  ;;  %4417 = vst.msk [vmem:[#allocation4 + $0x44] sm:$0xf] %vm206_vm0, %v10710_v4  ;;  %3671 = vrot.lane.b32.xlu0 %v10709_v20, %s11800_s19  ;;  %v10704_v20 = vpack.c.bf16 %v4219_v59, %v4219_v59 }
 0x320   :  { %3797 = vrot.lane.b32.xlu1 %v10677_v39, %s11801_s17  ;;  %3458 = vst.msk [vmem:[#allocation4 + $0x54] sm:$0xf] %vm206_vm0, %v10678_v6  ;;  %v4338_v38 = vld [vmem:[#allocation3 + $0x82] sm:$0xff] }
 0x321   :  { %3937 = vst.msk [vmem:[#allocation4 + $0x4c] sm:$0xf] %vm206_vm0, %v10694_v45  ;;  %v4210_v11 = vld [vmem:[#allocation3 + $0x81] sm:$0xff]  ;;  %v10711_v12 = vpack.c.bf16 %v4338_v38, %v4338_v38 }
 0x322   :  { %v10695_v13 = vpack.c.bf16 %v4210_v11, %v4210_v11  ;;  %v4082_v18 = vld [vmem:[#allocation3 + $0x80] sm:$0xff] }
 0x323   :  { %4418 = vst.msk [vmem:[#allocation4 + $0x50] sm:$0xf] %vm206_vm0, %v10711_v12  ;;  %4023 = vrot.lane.b32.xlu0 %v10710_v4, %s11798_s21  ;;  %v10679_v7 = vpack.c.bf16 %v4082_v18, %v4082_v18 }
 0x324   :  { %4150 = vrot.lane.b32.xlu1 %v10678_v6, %s11800_s19  ;;  %3938 = vst.msk [vmem:[#allocation4 + $0x58] sm:$0xf] %vm206_vm0, %v10695_v13 }
 0x326   :  { %v11676_v15 = vld [vmem:[#allocation4 + $0x38] ss:$12 sps:$4 sm:$0xff]  }
 0x327   :  { %3799 = vrot.lane.b32.xlu0 %v10678_v6, %s11801_s17  ;;  %11471 = vmatprep.mubr.msk.bf16.mxu0 %vm44_vm1, %v11676_v15 }
 0x328   :  { %4278 = vrot.lane.b32.xlu1 %v10694_v45, %s11801_s17 }
 0x32a   :  { %v11677_v43 = vld [vmem:[#allocation4 + $0x50] ss:$12 sps:$4 sm:$0xff]  }
 0x32b   :  { %4152 = vrot.lane.b32.xlu0 %v10679_v7, %s11800_s19  ;;  %6046 = vst.msk [vmem:[#allocation4 + $0x5c] sm:$0xf] %vm206_vm0, %v10856_v53  ;;  %11472 = vmatmul.mubr.msk.bf16.gmra.mxu0 %vm44_vm1, %v11677_v43 }
 0x32c   :  { %3545 = vrot.lane.b32.xlu1 %v10694_v45, %s11798_s21 }
 0x32e   :  { %v11123_v55 = vpop.f32.mrf.mxu1 }
 0x32f   :  { %4280 = vrot.lane.b32.xlu0 %v10695_v13, %s11801_s17 }
 0x330   :  { %3673 = vrot.lane.b32.xlu1 %v10710_v4, %s11800_s19  ;;  %v11124_v24 = vpop.f32.mrf.mxu1 }
 0x331   :  { %v11125_v56 = vadd.f32 %v11124_v24, %v11123_v55 }
 0x332   :  { %v11126_v5 = vpop.f32.mrf.mxu1 }
 0x333   :  { %v3195_v35 = vadd.f32 %v11125_v56, %v13165_v16  ;;  %3547 = vrot.lane.b32.xlu0 %v10601_v22, %s11798_s21 }
 0x334   :  { %4025 = vrot.lane.b32.xlu1 %v10711_v12, %s11798_s21  ;;  %v11127_v58 = vpop.f32.mrf.mxu1 }
 0x335   :  { %v3292_v49 = vadd.f32 %v3291_v23, %v3195_v35  ;;  %v11128_v40 = vadd.f32 %v11127_v58, %v11126_v5  ;;  %v4999_v35 = vld [vmem:[#allocation2] sm:$0xff] }
 0x337   :  { %v3330_v51 = vmax.f32 %v3292_v49, 0.0  ;;  %v3198_v63 = vadd.f32 %v11128_v40, %v13165_v16  ;;  %3675 = vrot.lane.b32.xlu0 %v10617_v30, %s11800_s19 }
 0x338   :  { %3801 = vrot.lane.b32.xlu1 %v10679_v7, %s11801_s17 }
 0x339   :  { %3347 = vst.msk [vmem:[#allocation3 + $0xb1] sm:$0xff] %vm44_vm1, %v3330_v51  ;;  %v3295_v31 = vadd.f32 %v3294_v26, %v3198_v63 }
 0x33b   :  { %v3331_v32 = vmax.f32 %v3295_v31, 0.0  ;;  %5159 = vrot.lane.b32.xlu0 %v10737_v0, %s11798_s21  ;;  %v10721_v0 = vpack.c.bf16 %v4999_v35, %v4999_v35 }
 0x33c   :  { %4282 = vrot.lane.b32.xlu1 %v10696_v52, %s11801_s17 }
 0x33d   :  { %3348 = vst.msk [vmem:[#allocation3 + $0xc1] sm:$0xff] %vm44_vm1, %v3331_v32 }
 0x33f   :  { %5287 = vrot.lane.b32.xlu0 %v10753_v9, %s11800_s19 }
 0x340   :  { %4170 = vrot.lane.b32.xlu1 %v10688_v57, %s11800_s19  ;;  %v3955_v39 = vld [vmem:[#allocation3 + $0xb2] sm:$0xff] }
 0x341   :  { %v3731_v60 = vld [vmem:[#allocation3 + $0xb0] sm:$0xff]  ;;  %v10665_v42 = vpack.c.bf16 %v3955_v39, %v3955_v39 }
 0x342   :  { %v3476_v61 = vld [vmem:[#allocation3 + $0xb1] sm:$0xff]  ;;  %v10633_v17 = vpack.c.bf16 %v3731_v60, %v3731_v60 }
 0x343   :  { %v10602_v47 = vpack.c.bf16 %v3476_v61, %v3476_v61  ;;  %4027 = vrot.lane.b32.xlu0 %v10665_v42, %s11798_s21 }
 0x344   :  { %4298 = vrot.lane.b32.xlu1 %v10704_v20, %s11801_s17  ;;  %3460 = vst.msk [vmem:[#allocation4 + $0x6c] sm:$0xf] %vm206_vm0, %v10633_v17  ;;  %v4340_v62 = vld [vmem:[#allocation3 + $0xc2] sm:$0xff] }
 0x345   :  { %3939 = vst.msk [vmem:[#allocation4 + $0x64] sm:$0xf] %vm206_vm0, %v10602_v47  ;;  %v4084_v33 = vld [vmem:[#allocation3 + $0xc0] sm:$0xff]  ;;  %v10713_v25 = vpack.c.bf16 %v4340_v62, %v4340_v62 }
 0x346   :  { %v4212_v29 = vld [vmem:[#allocation3 + $0xc1] sm:$0xff]  ;;  %v10681_v1 = vpack.c.bf16 %v4084_v33, %v4084_v33  ;;  %v11129_v8 = vpop.f32.mrf.mxu1 }
 0x347   :  { %v10697_v2 = vpack.c.bf16 %v4212_v29, %v4212_v29  ;;  %4420 = vst.msk [vmem:[#allocation4 + $0x68] sm:$0xf] %vm206_vm0, %v10713_v25  ;;  %3803 = vrot.lane.b32.xlu0 %v10633_v17, %s11801_s17 }
 0x348   :  { %5781 = vrot.lane.b32.xlu1 %v10824_v48, %s11800_s19  ;;  %3461 = vst.msk [vmem:[#allocation4 + $0x78] sm:$0xf] %vm206_vm0, %v10681_v1  ;;  %v11130_v3 = vpop.f32.mrf.mxu1 }
 0x349   :  { %3940 = vst.msk [vmem:[#allocation4 + $0x70] sm:$0xf] %vm206_vm0, %v10697_v2  ;;  %v11131_v4 = vadd.f32 %v11130_v3, %v11129_v8 }
 0x34a   :  { %v11132_v6 = vpop.f32.mrf.mxu1 }
 0x34b   :  { %v3203_v45 = vadd.f32 %v11131_v4, %v13165_v16  ;;  %4156 = vrot.lane.b32.xlu0 %v10681_v1, %s11800_s19 }
 0x34c   :  { %3549 = vrot.lane.b32.xlu1 %v10602_v47, %s11798_s21  ;;  %v11133_v38 = vpop.f32.mrf.mxu1 }
 0x34d   :  { %v3300_v11 = vadd.f32 %v13304_v36, %v3203_v45  ;;  %v11134_v12 = vadd.f32 %v11133_v38, %v11132_v6  ;;  %v4012_v13 = vpop.permute.xlu0 %4011 }
 0x34e   :  { %v3534_v14 = vpop.permute.xlu1 %3533  ;;  %4059 = vst.msk [vmem:[#allocation4 + $0x4] sm:$0xf] %vm335_vm3, %v4012_v13 }
 0x34f   :  { %3580 = vst.msk [vmem:[#allocation4 + $0xc] sm:$0xf] %vm335_vm3, %v3534_v14  ;;  %v3332_v15 = vmax.f32 %v3300_v11, 0.0  ;;  %v3206_v18 = vadd.f32 %v11134_v12, %v13165_v16  ;;  %4284 = vrot.lane.b32.xlu0 %v10697_v2, %s11801_s17 }
 0x350   :  { %3677 = vrot.lane.b32.xlu1 %v10665_v42, %s11800_s19 }
 0x351   :  { %3349 = vst.msk [vmem:[#allocation3 + $0xd1] sm:$0xff] %vm44_vm1, %v3332_v15  ;;  %v3303_v53 = vadd.f32 %v13313_v34, %v3206_v18  ;;  %v3788_v7 = vpop.permute.xlu0 %3787  ;;  %v13360_v34 = vpop.f32.mrf.mxu0 }
 0x352   :  { %v3662_v54 = vpop.permute.xlu1 %3661  ;;  %3835 = vst.msk [vmem:[#allocation4] sm:$0xf] %vm594_vm5, %v3788_v7 }
 0x353   :  { %3708 = vst.msk [vmem:[#allocation4 + $0xc] sm:$0xf] %vm464_vm4, %v3662_v54  ;;  %v3333_v43 = vmax.f32 %v3303_v53, 0.0  ;;  %3551 = vrot.lane.b32.xlu0 %v10697_v2, %s11798_s21  ;;  %v3307_v52 = vpop.f32.mrf.mxu0 }
 0x354   :  { %4029 = vrot.lane.b32.xlu1 %v10713_v25, %s11798_s21 }
 0x355   :  { %3350 = vst.msk [vmem:[#allocation3 + $0xe1] sm:$0xff] %vm44_vm1, %v3333_v43  ;;  %v4141_v19 = vpop.permute.xlu0 %4140  ;;  %v13375_v59 = vpop.f32.mrf.mxu0 }
 0x356   :  { %v4014_v36 = vpop.permute.xlu1 %4013  ;;  %4188 = vst.msk [vmem:[#allocation4 + $0x4] sm:$0xf] %vm464_vm4, %v4141_v19 }
 0x357   :  { %4060 = vst.msk [vmem:[#allocation4 + $0x10] sm:$0xf] %vm335_vm3, %v4014_v36  ;;  %3679 = vrot.lane.b32.xlu0 %v10713_v25, %s11800_s19  ;;  %v3310_v47 = vpop.f32.mrf.mxu0 }
 0x358   :  { %3805 = vrot.lane.b32.xlu1 %v10681_v1, %s11801_s17  ;;  %v4341_v21 = vld [vmem:[#allocation3 + $0xd2] sm:$0xff] }
 0x359   :  { %v4085_v55 = vld [vmem:[#allocation3 + $0xd0] sm:$0xff]  ;;  %v10714_v23 = vpack.c.bf16 %v4341_v21, %v4341_v21  ;;  %v4269_v24 = vpop.permute.xlu0 %4268 }
 0x35a   :  { %v4213_v22 = vld [vmem:[#allocation3 + $0xd1] sm:$0xff]  ;;  %v3790_v28 = vpop.permute.xlu1 %3789  ;;  %v10682_v56 = vpack.c.bf16 %v4085_v55, %v4085_v55  ;;  %4316 = vst.msk [vmem:[#allocation4 + $0x4] sm:$0xf] %vm594_vm5, %v4269_v24 }
 0x35b   :  { %v10698_v5 = vpack.c.bf16 %v4213_v22, %v4213_v22  ;;  %3836 = vst.msk [vmem:[#allocation4 + $0xc] sm:$0xf] %vm594_vm5, %v3790_v28  ;;  %4031 = vrot.lane.b32.xlu0 %v10714_v23, %s11798_s21 }
 0x35c   :  { %4421 = vst.msk [vmem:[#allocation4 + $0x74] sm:$0xf] %vm206_vm0, %v10714_v23  ;;  %4158 = vrot.lane.b32.xlu1 %v10682_v56, %s11800_s19  ;;  %3462 = vst.msk [vmem:[#allocation4 + $0x84] sm:$0xf] %vm206_vm0, %v10682_v56  ;;  %v4342_v30 = vld [vmem:[#allocation3 + $0xe2] sm:$0xff] }
 0x35d   :  { %3941 = vst.msk [vmem:[#allocation4 + $0x7c] sm:$0xf] %vm206_vm0, %v10698_v5  ;;  %v4086_v58 = vld [vmem:[#allocation3 + $0xe0] sm:$0xff]  ;;  %v10715_v44 = vpack.c.bf16 %v4342_v30, %v4342_v30  ;;  %v3536_v49 = vpop.permute.xlu0 %3535 }
 0x35e   :  { %v4214_v41 = vld [vmem:[#allocation3 + $0xe1] sm:$0xff]  ;;  %v10683_v40 = vpack.c.bf16 %v4086_v58, %v4086_v58  ;;  %3581 = vst.msk [vmem:[#allocation4 + $0x18] sm:$0xf] %vm335_vm3, %v3536_v49  ;;  %v11135_v63 = vpop.f32.mrf.mxu1 }
 0x35f   :  { %v10699_v51 = vpack.c.bf16 %v4214_v41, %v4214_v41  ;;  %4422 = vst.msk [vmem:[#allocation4 + $0x80] sm:$0xf] %vm206_vm0, %v10715_v44  ;;  %3807 = vrot.lane.b32.xlu0 %v10682_v56, %s11801_s17 }
 0x360   :  { %4286 = vrot.lane.b32.xlu1 %v10698_v5, %s11801_s17  ;;  %3463 = vst.msk [vmem:[#allocation4 + $0x90] sm:$0xf] %vm206_vm0, %v10683_v40  ;;  %v11136_v26 = vpop.f32.mrf.mxu1 }
 0x361   :  { %3942 = vst.msk [vmem:[#allocation4 + $0x88] sm:$0xf] %vm206_vm0, %v10699_v51  ;;  %v13368_v10 = vld [vmem:[#allocation4] sm:$0xff]  ;;  %v11137_v27 = vadd.f32 %v11136_v26, %v11135_v63  ;;  %v3664_v31 = vpop.permute.xlu0 %3663 }
 0x362   :  { %3709 = vst.msk [vmem:[#allocation4 + $0x18] sm:$0xf] %vm464_vm4, %v3664_v31  ;;  %v11138_v32 = vpop.f32.mrf.mxu1 }
 0x363   :  { %v11687_v9 = vld [vmem:[#allocation4 + $0x68] ss:$12 sps:$4 sm:$0xff]   ;;  %5079 = vst.msk [vmem:[#allocation4] sm:$0xf] %vm206_vm0, %v10721_v0  ;;  %v3211_v57 = vadd.f32 %v11137_v27, %v13165_v16  ;;  %4160 = vrot.lane.b32.xlu0 %v10683_v40, %s11800_s19 }
 0x364   :  { %3553 = vrot.lane.b32.xlu1 %v10698_v5, %s11798_s21  ;;  %v11139_v20 = vpop.f32.mrf.mxu1  ;;  %11475 = vmatprep.mubr.msk.bf16.mxu0 %vm44_vm1, %v11687_v9 }
 0x365   :  { %v3308_v37 = vadd.f32 %v3307_v52, %v3211_v57  ;;  %v11140_v39 = vadd.f32 %v11139_v20, %v11138_v32  ;;  %v4016_v60 = vpop.permute.xlu0 %4015 }
 0x366   :  { %v4143_v61 = vpop.permute.xlu1 %4142  ;;  %4061 = vst.msk [vmem:[#allocation4 + $0x1c] sm:$0xf] %vm335_vm3, %v4016_v60 }
 0x367   :  { %4189 = vst.msk [vmem:[#allocation4 + $0x10] sm:$0xf] %vm464_vm4, %v4143_v61  ;;  %v3334_v42 = vmax.f32 %v3308_v37, 0.0  ;;  %v3214_v17 = vadd.f32 %v11140_v39, %v13165_v16  ;;  %4288 = vrot.lane.b32.xlu0 %v10699_v51, %s11801_s17  ;;  %v5974_v39 = vld [vmem:[#allocation2 + $0x132] sm:$0xff] }
 0x368   :  { %3681 = vrot.lane.b32.xlu1 %v10714_v23, %s11800_s19 }
 0x369   :  { %3351 = vst.msk [vmem:[#allocation3 + $0xf1] sm:$0xff] %vm44_vm1, %v3334_v42  ;;  %v3311_v48 = vadd.f32 %v3310_v47, %v3214_v17  ;;  %v3792_v62 = vpop.permute.xlu0 %3791 }
 0x36a   :  { %v4271_v33 = vpop.permute.xlu1 %4270  ;;  %3837 = vst.msk [vmem:[#allocation4 + $0x18] sm:$0xf] %vm594_vm5, %v3792_v62 }
 0x36b   :  { %4317 = vst.msk [vmem:[#allocation4 + $0x10] sm:$0xf] %vm594_vm5, %v4271_v33  ;;  %v3335_v29 = vmax.f32 %v3311_v48, 0.0  ;;  %3555 = vrot.lane.b32.xlu0 %v10699_v51, %s11798_s21  ;;  %v10864_v33 = vpack.c.bf16 %v5974_v39, %v5974_v39 }
 0x36c   :  { %4033 = vrot.lane.b32.xlu1 %v10715_v44, %s11798_s21 }
 0x36d   :  { %3352 = vst.msk [vmem:[#allocation3 + $0x101] sm:$0xff] %vm44_vm1, %v3335_v29  ;;  %v4145_v25 = vpop.permute.xlu0 %4144 }
 0x36e   :  { %v3538_v1 = vpop.permute.xlu1 %3537  ;;  %4190 = vst.msk [vmem:[#allocation4 + $0x1c] sm:$0xf] %vm464_vm4, %v4145_v25  ;;  %v11141_v2 = vpop.f32.mrf.mxu1 }
 0x36f   :  { %3582 = vst.msk [vmem:[#allocation4 + $0x24] sm:$0xf] %vm335_vm3, %v3538_v1  ;;  %3683 = vrot.lane.b32.xlu0 %v10715_v44, %s11800_s19 }
 0x370   :  { %3809 = vrot.lane.b32.xlu1 %v10683_v40, %s11801_s17  ;;  %v4343_v8 = vld [vmem:[#allocation3 + $0xf2] sm:$0xff]  ;;  %v11142_v3 = vpop.f32.mrf.mxu1 }
 0x371   :  { %v4087_v4 = vld [vmem:[#allocation3 + $0xf0] sm:$0xff]  ;;  %v10716_v45 = vpack.c.bf16 %v4343_v8, %v4343_v8  ;;  %v11143_v11 = vadd.f32 %v11142_v3, %v11141_v2  ;;  %v4273_v12 = vpop.permute.xlu0 %4272 }
 0x372   :  { %v4215_v6 = vld [vmem:[#allocation3 + $0xf1] sm:$0xff]  ;;  %v3666_v13 = vpop.permute.xlu1 %3665  ;;  %v10684_v14 = vpack.c.bf16 %v4087_v4, %v4087_v4  ;;  %4318 = vst.msk [vmem:[#allocation4 + $0x1c] sm:$0xf] %vm594_vm5, %v4273_v12  ;;  %v11144_v18 = vpop.f32.mrf.mxu1 }
 0x373   :  { %v4430_v38 = vld [vmem:[#allocation4 + $0xc] sm:$0xff]  ;;  %v10700_v15 = vpack.c.bf16 %v4215_v6, %v4215_v6  ;;  %3710 = vst.msk [vmem:[#allocation4 + $0x24] sm:$0xf] %vm464_vm4, %v3666_v13  ;;  %v3219_v54 = vadd.f32 %v11143_v11, %v13165_v16  ;;  %4035 = vrot.lane.b32.xlu0 %v10716_v45, %s11798_s21 }
 0x374   :  { %v9747_v53 = vcombine.high %v13368_v10, %v4430_v38  ;;  %v9746_v7 = vcombine.low %v13368_v10, %v4430_v38  ;;  %4423 = vst.msk [vmem:[#allocation4 + $0x8c] sm:$0xf] %vm206_vm0, %v10716_v45  ;;  %4162 = vrot.lane.b32.xlu1 %v10684_v14, %s11800_s19  ;;  %3464 = vst.msk [vmem:[#allocation4 + $0x9c] sm:$0xf] %vm206_vm0, %v10684_v14  ;;  %v4344_v43 = vld [vmem:[#allocation3 + $0x102] sm:$0xff]  ;;  %v11145_v19 = vpop.f32.mrf.mxu1 }
 0x375   :  { %3943 = vst.msk [vmem:[#allocation4 + $0x94] sm:$0xf] %vm206_vm0, %v10700_v15  ;;  %v4088_v36 = vld [vmem:[#allocation3 + $0x100] sm:$0xff]  ;;  %v10717_v55 = vpack.c.bf16 %v4344_v43, %v4344_v43  ;;  %v3316_v22 = vadd.f32 %v13360_v34, %v3219_v54  ;;  %v11146_v23 = vadd.f32 %v11145_v19, %v11144_v18  ;;  %v3540_v24 = vpop.permute.xlu0 %3539 }
 0x376   :  { %4789 = vmatprep.mubr.bf16.mxu1 %v9747_v53  ;;  %v4216_v21 = vld [vmem:[#allocation3 + $0x101] sm:$0xff]  ;;  %v4018_v28 = vpop.permute.xlu1 %4017  ;;  %v10685_v56 = vpack.c.bf16 %v4088_v36, %v4088_v36  ;;  %3583 = vst.msk [vmem:[#allocation4 + $0x30] sm:$0xf] %vm335_vm3, %v3540_v24 }
 0x377   :  { %4790 = vmatmul.mubr.bf16.vlgmr.msra.gmra.mxu1 %v9746_v7  ;;  %4062 = vst.msk [vmem:[#allocation4 + $0x28] sm:$0xf] %vm335_vm3, %v4018_v28  ;;  %v10701_v5 = vpack.c.bf16 %v4216_v21, %v4216_v21  ;;  %v3336_v35 = vmax.f32 %v3316_v22, 0.0  ;;  %v3222_v30 = vadd.f32 %v11146_v23, %v13165_v16  ;;  %3811 = vrot.lane.b32.xlu0 %v10684_v14, %s11801_s17 }
 0x378   :  { %4424 = vst.msk [vmem:[#allocation4 + $0x98] sm:$0xf] %vm206_vm0, %v10717_v55  ;;  %4290 = vrot.lane.b32.xlu1 %v10700_v15, %s11801_s17  ;;  %3465 = vst.msk [vmem:[#allocation4 + $0xa8] sm:$0xf] %vm206_vm0, %v10685_v56 }
 0x379   :  { %3944 = vst.msk [vmem:[#allocation4 + $0xa0] sm:$0xf] %vm206_vm0, %v10701_v5  ;;  %v3319_v34 = vadd.f32 %v13375_v59, %v3222_v30  ;;  %v3668_v58 = vpop.permute.xlu0 %3667  ;;  %v4432_v60 = vld [vmem:[#allocation4 + $0x18] sm:$0xff] }
 0x37a   :  { %3353 = vst.msk [vmem:[#allocation3 + $0x111] sm:$0xff] %vm44_vm1, %v3336_v35  ;;  %v3794_v41 = vpop.permute.xlu1 %3793 }
 0x37b   :  { %3711 = vst.msk [vmem:[#allocation4 + $0x30] sm:$0xf] %vm464_vm4, %v3668_v58  ;;  %v11695_v44 = vld [vmem:[#allocation4 + $0x80] ss:$12 sps:$4 sm:$0xff]   ;;  %v3337_v16 = vmax.f32 %v3319_v34, 0.0  ;;  %4164 = vrot.lane.b32.xlu0 %v10685_v56, %s11800_s19 }
 0x37c   :  { %3838 = vst.msk [vmem:[#allocation4 + $0x24] sm:$0xf] %vm594_vm5, %v3794_v41  ;;  %3557 = vrot.lane.b32.xlu1 %v10700_v15, %s11798_s21  ;;  %11476 = vmatmul.mubr.msk.bf16.gmra.mxu0 %vm44_vm1, %v11695_v44 }
 0x37d   :  { %3354 = vst.msk [vmem:[#allocation3 + $0x121] sm:$0xff] %vm44_vm1, %v3337_v16  ;;  %v4020_v49 = vpop.permute.xlu0 %4019 }
 0x37e   :  { %v4147_v40 = vpop.permute.xlu1 %4146  ;;  %4063 = vst.msk [vmem:[#allocation4 + $0x34] sm:$0xf] %vm335_vm3, %v4020_v49 }
 0x37f   :  { %4191 = vst.msk [vmem:[#allocation4 + $0x28] sm:$0xf] %vm464_vm4, %v4147_v40  ;;  %4292 = vrot.lane.b32.xlu0 %v10701_v5, %s11801_s17 }
 0x380   :  { %3685 = vrot.lane.b32.xlu1 %v10716_v45, %s11800_s19 }
 0x381   :  { %v4345_v51 = vld [vmem:[#allocation3 + $0x112] sm:$0xff]  ;;  %v3796_v26 = vpop.permute.xlu0 %3795 }
 0x382   :  { %v4089_v63 = vld [vmem:[#allocation3 + $0x110] sm:$0xff]  ;;  %v10718_v52 = vpack.c.bf16 %v4345_v51, %v4345_v51  ;;  %v4275_v10 = vpop.permute.xlu1 %4274  ;;  %3839 = vst.msk [vmem:[#allocation4 + $0x30] sm:$0xf] %vm594_vm5, %v3796_v26 }
 0x383   :  { %v4217_v0 = vld [vmem:[#allocation3 + $0x111] sm:$0xff]  ;;  %v10686_v27 = vpack.c.bf16 %v4089_v63, %v4089_v63  ;;  %4319 = vst.msk [vmem:[#allocation4 + $0x28] sm:$0xf] %vm594_vm5, %v4275_v10  ;;  %3559 = vrot.lane.b32.xlu0 %v10701_v5, %s11798_s21 }
 0x384   :  { %v10702_v31 = vpack.c.bf16 %v4217_v0, %v4217_v0  ;;  %4425 = vst.msk [vmem:[#allocation4 + $0xa4] sm:$0xf] %vm206_vm0, %v10718_v52  ;;  %4037 = vrot.lane.b32.xlu1 %v10717_v55, %s11798_s21  ;;  %v4346_v32 = vld [vmem:[#allocation3 + $0x122] sm:$0xff] }
 0x385   :  { %3466 = vst.msk [vmem:[#allocation4 + $0xb4] sm:$0xf] %vm206_vm0, %v10686_v27  ;;  %v4218_v9 = vld [vmem:[#allocation3 + $0x121] sm:$0xff]  ;;  %v10719_v57 = vpack.c.bf16 %v4346_v32, %v4346_v32  ;;  %v4149_v59 = vpop.permute.xlu0 %4148 }
 0x386   :  { %3945 = vst.msk [vmem:[#allocation4 + $0xac] sm:$0xf] %vm206_vm0, %v10702_v31  ;;  %v3542_v20 = vpop.permute.xlu1 %3541  ;;  %v10703_v37 = vpack.c.bf16 %v4218_v9, %v4218_v9  ;;  %v4090_v2 = vld [vmem:[#allocation3 + $0x120] sm:$0xff] }
 0x387   :  { %4192 = vst.msk [vmem:[#allocation4 + $0x34] sm:$0xf] %vm464_vm4, %v4149_v59  ;;  %3687 = vrot.lane.b32.xlu0 %v10717_v55, %s11800_s19  ;;  %v10687_v4 = vpack.c.bf16 %v4090_v2, %v4090_v2 }
 0x388   :  { %3584 = vst.msk [vmem:[#allocation4 + $0x3c] sm:$0xf] %vm335_vm3, %v3542_v20  ;;  %3813 = vrot.lane.b32.xlu1 %v10685_v56, %s11801_s17 }
 0x389   :  { %4426 = vst.msk [vmem:[#allocation4 + $0xb0] sm:$0xf] %vm206_vm0, %v10719_v57  ;;  %3946 = vst.msk [vmem:[#allocation4 + $0xb8] sm:$0xf] %vm206_vm0, %v10703_v37  ;;  %v4277_v42 = vpop.permute.xlu0 %4276 }
 0x38a   :  { %v4434_v61 = vld [vmem:[#allocation4 + $0x24] sm:$0xff]  ;;  %v3670_v17 = vpop.permute.xlu1 %3669  ;;  %4320 = vst.msk [vmem:[#allocation4 + $0x34] sm:$0xf] %vm594_vm5, %v4277_v42 }
 0x38b   :  { %3712 = vst.msk [vmem:[#allocation4 + $0x3c] sm:$0xf] %vm464_vm4, %v3670_v17  ;;  %v9750_v47 = vcombine.high %v4432_v60, %v4434_v61  ;;  %v11696_v48 = vld [vmem:[#allocation4 + $0x98] ss:$12 sps:$4 sm:$0xff]   ;;  %v9749_v62 = vcombine.low %v4432_v60, %v4434_v61  ;;  %4039 = vrot.lane.b32.xlu0 %v10718_v52, %s11798_s21 }
 0x38c   :  { %4166 = vrot.lane.b32.xlu1 %v10686_v27, %s11800_s19  ;;  %11479 = vmatprep.mubr.msk.bf16.mxu0 %vm44_vm1, %v11696_v48 }
 0x38d   :  { %4797 = vmatprep.mubr.bf16.mxu1 %v9750_v47  ;;  %v3544_v29 = vpop.permute.xlu0 %3543 }
 0x38e   :  { %v4022_v25 = vpop.permute.xlu1 %4021  ;;  %4798 = vmatmul.mubr.bf16.gmra.mxu1 %v9749_v62  ;;  %3585 = vst.msk [vmem:[#allocation4 + $0x48] sm:$0xf] %vm335_vm3, %v3544_v29 }
 0x38f   :  { %4064 = vst.msk [vmem:[#allocation4 + $0x40] sm:$0xf] %vm335_vm3, %v4022_v25  ;;  %3815 = vrot.lane.b32.xlu0 %v10686_v27, %s11801_s17 }
 0x390   :  { %v11697_v1 = vld [vmem:[#allocation4 + $0xb0] ss:$12 sps:$4 sm:$0xff]   ;;  %4294 = vrot.lane.b32.xlu1 %v10702_v31, %s11801_s17 }
 0x391   :  { %6054 = vst.msk [vmem:[#allocation4 + $0xbc] sm:$0xf] %vm206_vm0, %v10864_v33  ;;  %11480 = vmatmul.mubr.msk.bf16.gmra.mxu0 %vm44_vm1, %v11697_v1  ;;  %v3672_v8 = vpop.permute.xlu0 %3671  ;;  %v4436_v14 = vld [vmem:[#allocation4 + $0x30] sm:$0xff] }
 0x392   :  { %v3798_v3 = vpop.permute.xlu1 %3797  ;;  %3713 = vst.msk [vmem:[#allocation4 + $0x48] sm:$0xf] %vm464_vm4, %v3672_v8 }
 0x393   :  { %3840 = vst.msk [vmem:[#allocation4 + $0x3c] sm:$0xf] %vm594_vm5, %v3798_v3  ;;  %4168 = vrot.lane.b32.xlu0 %v10687_v4, %s11800_s19 }
 0x394   :  { %3561 = vrot.lane.b32.xlu1 %v10702_v31, %s11798_s21 }
 0x395   :  { %v4024_v6 = vpop.permute.xlu0 %4023 }
 0x396   :  { %v4151_v45 = vpop.permute.xlu1 %4150  ;;  %4065 = vst.msk [vmem:[#allocation4 + $0x4c] sm:$0xf] %vm335_vm3, %v4024_v6 }
 0x397   :  { %4193 = vst.msk [vmem:[#allocation4 + $0x40] sm:$0xf] %vm464_vm4, %v4151_v45  ;;  %4296 = vrot.lane.b32.xlu0 %v10703_v37, %s11801_s17 }
 0x398   :  { %3689 = vrot.lane.b32.xlu1 %v10718_v52, %s11800_s19 }
 0x399   :  { %v3800_v38 = vpop.permute.xlu0 %3799 }
 0x39a   :  { %v4279_v11 = vpop.permute.xlu1 %4278  ;;  %3841 = vst.msk [vmem:[#allocation4 + $0x48] sm:$0xf] %vm594_vm5, %v3800_v38 }
 0x39b   :  { %4321 = vst.msk [vmem:[#allocation4 + $0x40] sm:$0xf] %vm594_vm5, %v4279_v11 }
 0x39c   :  { %4041 = vrot.lane.b32.xlu1 %v10719_v57, %s11798_s21 }
 0x39d   :  { %v4153_v12 = vpop.permute.xlu0 %4152 }
 0x39e   :  { %v3546_v13 = vpop.permute.xlu1 %3545  ;;  %4194 = vst.msk [vmem:[#allocation4 + $0x4c] sm:$0xf] %vm464_vm4, %v4153_v12 }
 0x39f   :  { %3586 = vst.msk [vmem:[#allocation4 + $0x54] sm:$0xf] %vm335_vm3, %v3546_v13  ;;  %v11699_v13 = vld [vmem:[%s14449_s1 + $0x238] sm:$0xff]  }
 0x3a0   :  { %3817 = vrot.lane.b32.xlu1 %v10687_v4, %s11801_s17  ;;  %11483 = vmatprep.subr.bf16.mxu1 %v11699_v13 }
 0x3a1   :  { %v4281_v18 = vpop.permute.xlu0 %4280  ;;  %11484 = vmatpush3.bf16.msra.mxu1 %v11699_v13  ;;  %v11710_v13 = vld [vmem:[%s14449_s1 + $0x210] sm:$0xff]  }
 0x3a2   :  { %v4438_v15 = vld [vmem:[#allocation4 + $0x3c] sm:$0xff]  ;;  %v3674_v53 = vpop.permute.xlu1 %3673  ;;  %4322 = vst.msk [vmem:[#allocation4 + $0x4c] sm:$0xf] %vm594_vm5, %v4281_v18  ;;  %v11700_v18 = vld [vmem:[%s14449_s1 + $0x230] sm:$0xff]  }
 0x3a3   :  { %3714 = vst.msk [vmem:[#allocation4 + $0x54] sm:$0xf] %vm464_vm4, %v3674_v53  ;;  %v9753_v7 = vcombine.high %v4436_v14, %v4438_v15  ;;  %v9752_v54 = vcombine.low %v4436_v14, %v4438_v15  ;;  %11485 = vmatprep.subr.bf16.mxu1 %v11700_v18 }
 0x3a5   :  { %4805 = vmatprep.mubr.bf16.mxu1 %v9753_v7  ;;  %v3548_v43 = vpop.permute.xlu0 %3547  ;;  %11486 = vmatpush3.bf16.msra.mxu1 %v11700_v18 }
 0x3a6   :  { %v4026_v19 = vpop.permute.xlu1 %4025  ;;  %4806 = vmatmul.mubr.bf16.gmra.mxu1 %v9752_v54  ;;  %3587 = vst.msk [vmem:[#allocation4 + $0x60] sm:$0xf] %vm335_vm3, %v3548_v43 }
 0x3a7   :  { %4066 = vst.msk [vmem:[#allocation4 + $0x58] sm:$0xf] %vm335_vm3, %v4026_v19 }
 0x3a8   :  { %4195 = vst.msk [vmem:[#allocation4 + $0x58] sm:$0xf] %vm464_vm4, %v13105_v50 }
 0x3a9   :  { %v3676_v36 = vpop.permute.xlu0 %3675  ;;  %v4440_v28 = vld [vmem:[#allocation4 + $0x48] sm:$0xff] }
 0x3aa   :  { %v3802_v21 = vpop.permute.xlu1 %3801  ;;  %3715 = vst.msk [vmem:[#allocation4 + $0x60] sm:$0xf] %vm464_vm4, %v3676_v36 }
 0x3ab   :  { %3842 = vst.msk [vmem:[#allocation4 + $0x54] sm:$0xf] %vm594_vm5, %v3802_v21 }
 0x3ad   :  { %v5160_v55 = vpop.permute.xlu0 %5159 }
 0x3ae   :  { %v4283_v22 = vpop.permute.xlu1 %4282  ;;  %5207 = vst.msk [vmem:[#allocation4] sm:$0xf] %vm335_vm3, %v5160_v55 }
 0x3af   :  { %4323 = vst.msk [vmem:[#allocation4 + $0x58] sm:$0xf] %vm594_vm5, %v4283_v22 }
 0x3b1   :  { %v5288_v23 = vpop.permute.xlu0 %5287 }
 0x3b2   :  { %v13472_v24 = vpop.permute.xlu1 %4170  ;;  %5335 = vst.msk [vmem:[#allocation4] sm:$0xf] %vm464_vm4, %v5288_v23 }
 0x3b5   :  { %v4028_v50 = vpop.permute.xlu0 %4027 }
 0x3b6   :  { %v4442_v56 = vld [vmem:[#allocation4 + $0x54] sm:$0xff]  ;;  %v13475_v5 = vpop.permute.xlu1 %4298  ;;  %4067 = vst.msk [vmem:[#allocation4 + $0x64] sm:$0xf] %vm335_vm3, %v4028_v50 }
 0x3b7   :  { %v9756_v35 = vcombine.high %v4440_v28, %v4442_v56  ;;  %v9755_v30 = vcombine.low %v4440_v28, %v4442_v56 }
 0x3b9   :  { %4813 = vmatprep.mubr.bf16.mxu1 %v9756_v35  ;;  %v3804_v34 = vpop.permute.xlu0 %3803 }
 0x3ba   :  { %v13478_v58 = vpop.permute.xlu1 %5781  ;;  %4814 = vmatmul.mubr.bf16.gmra.mxu1 %v9755_v30  ;;  %3843 = vst.msk [vmem:[#allocation4 + $0x60] sm:$0xf] %vm594_vm5, %v3804_v34 }
 0x3bd   :  { %v4157_v41 = vpop.permute.xlu0 %4156 }
 0x3be   :  { %v3550_v44 = vpop.permute.xlu1 %3549  ;;  %4196 = vst.msk [vmem:[#allocation4 + $0x64] sm:$0xf] %vm464_vm4, %v4157_v41 }
 0x3bf   :  { %3588 = vst.msk [vmem:[#allocation4 + $0x6c] sm:$0xf] %vm335_vm3, %v3550_v44 }
 0x3c1   :  { %v4285_v16 = vpop.permute.xlu0 %4284 }
 0x3c2   :  { %v3678_v49 = vpop.permute.xlu1 %3677  ;;  %4324 = vst.msk [vmem:[#allocation4 + $0x64] sm:$0xf] %vm594_vm5, %v4285_v16 }
 0x3c3   :  { %3716 = vst.msk [vmem:[#allocation4 + $0x6c] sm:$0xf] %vm464_vm4, %v3678_v49 }
 0x3c5   :  { %v3552_v40 = vpop.permute.xlu0 %3551 }
 0x3c6   :  { %v4030_v51 = vpop.permute.xlu1 %4029  ;;  %3589 = vst.msk [vmem:[#allocation4 + $0x78] sm:$0xf] %vm335_vm3, %v3552_v40 }
 0x3c7   :  { %4068 = vst.msk [vmem:[#allocation4 + $0x70] sm:$0xf] %vm335_vm3, %v4030_v51 }
 0x3c9   :  { %v3680_v63 = vpop.permute.xlu0 %3679  ;;  %v4444_v9 = vld [vmem:[#allocation4 + $0x60] sm:$0xff] }
 0x3ca   :  { %v3806_v0 = vpop.permute.xlu1 %3805  ;;  %3717 = vst.msk [vmem:[#allocation4 + $0x78] sm:$0xf] %vm464_vm4, %v3680_v63 }
 0x3cb   :  { %3844 = vst.msk [vmem:[#allocation4 + $0x6c] sm:$0xf] %vm594_vm5, %v3806_v0 }
 0x3cd   :  { %v4032_v52 = vpop.permute.xlu0 %4031 }
 0x3ce   :  { %v4159_v26 = vpop.permute.xlu1 %4158  ;;  %4069 = vst.msk [vmem:[#allocation4 + $0x7c] sm:$0xf] %vm335_vm3, %v4032_v52 }
 0x3cf   :  { %4197 = vst.msk [vmem:[#allocation4 + $0x70] sm:$0xf] %vm464_vm4, %v4159_v26 }
 0x3d1   :  { %v3808_v10 = vpop.permute.xlu0 %3807 }
 0x3d2   :  { %v4287_v27 = vpop.permute.xlu1 %4286  ;;  %3845 = vst.msk [vmem:[#allocation4 + $0x78] sm:$0xf] %vm594_vm5, %v3808_v10  ;;  %v3355_v10 = vld [vmem:[#allocation2 + $0x11] sm:$0xff] }
 0x3d3   :  { %4325 = vst.msk [vmem:[#allocation4 + $0x70] sm:$0xf] %vm594_vm5, %v4287_v27  ;;  %v13533_v41 = vpop.f32.mrf.mxu0 }
 0x3d5   :  { %v4161_v31 = vpop.permute.xlu0 %4160  ;;  %v4888_v16 = vpop.f32.mrf.mxu0 }
 0x3d6   :  { %v3554_v32 = vpop.permute.xlu1 %3553  ;;  %4198 = vst.msk [vmem:[#allocation4 + $0x7c] sm:$0xf] %vm464_vm4, %v4161_v31 }
 0x3d7   :  { %3590 = vst.msk [vmem:[#allocation4 + $0x84] sm:$0xf] %vm335_vm3, %v3554_v32  ;;  %v13541_v63 = vpop.f32.mrf.mxu0 }
 0x3d9   :  { %v4289_v59 = vpop.permute.xlu0 %4288  ;;  %v4891_v32 = vpop.f32.mrf.mxu0 }
 0x3da   :  { %v4446_v57 = vld [vmem:[#allocation4 + $0x6c] sm:$0xff]  ;;  %v3682_v20 = vpop.permute.xlu1 %3681  ;;  %4326 = vst.msk [vmem:[#allocation4 + $0x7c] sm:$0xf] %vm594_vm5, %v4289_v59  ;;  %v3356_v59 = vld [vmem:[#allocation2 + $0x21] sm:$0xff] }
 0x3db   :  { %3718 = vst.msk [vmem:[#allocation4 + $0x84] sm:$0xf] %vm464_vm4, %v3682_v20  ;;  %v9759_v37 = vcombine.high %v4444_v9, %v4446_v57  ;;  %v9758_v39 = vcombine.low %v4444_v9, %v4446_v57 }
 0x3dd   :  { %4821 = vmatprep.mubr.bf16.mxu1 %v9759_v37  ;;  %v3556_v60 = vpop.permute.xlu0 %3555 }
 0x3de   :  { %v4034_v61 = vpop.permute.xlu1 %4033  ;;  %4822 = vmatmul.mubr.bf16.gmra.mxu1 %v9758_v39  ;;  %3591 = vst.msk [vmem:[#allocation4 + $0x90] sm:$0xf] %vm335_vm3, %v3556_v60  ;;  %v11704_v39 = vld [vmem:[%s14449_s1 + $0x228] sm:$0xff]  }
 0x3df   :  { %4070 = vst.msk [vmem:[#allocation4 + $0x88] sm:$0xf] %vm335_vm3, %v4034_v61  ;;  %v11705_v60 = vld [vmem:[%s14449_s1 + $0x1e8] sm:$0xff]   ;;  %11231 = vmatprep.subr.bf16.mxu0 %v11704_v39  ;;  %v11706_v61 = vld [vmem:[%s14449_s1 + $0x220] sm:$0xff]  }
 0x3e0   :  { %11232 = vmatpush3.bf16.msra.mxu0 %v11705_v60 }
 0x3e1   :  { %v3684_v42 = vpop.permute.xlu0 %3683  ;;  %v4448_v1 = vld [vmem:[#allocation4 + $0x78] sm:$0xff]  ;;  %11233 = vmatprep.subr.bf16.mxu0 %v11706_v61 }
 0x3e2   :  { %v3810_v17 = vpop.permute.xlu1 %3809  ;;  %3719 = vst.msk [vmem:[#allocation4 + $0x90] sm:$0xf] %vm464_vm4, %v3684_v42 }
 0x3e3   :  { %3846 = vst.msk [vmem:[#allocation4 + $0x84] sm:$0xf] %vm594_vm5, %v3810_v17 }
 0x3e5   :  { %v4036_v47 = vpop.permute.xlu0 %4035 }
 0x3e6   :  { %v4163_v48 = vpop.permute.xlu1 %4162  ;;  %4071 = vst.msk [vmem:[#allocation4 + $0x94] sm:$0xf] %vm335_vm3, %v4036_v47 }
 0x3e7   :  { %4199 = vst.msk [vmem:[#allocation4 + $0x88] sm:$0xf] %vm464_vm4, %v4163_v48 }
 0x3e9   :  { %v3812_v62 = vpop.permute.xlu0 %3811 }
 0x3ea   :  { %v4291_v33 = vpop.permute.xlu1 %4290  ;;  %3847 = vst.msk [vmem:[#allocation4 + $0x90] sm:$0xf] %vm594_vm5, %v3812_v62 }
 0x3eb   :  { %4327 = vst.msk [vmem:[#allocation4 + $0x88] sm:$0xf] %vm594_vm5, %v4291_v33 }
 0x3ed   :  { %v4165_v29 = vpop.permute.xlu0 %4164 }
 0x3ee   :  { %v3558_v25 = vpop.permute.xlu1 %3557  ;;  %4200 = vst.msk [vmem:[#allocation4 + $0x94] sm:$0xf] %vm464_vm4, %v4165_v29  ;;  %v11707_v29 = vld [vmem:[%s14449_s1 + $0x1e0] sm:$0xff]  }
 0x3ef   :  { %3592 = vst.msk [vmem:[#allocation4 + $0x9c] sm:$0xf] %vm335_vm3, %v3558_v25  ;;  %v11708_v25 = vld [vmem:[%s14449_s1 + $0x218] sm:$0xff]   ;;  %11234 = vmatpush3.bf16.msra.mxu0 %v11707_v29 }
 0x3f0   :  { %11235 = vmatprep.subr.bf16.mxu0 %v11708_v25 }
 0x3f1   :  { %v4293_v8 = vpop.permute.xlu0 %4292 }
 0x3f2   :  { %v4450_v2 = vld [vmem:[#allocation4 + $0x84] sm:$0xff]  ;;  %v3686_v3 = vpop.permute.xlu1 %3685  ;;  %4328 = vst.msk [vmem:[#allocation4 + $0x94] sm:$0xf] %vm594_vm5, %v4293_v8 }
 0x3f3   :  { %3720 = vst.msk [vmem:[#allocation4 + $0x9c] sm:$0xf] %vm464_vm4, %v3686_v3  ;;  %v9762_v4 = vcombine.high %v4448_v1, %v4450_v2  ;;  %v9761_v6 = vcombine.low %v4448_v1, %v4450_v2 }
 0x3f5   :  { %4829 = vmatprep.mubr.bf16.mxu1 %v9762_v4  ;;  %v3560_v45 = vpop.permute.xlu0 %3559 }
 0x3f6   :  { %v4038_v38 = vpop.permute.xlu1 %4037  ;;  %4830 = vmatmul.mubr.bf16.gmra.mxu1 %v9761_v6  ;;  %3593 = vst.msk [vmem:[#allocation4 + $0xa8] sm:$0xf] %vm335_vm3, %v3560_v45 }
 0x3f7   :  { %4072 = vst.msk [vmem:[#allocation4 + $0xa0] sm:$0xf] %vm335_vm3, %v4038_v38  ;;  %v11709_v38 = vld [vmem:[%s14449_s1 + $0x1d8] sm:$0xff]  }
 0x3f8   :  { %11236 = vmatpush3.bf16.msra.mxu0 %v11709_v38 }
 0x3f9   :  { %v3688_v11 = vpop.permute.xlu0 %3687  ;;  %v4452_v19 = vld [vmem:[#allocation4 + $0x90] sm:$0xff]  ;;  %11237 = vmatprep.subr.bf16.mxu0 %v11710_v13 }
 0x3fa   :  { %v3814_v12 = vpop.permute.xlu1 %3813  ;;  %3721 = vst.msk [vmem:[#allocation4 + $0xa8] sm:$0xf] %vm464_vm4, %v3688_v11 }
 0x3fb   :  { %3848 = vst.msk [vmem:[#allocation4 + $0x9c] sm:$0xf] %vm594_vm5, %v3814_v12 }
 0x3fd   :  { %v4040_v14 = vpop.permute.xlu0 %4039 }
 0x3fe   :  { %v4167_v15 = vpop.permute.xlu1 %4166  ;;  %4073 = vst.msk [vmem:[#allocation4 + $0xac] sm:$0xf] %vm335_vm3, %v4040_v14 }
 0x3ff   :  { %4201 = vst.msk [vmem:[#allocation4 + $0xa0] sm:$0xf] %vm464_vm4, %v4167_v15  ;;  %v11711_v15 = vld [vmem:[%s14449_s1 + $0x1d0] sm:$0xff]  }
 0x400   :  { %11238 = vmatpush3.bf16.msra.mxu0 %v11711_v15 }
 0x401   :  { %v3816_v53 = vpop.permute.xlu0 %3815 }
 0x402   :  { %v4295_v7 = vpop.permute.xlu1 %4294  ;;  %3849 = vst.msk [vmem:[#allocation4 + $0xa8] sm:$0xf] %vm594_vm5, %v3816_v53 }
 0x403   :  { %4329 = vst.msk [vmem:[#allocation4 + $0xa0] sm:$0xf] %vm594_vm5, %v4295_v7 }
 0x405   :  { %v4169_v54 = vpop.permute.xlu0 %4168 }
 0x406   :  { %v3562_v43 = vpop.permute.xlu1 %3561  ;;  %4202 = vst.msk [vmem:[#allocation4 + $0xac] sm:$0xf] %vm464_vm4, %v4169_v54 }
 0x407   :  { %3594 = vst.msk [vmem:[#allocation4 + $0xb4] sm:$0xf] %vm335_vm3, %v3562_v43  ;;  %v11712_v43 = vld [vmem:[%s14449_s1 + $0x208] sm:$0xff]  }
 0x408   :  { %11239 = vmatprep.subr.bf16.mxu0 %v11712_v43 }
 0x409   :  { %v4297_v21 = vpop.permute.xlu0 %4296 }
 0x40a   :  { %v4454_v36 = vld [vmem:[#allocation4 + $0x9c] sm:$0xff]  ;;  %v3690_v55 = vpop.permute.xlu1 %3689  ;;  %4330 = vst.msk [vmem:[#allocation4 + $0xac] sm:$0xf] %vm594_vm5, %v4297_v21 }
 0x40b   :  { %3722 = vst.msk [vmem:[#allocation4 + $0xb4] sm:$0xf] %vm464_vm4, %v3690_v55  ;;  %v9765_v22 = vcombine.high %v4452_v19, %v4454_v36  ;;  %v9764_v23 = vcombine.low %v4452_v19, %v4454_v36  ;;  %v3357_v19 = vld [vmem:[#allocation2 + $0x31] sm:$0xff]  ;;  %v11714_v36 = vld [vmem:[%s14449_s1 + $0x1c8] sm:$0xff]  }
 0x40c   :  { %11240 = vmatpush3.bf16.msra.mxu0 %v11714_v36 }
 0x40d   :  { %4837 = vmatprep.mubr.bf16.mxu1 %v9765_v22 }
 0x40e   :  { %v4042_v28 = vpop.permute.xlu1 %4041  ;;  %4838 = vmatmul.mubr.bf16.gmra.mxu1 %v9764_v23 }
 0x40f   :  { %4074 = vst.msk [vmem:[#allocation4 + $0xb8] sm:$0xf] %vm335_vm3, %v4042_v28  ;;  %v11715_v28 = vld [vmem:[%s14449_s1 + $0x200] sm:$0xff]  }
 0x410   :  { %4203 = vst.msk [vmem:[#allocation4 + $0xb8] sm:$0xf] %vm464_vm4, %v13472_v24  ;;  %v13538_v24 = vld [vmem:[%s14450_s2 + $0x2] ss:$0 sm:$0xff]  ;;  %11241 = vmatprep.subr.bf16.mxu0 %v11715_v28 }
 0x411   :  { %4331 = vst.msk [vmem:[#allocation4 + $0xb8] sm:$0xf] %vm594_vm5, %v13475_v5  ;;  %v4456_v50 = vld [vmem:[#allocation4 + $0xa8] sm:$0xff] }
 0x412   :  { %v3818_v56 = vpop.permute.xlu1 %3817 }
 0x413   :  { %3850 = vst.msk [vmem:[#allocation4 + $0xb4] sm:$0xf] %vm594_vm5, %v3818_v56  ;;  %v3358_v56 = vld [vmem:[#allocation2 + $0x41] sm:$0xff] }
 0x41a   :  { %v4458_v35 = vld [vmem:[#allocation4 + $0xb4] sm:$0xff] }
 0x41b   :  { %v9768_v30 = vcombine.high %v4456_v50, %v4458_v35  ;;  %v9767_v34 = vcombine.low %v4456_v50, %v4458_v35  ;;  %v11716_v50 = vld [vmem:[%s14449_s1 + $0x1c0] sm:$0xff]  }
 0x41c   :  { %11242 = vmatpush3.bf16.msra.mxu0 %v11716_v50 }
 0x41d   :  { %4845 = vmatprep.mubr.bf16.mxu1 %v9768_v30 }
 0x41e   :  { %4846 = vmatmul.mubr.bf16.gmra.mxu1 %v9767_v34  ;;  %v11717_v34 = vld [vmem:[%s14449_s1 + $0x1f8] sm:$0xff]  }
 0x41f   :  { %11243 = vmatprep.subr.bf16.mxu0 %v11717_v34 }
 0x437   :  { %v11173_v44 = vpop.f32.mrf.mxu1 }
 0x439   :  { %v11174_v49 = vpop.f32.mrf.mxu1 }
 0x43a   :  { %v11175_v5 = vadd.f32 %v11174_v49, %v11173_v44  ;;  %v11719_v44 = vld [vmem:[%s14449_s1 + $0x1f0] sm:$0xff]  }
 0x43b   :  { %v11176_v40 = vpop.f32.mrf.mxu1 }
 0x43c   :  { %v4792_v51 = vadd.f32 %v11175_v5, %v13538_v24 }
 0x43d   :  { %v11177_v0 = vpop.f32.mrf.mxu1 }
 0x43e   :  { %v4889_v52 = vadd.f32 %v4888_v16, %v4792_v51  ;;  %v11178_v26 = vadd.f32 %v11177_v0, %v11176_v40  ;;  %v11720_v0 = vld [vmem:[%s14449_s1 + $0x1b0] sm:$0xff]  }
 0x440   :  { %v4951_v27 = vadd.f32 %v4889_v52, %v3355_v10  ;;  %v4795_v31 = vadd.f32 %v11178_v26, %v13538_v24  ;;  %v13615_v52 = vpop.f32.mrf.mxu0 }
 0x442   :  { %v4967_v9 = vmax.f32 %v4951_v27, 0.0  ;;  %v4892_v57 = vadd.f32 %v4891_v32, %v4795_v31 }
 0x444   :  { %4983 = vst.msk [vmem:[#allocation2 + $0x11] sm:$0xff] %vm44_vm1, %v4967_v9  ;;  %v4952_v20 = vadd.f32 %v4892_v57, %v3356_v59  ;;  %v4904_v59 = vpop.f32.mrf.mxu0 }
 0x446   :  { %v4968_v37 = vmax.f32 %v4952_v20, 0.0  ;;  %v11474_v61 = vpop.f32.mrf.mxu0 }
 0x448   :  { %4984 = vst.msk [vmem:[#allocation2 + $0x21] sm:$0xff] %vm44_vm1, %v4968_v37  ;;  %v4907_v25 = vpop.f32.mrf.mxu0 }
 0x44b   :  { %v5575_v42 = vld [vmem:[#allocation2 + $0x12] sm:$0xff] }
 0x44c   :  { %v5096_v17 = vld [vmem:[#allocation2 + $0x11] sm:$0xff]  ;;  %v10801_v48 = vpack.c.bf16 %v5575_v42, %v5575_v42 }
 0x44d   :  { %v5351_v47 = vld [vmem:[#allocation2 + $0x10] sm:$0xff]  ;;  %v10738_v62 = vpack.c.bf16 %v5096_v17, %v5096_v17 }
 0x44e   :  { %v10769_v33 = vpack.c.bf16 %v5351_v47, %v5351_v47  ;;  %5639 = vrot.lane.b32.xlu0 %v10801_v48, %s11798_s21  ;;  %v11179_v1 = vpop.f32.mrf.mxu1 }
 0x44f   :  { %5161 = vrot.lane.b32.xlu1 %v10738_v62, %s11798_s21  ;;  %5559 = vst.msk [vmem:[#allocation4 + $0x4] sm:$0xf] %vm206_vm0, %v10738_v62  ;;  %v5703_v2 = vld [vmem:[#allocation2 + $0x20] sm:$0xff]  ;;  %v3359_v62 = vld [vmem:[#allocation2 + $0x51] sm:$0xff] }
 0x450   :  { %5080 = vst.msk [vmem:[#allocation4 + $0xc] sm:$0xf] %vm206_vm0, %v10769_v33  ;;  %v5576_v8 = vld [vmem:[#allocation2 + $0x22] sm:$0xff]  ;;  %v10817_v4 = vpack.c.bf16 %v5703_v2, %v5703_v2  ;;  %v11180_v11 = vpop.f32.mrf.mxu1 }
 0x451   :  { %v5831_v3 = vld [vmem:[#allocation2 + $0x21] sm:$0xff]  ;;  %v10802_v6 = vpack.c.bf16 %v5576_v8, %v5576_v8  ;;  %v11181_v12 = vadd.f32 %v11180_v11, %v11179_v1 }
 0x452   :  { %v10833_v45 = vpack.c.bf16 %v5831_v3, %v5831_v3  ;;  %5415 = vrot.lane.b32.xlu0 %v10769_v33, %s11801_s17  ;;  %5081 = vst.msk [vmem:[#allocation4 + $0x18] sm:$0xf] %vm206_vm0, %v10817_v4  ;;  %v11182_v14 = vpop.f32.mrf.mxu1  ;;  %v3360_v8 = vld [vmem:[#allocation2 + $0x61] sm:$0xff] }
 0x453   :  { %5289 = vrot.lane.b32.xlu1 %v10801_v48, %s11800_s19  ;;  %6039 = vst.msk [vmem:[#allocation4 + $0x8] sm:$0xf] %vm206_vm0, %v10802_v6  ;;  %v4800_v18 = vadd.f32 %v11181_v12, %v13538_v24 }
 0x454   :  { %5560 = vst.msk [vmem:[#allocation4 + $0x10] sm:$0xf] %vm206_vm0, %v10833_v45  ;;  %v11183_v53 = vpop.f32.mrf.mxu1 }
 0x455   :  { %v4897_v7 = vadd.f32 %v13533_v41, %v4800_v18  ;;  %v11184_v54 = vadd.f32 %v11183_v53, %v11182_v14  ;;  %v11718_v41 = vld [vmem:[%s14449_s1 + $0x1b8] sm:$0xff]  }
 0x456   :  { %5767 = vrot.lane.b32.xlu0 %v10817_v4, %s11800_s19  ;;  %11244 = vmatpush3.bf16.msra.mxu0 %v11718_v41 }
 0x457   :  { %5641 = vrot.lane.b32.xlu1 %v10802_v6, %s11798_s21  ;;  %v4953_v21 = vadd.f32 %v4897_v7, %v3357_v19  ;;  %v4803_v55 = vadd.f32 %v11184_v54, %v13538_v24  ;;  %11245 = vmatprep.subr.bf16.mxu0 %v11719_v44  ;;  %v3362_v44 = vld [vmem:[#allocation2 + $0x81] sm:$0xff] }
 0x459   :  { %v4969_v22 = vmax.f32 %v4953_v21, 0.0  ;;  %v4900_v23 = vadd.f32 %v13541_v63, %v4803_v55 }
 0x45a   :  { %5895 = vrot.lane.b32.xlu0 %v10833_v45, %s11801_s17  ;;  %11246 = vmatpush3.bf16.msra.mxu0 %v11720_v0 }
 0x45b   :  { %5417 = vrot.lane.b32.xlu1 %v10817_v4, %s11801_s17  ;;  %4985 = vst.msk [vmem:[#allocation2 + $0x31] sm:$0xff] %vm44_vm1, %v4969_v22  ;;  %v4954_v35 = vadd.f32 %v4900_v23, %v3358_v56  ;;  %v3361_v56 = vld [vmem:[#allocation2 + $0x71] sm:$0xff] }
 0x45d   :  { %v4970_v30 = vmax.f32 %v4954_v35, 0.0 }
 0x45e   :  { %5163 = vrot.lane.b32.xlu0 %v10833_v45, %s11798_s21 }
 0x45f   :  { %4986 = vst.msk [vmem:[#allocation2 + $0x41] sm:$0xff] %vm44_vm1, %v4970_v30 }
 0x462   :  { %5291 = vrot.lane.b32.xlu0 %v10802_v6, %s11800_s19  ;;  %v5577_v16 = vld [vmem:[#allocation2 + $0x32] sm:$0xff] }
 0x463   :  { %v5704_v49 = vld [vmem:[#allocation2 + $0x30] sm:$0xff]  ;;  %v10803_v40 = vpack.c.bf16 %v5577_v16, %v5577_v16 }
 0x464   :  { %v5832_v5 = vld [vmem:[#allocation2 + $0x31] sm:$0xff]  ;;  %v10818_v51 = vpack.c.bf16 %v5704_v49, %v5704_v49 }
 0x465   :  { %v10834_v63 = vpack.c.bf16 %v5832_v5, %v5832_v5  ;;  %6040 = vst.msk [vmem:[#allocation4 + $0x14] sm:$0xf] %vm206_vm0, %v10803_v40 }
 0x466   :  { %5643 = vrot.lane.b32.xlu0 %v10803_v40, %s11798_s21  ;;  %5769 = vrot.lane.b32.xlu1 %v10818_v51, %s11800_s19  ;;  %5082 = vst.msk [vmem:[#allocation4 + $0x24] sm:$0xf] %vm206_vm0, %v10818_v51  ;;  %v11185_v26 = vpop.f32.mrf.mxu1  ;;  %v5705_v10 = vld [vmem:[#allocation2 + $0x40] sm:$0xff] }
 0x467   :  { %5561 = vst.msk [vmem:[#allocation4 + $0x1c] sm:$0xf] %vm206_vm0, %v10834_v63  ;;  %v5833_v27 = vld [vmem:[#allocation2 + $0x41] sm:$0xff]  ;;  %v10819_v32 = vpack.c.bf16 %v5705_v10, %v5705_v10 }
 0x468   :  { %v5578_v31 = vld [vmem:[#allocation2 + $0x42] sm:$0xff]  ;;  %v10835_v9 = vpack.c.bf16 %v5833_v27, %v5833_v27  ;;  %v11186_v20 = vpop.f32.mrf.mxu1 }
 0x469   :  { %v10804_v57 = vpack.c.bf16 %v5578_v31, %v5578_v31  ;;  %v11187_v37 = vadd.f32 %v11186_v20, %v11185_v26  ;;  %5083 = vst.msk [vmem:[#allocation4 + $0x30] sm:$0xf] %vm206_vm0, %v10819_v32 }
 0x46a   :  { %5419 = vrot.lane.b32.xlu0 %v10818_v51, %s11801_s17  ;;  %5897 = vrot.lane.b32.xlu1 %v10834_v63, %s11801_s17  ;;  %5562 = vst.msk [vmem:[#allocation4 + $0x28] sm:$0xf] %vm206_vm0, %v10835_v9  ;;  %v11188_v39 = vpop.f32.mrf.mxu1 }
 0x46b   :  { %6041 = vst.msk [vmem:[#allocation4 + $0x20] sm:$0xf] %vm206_vm0, %v10804_v57  ;;  %v4808_v60 = vadd.f32 %v11187_v37, %v13538_v24 }
 0x46c   :  { %v11189_v42 = vpop.f32.mrf.mxu1  ;;  %v11698_v17 = vld [vmem:[#allocation4 + $0x8] ss:$12 sps:$4 sm:$0xff]  }
 0x46d   :  { %v4905_v47 = vadd.f32 %v4904_v59, %v4808_v60  ;;  %v11190_v48 = vadd.f32 %v11189_v42, %v11188_v39  ;;  %11487 = vmatprep.mubr.msk.bf16.mxu1 %vm44_vm1, %v11698_v17  ;;  %v13675_v60 = vpop.f32.mrf.mxu0  ;;  %v5103_v17 = vld [vmem:[#allocation2 + $0xa1] sm:$0xff] }
 0x46e   :  { %5771 = vrot.lane.b32.xlu0 %v10819_v32, %s11800_s19  ;;  %5165 = vrot.lane.b32.xlu1 %v10834_v63, %s11798_s21 }
 0x46f   :  { %v4955_v33 = vadd.f32 %v4905_v47, %v3359_v62  ;;  %v4811_v29 = vadd.f32 %v11190_v48, %v13538_v24  ;;  %v4920_v47 = vpop.f32.mrf.mxu0 }
 0x471   :  { %v4971_v1 = vmax.f32 %v4955_v33, 0.0  ;;  %v4908_v2 = vadd.f32 %v4907_v25, %v4811_v29  ;;  %v10745_v33 = vpack.c.bf16 %v5103_v17, %v5103_v17  ;;  %v5231_v25 = vld [vmem:[#allocation2 + $0xa2] sm:$0xff] }
 0x472   :  { %5899 = vrot.lane.b32.xlu0 %v10835_v9, %s11801_s17  ;;  %5293 = vrot.lane.b32.xlu1 %v10803_v40, %s11800_s19 }
 0x473   :  { %4987 = vst.msk [vmem:[#allocation2 + $0x51] sm:$0xff] %vm44_vm1, %v4971_v1  ;;  %v4956_v3 = vadd.f32 %v4908_v2, %v3360_v8  ;;  %v13684_v2 = vpop.f32.mrf.mxu0 }
 0x475   :  { %v4972_v4 = vmax.f32 %v4956_v3, 0.0 }
 0x476   :  { %5167 = vrot.lane.b32.xlu0 %v10835_v9, %s11798_s21  ;;  %5645 = vrot.lane.b32.xlu1 %v10804_v57, %s11798_s21  ;;  %v7593_v9 = vld [vmem:[#allocation3 + $0x92] sm:$0xff] }
 0x477   :  { %4988 = vst.msk [vmem:[#allocation2 + $0x61] sm:$0xff] %vm44_vm1, %v4972_v4  ;;  %v11000_v37 = vpack.c.bf16 %v7593_v9, %v7593_v9 }
 0x47a   :  { %5295 = vrot.lane.b32.xlu0 %v10804_v57, %s11800_s19  ;;  %5421 = vrot.lane.b32.xlu1 %v10819_v32, %s11801_s17  ;;  %v11191_v6 = vpop.f32.mrf.mxu1  ;;  %v5579_v45 = vld [vmem:[#allocation2 + $0x52] sm:$0xff]  ;;  %v5007_v32 = vld [vmem:[#allocation2 + $0xa0] sm:$0xff] }
 0x47b   :  { %v5706_v38 = vld [vmem:[#allocation2 + $0x50] sm:$0xff]  ;;  %v10805_v12 = vpack.c.bf16 %v5579_v45, %v5579_v45  ;;  %v10729_v57 = vpack.c.bf16 %v5007_v32, %v5007_v32 }
 0x47c   :  { %v5834_v11 = vld [vmem:[#allocation2 + $0x51] sm:$0xff]  ;;  %v10820_v13 = vpack.c.bf16 %v5706_v38, %v5706_v38  ;;  %v11192_v15 = vpop.f32.mrf.mxu1  ;;  %v6722_v38 = vld [vmem:[#allocation3 + $0x1] sm:$0xff] }
 0x47d   :  { %v10836_v14 = vpack.c.bf16 %v5834_v11, %v5834_v11  ;;  %v11193_v18 = vadd.f32 %v11192_v15, %v11191_v6  ;;  %6042 = vst.msk [vmem:[#allocation4 + $0x2c] sm:$0xf] %vm206_vm0, %v10805_v12  ;;  %5087 = vst.msk [vmem:[#allocation4 + $0x60] sm:$0xf] %vm206_vm0, %v10729_v57  ;;  %v10761_v6 = vpack.c.bf16 %v5231_v25, %v5231_v25  ;;  %v3363_v45 = vld [vmem:[#allocation2 + $0xb1] sm:$0xff] }
 0x47e   :  { %5647 = vrot.lane.b32.xlu0 %v10805_v12, %s11798_s21  ;;  %5773 = vrot.lane.b32.xlu1 %v10820_v13, %s11800_s19  ;;  %5084 = vst.msk [vmem:[#allocation4 + $0x3c] sm:$0xf] %vm206_vm0, %v10820_v13  ;;  %v11194_v53 = vpop.f32.mrf.mxu1  ;;  %v5707_v7 = vld [vmem:[#allocation2 + $0x60] sm:$0xff]  ;;  %v5838_v11 = vld [vmem:[#allocation2 + $0x91] sm:$0xff] }
 0x47f   :  { %5563 = vst.msk [vmem:[#allocation4 + $0x34] sm:$0xf] %vm206_vm0, %v10836_v14  ;;  %v5835_v54 = vld [vmem:[#allocation2 + $0x61] sm:$0xff]  ;;  %v4816_v19 = vadd.f32 %v11193_v18, %v13538_v24  ;;  %v10821_v36 = vpack.c.bf16 %v5707_v7, %v5707_v7  ;;  %v10840_v7 = vpack.c.bf16 %v5838_v11, %v5838_v11 }
 0x480   :  { %v5580_v43 = vld [vmem:[#allocation2 + $0x62] sm:$0xff]  ;;  %v10837_v21 = vpack.c.bf16 %v5835_v54, %v5835_v54  ;;  %v11195_v22 = vpop.f32.mrf.mxu1 }
 0x481   :  { %v10806_v55 = vpack.c.bf16 %v5580_v43, %v5580_v43  ;;  %v4913_v23 = vadd.f32 %v13615_v52, %v4816_v19  ;;  %v11196_v28 = vadd.f32 %v11195_v22, %v11194_v53  ;;  %5085 = vst.msk [vmem:[#allocation4 + $0x48] sm:$0xf] %vm206_vm0, %v10821_v36  ;;  %v10881_v53 = vpack.c.bf16 %v6722_v38, %v6722_v38  ;;  %v3364_v54 = vld [vmem:[#allocation2 + $0xc1] sm:$0xff]  ;;  %v5718_v19 = vld [vmem:[#allocation2 + $0x130] sm:$0xff] }
 0x482   :  { %5423 = vrot.lane.b32.xlu0 %v10820_v13, %s11801_s17  ;;  %5901 = vrot.lane.b32.xlu1 %v10836_v14, %s11801_s17  ;;  %5564 = vst.msk [vmem:[#allocation4 + $0x40] sm:$0xf] %vm206_vm0, %v10837_v21  ;;  %v6850_v43 = vld [vmem:[#allocation3 + $0x2] sm:$0xff]  ;;  %v10832_v22 = vpack.c.bf16 %v5718_v19, %v5718_v19 }
 0x483   :  { %6043 = vst.msk [vmem:[#allocation4 + $0x38] sm:$0xf] %vm206_vm0, %v10806_v55  ;;  %v4957_v50 = vadd.f32 %v4913_v23, %v3361_v56  ;;  %v4819_v35 = vadd.f32 %v11196_v28, %v13538_v24  ;;  %v5846_v23 = vld [vmem:[#allocation2 + $0x131] sm:$0xff] }
 0x484   :  { %v11701_v30 = vld [vmem:[#allocation4 + $0x20] ss:$12 sps:$4 sm:$0xff]   ;;  %v10848_v28 = vpack.c.bf16 %v5846_v23, %v5846_v23  ;;  %v7337_v56 = vld [vmem:[#allocation3 + $0x90] sm:$0xff] }
 0x485   :  { %v4973_v34 = vmax.f32 %v4957_v50, 0.0  ;;  %v4916_v41 = vadd.f32 %v11474_v61, %v4819_v35  ;;  %11488 = vmatmul.mubr.msk.bf16.vlgmr.msra.gmra.mxu1 %vm44_vm1, %v11701_v30 }
 0x486   :  { %5775 = vrot.lane.b32.xlu0 %v10821_v36, %s11800_s19  ;;  %5169 = vrot.lane.b32.xlu1 %v10836_v14, %s11798_s21  ;;  %v4923_v14 = vpop.f32.mrf.mxu0 }
 0x487   :  { %4989 = vst.msk [vmem:[#allocation2 + $0x71] sm:$0xff] %vm44_vm1, %v4973_v34  ;;  %v4958_v16 = vadd.f32 %v4916_v41, %v3362_v44 }
 0x488   :  { %v13726_v11 = vpop.f32.mrf.mxu0 }
 0x489   :  { %v4974_v49 = vmax.f32 %v4958_v16, 0.0  ;;  %v10968_v16 = vpack.c.bf16 %v7337_v56, %v7337_v56 }
 0x48a   :  { %5903 = vrot.lane.b32.xlu0 %v10837_v21, %s11801_s17  ;;  %5297 = vrot.lane.b32.xlu1 %v10805_v12, %s11800_s19 }
 0x48b   :  { %4990 = vst.msk [vmem:[#allocation2 + $0x81] sm:$0xff] %vm44_vm1, %v4974_v49 }
 0x48e   :  { %5171 = vrot.lane.b32.xlu0 %v10837_v21, %s11798_s21  ;;  %5649 = vrot.lane.b32.xlu1 %v10806_v55, %s11798_s21  ;;  %v5581_v5 = vld [vmem:[#allocation2 + $0x72] sm:$0xff] }
 0x48f   :  { %v5708_v40 = vld [vmem:[#allocation2 + $0x70] sm:$0xff]  ;;  %v10807_v63 = vpack.c.bf16 %v5581_v5, %v5581_v5 }
 0x490   :  { %v5836_v51 = vld [vmem:[#allocation2 + $0x71] sm:$0xff]  ;;  %v10822_v0 = vpack.c.bf16 %v5708_v40, %v5708_v40 }
 0x491   :  { %v10838_v52 = vpack.c.bf16 %v5836_v51, %v5836_v51  ;;  %6044 = vst.msk [vmem:[#allocation4 + $0x44] sm:$0xf] %vm206_vm0, %v10807_v63 }
 0x492   :  { %5299 = vrot.lane.b32.xlu0 %v10806_v55, %s11800_s19  ;;  %5425 = vrot.lane.b32.xlu1 %v10821_v36, %s11801_s17  ;;  %5086 = vst.msk [vmem:[#allocation4 + $0x54] sm:$0xf] %vm206_vm0, %v10822_v0  ;;  %v5965_v26 = vld [vmem:[#allocation2 + $0x82] sm:$0xff]  ;;  %v10897_v55 = vpack.c.bf16 %v6850_v43, %v6850_v43  ;;  %v4936_v43 = vpop.f32.mrf.mxu0 }
 0x493   :  { %5565 = vst.msk [vmem:[#allocation4 + $0x4c] sm:$0xf] %vm206_vm0, %v10838_v52  ;;  %v5837_v10 = vld [vmem:[#allocation2 + $0x81] sm:$0xff]  ;;  %v10855_v27 = vpack.c.bf16 %v5965_v26, %v5965_v26 }
 0x494   :  { %v10839_v31 = vpack.c.bf16 %v5837_v10, %v5837_v10  ;;  %v5709_v20 = vld [vmem:[#allocation2 + $0x80] sm:$0xff]  ;;  %v13742_v23 = vpop.f32.mrf.mxu0 }
 0x495   :  { %6045 = vst.msk [vmem:[#allocation4 + $0x50] sm:$0xf] %vm206_vm0, %v10855_v27  ;;  %v10823_v39 = vpack.c.bf16 %v5709_v20, %v5709_v20 }
 0x496   :  { %5651 = vrot.lane.b32.xlu0 %v10807_v63, %s11798_s21  ;;  %5777 = vrot.lane.b32.xlu1 %v10822_v0, %s11800_s19  ;;  %5566 = vst.msk [vmem:[#allocation4 + $0x58] sm:$0xf] %vm206_vm0, %v10839_v31 }
 0x498   :  { %v11702_v59 = vld [vmem:[#allocation4 + $0x38] ss:$12 sps:$4 sm:$0xff]  }
 0x499   :  { %11491 = vmatprep.mubr.msk.bf16.mxu1 %vm44_vm1, %v11702_v59  ;;  %v3365_v59 = vld [vmem:[#allocation2 + $0xd1] sm:$0xff] }
 0x49a   :  { %5427 = vrot.lane.b32.xlu0 %v10822_v0, %s11801_s17  ;;  %5905 = vrot.lane.b32.xlu1 %v10838_v52, %s11801_s17 }
 0x49c   :  { %v11703_v61 = vld [vmem:[#allocation4 + $0x50] ss:$12 sps:$4 sm:$0xff]  }
 0x49d   :  { %7673 = vst.msk [vmem:[#allocation4 + $0x5c] sm:$0xf] %vm206_vm0, %v11000_v37  ;;  %11492 = vmatmul.mubr.msk.bf16.gmra.mxu1 %vm44_vm1, %v11703_v61 }
 0x49e   :  { %5779 = vrot.lane.b32.xlu0 %v10823_v39, %s11800_s19  ;;  %5173 = vrot.lane.b32.xlu1 %v10838_v52, %s11798_s21  ;;  %v11197_v42 = vpop.f32.mrf.mxu1 }
 0x4a0   :  { %v11198_v48 = vpop.f32.mrf.mxu1 }
 0x4a1   :  { %v11199_v62 = vadd.f32 %v11198_v48, %v11197_v42 }
 0x4a2   :  { %5907 = vrot.lane.b32.xlu0 %v10839_v31, %s11801_s17  ;;  %5301 = vrot.lane.b32.xlu1 %v10807_v63, %s11800_s19  ;;  %v11200_v29 = vpop.f32.mrf.mxu1 }
 0x4a3   :  { %v4824_v1 = vadd.f32 %v11199_v62, %v13538_v24 }
 0x4a4   :  { %v11201_v8 = vpop.f32.mrf.mxu1 }
 0x4a5   :  { %v4921_v3 = vadd.f32 %v4920_v47, %v4824_v1  ;;  %v11202_v4 = vadd.f32 %v11201_v8, %v11200_v29 }
 0x4a6   :  { %5175 = vrot.lane.b32.xlu0 %v10745_v33, %s11798_s21  ;;  %5653 = vrot.lane.b32.xlu1 %v10855_v27, %s11798_s21 }
 0x4a7   :  { %v4959_v12 = vadd.f32 %v4921_v3, %v3363_v45  ;;  %v4827_v13 = vadd.f32 %v11202_v4, %v13538_v24 }
 0x4a9   :  { %v4975_v15 = vmax.f32 %v4959_v12, 0.0  ;;  %v4924_v18 = vadd.f32 %v4923_v14, %v4827_v13 }
 0x4aa   :  { %5303 = vrot.lane.b32.xlu0 %v10761_v6, %s11800_s19  ;;  %5429 = vrot.lane.b32.xlu1 %v10823_v39, %s11801_s17 }
 0x4ab   :  { %4991 = vst.msk [vmem:[#allocation2 + $0xb1] sm:$0xff] %vm44_vm1, %v4975_v15  ;;  %v4960_v36 = vadd.f32 %v4924_v18, %v3364_v54 }
 0x4ad   :  { %v4976_v21 = vmax.f32 %v4960_v36, 0.0 }
 0x4ae   :  { %6786 = vrot.lane.b32.xlu0 %v10881_v53, %s11798_s21  ;;  %5909 = vrot.lane.b32.xlu1 %v10840_v7, %s11801_s17 }
 0x4af   :  { %4992 = vst.msk [vmem:[#allocation2 + $0xc1] sm:$0xff] %vm44_vm1, %v4976_v21 }
 0x4b2   :  { %6914 = vrot.lane.b32.xlu0 %v10897_v55, %s11800_s19  ;;  %5797 = vrot.lane.b32.xlu1 %v10832_v22, %s11800_s19  ;;  %v5583_v50 = vld [vmem:[#allocation2 + $0xb2] sm:$0xff] }
 0x4b3   :  { %v5359_v35 = vld [vmem:[#allocation2 + $0xb0] sm:$0xff]  ;;  %v10809_v34 = vpack.c.bf16 %v5583_v50, %v5583_v50 }
 0x4b4   :  { %v5104_v30 = vld [vmem:[#allocation2 + $0xb1] sm:$0xff]  ;;  %v10777_v41 = vpack.c.bf16 %v5359_v35, %v5359_v35 }
 0x4b5   :  { %v10746_v44 = vpack.c.bf16 %v5104_v30, %v5104_v30  ;;  %v3367_v30 = vld [vmem:[#allocation2 + $0xf1] sm:$0xff] }
 0x4b6   :  { %5655 = vrot.lane.b32.xlu0 %v10809_v34, %s11798_s21  ;;  %5925 = vrot.lane.b32.xlu1 %v10848_v28, %s11801_s17  ;;  %5088 = vst.msk [vmem:[#allocation4 + $0x6c] sm:$0xf] %vm206_vm0, %v10777_v41  ;;  %v11203_v49 = vpop.f32.mrf.mxu1  ;;  %v5711_v5 = vld [vmem:[#allocation2 + $0xc0] sm:$0xff] }
 0x4b7   :  { %5567 = vst.msk [vmem:[#allocation4 + $0x64] sm:$0xf] %vm206_vm0, %v10746_v44  ;;  %v5839_v40 = vld [vmem:[#allocation2 + $0xc1] sm:$0xff]  ;;  %v10825_v63 = vpack.c.bf16 %v5711_v5, %v5711_v5 }
 0x4b8   :  { %v5584_v51 = vld [vmem:[#allocation2 + $0xc2] sm:$0xff]  ;;  %v10841_v0 = vpack.c.bf16 %v5839_v40, %v5839_v40  ;;  %v11204_v26 = vpop.f32.mrf.mxu1 }
 0x4b9   :  { %v10810_v52 = vpack.c.bf16 %v5584_v51, %v5584_v51  ;;  %v11205_v10 = vadd.f32 %v11204_v26, %v11203_v49  ;;  %5089 = vst.msk [vmem:[#allocation4 + $0x78] sm:$0xf] %vm206_vm0, %v10825_v63  ;;  %v4939_v49 = vpop.f32.mrf.mxu0  ;;  %v3368_v51 = vld [vmem:[#allocation2 + $0x101] sm:$0xff] }
 0x4ba   :  { %5431 = vrot.lane.b32.xlu0 %v10777_v41, %s11801_s17  ;;  %7408 = vrot.lane.b32.xlu1 %v10968_v16, %s11800_s19  ;;  %5568 = vst.msk [vmem:[#allocation4 + $0x70] sm:$0xf] %vm206_vm0, %v10841_v0  ;;  %v11206_v27 = vpop.f32.mrf.mxu1 }
 0x4bb   :  { %6047 = vst.msk [vmem:[#allocation4 + $0x68] sm:$0xf] %vm206_vm0, %v10810_v52  ;;  %v4832_v31 = vadd.f32 %v11205_v10, %v13538_v24  ;;  %v6626_v10 = vld [vmem:[#allocation3] sm:$0xff] }
 0x4bc   :  { %v11207_v32 = vpop.f32.mrf.mxu1 }
 0x4bd   :  { %v4929_v9 = vadd.f32 %v13675_v60, %v4832_v31  ;;  %v11208_v57 = vadd.f32 %v11207_v32, %v11206_v27  ;;  %v3366_v60 = vld [vmem:[#allocation2 + $0xe1] sm:$0xff] }
 0x4be   :  { %5783 = vrot.lane.b32.xlu0 %v10825_v63, %s11800_s19  ;;  %5177 = vrot.lane.b32.xlu1 %v10746_v44, %s11798_s21 }
 0x4bf   :  { %v4961_v20 = vadd.f32 %v4929_v9, %v3365_v59  ;;  %v4835_v37 = vadd.f32 %v11208_v57, %v13538_v24  ;;  %v10865_v57 = vpack.c.bf16 %v6626_v10, %v6626_v10 }
 0x4c0   :  { %v5640_v39 = vpop.permute.xlu0 %5639 }
 0x4c1   :  { %v5162_v61 = vpop.permute.xlu1 %5161  ;;  %5687 = vst.msk [vmem:[#allocation4 + $0x4] sm:$0xf] %vm335_vm3, %v5640_v39  ;;  %v4977_v42 = vmax.f32 %v4961_v20, 0.0  ;;  %v4932_v17 = vadd.f32 %v13684_v2, %v4835_v37 }
 0x4c2   :  { %5208 = vst.msk [vmem:[#allocation4 + $0xc] sm:$0xf] %vm335_vm3, %v5162_v61  ;;  %5911 = vrot.lane.b32.xlu0 %v10841_v0, %s11801_s17  ;;  %5305 = vrot.lane.b32.xlu1 %v10809_v34, %s11800_s19 }
 0x4c3   :  { %4993 = vst.msk [vmem:[#allocation2 + $0xd1] sm:$0xff] %vm44_vm1, %v4977_v42  ;;  %v4962_v47 = vadd.f32 %v4932_v17, %v3366_v60 }
 0x4c4   :  { %v5416_v48 = vpop.permute.xlu0 %5415 }
 0x4c5   :  { %v5290_v62 = vpop.permute.xlu1 %5289  ;;  %5463 = vst.msk [vmem:[#allocation4] sm:$0xf] %vm594_vm5, %v5416_v48  ;;  %v4978_v33 = vmax.f32 %v4962_v47, 0.0 }
 0x4c6   :  { %5336 = vst.msk [vmem:[#allocation4 + $0xc] sm:$0xf] %vm464_vm4, %v5290_v62  ;;  %5179 = vrot.lane.b32.xlu0 %v10841_v0, %s11798_s21  ;;  %5657 = vrot.lane.b32.xlu1 %v10810_v52, %s11798_s21 }
 0x4c7   :  { %4994 = vst.msk [vmem:[#allocation2 + $0xe1] sm:$0xff] %vm44_vm1, %v4978_v33 }
 0x4c8   :  { %v5768_v29 = vpop.permute.xlu0 %5767 }
 0x4c9   :  { %v5642_v25 = vpop.permute.xlu1 %5641  ;;  %5815 = vst.msk [vmem:[#allocation4 + $0x4] sm:$0xf] %vm464_vm4, %v5768_v29 }
 0x4ca   :  { %5688 = vst.msk [vmem:[#allocation4 + $0x10] sm:$0xf] %vm335_vm3, %v5642_v25  ;;  %5307 = vrot.lane.b32.xlu0 %v10810_v52, %s11800_s19  ;;  %5433 = vrot.lane.b32.xlu1 %v10825_v63, %s11801_s17  ;;  %v5585_v1 = vld [vmem:[#allocation2 + $0xd2] sm:$0xff] }
 0x4cb   :  { %v5712_v2 = vld [vmem:[#allocation2 + $0xd0] sm:$0xff]  ;;  %v10811_v6 = vpack.c.bf16 %v5585_v1, %v5585_v1 }
 0x4cc   :  { %v5840_v8 = vld [vmem:[#allocation2 + $0xd1] sm:$0xff]  ;;  %v5896_v3 = vpop.permute.xlu0 %5895  ;;  %v10826_v45 = vpack.c.bf16 %v5712_v2, %v5712_v2 }
 0x4cd   :  { %v5418_v4 = vpop.permute.xlu1 %5417  ;;  %v10842_v38 = vpack.c.bf16 %v5840_v8, %v5840_v8  ;;  %5943 = vst.msk [vmem:[#allocation4 + $0x4] sm:$0xf] %vm594_vm5, %v5896_v3  ;;  %v3369_v8 = vld [vmem:[#allocation2 + $0x111] sm:$0xff] }
 0x4ce   :  { %5464 = vst.msk [vmem:[#allocation4 + $0xc] sm:$0xf] %vm594_vm5, %v5418_v4  ;;  %5659 = vrot.lane.b32.xlu0 %v10811_v6, %s11798_s21  ;;  %5785 = vrot.lane.b32.xlu1 %v10826_v45, %s11800_s19  ;;  %v11209_v12 = vpop.f32.mrf.mxu1  ;;  %v5713_v13 = vld [vmem:[#allocation2 + $0xe0] sm:$0xff] }
 0x4cf   :  { %6048 = vst.msk [vmem:[#allocation4 + $0x74] sm:$0xf] %vm206_vm0, %v10811_v6  ;;  %5569 = vst.msk [vmem:[#allocation4 + $0x7c] sm:$0xf] %vm206_vm0, %v10842_v38  ;;  %v5841_v14 = vld [vmem:[#allocation2 + $0xe1] sm:$0xff]  ;;  %v10827_v53 = vpack.c.bf16 %v5713_v13, %v5713_v13 }
 0x4d0   :  { %5090 = vst.msk [vmem:[#allocation4 + $0x84] sm:$0xf] %vm206_vm0, %v10826_v45  ;;  %v5586_v15 = vld [vmem:[#allocation2 + $0xe2] sm:$0xff]  ;;  %v5164_v18 = vpop.permute.xlu0 %5163  ;;  %v10843_v7 = vpack.c.bf16 %v5841_v14, %v5841_v14  ;;  %v11210_v19 = vpop.f32.mrf.mxu1 }
 0x4d1   :  { %v10812_v54 = vpack.c.bf16 %v5586_v15, %v5586_v15  ;;  %5209 = vst.msk [vmem:[#allocation4 + $0x18] sm:$0xf] %vm335_vm3, %v5164_v18  ;;  %v11211_v36 = vadd.f32 %v11210_v19, %v11209_v12 }
 0x4d2   :  { %5435 = vrot.lane.b32.xlu0 %v10826_v45, %s11801_s17  ;;  %5913 = vrot.lane.b32.xlu1 %v10842_v38, %s11801_s17  ;;  %5091 = vst.msk [vmem:[#allocation4 + $0x90] sm:$0xf] %vm206_vm0, %v10827_v53  ;;  %5570 = vst.msk [vmem:[#allocation4 + $0x88] sm:$0xf] %vm206_vm0, %v10843_v7  ;;  %v11212_v21 = vpop.f32.mrf.mxu1 }
 0x4d3   :  { %6049 = vst.msk [vmem:[#allocation4 + $0x80] sm:$0xf] %vm206_vm0, %v10812_v54  ;;  %v4840_v55 = vadd.f32 %v11211_v36, %v13538_v24 }
 0x4d4   :  { %v5292_v22 = vpop.permute.xlu0 %5291  ;;  %v11213_v28 = vpop.f32.mrf.mxu1  ;;  %v6055_v62 = vld [vmem:[#allocation4] sm:$0xff] }
 0x4d5   :  { %5337 = vst.msk [vmem:[#allocation4 + $0x18] sm:$0xf] %vm464_vm4, %v5292_v22  ;;  %v4937_v50 = vadd.f32 %v4936_v43, %v4840_v55  ;;  %v11214_v35 = vadd.f32 %v11213_v28, %v11212_v21 }
 0x4d6   :  { %v11713_v56 = vld [vmem:[#allocation4 + $0x68] ss:$12 sps:$4 sm:$0xff]   ;;  %5787 = vrot.lane.b32.xlu0 %v10827_v53, %s11800_s19  ;;  %5181 = vrot.lane.b32.xlu1 %v10842_v38, %s11798_s21  ;;  %6706 = vst.msk [vmem:[#allocation4] sm:$0xf] %vm206_vm0, %v10865_v57 }
 0x4d7   :  { %11495 = vmatprep.mubr.msk.bf16.mxu1 %vm44_vm1, %v11713_v56  ;;  %v4963_v34 = vadd.f32 %v4937_v50, %v3367_v30  ;;  %v4843_v41 = vadd.f32 %v11214_v35, %v13538_v24 }
 0x4d8   :  { %v5644_v44 = vpop.permute.xlu0 %5643  ;;  %v5770_v16 = vpop.permute.xlu1 %5769 }
 0x4d9   :  { %5689 = vst.msk [vmem:[#allocation4 + $0x1c] sm:$0xf] %vm335_vm3, %v5644_v44  ;;  %v4979_v5 = vmax.f32 %v4963_v34, 0.0  ;;  %v4940_v40 = vadd.f32 %v4939_v49, %v4843_v41 }
 0x4da   :  { %5816 = vst.msk [vmem:[#allocation4 + $0x10] sm:$0xf] %vm464_vm4, %v5770_v16  ;;  %5915 = vrot.lane.b32.xlu0 %v10843_v7, %s11801_s17  ;;  %5309 = vrot.lane.b32.xlu1 %v10811_v6, %s11800_s19 }
 0x4db   :  { %4995 = vst.msk [vmem:[#allocation2 + $0xf1] sm:$0xff] %vm44_vm1, %v4979_v5  ;;  %v4964_v63 = vadd.f32 %v4940_v40, %v3368_v51 }
 0x4dc   :  { %v5420_v0 = vpop.permute.xlu0 %5419  ;;  %v5898_v52 = vpop.permute.xlu1 %5897 }
 0x4dd   :  { %5465 = vst.msk [vmem:[#allocation4 + $0x18] sm:$0xf] %vm594_vm5, %v5420_v0  ;;  %5944 = vst.msk [vmem:[#allocation4 + $0x10] sm:$0xf] %vm594_vm5, %v5898_v52  ;;  %v4980_v26 = vmax.f32 %v4964_v63, 0.0  ;;  %v7601_v0 = vld [vmem:[#allocation3 + $0x132] sm:$0xff] }
 0x4de   :  { %5183 = vrot.lane.b32.xlu0 %v10843_v7, %s11798_s21  ;;  %5661 = vrot.lane.b32.xlu1 %v10812_v54, %s11798_s21  ;;  %v11215_v27 = vpop.f32.mrf.mxu1  ;;  %v11008_v57 = vpack.c.bf16 %v7601_v0, %v7601_v0 }
 0x4df   :  { %4996 = vst.msk [vmem:[#allocation2 + $0x101] sm:$0xff] %vm44_vm1, %v4980_v26 }
 0x4e0   :  { %v5772_v31 = vpop.permute.xlu0 %5771  ;;  %v5166_v32 = vpop.permute.xlu1 %5165 }
 0x4e1   :  { %5817 = vst.msk [vmem:[#allocation4 + $0x1c] sm:$0xf] %vm464_vm4, %v5772_v31  ;;  %v11216_v9 = vpop.f32.mrf.mxu1 }
 0x4e2   :  { %5210 = vst.msk [vmem:[#allocation4 + $0x24] sm:$0xf] %vm335_vm3, %v5166_v32  ;;  %v11217_v59 = vadd.f32 %v11216_v9, %v11215_v27  ;;  %5311 = vrot.lane.b32.xlu0 %v10812_v54, %s11800_s19  ;;  %5437 = vrot.lane.b32.xlu1 %v10827_v53, %s11801_s17  ;;  %v5587_v37 = vld [vmem:[#allocation2 + $0xf2] sm:$0xff] }
 0x4e3   :  { %v11218_v20 = vpop.f32.mrf.mxu1  ;;  %v5714_v39 = vld [vmem:[#allocation2 + $0xf0] sm:$0xff]  ;;  %v10813_v47 = vpack.c.bf16 %v5587_v37, %v5587_v37 }
 0x4e4   :  { %v5842_v61 = vld [vmem:[#allocation2 + $0xf1] sm:$0xff]  ;;  %v4848_v42 = vadd.f32 %v11217_v59, %v13538_v24  ;;  %v5900_v17 = vpop.permute.xlu0 %5899  ;;  %v5294_v60 = vpop.permute.xlu1 %5293  ;;  %v10828_v48 = vpack.c.bf16 %v5714_v39, %v5714_v39 }
 0x4e5   :  { %v6057_v33 = vld [vmem:[#allocation4 + $0xc] sm:$0xff]  ;;  %v10844_v25 = vpack.c.bf16 %v5842_v61, %v5842_v61  ;;  %5945 = vst.msk [vmem:[#allocation4 + $0x1c] sm:$0xf] %vm594_vm5, %v5900_v17  ;;  %v11219_v1 = vpop.f32.mrf.mxu1 }
 0x4e6   :  { %v11721_v29 = vld [vmem:[#allocation4 + $0x4] ss:$12 sps:$4 sm:$0xff]   ;;  %5338 = vst.msk [vmem:[#allocation4 + $0x24] sm:$0xf] %vm464_vm4, %v5294_v60  ;;  %v9978_v2 = vcombine.low %v6055_v62, %v6057_v33  ;;  %v4945_v3 = vadd.f32 %v13726_v11, %v4848_v42  ;;  %v11220_v4 = vadd.f32 %v11219_v1, %v11218_v20  ;;  %5663 = vrot.lane.b32.xlu0 %v10813_v47, %s11798_s21 }
 0x4e7   :  { %5789 = vrot.lane.b32.xlu1 %v10828_v48, %s11800_s19  ;;  %6050 = vst.msk [vmem:[#allocation4 + $0x8c] sm:$0xf] %vm206_vm0, %v10813_v47  ;;  %5571 = vst.msk [vmem:[#allocation4 + $0x94] sm:$0xf] %vm206_vm0, %v10844_v25  ;;  %6416 = vmatprep.mubr.bf16.mxu0 %v11721_v29  ;;  %v5715_v6 = vld [vmem:[#allocation2 + $0x100] sm:$0xff] }
 0x4e8   :  { %5092 = vst.msk [vmem:[#allocation4 + $0x9c] sm:$0xf] %vm206_vm0, %v10828_v48  ;;  %v5843_v45 = vld [vmem:[#allocation2 + $0x101] sm:$0xff]  ;;  %v4965_v12 = vadd.f32 %v4945_v3, %v3369_v8  ;;  %v4851_v13 = vadd.f32 %v11220_v4, %v13538_v24  ;;  %v5168_v14 = vpop.permute.xlu0 %5167  ;;  %v5646_v11 = vpop.permute.xlu1 %5645  ;;  %6417 = vmatmul.mubr.bf16.vlgmr.msra.gmra.mxu0 %v9978_v2  ;;  %v10829_v15 = vpack.c.bf16 %v5715_v6, %v5715_v6 }
 0x4e9   :  { %v5588_v38 = vld [vmem:[#allocation2 + $0x102] sm:$0xff]  ;;  %v10845_v18 = vpack.c.bf16 %v5843_v45, %v5843_v45  ;;  %5211 = vst.msk [vmem:[#allocation4 + $0x30] sm:$0xf] %vm335_vm3, %v5168_v14  ;;  %5690 = vst.msk [vmem:[#allocation4 + $0x28] sm:$0xf] %vm335_vm3, %v5646_v11 }
 0x4ea   :  { %v10814_v53 = vpack.c.bf16 %v5588_v38, %v5588_v38  ;;  %v4981_v7 = vmax.f32 %v4965_v12, 0.0  ;;  %v4948_v54 = vadd.f32 %v13742_v23, %v4851_v13  ;;  %5439 = vrot.lane.b32.xlu0 %v10828_v48, %s11801_s17  ;;  %5093 = vst.msk [vmem:[#allocation4 + $0xa8] sm:$0xf] %vm206_vm0, %v10829_v15  ;;  %v3370_v24 = vld [vmem:[#allocation2 + $0x121] sm:$0xff] }
 0x4eb   :  { %5917 = vrot.lane.b32.xlu1 %v10844_v25, %s11801_s17  ;;  %5572 = vst.msk [vmem:[#allocation4 + $0xa0] sm:$0xf] %vm206_vm0, %v10845_v18 }
 0x4ec   :  { %6051 = vst.msk [vmem:[#allocation4 + $0x98] sm:$0xf] %vm206_vm0, %v10814_v53  ;;  %v4966_v43 = vadd.f32 %v4948_v54, %v3370_v24  ;;  %v5296_v19 = vpop.permute.xlu0 %5295  ;;  %v5422_v36 = vpop.permute.xlu1 %5421  ;;  %v6059_v10 = vld [vmem:[#allocation4 + $0x18] sm:$0xff] }
 0x4ed   :  { %4997 = vst.msk [vmem:[#allocation2 + $0x111] sm:$0xff] %vm44_vm1, %v4981_v7 }
 0x4ee   :  { %5339 = vst.msk [vmem:[#allocation4 + $0x30] sm:$0xf] %vm464_vm4, %v5296_v19  ;;  %v11723_v21 = vld [vmem:[#allocation4 + $0x80] ss:$12 sps:$4 sm:$0xff]   ;;  %v4982_v55 = vmax.f32 %v4966_v43, 0.0  ;;  %5791 = vrot.lane.b32.xlu0 %v10829_v15, %s11800_s19 }
 0x4ef   :  { %5466 = vst.msk [vmem:[#allocation4 + $0x24] sm:$0xf] %vm594_vm5, %v5422_v36  ;;  %5185 = vrot.lane.b32.xlu1 %v10844_v25, %s11798_s21  ;;  %11496 = vmatmul.mubr.msk.bf16.gmra.mxu1 %vm44_vm1, %v11723_v21 }
 0x4f0   :  { %4998 = vst.msk [vmem:[#allocation2 + $0x121] sm:$0xff] %vm44_vm1, %v4982_v55  ;;  %v5648_v22 = vpop.permute.xlu0 %5647  ;;  %v5774_v23 = vpop.permute.xlu1 %5773 }
 0x4f1   :  { %5691 = vst.msk [vmem:[#allocation4 + $0x34] sm:$0xf] %vm335_vm3, %v5648_v22 }
 0x4f2   :  { %5818 = vst.msk [vmem:[#allocation4 + $0x28] sm:$0xf] %vm464_vm4, %v5774_v23  ;;  %5919 = vrot.lane.b32.xlu0 %v10845_v18, %s11801_s17 }
 0x4f3   :  { %5313 = vrot.lane.b32.xlu1 %v10813_v47, %s11800_s19 }
 0x4f4   :  { %v5589_v28 = vld [vmem:[#allocation2 + $0x112] sm:$0xff]  ;;  %v5424_v35 = vpop.permute.xlu0 %5423  ;;  %v5902_v30 = vpop.permute.xlu1 %5901 }
 0x4f5   :  { %v5716_v56 = vld [vmem:[#allocation2 + $0x110] sm:$0xff]  ;;  %v10815_v34 = vpack.c.bf16 %v5589_v28, %v5589_v28  ;;  %5467 = vst.msk [vmem:[#allocation4 + $0x30] sm:$0xf] %vm594_vm5, %v5424_v35  ;;  %5946 = vst.msk [vmem:[#allocation4 + $0x28] sm:$0xf] %vm594_vm5, %v5902_v30 }
 0x4f6   :  { %v5844_v50 = vld [vmem:[#allocation2 + $0x111] sm:$0xff]  ;;  %v10830_v41 = vpack.c.bf16 %v5716_v56, %v5716_v56  ;;  %5187 = vrot.lane.b32.xlu0 %v10845_v18, %s11798_s21 }
 0x4f7   :  { %v10846_v44 = vpack.c.bf16 %v5844_v50, %v5844_v50  ;;  %5665 = vrot.lane.b32.xlu1 %v10814_v53, %s11798_s21  ;;  %6052 = vst.msk [vmem:[#allocation4 + $0xa4] sm:$0xf] %vm206_vm0, %v10815_v34  ;;  %v5973_v16 = vld [vmem:[#allocation2 + $0x122] sm:$0xff] }
 0x4f8   :  { %5094 = vst.msk [vmem:[#allocation4 + $0xb4] sm:$0xf] %vm206_vm0, %v10830_v41  ;;  %v5845_v49 = vld [vmem:[#allocation2 + $0x121] sm:$0xff]  ;;  %v5776_v5 = vpop.permute.xlu0 %5775  ;;  %v5170_v40 = vpop.permute.xlu1 %5169  ;;  %v10863_v51 = vpack.c.bf16 %v5973_v16, %v5973_v16 }
 0x4f9   :  { %5573 = vst.msk [vmem:[#allocation4 + $0xac] sm:$0xf] %vm206_vm0, %v10846_v44  ;;  %v10847_v63 = vpack.c.bf16 %v5845_v49, %v5845_v49  ;;  %v5717_v39 = vld [vmem:[#allocation2 + $0x120] sm:$0xff] }
 0x4fa   :  { %5819 = vst.msk [vmem:[#allocation4 + $0x34] sm:$0xf] %vm464_vm4, %v5776_v5  ;;  %5315 = vrot.lane.b32.xlu0 %v10814_v53, %s11800_s19  ;;  %v10831_v17 = vpack.c.bf16 %v5717_v39, %v5717_v39 }
 0x4fb   :  { %5212 = vst.msk [vmem:[#allocation4 + $0x3c] sm:$0xf] %vm335_vm3, %v5170_v40  ;;  %5441 = vrot.lane.b32.xlu1 %v10829_v15, %s11801_s17 }
 0x4fc   :  { %6053 = vst.msk [vmem:[#allocation4 + $0xb0] sm:$0xf] %vm206_vm0, %v10863_v51  ;;  %5574 = vst.msk [vmem:[#allocation4 + $0xb8] sm:$0xf] %vm206_vm0, %v10847_v63  ;;  %v5904_v52 = vpop.permute.xlu0 %5903  ;;  %v5298_v26 = vpop.permute.xlu1 %5297  ;;  %v6061_v27 = vld [vmem:[#allocation4 + $0x24] sm:$0xff] }
 0x4fd   :  { %v11724_v31 = vld [vmem:[#allocation4 + $0x1c] ss:$12 sps:$4 sm:$0xff]   ;;  %5947 = vst.msk [vmem:[#allocation4 + $0x34] sm:$0xf] %vm594_vm5, %v5904_v52  ;;  %v9981_v9 = vcombine.low %v6059_v10, %v6061_v27 }
 0x4fe   :  { %5340 = vst.msk [vmem:[#allocation4 + $0x3c] sm:$0xf] %vm464_vm4, %v5298_v26  ;;  %v11726_v32 = vld [vmem:[#allocation4 + $0x98] ss:$12 sps:$4 sm:$0xff]   ;;  %5667 = vrot.lane.b32.xlu0 %v10815_v34, %s11798_s21  ;;  %6424 = vmatprep.mubr.bf16.mxu0 %v11724_v31 }
 0x4ff   :  { %5793 = vrot.lane.b32.xlu1 %v10830_v41, %s11800_s19  ;;  %11499 = vmatprep.mubr.msk.bf16.mxu1 %vm44_vm1, %v11726_v32 }
 0x500   :  { %v5172_v59 = vpop.permute.xlu0 %5171  ;;  %v5650_v20 = vpop.permute.xlu1 %5649  ;;  %6425 = vmatmul.mubr.bf16.gmra.mxu0 %v9981_v9 }
 0x501   :  { %5213 = vst.msk [vmem:[#allocation4 + $0x48] sm:$0xf] %vm335_vm3, %v5172_v59  ;;  %5692 = vst.msk [vmem:[#allocation4 + $0x40] sm:$0xf] %vm335_vm3, %v5650_v20 }
 0x502   :  { %5443 = vrot.lane.b32.xlu0 %v10830_v41, %s11801_s17 }
 0x503   :  { %v11727_v37 = vld [vmem:[#allocation4 + $0xb0] ss:$12 sps:$4 sm:$0xff]   ;;  %5921 = vrot.lane.b32.xlu1 %v10846_v44, %s11801_s17 }
 0x504   :  { %7681 = vst.msk [vmem:[#allocation4 + $0xbc] sm:$0xf] %vm206_vm0, %v11008_v57  ;;  %11500 = vmatmul.mubr.msk.bf16.gmra.mxu1 %vm44_vm1, %v11727_v37  ;;  %v5300_v61 = vpop.permute.xlu0 %5299  ;;  %v5426_v42 = vpop.permute.xlu1 %5425  ;;  %v6063_v2 = vld [vmem:[#allocation4 + $0x30] sm:$0xff] }
 0x505   :  { %5341 = vst.msk [vmem:[#allocation4 + $0x48] sm:$0xf] %vm464_vm4, %v5300_v61 }
 0x506   :  { %5468 = vst.msk [vmem:[#allocation4 + $0x3c] sm:$0xf] %vm594_vm5, %v5426_v42  ;;  %5795 = vrot.lane.b32.xlu0 %v10831_v17, %s11800_s19 }
 0x507   :  { %5189 = vrot.lane.b32.xlu1 %v10846_v44, %s11798_s21 }
 0x508   :  { %v5652_v60 = vpop.permute.xlu0 %5651  ;;  %v5778_v47 = vpop.permute.xlu1 %5777 }
 0x509   :  { %5693 = vst.msk [vmem:[#allocation4 + $0x4c] sm:$0xf] %vm335_vm3, %v5652_v60 }
 0x50a   :  { %5820 = vst.msk [vmem:[#allocation4 + $0x40] sm:$0xf] %vm464_vm4, %v5778_v47  ;;  %5923 = vrot.lane.b32.xlu0 %v10847_v63, %s11801_s17 }
 0x50b   :  { %5317 = vrot.lane.b32.xlu1 %v10815_v34, %s11800_s19 }
 0x50c   :  { %v5428_v48 = vpop.permute.xlu0 %5427  ;;  %v5906_v62 = vpop.permute.xlu1 %5905 }
 0x50d   :  { %5469 = vst.msk [vmem:[#allocation4 + $0x48] sm:$0xf] %vm594_vm5, %v5428_v48  ;;  %5948 = vst.msk [vmem:[#allocation4 + $0x40] sm:$0xf] %vm594_vm5, %v5906_v62 }
 0x50f   :  { %5669 = vrot.lane.b32.xlu1 %v10863_v51, %s11798_s21 }
 0x510   :  { %v5780_v33 = vpop.permute.xlu0 %5779  ;;  %v5174_v29 = vpop.permute.xlu1 %5173 }
 0x511   :  { %5821 = vst.msk [vmem:[#allocation4 + $0x4c] sm:$0xf] %vm464_vm4, %v5780_v33 }
 0x512   :  { %5214 = vst.msk [vmem:[#allocation4 + $0x54] sm:$0xf] %vm335_vm3, %v5174_v29  ;;  %v11742_v29 = vld [vmem:[%s14449_s1 + $0x2c8] sm:$0xff]  }
 0x513   :  { %5445 = vrot.lane.b32.xlu1 %v10831_v17, %s11801_s17  ;;  %11503 = vmatprep.subr.bf16.mxu0 %v11742_v29 }
 0x514   :  { %v5908_v25 = vpop.permute.xlu0 %5907  ;;  %v5302_v1 = vpop.permute.xlu1 %5301  ;;  %v6065_v8 = vld [vmem:[#allocation4 + $0x3c] sm:$0xff]  ;;  %11504 = vmatpush3.bf16.msra.mxu0 %v11742_v29 }
 0x515   :  { %v11728_v3 = vld [vmem:[#allocation4 + $0x34] ss:$12 sps:$4 sm:$0xff]   ;;  %5949 = vst.msk [vmem:[#allocation4 + $0x4c] sm:$0xf] %vm594_vm5, %v5908_v25  ;;  %v9984_v4 = vcombine.low %v6063_v2, %v6065_v8 }
 0x516   :  { %5342 = vst.msk [vmem:[#allocation4 + $0x54] sm:$0xf] %vm464_vm4, %v5302_v1  ;;  %6432 = vmatprep.mubr.bf16.mxu0 %v11728_v3  ;;  %v11743_v2 = vld [vmem:[%s14449_s1 + $0x2c0] sm:$0xff]  }
 0x517   :  { %6433 = vmatmul.mubr.bf16.gmra.mxu0 %v9984_v4  ;;  %11505 = vmatprep.subr.bf16.mxu0 %v11743_v2 }
 0x518   :  { %v5176_v6 = vpop.permute.xlu0 %5175  ;;  %v5654_v45 = vpop.permute.xlu1 %5653  ;;  %11506 = vmatpush3.bf16.msra.mxu0 %v11743_v2  ;;  %v11758_v2 = vld [vmem:[%s14449_s1 + $0x290] sm:$0xff]  }
 0x519   :  { %5215 = vst.msk [vmem:[#allocation4 + $0x60] sm:$0xf] %vm335_vm3, %v5176_v6  ;;  %5694 = vst.msk [vmem:[#allocation4 + $0x58] sm:$0xf] %vm335_vm3, %v5654_v45 }
 0x51a   :  { %5822 = vst.msk [vmem:[#allocation4 + $0x58] sm:$0xf] %vm464_vm4, %v13478_v58 }
 0x51c   :  { %v5304_v38 = vpop.permute.xlu0 %5303  ;;  %v5430_v12 = vpop.permute.xlu1 %5429  ;;  %v6067_v58 = vld [vmem:[#allocation4 + $0x48] sm:$0xff] }
 0x51d   :  { %5343 = vst.msk [vmem:[#allocation4 + $0x60] sm:$0xf] %vm464_vm4, %v5304_v38 }
 0x51e   :  { %5470 = vst.msk [vmem:[#allocation4 + $0x54] sm:$0xf] %vm594_vm5, %v5430_v12 }
 0x520   :  { %v6787_v13 = vpop.permute.xlu0 %6786  ;;  %v5910_v14 = vpop.permute.xlu1 %5909 }
 0x521   :  { %6834 = vst.msk [vmem:[#allocation4] sm:$0xf] %vm335_vm3, %v6787_v13 }
 0x522   :  { %5950 = vst.msk [vmem:[#allocation4 + $0x58] sm:$0xf] %vm594_vm5, %v5910_v14 }
 0x524   :  { %v6915_v11 = vpop.permute.xlu0 %6914  ;;  %v13841_v15 = vpop.permute.xlu1 %5797 }
 0x525   :  { %6962 = vst.msk [vmem:[#allocation4] sm:$0xf] %vm464_vm4, %v6915_v11 }
 0x528   :  { %v5656_v18 = vpop.permute.xlu0 %5655  ;;  %v13844_v53 = vpop.permute.xlu1 %5925 }
 0x529   :  { %v6069_v7 = vld [vmem:[#allocation4 + $0x54] sm:$0xff]  ;;  %5695 = vst.msk [vmem:[#allocation4 + $0x64] sm:$0xf] %vm335_vm3, %v5656_v18 }
 0x52a   :  { %v11730_v54 = vld [vmem:[#allocation4 + $0x4c] ss:$12 sps:$4 sm:$0xff]   ;;  %v9987_v24 = vcombine.low %v6067_v58, %v6069_v7 }
 0x52b   :  { %6440 = vmatprep.mubr.bf16.mxu0 %v11730_v54 }
 0x52c   :  { %6441 = vmatmul.mubr.bf16.gmra.mxu0 %v9987_v24  ;;  %v5432_v43 = vpop.permute.xlu0 %5431  ;;  %v13847_v19 = vpop.permute.xlu1 %7408 }
 0x52d   :  { %5471 = vst.msk [vmem:[#allocation4 + $0x60] sm:$0xf] %vm594_vm5, %v5432_v43 }
 0x530   :  { %v5784_v36 = vpop.permute.xlu0 %5783  ;;  %v5178_v21 = vpop.permute.xlu1 %5177 }
 0x531   :  { %5823 = vst.msk [vmem:[#allocation4 + $0x64] sm:$0xf] %vm464_vm4, %v5784_v36 }
 0x532   :  { %5216 = vst.msk [vmem:[#allocation4 + $0x6c] sm:$0xf] %vm335_vm3, %v5178_v21  ;;  %v13907_v21 = vld [vmem:[%s14450_s2 + $0x3] ss:$0 sm:$0xff] }
 0x534   :  { %v5912_v55 = vpop.permute.xlu0 %5911  ;;  %v5306_v22 = vpop.permute.xlu1 %5305 }
 0x535   :  { %5951 = vst.msk [vmem:[#allocation4 + $0x64] sm:$0xf] %vm594_vm5, %v5912_v55 }
 0x536   :  { %5344 = vst.msk [vmem:[#allocation4 + $0x6c] sm:$0xf] %vm464_vm4, %v5306_v22 }
 0x538   :  { %v5180_v23 = vpop.permute.xlu0 %5179  ;;  %v5658_v28 = vpop.permute.xlu1 %5657 }
 0x539   :  { %5217 = vst.msk [vmem:[#allocation4 + $0x78] sm:$0xf] %vm335_vm3, %v5180_v23  ;;  %5696 = vst.msk [vmem:[#allocation4 + $0x70] sm:$0xf] %vm335_vm3, %v5658_v28 }
 0x53c   :  { %v5308_v56 = vpop.permute.xlu0 %5307  ;;  %v5434_v50 = vpop.permute.xlu1 %5433  ;;  %v6071_v40 = vld [vmem:[#allocation4 + $0x60] sm:$0xff] }
 0x53d   :  { %5345 = vst.msk [vmem:[#allocation4 + $0x78] sm:$0xf] %vm464_vm4, %v5308_v56 }
 0x53e   :  { %5472 = vst.msk [vmem:[#allocation4 + $0x6c] sm:$0xf] %vm594_vm5, %v5434_v50 }
 0x540   :  { %v5660_v35 = vpop.permute.xlu0 %5659  ;;  %v5786_v30 = vpop.permute.xlu1 %5785 }
 0x541   :  { %5697 = vst.msk [vmem:[#allocation4 + $0x7c] sm:$0xf] %vm335_vm3, %v5660_v35 }
 0x542   :  { %5824 = vst.msk [vmem:[#allocation4 + $0x70] sm:$0xf] %vm464_vm4, %v5786_v30 }
 0x544   :  { %v5436_v34 = vpop.permute.xlu0 %5435  ;;  %v5914_v41 = vpop.permute.xlu1 %5913 }
 0x545   :  { %5473 = vst.msk [vmem:[#allocation4 + $0x78] sm:$0xf] %vm594_vm5, %v5436_v34  ;;  %5952 = vst.msk [vmem:[#allocation4 + $0x70] sm:$0xf] %vm594_vm5, %v5914_v41  ;;  %v13902_v24 = vpop.f32.mrf.mxu1 }
 0x547   :  { %v6515_v36 = vpop.f32.mrf.mxu1 }
 0x548   :  { %v5788_v44 = vpop.permute.xlu0 %5787  ;;  %v5182_v16 = vpop.permute.xlu1 %5181 }
 0x549   :  { %5825 = vst.msk [vmem:[#allocation4 + $0x7c] sm:$0xf] %vm464_vm4, %v5788_v44  ;;  %v13910_v23 = vpop.f32.mrf.mxu1  ;;  %v11747_v44 = vld [vmem:[%s14449_s1 + $0x2b8] sm:$0xff]  }
 0x54a   :  { %5218 = vst.msk [vmem:[#allocation4 + $0x84] sm:$0xf] %vm335_vm3, %v5182_v16  ;;  %11305 = vmatprep.subr.bf16.mxu1 %v11747_v44 }
 0x54b   :  { %v6518_v34 = vpop.f32.mrf.mxu1 }
 0x54c   :  { %v5916_v49 = vpop.permute.xlu0 %5915  ;;  %v5310_v5 = vpop.permute.xlu1 %5309  ;;  %v6073_v51 = vld [vmem:[#allocation4 + $0x6c] sm:$0xff] }
 0x54d   :  { %v11732_v63 = vld [vmem:[#allocation4 + $0x64] ss:$12 sps:$4 sm:$0xff]   ;;  %5953 = vst.msk [vmem:[#allocation4 + $0x7c] sm:$0xf] %vm594_vm5, %v5916_v49  ;;  %v9990_v0 = vcombine.low %v6071_v40, %v6073_v51  ;;  %v11748_v49 = vld [vmem:[%s14449_s1 + $0x278] sm:$0xff]  }
 0x54e   :  { %5346 = vst.msk [vmem:[#allocation4 + $0x84] sm:$0xf] %vm464_vm4, %v5310_v5  ;;  %6448 = vmatprep.mubr.bf16.mxu0 %v11732_v63  ;;  %11306 = vmatpush3.bf16.msra.mxu1 %v11748_v49  ;;  %v11749_v5 = vld [vmem:[%s14449_s1 + $0x2b0] sm:$0xff]  }
 0x54f   :  { %6449 = vmatmul.mubr.bf16.gmra.mxu0 %v9990_v0  ;;  %v11750_v40 = vld [vmem:[%s14449_s1 + $0x270] sm:$0xff]   ;;  %11307 = vmatprep.subr.bf16.mxu1 %v11749_v5 }
 0x550   :  { %v5184_v52 = vpop.permute.xlu0 %5183  ;;  %v5662_v26 = vpop.permute.xlu1 %5661 }
 0x551   :  { %5219 = vst.msk [vmem:[#allocation4 + $0x90] sm:$0xf] %vm335_vm3, %v5184_v52  ;;  %5698 = vst.msk [vmem:[#allocation4 + $0x88] sm:$0xf] %vm335_vm3, %v5662_v26 }
 0x552   :  { %11308 = vmatpush3.bf16.msra.mxu1 %v11750_v40 }
 0x554   :  { %v5312_v10 = vpop.permute.xlu0 %5311  ;;  %v5438_v27 = vpop.permute.xlu1 %5437  ;;  %v6075_v61 = vld [vmem:[#allocation4 + $0x78] sm:$0xff] }
 0x555   :  { %5347 = vst.msk [vmem:[#allocation4 + $0x90] sm:$0xf] %vm464_vm4, %v5312_v10 }
 0x556   :  { %5474 = vst.msk [vmem:[#allocation4 + $0x84] sm:$0xf] %vm594_vm5, %v5438_v27  ;;  %v11751_v27 = vld [vmem:[%s14449_s1 + $0x2a8] sm:$0xff]  }
 0x557   :  { %11309 = vmatprep.subr.bf16.mxu1 %v11751_v27 }
 0x558   :  { %v5664_v31 = vpop.permute.xlu0 %5663 }
 0x559   :  { %v5790_v32 = vpop.permute.xlu1 %5789  ;;  %5699 = vst.msk [vmem:[#allocation4 + $0x94] sm:$0xf] %vm335_vm3, %v5664_v31  ;;  %v11752_v31 = vld [vmem:[%s14449_s1 + $0x268] sm:$0xff]  }
 0x55a   :  { %5826 = vst.msk [vmem:[#allocation4 + $0x88] sm:$0xf] %vm464_vm4, %v5790_v32  ;;  %11310 = vmatpush3.bf16.msra.mxu1 %v11752_v31 }
 0x55c   :  { %v5440_v9 = vpop.permute.xlu0 %5439 }
 0x55d   :  { %v5918_v57 = vpop.permute.xlu1 %5917  ;;  %5475 = vst.msk [vmem:[#allocation4 + $0x90] sm:$0xf] %vm594_vm5, %v5440_v9 }
 0x55e   :  { %5954 = vst.msk [vmem:[#allocation4 + $0x88] sm:$0xf] %vm594_vm5, %v5918_v57 }
 0x560   :  { %v5792_v59 = vpop.permute.xlu0 %5791 }
 0x561   :  { %v5186_v20 = vpop.permute.xlu1 %5185  ;;  %5827 = vst.msk [vmem:[#allocation4 + $0x94] sm:$0xf] %vm464_vm4, %v5792_v59 }
 0x562   :  { %5220 = vst.msk [vmem:[#allocation4 + $0x9c] sm:$0xf] %vm335_vm3, %v5186_v20 }
 0x564   :  { %v5920_v37 = vpop.permute.xlu0 %5919 }
 0x565   :  { %v5314_v39 = vpop.permute.xlu1 %5313  ;;  %v6077_v42 = vld [vmem:[#allocation4 + $0x84] sm:$0xff]  ;;  %5955 = vst.msk [vmem:[#allocation4 + $0x94] sm:$0xf] %vm594_vm5, %v5920_v37 }
 0x566   :  { %v11734_v17 = vld [vmem:[#allocation4 + $0x7c] ss:$12 sps:$4 sm:$0xff]   ;;  %5348 = vst.msk [vmem:[#allocation4 + $0x9c] sm:$0xf] %vm464_vm4, %v5314_v39  ;;  %v9993_v60 = vcombine.low %v6075_v61, %v6077_v42  ;;  %v11753_v61 = vld [vmem:[%s14449_s1 + $0x2a0] sm:$0xff]  }
 0x567   :  { %6456 = vmatprep.mubr.bf16.mxu0 %v11734_v17  ;;  %v11754_v42 = vld [vmem:[%s14449_s1 + $0x260] sm:$0xff]   ;;  %11311 = vmatprep.subr.bf16.mxu1 %v11753_v61 }
 0x568   :  { %6457 = vmatmul.mubr.bf16.gmra.mxu0 %v9993_v60  ;;  %v5188_v47 = vpop.permute.xlu0 %5187  ;;  %11312 = vmatpush3.bf16.msra.mxu1 %v11754_v42 }
 0x569   :  { %v5666_v48 = vpop.permute.xlu1 %5665  ;;  %5221 = vst.msk [vmem:[#allocation4 + $0xa8] sm:$0xf] %vm335_vm3, %v5188_v47 }
 0x56a   :  { %5700 = vst.msk [vmem:[#allocation4 + $0xa0] sm:$0xf] %vm335_vm3, %v5666_v48  ;;  %v11755_v48 = vld [vmem:[%s14449_s1 + $0x298] sm:$0xff]  }
 0x56b   :  { %11313 = vmatprep.subr.bf16.mxu1 %v11755_v48 }
 0x56c   :  { %v5316_v62 = vpop.permute.xlu0 %5315  ;;  %v6079_v12 = vld [vmem:[#allocation4 + $0x90] sm:$0xff] }
 0x56d   :  { %v5442_v33 = vpop.permute.xlu1 %5441  ;;  %5349 = vst.msk [vmem:[#allocation4 + $0xa8] sm:$0xf] %vm464_vm4, %v5316_v62 }
 0x56e   :  { %5476 = vst.msk [vmem:[#allocation4 + $0x9c] sm:$0xf] %vm594_vm5, %v5442_v33  ;;  %v11757_v33 = vld [vmem:[%s14449_s1 + $0x258] sm:$0xff]  }
 0x56f   :  { %11314 = vmatpush3.bf16.msra.mxu1 %v11757_v33 }
 0x570   :  { %v5668_v25 = vpop.permute.xlu0 %5667  ;;  %11315 = vmatprep.subr.bf16.mxu1 %v11758_v2 }
 0x571   :  { %v5794_v1 = vpop.permute.xlu1 %5793  ;;  %5701 = vst.msk [vmem:[#allocation4 + $0xac] sm:$0xf] %vm335_vm3, %v5668_v25 }
 0x572   :  { %5828 = vst.msk [vmem:[#allocation4 + $0xa0] sm:$0xf] %vm464_vm4, %v5794_v1 }
 0x574   :  { %v5444_v8 = vpop.permute.xlu0 %5443 }
 0x575   :  { %v5922_v3 = vpop.permute.xlu1 %5921  ;;  %5477 = vst.msk [vmem:[#allocation4 + $0xa8] sm:$0xf] %vm594_vm5, %v5444_v8 }
 0x576   :  { %5956 = vst.msk [vmem:[#allocation4 + $0xa0] sm:$0xf] %vm594_vm5, %v5922_v3 }
 0x578   :  { %v5796_v4 = vpop.permute.xlu0 %5795 }
 0x579   :  { %v5190_v6 = vpop.permute.xlu1 %5189  ;;  %5829 = vst.msk [vmem:[#allocation4 + $0xac] sm:$0xf] %vm464_vm4, %v5796_v4  ;;  %v11759_v4 = vld [vmem:[%s14449_s1 + $0x250] sm:$0xff]  }
 0x57a   :  { %5222 = vst.msk [vmem:[#allocation4 + $0xb4] sm:$0xf] %vm335_vm3, %v5190_v6  ;;  %11316 = vmatpush3.bf16.msra.mxu1 %v11759_v4 }
 0x57c   :  { %v5924_v45 = vpop.permute.xlu0 %5923 }
 0x57d   :  { %v5318_v38 = vpop.permute.xlu1 %5317  ;;  %v6081_v13 = vld [vmem:[#allocation4 + $0x9c] sm:$0xff]  ;;  %5957 = vst.msk [vmem:[#allocation4 + $0xac] sm:$0xf] %vm594_vm5, %v5924_v45  ;;  %v11760_v45 = vld [vmem:[%s14449_s1 + $0x288] sm:$0xff]  }
 0x57e   :  { %v11736_v14 = vld [vmem:[#allocation4 + $0x94] ss:$12 sps:$4 sm:$0xff]   ;;  %5350 = vst.msk [vmem:[#allocation4 + $0xb4] sm:$0xf] %vm464_vm4, %v5318_v38  ;;  %v9996_v11 = vcombine.low %v6079_v12, %v6081_v13  ;;  %v11761_v12 = vld [vmem:[%s14449_s1 + $0x248] sm:$0xff]   ;;  %11317 = vmatprep.subr.bf16.mxu1 %v11760_v45 }
 0x57f   :  { %6464 = vmatprep.mubr.bf16.mxu0 %v11736_v14  ;;  %11318 = vmatpush3.bf16.msra.mxu1 %v11761_v12  ;;  %v11762_v13 = vld [vmem:[%s14449_s1 + $0x280] sm:$0xff]  }
 0x580   :  { %6465 = vmatmul.mubr.bf16.gmra.mxu0 %v9996_v11  ;;  %v11763_v14 = vld [vmem:[%s14449_s1 + $0x240] sm:$0xff]   ;;  %11319 = vmatprep.subr.bf16.mxu1 %v11762_v13 }
 0x581   :  { %v5670_v18 = vpop.permute.xlu1 %5669 }
 0x582   :  { %5702 = vst.msk [vmem:[#allocation4 + $0xb8] sm:$0xf] %vm335_vm3, %v5670_v18 }
 0x583   :  { %5830 = vst.msk [vmem:[#allocation4 + $0xb8] sm:$0xf] %vm464_vm4, %v13841_v15  ;;  %11320 = vmatpush3.bf16.msra.mxu1 %v11763_v14 }
 0x584   :  { %5958 = vst.msk [vmem:[#allocation4 + $0xb8] sm:$0xf] %vm594_vm5, %v13844_v53 }
 0x585   :  { %v5446_v58 = vpop.permute.xlu1 %5445 }
 0x586   :  { %5478 = vst.msk [vmem:[#allocation4 + $0xb4] sm:$0xf] %vm594_vm5, %v5446_v58 }
 0x58b   :  { %v11738_v7 = vld [vmem:[#allocation4 + $0xac] ss:$12 sps:$4 sm:$0xff]  }
 0x58c   :  { %6472 = vmatprep.mubr.bf16.mxu0 %v11738_v7 }
 0x58d   :  { %v11740_v54 = vld [vmem:[#allocation4 + $0xa8] ss:$12 sps:$4 sm:$0xff]  }
 0x58e   :  { %6473 = vmatmul.mubr.bf16.gmra.mxu0 %v11740_v54 }
 0x5a8   :  { %v11247_v43 = vpop.f32.mrf.mxu0 }
 0x5aa   :  { %v11248_v15 = vpop.f32.mrf.mxu0 }
 0x5ab   :  { %v11249_v55 = vadd.f32 %v11248_v15, %v11247_v43  ;;  %v13984_v43 = vpop.f32.mrf.mxu1 }
 0x5ac   :  { %v11250_v22 = vpop.f32.mrf.mxu0 }
 0x5ad   :  { %v6419_v53 = vadd.f32 %v11249_v55, %v13907_v21 }
 0x5ae   :  { %v11251_v28 = vpop.f32.mrf.mxu0 }
 0x5af   :  { %v6516_v56 = vadd.f32 %v6515_v36, %v6419_v53  ;;  %v11252_v50 = vadd.f32 %v11251_v28, %v11250_v22 }
 0x5b1   :  { %v6578_v35 = vmax.f32 %v6516_v56, 0.0  ;;  %v6422_v30 = vadd.f32 %v11252_v50, %v13907_v21  ;;  %v6531_v56 = vpop.f32.mrf.mxu1 }
 0x5b3   :  { %6594 = vst.msk [vmem:[#allocation3 + $0x11] sm:$0xff] %vm44_vm1, %v6578_v35  ;;  %v6519_v41 = vadd.f32 %v6518_v34, %v6422_v30  ;;  %v11494_v44 = vpop.f32.mrf.mxu1 }
 0x5b5   :  { %v6579_v16 = vmax.f32 %v6519_v41, 0.0 }
 0x5b7   :  { %6595 = vst.msk [vmem:[#allocation3 + $0x21] sm:$0xff] %vm44_vm1, %v6579_v16 }
 0x5ba   :  { %v7202_v51 = vld [vmem:[#allocation3 + $0x12] sm:$0xff] }
 0x5bb   :  { %v6723_v63 = vld [vmem:[#allocation3 + $0x11] sm:$0xff]  ;;  %v10945_v52 = vpack.c.bf16 %v7202_v51, %v7202_v51 }
 0x5bc   :  { %v6978_v0 = vld [vmem:[#allocation3 + $0x10] sm:$0xff]  ;;  %v10882_v26 = vpack.c.bf16 %v6723_v63, %v6723_v63  ;;  %v6534_v63 = vpop.f32.mrf.mxu1 }
 0x5bd   :  { %v10913_v10 = vpack.c.bf16 %v6978_v0, %v6978_v0  ;;  %7266 = vrot.lane.b32.xlu0 %v10945_v52, %s11798_s21 }
 0x5be   :  { %6788 = vrot.lane.b32.xlu1 %v10882_v26, %s11798_s21  ;;  %7186 = vst.msk [vmem:[#allocation4 + $0x4] sm:$0xf] %vm206_vm0, %v10882_v26  ;;  %v7330_v32 = vld [vmem:[#allocation3 + $0x20] sm:$0xff] }
 0x5bf   :  { %6707 = vst.msk [vmem:[#allocation4 + $0xc] sm:$0xf] %vm206_vm0, %v10913_v10  ;;  %v7203_v9 = vld [vmem:[#allocation3 + $0x22] sm:$0xff]  ;;  %v10961_v59 = vpack.c.bf16 %v7330_v32, %v7330_v32 }
 0x5c0   :  { %v7458_v57 = vld [vmem:[#allocation3 + $0x21] sm:$0xff]  ;;  %v10946_v20 = vpack.c.bf16 %v7203_v9, %v7203_v9  ;;  %v11253_v39 = vpop.f32.mrf.mxu0 }
 0x5c1   :  { %v10977_v37 = vpack.c.bf16 %v7458_v57, %v7458_v57  ;;  %7042 = vrot.lane.b32.xlu0 %v10913_v10, %s11801_s17  ;;  %6708 = vst.msk [vmem:[#allocation4 + $0x18] sm:$0xf] %vm206_vm0, %v10961_v59 }
 0x5c2   :  { %6916 = vrot.lane.b32.xlu1 %v10945_v52, %s11800_s19  ;;  %7666 = vst.msk [vmem:[#allocation4 + $0x8] sm:$0xf] %vm206_vm0, %v10946_v20  ;;  %v11254_v17 = vpop.f32.mrf.mxu0 }
 0x5c3   :  { %7187 = vst.msk [vmem:[#allocation4 + $0x10] sm:$0xf] %vm206_vm0, %v10977_v37  ;;  %v11255_v60 = vadd.f32 %v11254_v17, %v11253_v39 }
 0x5c4   :  { %v11256_v47 = vpop.f32.mrf.mxu0 }
 0x5c5   :  { %v6427_v62 = vadd.f32 %v11255_v60, %v13907_v21  ;;  %7394 = vrot.lane.b32.xlu0 %v10961_v59, %s11800_s19 }
 0x5c6   :  { %7268 = vrot.lane.b32.xlu1 %v10946_v20, %s11798_s21  ;;  %v11257_v29 = vpop.f32.mrf.mxu0 }
 0x5c7   :  { %v6524_v25 = vadd.f32 %v13902_v24, %v6427_v62  ;;  %v11258_v1 = vadd.f32 %v11257_v29, %v11256_v47 }
 0x5c9   :  { %v6580_v8 = vmax.f32 %v6524_v25, 0.0  ;;  %v6430_v3 = vadd.f32 %v11258_v1, %v13907_v21  ;;  %7522 = vrot.lane.b32.xlu0 %v10977_v37, %s11801_s17 }
 0x5ca   :  { %7044 = vrot.lane.b32.xlu1 %v10961_v59, %s11801_s17 }
 0x5cb   :  { %6596 = vst.msk [vmem:[#allocation3 + $0x31] sm:$0xff] %vm44_vm1, %v6580_v8  ;;  %v6527_v6 = vadd.f32 %v13910_v23, %v6430_v3 }
 0x5cd   :  { %v6581_v38 = vmax.f32 %v6527_v6, 0.0  ;;  %6790 = vrot.lane.b32.xlu0 %v10977_v37, %s11798_s21 }
 0x5cf   :  { %6597 = vst.msk [vmem:[#allocation3 + $0x41] sm:$0xff] %vm44_vm1, %v6581_v38 }
 0x5d1   :  { %6918 = vrot.lane.b32.xlu0 %v10946_v20, %s11800_s19 }
 0x5d2   :  { %v7204_v11 = vld [vmem:[#allocation3 + $0x32] sm:$0xff] }
 0x5d3   :  { %v7331_v18 = vld [vmem:[#allocation3 + $0x30] sm:$0xff]  ;;  %v10947_v7 = vpack.c.bf16 %v7204_v11, %v7204_v11 }
 0x5d4   :  { %v7459_v58 = vld [vmem:[#allocation3 + $0x31] sm:$0xff]  ;;  %v10962_v54 = vpack.c.bf16 %v7331_v18, %v7331_v18 }
 0x5d5   :  { %v10978_v24 = vpack.c.bf16 %v7459_v58, %v7459_v58  ;;  %7270 = vrot.lane.b32.xlu0 %v10947_v7, %s11798_s21  ;;  %7667 = vst.msk [vmem:[#allocation4 + $0x14] sm:$0xf] %vm206_vm0, %v10947_v7 }
 0x5d6   :  { %7396 = vrot.lane.b32.xlu1 %v10962_v54, %s11800_s19  ;;  %6709 = vst.msk [vmem:[#allocation4 + $0x24] sm:$0xf] %vm206_vm0, %v10962_v54  ;;  %v7332_v36 = vld [vmem:[#allocation3 + $0x40] sm:$0xff] }
 0x5d7   :  { %7188 = vst.msk [vmem:[#allocation4 + $0x1c] sm:$0xf] %vm206_vm0, %v10978_v24  ;;  %v7460_v15 = vld [vmem:[#allocation3 + $0x41] sm:$0xff]  ;;  %v11259_v22 = vpop.f32.mrf.mxu0  ;;  %v10963_v53 = vpack.c.bf16 %v7332_v36, %v7332_v36 }
 0x5d8   :  { %v7205_v55 = vld [vmem:[#allocation3 + $0x42] sm:$0xff]  ;;  %v10979_v23 = vpack.c.bf16 %v7460_v15, %v7460_v15  ;;  %v14043_v15 = vpop.f32.mrf.mxu1 }
 0x5d9   :  { %v10948_v28 = vpack.c.bf16 %v7205_v55, %v7205_v55  ;;  %7046 = vrot.lane.b32.xlu0 %v10962_v54, %s11801_s17  ;;  %v11260_v50 = vpop.f32.mrf.mxu0  ;;  %6710 = vst.msk [vmem:[#allocation4 + $0x30] sm:$0xf] %vm206_vm0, %v10963_v53  ;;  %v6634_v36 = vld [vmem:[#allocation3 + $0xa0] sm:$0xff] }
 0x5da   :  { %7524 = vrot.lane.b32.xlu1 %v10978_v24, %s11801_s17  ;;  %7189 = vst.msk [vmem:[#allocation4 + $0x28] sm:$0xf] %vm206_vm0, %v10979_v23  ;;  %v11261_v35 = vadd.f32 %v11260_v50, %v11259_v22  ;;  %v10873_v55 = vpack.c.bf16 %v6634_v36, %v6634_v36  ;;  %v6730_v22 = vld [vmem:[#allocation3 + $0xa1] sm:$0xff] }
 0x5db   :  { %7668 = vst.msk [vmem:[#allocation4 + $0x20] sm:$0xf] %vm206_vm0, %v10948_v28  ;;  %v11262_v30 = vpop.f32.mrf.mxu0 }
 0x5dc   :  { %v6435_v34 = vadd.f32 %v11261_v35, %v13907_v21  ;;  %v11741_v41 = vld [vmem:[#allocation4 + $0x8] ss:$12 sps:$4 sm:$0xff]   ;;  %6714 = vst.msk [vmem:[#allocation4 + $0x60] sm:$0xf] %vm206_vm0, %v10873_v55 }
 0x5dd   :  { %7398 = vrot.lane.b32.xlu0 %v10963_v53, %s11800_s19  ;;  %v11263_v16 = vpop.f32.mrf.mxu0  ;;  %11507 = vmatprep.mubr.msk.bf16.mxu0 %vm44_vm1, %v11741_v41  ;;  %v6858_v35 = vld [vmem:[#allocation3 + $0xa2] sm:$0xff] }
 0x5de   :  { %6792 = vrot.lane.b32.xlu1 %v10978_v24, %s11798_s21  ;;  %v6532_v49 = vadd.f32 %v6531_v56, %v6435_v34  ;;  %v11264_v5 = vadd.f32 %v11263_v16, %v11262_v30  ;;  %v10889_v56 = vpack.c.bf16 %v6730_v22, %v6730_v22  ;;  %v10905_v16 = vpack.c.bf16 %v6858_v35, %v6858_v35 }
 0x5e0   :  { %v6582_v40 = vmax.f32 %v6532_v49, 0.0  ;;  %v6438_v51 = vadd.f32 %v11264_v5, %v13907_v21 }
 0x5e1   :  { %7526 = vrot.lane.b32.xlu0 %v10979_v23, %s11801_s17 }
 0x5e2   :  { %6920 = vrot.lane.b32.xlu1 %v10947_v7, %s11800_s19  ;;  %6598 = vst.msk [vmem:[#allocation3 + $0x51] sm:$0xff] %vm44_vm1, %v6582_v40  ;;  %v6535_v0 = vadd.f32 %v6534_v63, %v6438_v51  ;;  %v7465_v40 = vld [vmem:[#allocation3 + $0x91] sm:$0xff] }
 0x5e4   :  { %v6583_v52 = vmax.f32 %v6535_v0, 0.0 }
 0x5e5   :  { %6794 = vrot.lane.b32.xlu0 %v10979_v23, %s11798_s21  ;;  %v6547_v23 = vpop.f32.mrf.mxu1 }
 0x5e6   :  { %7272 = vrot.lane.b32.xlu1 %v10948_v28, %s11798_s21  ;;  %6599 = vst.msk [vmem:[#allocation3 + $0x61] sm:$0xff] %vm44_vm1, %v6583_v52  ;;  %v10984_v52 = vpack.c.bf16 %v7465_v40, %v7465_v40 }
 0x5e7   :  { %v11498_v41 = vpop.f32.mrf.mxu1 }
 0x5e9   :  { %6922 = vrot.lane.b32.xlu0 %v10948_v28, %s11800_s19  ;;  %v7206_v26 = vld [vmem:[#allocation3 + $0x52] sm:$0xff]  ;;  %v6550_v0 = vpop.f32.mrf.mxu1 }
 0x5ea   :  { %7048 = vrot.lane.b32.xlu1 %v10963_v53, %s11801_s17  ;;  %v7333_v10 = vld [vmem:[#allocation3 + $0x50] sm:$0xff]  ;;  %v10949_v31 = vpack.c.bf16 %v7206_v26, %v7206_v26 }
 0x5eb   :  { %v7461_v27 = vld [vmem:[#allocation3 + $0x51] sm:$0xff]  ;;  %v10964_v32 = vpack.c.bf16 %v7333_v10, %v7333_v10  ;;  %v14094_v22 = vpop.f32.mrf.mxu1 }
 0x5ec   :  { %v10980_v9 = vpack.c.bf16 %v7461_v27, %v7461_v27  ;;  %v11265_v57 = vpop.f32.mrf.mxu0  ;;  %7669 = vst.msk [vmem:[#allocation4 + $0x2c] sm:$0xf] %vm206_vm0, %v10949_v31  ;;  %v7345_v10 = vld [vmem:[#allocation3 + $0x130] sm:$0xff] }
 0x5ed   :  { %6711 = vst.msk [vmem:[#allocation4 + $0x3c] sm:$0xf] %vm206_vm0, %v10964_v32  ;;  %7274 = vrot.lane.b32.xlu0 %v10949_v31, %s11798_s21  ;;  %v7334_v20 = vld [vmem:[#allocation3 + $0x60] sm:$0xff] }
 0x5ee   :  { %7190 = vst.msk [vmem:[#allocation4 + $0x34] sm:$0xf] %vm206_vm0, %v10980_v9  ;;  %7400 = vrot.lane.b32.xlu1 %v10964_v32, %s11800_s19  ;;  %v11266_v59 = vpop.f32.mrf.mxu0  ;;  %v7462_v37 = vld [vmem:[#allocation3 + $0x61] sm:$0xff]  ;;  %v10965_v42 = vpack.c.bf16 %v7334_v20, %v7334_v20 }
 0x5ef   :  { %v7207_v39 = vld [vmem:[#allocation3 + $0x62] sm:$0xff]  ;;  %v11267_v61 = vadd.f32 %v11266_v59, %v11265_v57  ;;  %v10981_v17 = vpack.c.bf16 %v7462_v37, %v7462_v37 }
 0x5f0   :  { %v10950_v60 = vpack.c.bf16 %v7207_v39, %v7207_v39  ;;  %v11268_v47 = vpop.f32.mrf.mxu0  ;;  %6712 = vst.msk [vmem:[#allocation4 + $0x48] sm:$0xf] %vm206_vm0, %v10965_v42 }
 0x5f1   :  { %v6443_v48 = vadd.f32 %v11267_v61, %v13907_v21  ;;  %7191 = vst.msk [vmem:[#allocation4 + $0x40] sm:$0xf] %vm206_vm0, %v10981_v17  ;;  %7050 = vrot.lane.b32.xlu0 %v10964_v32, %s11801_s17 }
 0x5f2   :  { %7670 = vst.msk [vmem:[#allocation4 + $0x38] sm:$0xf] %vm206_vm0, %v10950_v60  ;;  %7528 = vrot.lane.b32.xlu1 %v10980_v9, %s11801_s17  ;;  %v11269_v62 = vpop.f32.mrf.mxu0 }
 0x5f3   :  { %v6540_v33 = vadd.f32 %v13984_v43, %v6443_v48  ;;  %v11270_v29 = vadd.f32 %v11269_v62, %v11268_v47  ;;  %v11744_v25 = vld [vmem:[#allocation4 + $0x20] ss:$12 sps:$4 sm:$0xff]  }
 0x5f4   :  { %11508 = vmatmul.mubr.msk.bf16.vlgmr.msra.gmra.mxu0 %vm44_vm1, %v11744_v25 }
 0x5f5   :  { %v6584_v1 = vmax.f32 %v6540_v33, 0.0  ;;  %v6446_v2 = vadd.f32 %v11270_v29, %v13907_v21  ;;  %7402 = vrot.lane.b32.xlu0 %v10965_v42, %s11800_s19 }
 0x5f6   :  { %6796 = vrot.lane.b32.xlu1 %v10980_v9, %s11798_s21 }
 0x5f7   :  { %6600 = vst.msk [vmem:[#allocation3 + $0x71] sm:$0xff] %vm44_vm1, %v6584_v1  ;;  %v6543_v8 = vadd.f32 %v11494_v44, %v6446_v2 }
 0x5f9   :  { %v6585_v3 = vmax.f32 %v6543_v8, 0.0  ;;  %7530 = vrot.lane.b32.xlu0 %v10981_v17, %s11801_s17 }
 0x5fa   :  { %6924 = vrot.lane.b32.xlu1 %v10949_v31, %s11800_s19  ;;  %v10976_v31 = vpack.c.bf16 %v7345_v10, %v7345_v10 }
 0x5fb   :  { %6601 = vst.msk [vmem:[#allocation3 + $0x81] sm:$0xff] %vm44_vm1, %v6585_v3 }
 0x5fd   :  { %6798 = vrot.lane.b32.xlu0 %v10981_v17, %s11798_s21 }
 0x5fe   :  { %7276 = vrot.lane.b32.xlu1 %v10950_v60, %s11798_s21  ;;  %v7208_v4 = vld [vmem:[#allocation3 + $0x72] sm:$0xff] }
 0x5ff   :  { %v7335_v6 = vld [vmem:[#allocation3 + $0x70] sm:$0xff]  ;;  %v10951_v38 = vpack.c.bf16 %v7208_v4, %v7208_v4 }
 0x600   :  { %v7463_v45 = vld [vmem:[#allocation3 + $0x71] sm:$0xff]  ;;  %v10966_v12 = vpack.c.bf16 %v7335_v6, %v7335_v6 }
 0x601   :  { %v10982_v13 = vpack.c.bf16 %v7463_v45, %v7463_v45  ;;  %7671 = vst.msk [vmem:[#allocation4 + $0x44] sm:$0xf] %vm206_vm0, %v10951_v38  ;;  %6926 = vrot.lane.b32.xlu0 %v10950_v60, %s11800_s19 }
 0x602   :  { %6713 = vst.msk [vmem:[#allocation4 + $0x54] sm:$0xf] %vm206_vm0, %v10966_v12  ;;  %7052 = vrot.lane.b32.xlu1 %v10965_v42, %s11801_s17  ;;  %v7592_v14 = vld [vmem:[#allocation3 + $0x82] sm:$0xff] }
 0x603   :  { %7192 = vst.msk [vmem:[#allocation4 + $0x4c] sm:$0xf] %vm206_vm0, %v10982_v13  ;;  %v7464_v11 = vld [vmem:[#allocation3 + $0x81] sm:$0xff]  ;;  %v10999_v18 = vpack.c.bf16 %v7592_v14, %v7592_v14 }
 0x604   :  { %v10983_v58 = vpack.c.bf16 %v7464_v11, %v7464_v11  ;;  %v7336_v54 = vld [vmem:[#allocation3 + $0x80] sm:$0xff] }
 0x605   :  { %7672 = vst.msk [vmem:[#allocation4 + $0x50] sm:$0xf] %vm206_vm0, %v10999_v18  ;;  %7278 = vrot.lane.b32.xlu0 %v10951_v38, %s11798_s21  ;;  %v10967_v24 = vpack.c.bf16 %v7336_v54, %v7336_v54 }
 0x606   :  { %7193 = vst.msk [vmem:[#allocation4 + $0x58] sm:$0xf] %vm206_vm0, %v10983_v58  ;;  %7404 = vrot.lane.b32.xlu1 %v10966_v12, %s11800_s19 }
 0x608   :  { %v11745_v7 = vld [vmem:[#allocation4 + $0x38] ss:$12 sps:$4 sm:$0xff]  }
 0x609   :  { %7054 = vrot.lane.b32.xlu0 %v10966_v12, %s11801_s17  ;;  %11511 = vmatprep.mubr.msk.bf16.mxu0 %vm44_vm1, %v11745_v7 }
 0x60a   :  { %7532 = vrot.lane.b32.xlu1 %v10982_v13, %s11801_s17 }
 0x60c   :  { %v11746_v43 = vld [vmem:[#allocation4 + $0x50] ss:$12 sps:$4 sm:$0xff]  }
 0x60d   :  { %7406 = vrot.lane.b32.xlu0 %v10967_v24, %s11800_s19  ;;  %11512 = vmatmul.mubr.msk.bf16.gmra.mxu0 %vm44_vm1, %v11746_v43 }
 0x60e   :  { %6800 = vrot.lane.b32.xlu1 %v10982_v13, %s11798_s21 }
 0x60f   :  { %v11271_v53 = vpop.f32.mrf.mxu0 }
 0x611   :  { %7534 = vrot.lane.b32.xlu0 %v10983_v58, %s11801_s17  ;;  %v11272_v28 = vpop.f32.mrf.mxu0 }
 0x612   :  { %6928 = vrot.lane.b32.xlu1 %v10951_v38, %s11800_s19  ;;  %v11273_v50 = vadd.f32 %v11272_v28, %v11271_v53 }
 0x613   :  { %v11274_v30 = vpop.f32.mrf.mxu0 }
 0x614   :  { %v6451_v34 = vadd.f32 %v11273_v50, %v13907_v21 }
 0x615   :  { %v11275_v44 = vpop.f32.mrf.mxu0  ;;  %6802 = vrot.lane.b32.xlu0 %v10889_v56, %s11798_s21 }
 0x616   :  { %7280 = vrot.lane.b32.xlu1 %v10999_v18, %s11798_s21  ;;  %v6548_v49 = vadd.f32 %v6547_v23, %v6451_v34  ;;  %v11276_v5 = vadd.f32 %v11275_v44, %v11274_v30 }
 0x618   :  { %v6586_v51 = vmax.f32 %v6548_v49, 0.0  ;;  %v6454_v63 = vadd.f32 %v11276_v5, %v13907_v21 }
 0x619   :  { %6930 = vrot.lane.b32.xlu0 %v10905_v16, %s11800_s19 }
 0x61a   :  { %7056 = vrot.lane.b32.xlu1 %v10967_v24, %s11801_s17  ;;  %6602 = vst.msk [vmem:[#allocation3 + $0xb1] sm:$0xff] %vm44_vm1, %v6586_v51  ;;  %v6551_v26 = vadd.f32 %v6550_v0, %v6454_v63 }
 0x61c   :  { %v6587_v27 = vmax.f32 %v6551_v26, 0.0 }
 0x61e   :  { %7536 = vrot.lane.b32.xlu1 %v10984_v52, %s11801_s17  ;;  %6603 = vst.msk [vmem:[#allocation3 + $0xc1] sm:$0xff] %vm44_vm1, %v6587_v27 }
 0x621   :  { %v7210_v32 = vld [vmem:[#allocation3 + $0xb2] sm:$0xff] }
 0x622   :  { %7424 = vrot.lane.b32.xlu1 %v10976_v31, %s11800_s19  ;;  %v6731_v9 = vld [vmem:[#allocation3 + $0xb1] sm:$0xff]  ;;  %v10953_v59 = vpack.c.bf16 %v7210_v32, %v7210_v32 }
 0x623   :  { %v6986_v57 = vld [vmem:[#allocation3 + $0xb0] sm:$0xff]  ;;  %v10890_v20 = vpack.c.bf16 %v6731_v9, %v6731_v9 }
 0x624   :  { %v10921_v37 = vpack.c.bf16 %v6986_v57, %v6986_v57  ;;  %7282 = vrot.lane.b32.xlu0 %v10953_v59, %s11798_s21 }
 0x625   :  { %7194 = vst.msk [vmem:[#allocation4 + $0x64] sm:$0xf] %vm206_vm0, %v10890_v20  ;;  %v7338_v39 = vld [vmem:[#allocation3 + $0xc0] sm:$0xff] }
 0x626   :  { %6715 = vst.msk [vmem:[#allocation4 + $0x6c] sm:$0xf] %vm206_vm0, %v10921_v37  ;;  %6804 = vrot.lane.b32.xlu1 %v10890_v20, %s11798_s21  ;;  %v7211_v61 = vld [vmem:[#allocation3 + $0xc2] sm:$0xff]  ;;  %v10969_v17 = vpack.c.bf16 %v7338_v39, %v7338_v39 }
 0x627   :  { %v7466_v42 = vld [vmem:[#allocation3 + $0xc1] sm:$0xff]  ;;  %v10954_v60 = vpack.c.bf16 %v7211_v61, %v7211_v61 }
 0x628   :  { %v10985_v47 = vpack.c.bf16 %v7466_v42, %v7466_v42  ;;  %v11277_v48 = vpop.f32.mrf.mxu0  ;;  %7058 = vrot.lane.b32.xlu0 %v10921_v37, %s11801_s17  ;;  %6716 = vst.msk [vmem:[#allocation4 + $0x78] sm:$0xf] %vm206_vm0, %v10969_v17 }
 0x629   :  { %7674 = vst.msk [vmem:[#allocation4 + $0x68] sm:$0xf] %vm206_vm0, %v10954_v60 }
 0x62a   :  { %7195 = vst.msk [vmem:[#allocation4 + $0x70] sm:$0xf] %vm206_vm0, %v10985_v47  ;;  %6932 = vrot.lane.b32.xlu1 %v10953_v59, %s11800_s19  ;;  %v11278_v62 = vpop.f32.mrf.mxu0 }
 0x62b   :  { %v11279_v33 = vadd.f32 %v11278_v62, %v11277_v48 }
 0x62c   :  { %v11280_v29 = vpop.f32.mrf.mxu0  ;;  %7410 = vrot.lane.b32.xlu0 %v10969_v17, %s11800_s19 }
 0x62d   :  { %v6459_v25 = vadd.f32 %v11279_v33, %v13907_v21 }
 0x62e   :  { %7284 = vrot.lane.b32.xlu1 %v10954_v60, %s11798_s21  ;;  %v11281_v1 = vpop.f32.mrf.mxu0 }
 0x62f   :  { %v6556_v2 = vadd.f32 %v14043_v15, %v6459_v25  ;;  %v11282_v8 = vadd.f32 %v11281_v1, %v11280_v29  ;;  %v7267_v3 = vpop.permute.xlu0 %7266 }
 0x630   :  { %v6789_v4 = vpop.permute.xlu1 %6788  ;;  %7314 = vst.msk [vmem:[#allocation4 + $0x4] sm:$0xf] %vm335_vm3, %v7267_v3  ;;  %7538 = vrot.lane.b32.xlu0 %v10985_v47, %s11801_s17 }
 0x631   :  { %v6588_v6 = vmax.f32 %v6556_v2, 0.0  ;;  %v6462_v45 = vadd.f32 %v11282_v8, %v13907_v21  ;;  %6835 = vst.msk [vmem:[#allocation4 + $0xc] sm:$0xf] %vm335_vm3, %v6789_v4 }
 0x632   :  { %7060 = vrot.lane.b32.xlu1 %v10969_v17, %s11801_s17 }
 0x633   :  { %6604 = vst.msk [vmem:[#allocation3 + $0xd1] sm:$0xff] %vm44_vm1, %v6588_v6  ;;  %v6559_v38 = vadd.f32 %v11498_v41, %v6462_v45  ;;  %v7043_v12 = vpop.permute.xlu0 %7042  ;;  %v6563_v41 = vpop.f32.mrf.mxu1 }
 0x634   :  { %v6917_v13 = vpop.permute.xlu1 %6916  ;;  %7090 = vst.msk [vmem:[#allocation4] sm:$0xf] %vm594_vm5, %v7043_v12  ;;  %6806 = vrot.lane.b32.xlu0 %v10985_v47, %s11798_s21 }
 0x635   :  { %v6589_v14 = vmax.f32 %v6559_v38, 0.0  ;;  %6963 = vst.msk [vmem:[#allocation4 + $0xc] sm:$0xf] %vm464_vm4, %v6917_v13  ;;  %v14106_v63 = vpop.f32.mrf.mxu1 }
 0x637   :  { %6605 = vst.msk [vmem:[#allocation3 + $0xe1] sm:$0xff] %vm44_vm1, %v6589_v14  ;;  %v7395_v11 = vpop.permute.xlu0 %7394  ;;  %v6566_v9 = vpop.f32.mrf.mxu1 }
 0x638   :  { %v7269_v18 = vpop.permute.xlu1 %7268  ;;  %7442 = vst.msk [vmem:[#allocation4 + $0x4] sm:$0xf] %vm464_vm4, %v7395_v11  ;;  %6934 = vrot.lane.b32.xlu0 %v10954_v60, %s11800_s19 }
 0x639   :  { %7315 = vst.msk [vmem:[#allocation4 + $0x10] sm:$0xf] %vm335_vm3, %v7269_v18 }
 0x63a   :  { %v7212_v58 = vld [vmem:[#allocation3 + $0xd2] sm:$0xff] }
 0x63b   :  { %v7339_v7 = vld [vmem:[#allocation3 + $0xd0] sm:$0xff]  ;;  %v10955_v24 = vpack.c.bf16 %v7212_v58, %v7212_v58  ;;  %v7523_v15 = vpop.permute.xlu0 %7522 }
 0x63c   :  { %v7467_v54 = vld [vmem:[#allocation3 + $0xd1] sm:$0xff]  ;;  %v10970_v43 = vpack.c.bf16 %v7339_v7, %v7339_v7  ;;  %v7045_v55 = vpop.permute.xlu1 %7044  ;;  %7570 = vst.msk [vmem:[#allocation4 + $0x4] sm:$0xf] %vm594_vm5, %v7523_v15 }
 0x63d   :  { %v10986_v36 = vpack.c.bf16 %v7467_v54, %v7467_v54  ;;  %7091 = vst.msk [vmem:[#allocation4 + $0xc] sm:$0xf] %vm594_vm5, %v7045_v55  ;;  %7286 = vrot.lane.b32.xlu0 %v10955_v24, %s11798_s21 }
 0x63e   :  { %7412 = vrot.lane.b32.xlu1 %v10970_v43, %s11800_s19  ;;  %7675 = vst.msk [vmem:[#allocation4 + $0x74] sm:$0xf] %vm206_vm0, %v10955_v24  ;;  %6717 = vst.msk [vmem:[#allocation4 + $0x84] sm:$0xf] %vm206_vm0, %v10970_v43  ;;  %v7340_v53 = vld [vmem:[#allocation3 + $0xe0] sm:$0xff] }
 0x63f   :  { %7196 = vst.msk [vmem:[#allocation4 + $0x7c] sm:$0xf] %vm206_vm0, %v10986_v36  ;;  %v7468_v23 = vld [vmem:[#allocation3 + $0xe1] sm:$0xff]  ;;  %v10971_v56 = vpack.c.bf16 %v7340_v53, %v7340_v53  ;;  %v6791_v30 = vpop.permute.xlu0 %6790 }
 0x640   :  { %v7213_v28 = vld [vmem:[#allocation3 + $0xe2] sm:$0xff]  ;;  %v10987_v50 = vpack.c.bf16 %v7468_v23, %v7468_v23  ;;  %v11283_v34 = vpop.f32.mrf.mxu0  ;;  %6836 = vst.msk [vmem:[#allocation4 + $0x18] sm:$0xf] %vm335_vm3, %v6791_v30 }
 0x641   :  { %v10956_v35 = vpack.c.bf16 %v7213_v28, %v7213_v28  ;;  %7062 = vrot.lane.b32.xlu0 %v10970_v43, %s11801_s17  ;;  %6718 = vst.msk [vmem:[#allocation4 + $0x90] sm:$0xf] %vm206_vm0, %v10971_v56 }
 0x642   :  { %7540 = vrot.lane.b32.xlu1 %v10986_v36, %s11801_s17  ;;  %7197 = vst.msk [vmem:[#allocation4 + $0x88] sm:$0xf] %vm206_vm0, %v10987_v50  ;;  %v11284_v44 = vpop.f32.mrf.mxu0 }
 0x643   :  { %7676 = vst.msk [vmem:[#allocation4 + $0x80] sm:$0xf] %vm206_vm0, %v10956_v35  ;;  %v11285_v16 = vadd.f32 %v11284_v44, %v11283_v34  ;;  %v6919_v49 = vpop.permute.xlu0 %6918 }
 0x644   :  { %v11286_v5 = vpop.f32.mrf.mxu0  ;;  %6964 = vst.msk [vmem:[#allocation4 + $0x18] sm:$0xf] %vm464_vm4, %v6919_v49  ;;  %v11764_v8 = vld [vmem:[#allocation4] ss:$12 sps:$4 sm:$0xff]  }
 0x645   :  { %v11756_v40 = vld [vmem:[#allocation4 + $0x68] ss:$12 sps:$4 sm:$0xff]   ;;  %v6467_v51 = vadd.f32 %v11285_v16, %v13907_v21  ;;  %7414 = vrot.lane.b32.xlu0 %v10971_v56, %s11800_s19 }
 0x646   :  { %6808 = vrot.lane.b32.xlu1 %v10986_v36, %s11798_s21  ;;  %v11287_v0 = vpop.f32.mrf.mxu0  ;;  %11515 = vmatprep.mubr.msk.bf16.mxu0 %vm44_vm1, %v11756_v40 }
 0x647   :  { %v6564_v52 = vadd.f32 %v6563_v41, %v6467_v51  ;;  %v11288_v26 = vadd.f32 %v11287_v0, %v11286_v5  ;;  %v7271_v10 = vpop.permute.xlu0 %7270 }
 0x648   :  { %v7397_v27 = vpop.permute.xlu1 %7396  ;;  %7316 = vst.msk [vmem:[#allocation4 + $0x1c] sm:$0xf] %vm335_vm3, %v7271_v10 }
 0x649   :  { %v6590_v31 = vmax.f32 %v6564_v52, 0.0  ;;  %v6470_v32 = vadd.f32 %v11288_v26, %v13907_v21  ;;  %7443 = vst.msk [vmem:[#allocation4 + $0x10] sm:$0xf] %vm464_vm4, %v7397_v27  ;;  %7542 = vrot.lane.b32.xlu0 %v10987_v50, %s11801_s17 }
 0x64a   :  { %6936 = vrot.lane.b32.xlu1 %v10955_v24, %s11800_s19 }
 0x64b   :  { %6606 = vst.msk [vmem:[#allocation3 + $0xf1] sm:$0xff] %vm44_vm1, %v6590_v31  ;;  %v6567_v57 = vadd.f32 %v6566_v9, %v6470_v32  ;;  %v7047_v59 = vpop.permute.xlu0 %7046 }
 0x64c   :  { %v7525_v20 = vpop.permute.xlu1 %7524  ;;  %7092 = vst.msk [vmem:[#allocation4 + $0x18] sm:$0xf] %vm594_vm5, %v7047_v59 }
 0x64d   :  { %v6591_v37 = vmax.f32 %v6567_v57, 0.0  ;;  %7571 = vst.msk [vmem:[#allocation4 + $0x10] sm:$0xf] %vm594_vm5, %v7525_v20  ;;  %6810 = vrot.lane.b32.xlu0 %v10987_v50, %s11798_s21 }
 0x64e   :  { %7288 = vrot.lane.b32.xlu1 %v10956_v35, %s11798_s21  ;;  %v11289_v42 = vpop.f32.mrf.mxu0 }
 0x64f   :  { %6607 = vst.msk [vmem:[#allocation3 + $0x101] sm:$0xff] %vm44_vm1, %v6591_v37  ;;  %v7399_v39 = vpop.permute.xlu0 %7398 }
 0x650   :  { %v6793_v61 = vpop.permute.xlu1 %6792  ;;  %7444 = vst.msk [vmem:[#allocation4 + $0x1c] sm:$0xf] %vm464_vm4, %v7399_v39  ;;  %v11290_v48 = vpop.f32.mrf.mxu0 }
 0x651   :  { %6837 = vst.msk [vmem:[#allocation4 + $0x24] sm:$0xf] %vm335_vm3, %v6793_v61  ;;  %6938 = vrot.lane.b32.xlu0 %v10956_v35, %s11800_s19  ;;  %v11291_v25 = vadd.f32 %v11290_v48, %v11289_v42 }
 0x652   :  { %7064 = vrot.lane.b32.xlu1 %v10971_v56, %s11801_s17  ;;  %v7214_v17 = vld [vmem:[#allocation3 + $0xf2] sm:$0xff]  ;;  %v11292_v4 = vpop.f32.mrf.mxu0 }
 0x653   :  { %v7341_v60 = vld [vmem:[#allocation3 + $0xf0] sm:$0xff]  ;;  %v10957_v62 = vpack.c.bf16 %v7214_v17, %v7214_v17  ;;  %v7527_v1 = vpop.permute.xlu0 %7526  ;;  %v6475_v6 = vadd.f32 %v11291_v25, %v13907_v21 }
 0x654   :  { %v7469_v47 = vld [vmem:[#allocation3 + $0xf1] sm:$0xff]  ;;  %v10972_v33 = vpack.c.bf16 %v7341_v60, %v7341_v60  ;;  %v6921_v2 = vpop.permute.xlu1 %6920  ;;  %7572 = vst.msk [vmem:[#allocation4 + $0x1c] sm:$0xf] %vm594_vm5, %v7527_v1  ;;  %v11293_v13 = vpop.f32.mrf.mxu0 }
 0x655   :  { %v10988_v29 = vpack.c.bf16 %v7469_v47, %v7469_v47  ;;  %v11766_v3 = vld [vmem:[#allocation4 + $0x4] ss:$12 sps:$4 sm:$0xff]   ;;  %6965 = vst.msk [vmem:[#allocation4 + $0x24] sm:$0xf] %vm464_vm4, %v6921_v2  ;;  %7290 = vrot.lane.b32.xlu0 %v10957_v62, %s11798_s21  ;;  %v6572_v58 = vadd.f32 %v14094_v22, %v6475_v6  ;;  %v11294_v7 = vadd.f32 %v11293_v13, %v11292_v4 }
 0x656   :  { %7416 = vrot.lane.b32.xlu1 %v10972_v33, %s11800_s19  ;;  %7677 = vst.msk [vmem:[#allocation4 + $0x8c] sm:$0xf] %vm206_vm0, %v10957_v62  ;;  %6719 = vst.msk [vmem:[#allocation4 + $0x9c] sm:$0xf] %vm206_vm0, %v10972_v33  ;;  %8043 = vmatprep.mubr.bf16.mxu1 %v11766_v3  ;;  %v7342_v45 = vld [vmem:[#allocation3 + $0x100] sm:$0xff] }
 0x657   :  { %7198 = vst.msk [vmem:[#allocation4 + $0x94] sm:$0xf] %vm206_vm0, %v10988_v29  ;;  %v7470_v38 = vld [vmem:[#allocation3 + $0x101] sm:$0xff]  ;;  %8044 = vmatmul.mubr.bf16.vlgmr.msra.gmra.mxu1 %v11764_v8  ;;  %v10973_v14 = vpack.c.bf16 %v7342_v45, %v7342_v45  ;;  %v6795_v54 = vpop.permute.xlu0 %6794  ;;  %v6592_v43 = vmax.f32 %v6572_v58, 0.0  ;;  %v6478_v36 = vadd.f32 %v11294_v7, %v13907_v21 }
 0x658   :  { %v7215_v12 = vld [vmem:[#allocation3 + $0x102] sm:$0xff]  ;;  %v10989_v11 = vpack.c.bf16 %v7470_v38, %v7470_v38  ;;  %v7273_v24 = vpop.permute.xlu1 %7272  ;;  %6838 = vst.msk [vmem:[#allocation4 + $0x30] sm:$0xf] %vm335_vm3, %v6795_v54 }
 0x659   :  { %v10958_v18 = vpack.c.bf16 %v7215_v12, %v7215_v12  ;;  %7317 = vst.msk [vmem:[#allocation4 + $0x28] sm:$0xf] %vm335_vm3, %v7273_v24  ;;  %7066 = vrot.lane.b32.xlu0 %v10972_v33, %s11801_s17  ;;  %v6575_v15 = vadd.f32 %v14106_v63, %v6478_v36 }
 0x65a   :  { %7544 = vrot.lane.b32.xlu1 %v10988_v29, %s11801_s17  ;;  %6720 = vst.msk [vmem:[#allocation4 + $0xa8] sm:$0xf] %vm206_vm0, %v10973_v14  ;;  %7199 = vst.msk [vmem:[#allocation4 + $0xa0] sm:$0xf] %vm206_vm0, %v10989_v11 }
 0x65b   :  { %7678 = vst.msk [vmem:[#allocation4 + $0x98] sm:$0xf] %vm206_vm0, %v10958_v18  ;;  %v6923_v55 = vpop.permute.xlu0 %6922  ;;  %v6593_v23 = vmax.f32 %v6575_v15, 0.0  ;;  %v7686_v10 = vld [vmem:[#allocation4 + $0x18] sm:$0xff] }
 0x65c   :  { %6608 = vst.msk [vmem:[#allocation3 + $0x111] sm:$0xff] %vm44_vm1, %v6592_v43  ;;  %v7049_v22 = vpop.permute.xlu1 %7048 }
 0x65d   :  { %v11767_v53 = vld [vmem:[#allocation4 + $0x80] ss:$12 sps:$4 sm:$0xff]   ;;  %6966 = vst.msk [vmem:[#allocation4 + $0x30] sm:$0xf] %vm464_vm4, %v6923_v55  ;;  %7418 = vrot.lane.b32.xlu0 %v10973_v14, %s11800_s19 }
 0x65e   :  { %7093 = vst.msk [vmem:[#allocation4 + $0x24] sm:$0xf] %vm594_vm5, %v7049_v22  ;;  %6812 = vrot.lane.b32.xlu1 %v10988_v29, %s11798_s21  ;;  %11516 = vmatmul.mubr.msk.bf16.gmra.mxu0 %vm44_vm1, %v11767_v53 }
 0x65f   :  { %6609 = vst.msk [vmem:[#allocation3 + $0x121] sm:$0xff] %vm44_vm1, %v6593_v23  ;;  %v7275_v21 = vpop.permute.xlu0 %7274 }
 0x660   :  { %v7401_v28 = vpop.permute.xlu1 %7400  ;;  %7318 = vst.msk [vmem:[#allocation4 + $0x34] sm:$0xf] %vm335_vm3, %v7275_v21 }
 0x661   :  { %7445 = vst.msk [vmem:[#allocation4 + $0x28] sm:$0xf] %vm464_vm4, %v7401_v28  ;;  %7546 = vrot.lane.b32.xlu0 %v10989_v11, %s11801_s17 }
 0x662   :  { %6940 = vrot.lane.b32.xlu1 %v10957_v62, %s11800_s19  ;;  %v7473_v62 = vld [vmem:[#allocation3 + $0x131] sm:$0xff] }
 0x663   :  { %v7216_v56 = vld [vmem:[#allocation3 + $0x112] sm:$0xff]  ;;  %v7051_v30 = vpop.permute.xlu0 %7050  ;;  %v10992_v25 = vpack.c.bf16 %v7473_v62, %v7473_v62 }
 0x664   :  { %v7343_v50 = vld [vmem:[#allocation3 + $0x110] sm:$0xff]  ;;  %v7529_v34 = vpop.permute.xlu1 %7528  ;;  %v10959_v41 = vpack.c.bf16 %v7216_v56, %v7216_v56  ;;  %7094 = vst.msk [vmem:[#allocation4 + $0x30] sm:$0xf] %vm594_vm5, %v7051_v30 }
 0x665   :  { %v7471_v35 = vld [vmem:[#allocation3 + $0x111] sm:$0xff]  ;;  %v10974_v44 = vpack.c.bf16 %v7343_v50, %v7343_v50  ;;  %7573 = vst.msk [vmem:[#allocation4 + $0x28] sm:$0xf] %vm594_vm5, %v7529_v34  ;;  %6814 = vrot.lane.b32.xlu0 %v10989_v11, %s11798_s21 }
 0x666   :  { %v10990_v16 = vpack.c.bf16 %v7471_v35, %v7471_v35  ;;  %7292 = vrot.lane.b32.xlu1 %v10958_v18, %s11798_s21  ;;  %7679 = vst.msk [vmem:[#allocation4 + $0xa4] sm:$0xf] %vm206_vm0, %v10959_v41  ;;  %v7600_v49 = vld [vmem:[#allocation3 + $0x122] sm:$0xff] }
 0x667   :  { %6721 = vst.msk [vmem:[#allocation4 + $0xb4] sm:$0xf] %vm206_vm0, %v10974_v44  ;;  %v7472_v5 = vld [vmem:[#allocation3 + $0x121] sm:$0xff]  ;;  %v7403_v40 = vpop.permute.xlu0 %7402  ;;  %v11007_v63 = vpack.c.bf16 %v7600_v49, %v7600_v49 }
 0x668   :  { %7200 = vst.msk [vmem:[#allocation4 + $0xac] sm:$0xf] %vm206_vm0, %v10990_v16  ;;  %v6797_v51 = vpop.permute.xlu1 %6796  ;;  %v10991_v0 = vpack.c.bf16 %v7472_v5, %v7472_v5  ;;  %v7344_v20 = vld [vmem:[#allocation3 + $0x120] sm:$0xff] }
 0x669   :  { %7446 = vst.msk [vmem:[#allocation4 + $0x34] sm:$0xf] %vm464_vm4, %v7403_v40  ;;  %6942 = vrot.lane.b32.xlu0 %v10958_v18, %s11800_s19  ;;  %v10975_v39 = vpack.c.bf16 %v7344_v20, %v7344_v20  ;;  %v11789_v40 = vld [vmem:[%s14451_s3] sm:$0xff]  }
 0x66a   :  { %6839 = vst.msk [vmem:[#allocation4 + $0x3c] sm:$0xf] %vm335_vm3, %v6797_v51  ;;  %7068 = vrot.lane.b32.xlu1 %v10973_v14, %s11801_s17 }
 0x66b   :  { %7680 = vst.msk [vmem:[#allocation4 + $0xb0] sm:$0xf] %vm206_vm0, %v11007_v63  ;;  %7201 = vst.msk [vmem:[#allocation4 + $0xb8] sm:$0xf] %vm206_vm0, %v10991_v0  ;;  %v7531_v52 = vpop.permute.xlu0 %7530 }
 0x66c   :  { %v6925_v26 = vpop.permute.xlu1 %6924  ;;  %v7688_v27 = vld [vmem:[#allocation4 + $0x24] sm:$0xff]  ;;  %7574 = vst.msk [vmem:[#allocation4 + $0x34] sm:$0xf] %vm594_vm5, %v7531_v52 }
 0x66d   :  { %v11768_v31 = vld [vmem:[#allocation4 + $0x1c] ss:$12 sps:$4 sm:$0xff]   ;;  %6967 = vst.msk [vmem:[#allocation4 + $0x3c] sm:$0xf] %vm464_vm4, %v6925_v26  ;;  %7294 = vrot.lane.b32.xlu0 %v10959_v41, %s11798_s21  ;;  %v11770_v32 = vld [vmem:[#allocation4 + $0x98] ss:$12 sps:$4 sm:$0xff]   ;;  %v10213_v9 = vcombine.low %v7686_v10, %v7688_v27 }
 0x66e   :  { %7420 = vrot.lane.b32.xlu1 %v10974_v44, %s11800_s19  ;;  %8051 = vmatprep.mubr.bf16.mxu1 %v11768_v31 }
 0x66f   :  { %11519 = vmatprep.mubr.msk.bf16.mxu0 %vm44_vm1, %v11770_v32  ;;  %8052 = vmatmul.mubr.bf16.gmra.mxu1 %v10213_v9  ;;  %v6799_v57 = vpop.permute.xlu0 %6798 }
 0x670   :  { %v7277_v59 = vpop.permute.xlu1 %7276  ;;  %6840 = vst.msk [vmem:[#allocation4 + $0x48] sm:$0xf] %vm335_vm3, %v6799_v57 }
 0x671   :  { %7319 = vst.msk [vmem:[#allocation4 + $0x40] sm:$0xf] %vm335_vm3, %v7277_v59  ;;  %7070 = vrot.lane.b32.xlu0 %v10974_v44, %s11801_s17 }
 0x672   :  { %7548 = vrot.lane.b32.xlu1 %v10990_v16, %s11801_s17  ;;  %v11771_v37 = vld [vmem:[#allocation4 + $0xb0] ss:$12 sps:$4 sm:$0xff]  }
 0x673   :  { %11520 = vmatmul.mubr.msk.bf16.gmra.mxu0 %vm44_vm1, %v11771_v37  ;;  %v6927_v61 = vpop.permute.xlu0 %6926  ;;  %v7690_v8 = vld [vmem:[#allocation4 + $0x30] sm:$0xff] }
 0x674   :  { %v7053_v42 = vpop.permute.xlu1 %7052  ;;  %6968 = vst.msk [vmem:[#allocation4 + $0x48] sm:$0xf] %vm464_vm4, %v6927_v61 }
 0x675   :  { %7095 = vst.msk [vmem:[#allocation4 + $0x3c] sm:$0xf] %vm594_vm5, %v7053_v42  ;;  %7422 = vrot.lane.b32.xlu0 %v10975_v39, %s11800_s19 }
 0x676   :  { %6816 = vrot.lane.b32.xlu1 %v10990_v16, %s11798_s21 }
 0x677   :  { %v7279_v17 = vpop.permute.xlu0 %7278 }
 0x678   :  { %v7405_v60 = vpop.permute.xlu1 %7404  ;;  %7320 = vst.msk [vmem:[#allocation4 + $0x4c] sm:$0xf] %vm335_vm3, %v7279_v17 }
 0x679   :  { %7447 = vst.msk [vmem:[#allocation4 + $0x40] sm:$0xf] %vm464_vm4, %v7405_v60  ;;  %7550 = vrot.lane.b32.xlu0 %v10991_v0, %s11801_s17 }
 0x67a   :  { %6944 = vrot.lane.b32.xlu1 %v10959_v41, %s11800_s19  ;;  %v11788_v41 = vld [vmem:[%s14451_s3 + $0x8] sm:$0xff]   ;;  %s11803_s19 = smov 126  }
 0x67b   :  { %v7055_v47 = vpop.permute.xlu0 %7054  ;;  %11523 = vmatprep.subr.bf16.mxu0 %v11788_v41 }
 0x67c   :  { %v7533_v48 = vpop.permute.xlu1 %7532  ;;  %7096 = vst.msk [vmem:[#allocation4 + $0x48] sm:$0xf] %vm594_vm5, %v7055_v47  ;;  %11524 = vmatpush3.bf16.msra.mxu0 %v11788_v41 }
 0x67d   :  { %7575 = vst.msk [vmem:[#allocation4 + $0x40] sm:$0xf] %vm594_vm5, %v7533_v48  ;;  %11525 = vmatprep.subr.bf16.mxu0 %v11789_v40 }
 0x67e   :  { %7296 = vrot.lane.b32.xlu1 %v11007_v63, %s11798_s21 }
 0x67f   :  { %v7407_v33 = vpop.permute.xlu0 %7406 }
 0x680   :  { %v6801_v29 = vpop.permute.xlu1 %6800  ;;  %7448 = vst.msk [vmem:[#allocation4 + $0x4c] sm:$0xf] %vm464_vm4, %v7407_v33  ;;  %11526 = vmatpush3.bf16.msra.mxu0 %v11789_v40 }
 0x681   :  { %6841 = vst.msk [vmem:[#allocation4 + $0x54] sm:$0xf] %vm335_vm3, %v6801_v29 }
 0x682   :  { %7072 = vrot.lane.b32.xlu1 %v10975_v39, %s11801_s17 }
 0x683   :  { %v7535_v1 = vpop.permute.xlu0 %7534 }
 0x684   :  { %v6929_v2 = vpop.permute.xlu1 %6928  ;;  %v7692_v3 = vld [vmem:[#allocation4 + $0x3c] sm:$0xff]  ;;  %7576 = vst.msk [vmem:[#allocation4 + $0x4c] sm:$0xf] %vm594_vm5, %v7535_v1 }
 0x685   :  { %v11772_v4 = vld [vmem:[#allocation4 + $0x34] ss:$12 sps:$4 sm:$0xff]   ;;  %6969 = vst.msk [vmem:[#allocation4 + $0x54] sm:$0xf] %vm464_vm4, %v6929_v2  ;;  %v10216_v6 = vcombine.low %v7690_v8, %v7692_v3 }
 0x686   :  { %7552 = vrot.lane.b32.xlu1 %v10992_v25, %s11801_s17  ;;  %8059 = vmatprep.mubr.bf16.mxu1 %v11772_v4 }
 0x687   :  { %8060 = vmatmul.mubr.bf16.gmra.mxu1 %v10216_v6  ;;  %v6803_v38 = vpop.permute.xlu0 %6802 }
 0x688   :  { %v7281_v45 = vpop.permute.xlu1 %7280  ;;  %6842 = vst.msk [vmem:[#allocation4 + $0x60] sm:$0xf] %vm335_vm3, %v6803_v38 }
 0x689   :  { %7321 = vst.msk [vmem:[#allocation4 + $0x58] sm:$0xf] %vm335_vm3, %v7281_v45 }
 0x68a   :  { %7449 = vst.msk [vmem:[#allocation4 + $0x58] sm:$0xf] %vm464_vm4, %v13847_v19 }
 0x68b   :  { %v6931_v13 = vpop.permute.xlu0 %6930  ;;  %v7694_v7 = vld [vmem:[#allocation4 + $0x48] sm:$0xff] }
 0x68c   :  { %v7057_v12 = vpop.permute.xlu1 %7056  ;;  %6970 = vst.msk [vmem:[#allocation4 + $0x60] sm:$0xf] %vm464_vm4, %v6931_v13 }
 0x68d   :  { %7097 = vst.msk [vmem:[#allocation4 + $0x54] sm:$0xf] %vm594_vm5, %v7057_v12 }
 0x690   :  { %v7537_v14 = vpop.permute.xlu1 %7536 }
 0x691   :  { %7577 = vst.msk [vmem:[#allocation4 + $0x58] sm:$0xf] %vm594_vm5, %v7537_v14 }
 0x694   :  { %v14200_v11 = vpop.permute.xlu1 %7424 }
 0x696   :  { %v7283_v18 = vpop.permute.xlu0 %7282 }
 0x697   :  { %7322 = vst.msk [vmem:[#allocation4 + $0x64] sm:$0xf] %vm335_vm3, %v7283_v18  ;;  %v14258_v18 = vld [vmem:[%s14450_s2 + $0x4] ss:$0 sm:$0xff] }
 0x698   :  { %v6805_v58 = vpop.permute.xlu1 %6804  ;;  %v7696_v54 = vld [vmem:[#allocation4 + $0x54] sm:$0xff] }
 0x699   :  { %v11774_v24 = vld [vmem:[#allocation4 + $0x4c] ss:$12 sps:$4 sm:$0xff]   ;;  %6843 = vst.msk [vmem:[#allocation4 + $0x6c] sm:$0xf] %vm335_vm3, %v6805_v58  ;;  %v10219_v19 = vcombine.low %v7694_v7, %v7696_v54 }
 0x69a   :  { %8067 = vmatprep.mubr.bf16.mxu1 %v11774_v24  ;;  %v7059_v43 = vpop.permute.xlu0 %7058 }
 0x69b   :  { %8068 = vmatmul.mubr.bf16.gmra.mxu1 %v10219_v19  ;;  %7098 = vst.msk [vmem:[#allocation4 + $0x60] sm:$0xf] %vm594_vm5, %v7059_v43 }
 0x69c   :  { %v6933_v36 = vpop.permute.xlu1 %6932 }
 0x69d   :  { %6971 = vst.msk [vmem:[#allocation4 + $0x6c] sm:$0xf] %vm464_vm4, %v6933_v36 }
 0x69e   :  { %v7411_v15 = vpop.permute.xlu0 %7410 }
 0x69f   :  { %7450 = vst.msk [vmem:[#allocation4 + $0x64] sm:$0xf] %vm464_vm4, %v7411_v15 }
 0x6a0   :  { %v7285_v55 = vpop.permute.xlu1 %7284 }
 0x6a1   :  { %7323 = vst.msk [vmem:[#allocation4 + $0x70] sm:$0xf] %vm335_vm3, %v7285_v55 }
 0x6a2   :  { %v7539_v22 = vpop.permute.xlu0 %7538 }
 0x6a3   :  { %7578 = vst.msk [vmem:[#allocation4 + $0x64] sm:$0xf] %vm594_vm5, %v7539_v22  ;;  %v6610_v22 = vld [vmem:[#allocation2 + $0x11] sm:$0xff] }
 0x6a4   :  { %v7061_v53 = vpop.permute.xlu1 %7060 }
 0x6a5   :  { %7099 = vst.msk [vmem:[#allocation4 + $0x6c] sm:$0xf] %vm594_vm5, %v7061_v53 }
 0x6a6   :  { %v6807_v23 = vpop.permute.xlu0 %6806 }
 0x6a7   :  { %6844 = vst.msk [vmem:[#allocation4 + $0x78] sm:$0xf] %vm335_vm3, %v6807_v23 }
 0x6aa   :  { %v6935_v21 = vpop.permute.xlu0 %6934 }
 0x6ab   :  { %6972 = vst.msk [vmem:[#allocation4 + $0x78] sm:$0xf] %vm464_vm4, %v6935_v21  ;;  %v6611_v21 = vld [vmem:[#allocation2 + $0x21] sm:$0xff] }
 0x6ac   :  { %v11776_v16 = vld [vmem:[#allocation4 + $0x60] ss:$12 sps:$4 sm:$0xff]  }
 0x6af   :  { %v7287_v28 = vpop.permute.xlu0 %7286 }
 0x6b0   :  { %v7413_v56 = vpop.permute.xlu1 %7412  ;;  %7324 = vst.msk [vmem:[#allocation4 + $0x7c] sm:$0xf] %vm335_vm3, %v7287_v28 }
 0x6b1   :  { %7451 = vst.msk [vmem:[#allocation4 + $0x70] sm:$0xf] %vm464_vm4, %v7413_v56 }
 0x6b3   :  { %v7063_v50 = vpop.permute.xlu0 %7062 }
 0x6b4   :  { %v7541_v35 = vpop.permute.xlu1 %7540  ;;  %7100 = vst.msk [vmem:[#allocation4 + $0x78] sm:$0xf] %vm594_vm5, %v7063_v50  ;;  %v11509_v12 = vpop.f32.mrf.mxu0 }
 0x6b5   :  { %7579 = vst.msk [vmem:[#allocation4 + $0x70] sm:$0xf] %vm594_vm5, %v7541_v35 }
 0x6b6   :  { %v8142_v14 = vpop.f32.mrf.mxu0 }
 0x6b7   :  { %v7415_v30 = vpop.permute.xlu0 %7414 }
 0x6b8   :  { %7452 = vst.msk [vmem:[#allocation4 + $0x7c] sm:$0xf] %vm464_vm4, %v7415_v30  ;;  %v6809_v34 = vpop.permute.xlu1 %6808  ;;  %v11510_v24 = vpop.f32.mrf.mxu0 }
 0x6b9   :  { %6845 = vst.msk [vmem:[#allocation4 + $0x84] sm:$0xf] %vm335_vm3, %v6809_v34 }
 0x6ba   :  { %v8145_v55 = vpop.f32.mrf.mxu0 }
 0x6bb   :  { %v7543_v44 = vpop.permute.xlu0 %7542 }
 0x6bc   :  { %v11778_v49 = vld [vmem:[#allocation4 + $0x64] ss:$12 sps:$4 sm:$0xff]   ;;  %7580 = vst.msk [vmem:[#allocation4 + $0x7c] sm:$0xf] %vm594_vm5, %v7543_v44  ;;  %v6937_v5 = vpop.permute.xlu1 %6936 }
 0x6bd   :  { %6973 = vst.msk [vmem:[#allocation4 + $0x84] sm:$0xf] %vm464_vm4, %v6937_v5  ;;  %8075 = vmatprep.mubr.bf16.mxu1 %v11778_v49 }
 0x6be   :  { %8076 = vmatmul.mubr.bf16.gmra.mxu1 %v11776_v16 }
 0x6bf   :  { %v6811_v51 = vpop.permute.xlu0 %6810 }
 0x6c0   :  { %6846 = vst.msk [vmem:[#allocation4 + $0x90] sm:$0xf] %vm335_vm3, %v6811_v51  ;;  %v7289_v63 = vpop.permute.xlu1 %7288 }
 0x6c1   :  { %7325 = vst.msk [vmem:[#allocation4 + $0x88] sm:$0xf] %vm335_vm3, %v7289_v63  ;;  %v6612_v63 = vld [vmem:[#allocation2 + $0x31] sm:$0xff] }
 0x6c3   :  { %v6939_v0 = vpop.permute.xlu0 %6938 }
 0x6c4   :  { %6974 = vst.msk [vmem:[#allocation4 + $0x90] sm:$0xf] %vm464_vm4, %v6939_v0  ;;  %v7065_v52 = vpop.permute.xlu1 %7064 }
 0x6c5   :  { %7101 = vst.msk [vmem:[#allocation4 + $0x84] sm:$0xf] %vm594_vm5, %v7065_v52 }
 0x6c7   :  { %v7291_v26 = vpop.permute.xlu0 %7290 }
 0x6c8   :  { %7326 = vst.msk [vmem:[#allocation4 + $0x94] sm:$0xf] %vm335_vm3, %v7291_v26  ;;  %v7417_v10 = vpop.permute.xlu1 %7416  ;;  %v6613_v26 = vld [vmem:[#allocation2 + $0x41] sm:$0xff] }
 0x6c9   :  { %7453 = vst.msk [vmem:[#allocation4 + $0x88] sm:$0xf] %vm464_vm4, %v7417_v10 }
 0x6cb   :  { %v7067_v27 = vpop.permute.xlu0 %7066 }
 0x6cc   :  { %7102 = vst.msk [vmem:[#allocation4 + $0x90] sm:$0xf] %vm594_vm5, %v7067_v27  ;;  %v7545_v31 = vpop.permute.xlu1 %7544  ;;  %v11779_v20 = vld [vmem:[#allocation4 + $0x78] ss:$12 sps:$4 sm:$0xff]  }
 0x6cd   :  { %7581 = vst.msk [vmem:[#allocation4 + $0x88] sm:$0xf] %vm594_vm5, %v7545_v31 }
 0x6cf   :  { %v7419_v32 = vpop.permute.xlu0 %7418 }
 0x6d0   :  { %7454 = vst.msk [vmem:[#allocation4 + $0x94] sm:$0xf] %vm464_vm4, %v7419_v32  ;;  %v6813_v9 = vpop.permute.xlu1 %6812 }
 0x6d1   :  { %6847 = vst.msk [vmem:[#allocation4 + $0x9c] sm:$0xf] %vm335_vm3, %v6813_v9  ;;  %v11513_v9 = vpop.f32.mrf.mxu0 }
 0x6d3   :  { %v7547_v57 = vpop.permute.xlu0 %7546 }
 0x6d4   :  { %7582 = vst.msk [vmem:[#allocation4 + $0x94] sm:$0xf] %vm594_vm5, %v7547_v57  ;;  %v6941_v59 = vpop.permute.xlu1 %6940  ;;  %v11781_v37 = vld [vmem:[#allocation4 + $0x7c] ss:$12 sps:$4 sm:$0xff]  }
 0x6d5   :  { %6975 = vst.msk [vmem:[#allocation4 + $0x9c] sm:$0xf] %vm464_vm4, %v6941_v59  ;;  %8083 = vmatprep.mubr.bf16.mxu1 %v11781_v37  ;;  %v8158_v59 = vpop.f32.mrf.mxu0 }
 0x6d6   :  { %8084 = vmatmul.mubr.bf16.gmra.mxu1 %v11779_v20 }
 0x6d7   :  { %v6815_v39 = vpop.permute.xlu0 %6814 }
 0x6d8   :  { %6848 = vst.msk [vmem:[#allocation4 + $0xa8] sm:$0xf] %vm335_vm3, %v6815_v39  ;;  %v7293_v61 = vpop.permute.xlu1 %7292 }
 0x6d9   :  { %7327 = vst.msk [vmem:[#allocation4 + $0xa0] sm:$0xf] %vm335_vm3, %v7293_v61 }
 0x6db   :  { %v6943_v42 = vpop.permute.xlu0 %6942 }
 0x6dc   :  { %6976 = vst.msk [vmem:[#allocation4 + $0xa8] sm:$0xf] %vm464_vm4, %v6943_v42  ;;  %v7069_v17 = vpop.permute.xlu1 %7068  ;;  %v11514_v42 = vpop.f32.mrf.mxu0 }
 0x6dd   :  { %7103 = vst.msk [vmem:[#allocation4 + $0x9c] sm:$0xf] %vm594_vm5, %v7069_v17 }
 0x6df   :  { %v7295_v60 = vpop.permute.xlu0 %7294 }
 0x6e0   :  { %7328 = vst.msk [vmem:[#allocation4 + $0xac] sm:$0xf] %vm335_vm3, %v7295_v60  ;;  %v7421_v47 = vpop.permute.xlu1 %7420 }
 0x6e1   :  { %7455 = vst.msk [vmem:[#allocation4 + $0xa0] sm:$0xf] %vm464_vm4, %v7421_v47 }
 0x6e3   :  { %v7071_v48 = vpop.permute.xlu0 %7070 }
 0x6e4   :  { %7104 = vst.msk [vmem:[#allocation4 + $0xa8] sm:$0xf] %vm594_vm5, %v7071_v48  ;;  %v7549_v62 = vpop.permute.xlu1 %7548  ;;  %v11782_v2 = vld [vmem:[#allocation4 + $0x90] ss:$12 sps:$4 sm:$0xff]  }
 0x6e5   :  { %7583 = vst.msk [vmem:[#allocation4 + $0xa0] sm:$0xf] %vm594_vm5, %v7549_v62  ;;  %v8161_v62 = vpop.f32.mrf.mxu0 }
 0x6e7   :  { %v7423_v33 = vpop.permute.xlu0 %7422 }
 0x6e8   :  { %7456 = vst.msk [vmem:[#allocation4 + $0xac] sm:$0xf] %vm464_vm4, %v7423_v33  ;;  %v6817_v29 = vpop.permute.xlu1 %6816  ;;  %v6614_v33 = vld [vmem:[#allocation2 + $0x51] sm:$0xff] }
 0x6e9   :  { %6849 = vst.msk [vmem:[#allocation4 + $0xb4] sm:$0xf] %vm335_vm3, %v6817_v29 }
 0x6eb   :  { %v7551_v25 = vpop.permute.xlu0 %7550 }
 0x6ec   :  { %7584 = vst.msk [vmem:[#allocation4 + $0xac] sm:$0xf] %vm594_vm5, %v7551_v25  ;;  %v6945_v1 = vpop.permute.xlu1 %6944  ;;  %v11784_v8 = vld [vmem:[#allocation4 + $0x94] ss:$12 sps:$4 sm:$0xff]  }
 0x6ed   :  { %6977 = vst.msk [vmem:[#allocation4 + $0xb4] sm:$0xf] %vm464_vm4, %v6945_v1  ;;  %8091 = vmatprep.mubr.bf16.mxu1 %v11784_v8  ;;  %v6615_v1 = vld [vmem:[#allocation2 + $0x61] sm:$0xff] }
 0x6ee   :  { %8092 = vmatmul.mubr.bf16.gmra.mxu1 %v11782_v2 }
 0x6f0   :  { %v7297_v3 = vpop.permute.xlu1 %7296 }
 0x6f1   :  { %7329 = vst.msk [vmem:[#allocation4 + $0xb8] sm:$0xf] %vm335_vm3, %v7297_v3 }
 0x6f2   :  { %7457 = vst.msk [vmem:[#allocation4 + $0xb8] sm:$0xf] %vm464_vm4, %v14200_v11 }
 0x6f4   :  { %v7073_v4 = vpop.permute.xlu1 %7072 }
 0x6f5   :  { %7105 = vst.msk [vmem:[#allocation4 + $0xb4] sm:$0xf] %vm594_vm5, %v7073_v4 }
 0x6f8   :  { %v7553_v6 = vpop.permute.xlu1 %7552 }
 0x6f9   :  { %7585 = vst.msk [vmem:[#allocation4 + $0xb8] sm:$0xf] %vm594_vm5, %v7553_v6 }
 0x6fc   :  { %v11785_v45 = vld [vmem:[#allocation4 + $0xa8] ss:$12 sps:$4 sm:$0xff]  }
 0x700   :  { %v11787_v38 = vld [vmem:[#allocation4 + $0xac] ss:$12 sps:$4 sm:$0xff]  }
 0x701   :  { %8099 = vmatprep.mubr.bf16.mxu1 %v11787_v38 }
 0x702   :  { %8100 = vmatmul.mubr.bf16.gmra.mxu1 %v11785_v45 }
 0x717   :  { %v11321_v13 = vpop.f32.mrf.mxu1 }
 0x719   :  { %v11322_v58 = vpop.f32.mrf.mxu1 }
 0x71a   :  { %v11323_v11 = vadd.f32 %v11322_v58, %v11321_v13 }
 0x71b   :  { %v11324_v7 = vpop.f32.mrf.mxu1 }
 0x71c   :  { %v8046_v54 = vadd.f32 %v11323_v11, %v14258_v18 }
 0x71d   :  { %v11325_v19 = vpop.f32.mrf.mxu1 }
 0x71e   :  { %v8143_v43 = vadd.f32 %v8142_v14, %v8046_v54  ;;  %v11326_v36 = vadd.f32 %v11325_v19, %v11324_v7  ;;  %v6616_v54 = vld [vmem:[#allocation2 + $0x71] sm:$0xff] }
 0x720   :  { %v8049_v15 = vadd.f32 %v11326_v36, %v14258_v18  ;;  %v8205_v53 = vadd.f32 %v8143_v43, %v6610_v22  ;;  %v6617_v43 = vld [vmem:[#allocation2 + $0x81] sm:$0xff] }
 0x722   :  { %v8146_v23 = vadd.f32 %v8145_v55, %v8049_v15  ;;  %v8221_v56 = vmax.f32 %v8205_v53, 0.0  ;;  %v11517_v53 = vpop.f32.mrf.mxu0 }
 0x724   :  { %v8206_v28 = vadd.f32 %v8146_v23, %v6611_v21  ;;  %v8174_v21 = vpop.f32.mrf.mxu0 }
 0x726   :  { %v8222_v50 = vmax.f32 %v8206_v28, 0.0 }
 0x728   :  { %v8237_v35 = vpack.c.bf16 %v8222_v50, %v8221_v56 }
 0x72a   :  { %11527 = vmatprep.mubr.msk.bf16.mxu0 %vm44_vm1, %v8237_v35 }
 0x72f   :  { %v11327_v30 = vpop.f32.mrf.mxu1 }
 0x731   :  { %v11328_v34 = vpop.f32.mrf.mxu1 }
 0x732   :  { %v11329_v41 = vadd.f32 %v11328_v34, %v11327_v30  ;;  %v11518_v30 = vpop.f32.mrf.mxu0 }
 0x733   :  { %v11330_v44 = vpop.f32.mrf.mxu1 }
 0x734   :  { %v8054_v16 = vadd.f32 %v11329_v41, %v14258_v18 }
 0x735   :  { %v11331_v49 = vpop.f32.mrf.mxu1 }
 0x736   :  { %v8151_v5 = vadd.f32 %v11509_v12, %v8054_v16  ;;  %v11332_v40 = vadd.f32 %v11331_v49, %v11330_v44  ;;  %v8177_v49 = vpop.f32.mrf.mxu0 }
 0x738   :  { %v8057_v51 = vadd.f32 %v11332_v40, %v14258_v18  ;;  %v8207_v0 = vadd.f32 %v8151_v5, %v6612_v63  ;;  %v6618_v5 = vld [vmem:[#allocation2 + $0xb1] sm:$0xff]  ;;  %v6619_v63 = vld [vmem:[#allocation2 + $0xc1] sm:$0xff] }
 0x73a   :  { %v8154_v52 = vadd.f32 %v11510_v24, %v8057_v51  ;;  %v8223_v27 = vmax.f32 %v8207_v0, 0.0 }
 0x73c   :  { %v8208_v10 = vadd.f32 %v8154_v52, %v6613_v26 }
 0x73e   :  { %v8224_v31 = vmax.f32 %v8208_v10, 0.0 }
 0x740   :  { %v8238_v32 = vpack.c.bf16 %v8224_v31, %v8223_v27 }
 0x742   :  { %11528 = vmatmul.mubr.msk.bf16.vlgmr.msra.gmra.mxu0 %vm44_vm1, %v8238_v32 }
 0x747   :  { %v11333_v57 = vpop.f32.mrf.mxu1 }
 0x749   :  { %v11334_v20 = vpop.f32.mrf.mxu1 }
 0x74a   :  { %v11335_v37 = vadd.f32 %v11334_v20, %v11333_v57 }
 0x74b   :  { %v11336_v39 = vpop.f32.mrf.mxu1 }
 0x74c   :  { %v8062_v61 = vadd.f32 %v11335_v37, %v14258_v18 }
 0x74d   :  { %v11337_v17 = vpop.f32.mrf.mxu1 }
 0x74e   :  { %v8159_v60 = vadd.f32 %v8158_v59, %v8062_v61  ;;  %v11338_v47 = vadd.f32 %v11337_v17, %v11336_v39  ;;  %v6620_v61 = vld [vmem:[#allocation2 + $0xd1] sm:$0xff] }
 0x750   :  { %v8065_v48 = vadd.f32 %v11338_v47, %v14258_v18  ;;  %v8209_v29 = vadd.f32 %v8159_v60, %v6614_v33  ;;  %v6621_v60 = vld [vmem:[#allocation2 + $0xe1] sm:$0xff] }
 0x752   :  { %v8162_v25 = vadd.f32 %v8161_v62, %v8065_v48  ;;  %v8225_v8 = vmax.f32 %v8209_v29, 0.0  ;;  %v11521_v29 = vpop.f32.mrf.mxu0 }
 0x754   :  { %v8210_v2 = vadd.f32 %v8162_v25, %v6615_v1  ;;  %v8190_v1 = vpop.f32.mrf.mxu0 }
 0x756   :  { %v8226_v3 = vmax.f32 %v8210_v2, 0.0 }
 0x758   :  { %v8239_v4 = vpack.c.bf16 %v8226_v3, %v8225_v8 }
 0x75a   :  { %11531 = vmatprep.mubr.msk.bf16.mxu0 %vm44_vm1, %v8239_v4 }
 0x75b   :  { %v11339_v6 = vpop.f32.mrf.mxu1 }
 0x75d   :  { %v11340_v45 = vpop.f32.mrf.mxu1 }
 0x75e   :  { %v11341_v38 = vadd.f32 %v11340_v45, %v11339_v6  ;;  %v11522_v6 = vpop.f32.mrf.mxu0 }
 0x75f   :  { %v11342_v12 = vpop.f32.mrf.mxu1 }
 0x760   :  { %v8070_v13 = vadd.f32 %v11341_v38, %v14258_v18 }
 0x761   :  { %v11343_v14 = vpop.f32.mrf.mxu1 }
 0x762   :  { %v8167_v58 = vadd.f32 %v11513_v9, %v8070_v13  ;;  %v11344_v11 = vadd.f32 %v11343_v14, %v11342_v12  ;;  %v8193_v14 = vpop.f32.mrf.mxu0 }
 0x764   :  { %v8073_v7 = vadd.f32 %v11344_v11, %v14258_v18  ;;  %v8211_v24 = vadd.f32 %v8167_v58, %v6616_v54  ;;  %v6622_v58 = vld [vmem:[#allocation2 + $0xf1] sm:$0xff]  ;;  %v6623_v54 = vld [vmem:[#allocation2 + $0x101] sm:$0xff] }
 0x766   :  { %v8170_v19 = vadd.f32 %v11514_v42, %v8073_v7  ;;  %v8227_v15 = vmax.f32 %v8211_v24, 0.0 }
 0x768   :  { %v8212_v36 = vadd.f32 %v8170_v19, %v6617_v43 }
 0x76a   :  { %v8228_v55 = vmax.f32 %v8212_v36, 0.0 }
 0x76c   :  { %v8240_v22 = vpack.c.bf16 %v8228_v55, %v8227_v15 }
 0x76e   :  { %11532 = vmatmul.mubr.msk.bf16.gmra.mxu0 %vm44_vm1, %v8240_v22 }
 0x77e   :  { %v11345_v23 = vpop.f32.mrf.mxu1 }
 0x780   :  { %v11346_v28 = vpop.f32.mrf.mxu1 }
 0x781   :  { %v11347_v56 = vadd.f32 %v11346_v28, %v11345_v23 }
 0x782   :  { %v11348_v50 = vpop.f32.mrf.mxu1 }
 0x783   :  { %v8078_v35 = vadd.f32 %v11347_v56, %v14258_v18 }
 0x784   :  { %v11349_v34 = vpop.f32.mrf.mxu1 }
 0x785   :  { %v8175_v41 = vadd.f32 %v8174_v21, %v8078_v35  ;;  %v11350_v44 = vadd.f32 %v11349_v34, %v11348_v50 }
 0x787   :  { %v8081_v16 = vadd.f32 %v11350_v44, %v14258_v18  ;;  %v8213_v40 = vadd.f32 %v8175_v41, %v6618_v5  ;;  %v6625_v44 = vld [vmem:[#allocation2 + $0x121] sm:$0xff] }
 0x789   :  { %v8178_v51 = vadd.f32 %v8177_v49, %v8081_v16  ;;  %v8229_v52 = vmax.f32 %v8213_v40, 0.0 }
 0x78b   :  { %v8214_v0 = vadd.f32 %v8178_v51, %v6619_v63  ;;  %v14292_v51 = vld [vmem:[%s14453_s7 + $0x10] sm:$0xff]  ;;  %v14299_v63 = vld [vmem:[%s14453_s7 + $0x18] sm:$0xff] }
 0x78c   :  { %8544 = vrot.lane.b32.xlu1 %v14292_v51, %s11802_s26  ;;  %8546 = vrot.lane.b32.xlu0 %v14299_v63, %s11802_s26 }
 0x78d   :  { %v8230_v26 = vmax.f32 %v8214_v0, 0.0  ;;  %v14304_v0 = vld [vmem:[%s14453_s7] sm:$0xff] }
 0x78f   :  { %v8241_v10 = vpack.c.bf16 %v8230_v26, %v8229_v52  ;;  %v14313_v26 = vld [vmem:[%s14453_s7 + $0x8] sm:$0xff] }
 0x790   :  { %8540 = vrot.lane.b32.xlu1 %v14304_v0, %s11802_s26  ;;  %8542 = vrot.lane.b32.xlu0 %v14313_v26, %s11802_s26 }
 0x791   :  { %11535 = vmatprep.mubr.msk.bf16.mxu0 %vm44_vm1, %v8241_v10 }
 0x796   :  { %v11351_v27 = vpop.f32.mrf.mxu1 }
 0x798   :  { %v11352_v31 = vpop.f32.mrf.mxu1 }
 0x799   :  { %v11353_v32 = vadd.f32 %v11352_v31, %v11351_v27 }
 0x79a   :  { %v11354_v9 = vpop.f32.mrf.mxu1 }
 0x79b   :  { %v8086_v57 = vadd.f32 %v11353_v32, %v14258_v18  ;;  %v14320_v32 = vld [vmem:[%s14454_s4] ss:$0 sm:$0xff] }
 0x79c   :  { %v11355_v59 = vpop.f32.mrf.mxu1 }
 0x79d   :  { %v8183_v20 = vadd.f32 %v11517_v53, %v8086_v57  ;;  %v11356_v37 = vadd.f32 %v11355_v59, %v11354_v9  ;;  %v11790_v53 = vld [vmem:[%s14452_s5] sm:$0xff]  }
 0x79e   :  { %11551 = vmatprep.mubr.msk.bf16.mxu1 %vm8440_vm6, %v11790_v53 }
 0x79f   :  { %v8089_v39 = vadd.f32 %v11356_v37, %v14258_v18  ;;  %v8215_v42 = vadd.f32 %v8183_v20, %v6620_v61 }
 0x7a1   :  { %v8186_v17 = vadd.f32 %v11518_v30, %v8089_v39  ;;  %v8231_v48 = vmax.f32 %v8215_v42, 0.0  ;;  %v6624_v30 = vld [vmem:[#allocation2 + $0x111] sm:$0xff] }
 0x7a3   :  { %v8216_v47 = vadd.f32 %v8186_v17, %v6621_v60 }
 0x7a5   :  { %v8232_v62 = vmax.f32 %v8216_v47, 0.0 }
 0x7a7   :  { %v8242_v33 = vpack.c.bf16 %v8232_v62, %v8231_v48 }
 0x7a9   :  { %11536 = vmatmul.mubr.msk.bf16.gmra.mxu0 %vm44_vm1, %v8242_v33 }
 0x7ae   :  { %v11357_v25 = vpop.f32.mrf.mxu1 }
 0x7b0   :  { %v11358_v2 = vpop.f32.mrf.mxu1 }
 0x7b1   :  { %v11359_v8 = vadd.f32 %v11358_v2, %v11357_v25 }
 0x7b2   :  { %v11360_v3 = vpop.f32.mrf.mxu1 }
 0x7b3   :  { %v8094_v4 = vadd.f32 %v11359_v8, %v14258_v18 }
 0x7b4   :  { %v11361_v45 = vpop.f32.mrf.mxu1 }
 0x7b5   :  { %v8191_v38 = vadd.f32 %v8190_v1, %v8094_v4  ;;  %v11362_v12 = vadd.f32 %v11361_v45, %v11360_v3 }
 0x7b7   :  { %v8097_v13 = vadd.f32 %v11362_v12, %v14258_v18  ;;  %v8217_v11 = vadd.f32 %v8191_v38, %v6622_v58  ;;  %v11791_v38 = vld [vmem:[%s14452_s5 + $0x8] sm:$0xff]   ;;  %v11792_v12 = vld [vmem:[%s14452_s5 + $0x10] sm:$0xff]  }
 0x7b9   :  { %v8194_v7 = vadd.f32 %v8193_v14, %v8097_v13  ;;  %v8233_v19 = vmax.f32 %v8217_v11, 0.0  ;;  %v11793_v13 = vld [vmem:[%s14452_s5 + $0x18] sm:$0xff]  }
 0x7bb   :  { %v8218_v24 = vadd.f32 %v8194_v7, %v6623_v54 }
 0x7bd   :  { %v8234_v43 = vmax.f32 %v8218_v24, 0.0 }
 0x7bf   :  { %v8243_v36 = vpack.c.bf16 %v8234_v43, %v8233_v19 }
 0x7c1   :  { %11539 = vmatprep.mubr.msk.bf16.mxu0 %vm44_vm1, %v8243_v36 }
 0x7c2   :  { %v11363_v15 = vpop.f32.mrf.mxu1 }
 0x7c4   :  { %v11364_v55 = vpop.f32.mrf.mxu1 }
 0x7c5   :  { %v11365_v22 = vadd.f32 %v11364_v55, %v11363_v15 }
 0x7c6   :  { %v11366_v23 = vpop.f32.mrf.mxu1 }
 0x7c7   :  { %v8102_v21 = vadd.f32 %v11365_v22, %v14258_v18 }
 0x7c8   :  { %v11367_v28 = vpop.f32.mrf.mxu1 }
 0x7c9   :  { %v8199_v56 = vadd.f32 %v11521_v29, %v8102_v21  ;;  %v11368_v50 = vadd.f32 %v11367_v28, %v11366_v23 }
 0x7cb   :  { %v8105_v35 = vadd.f32 %v11368_v50, %v14258_v18  ;;  %v8219_v34 = vadd.f32 %v8199_v56, %v6624_v30 }
 0x7cd   :  { %v8202_v41 = vadd.f32 %v11522_v6, %v8105_v35  ;;  %v8235_v49 = vmax.f32 %v8219_v34, 0.0 }
 0x7cf   :  { %v8220_v16 = vadd.f32 %v8202_v41, %v6625_v44 }
 0x7d1   :  { %v8236_v5 = vmax.f32 %v8220_v16, 0.0 }
 0x7d3   :  { %v8244_v40 = vpack.c.bf16 %v8236_v5, %v8235_v49 }
 0x7d5   :  { %11540 = vmatmul.mubr.msk.bf16.gmra.mxu0 %vm44_vm1, %v8244_v40 }
 0x7d6   :  { %11585 = vmatprep.mubr.msk.bf16.mxu0 %vm8440_vm6, %v11790_v53 }
 0x802   :  { %v11529_v18 = vpop.f32.mrf.mxu0 }
 0x803   :  { %v8335_v47 = vadd.f32 %v11529_v18, %v14320_v32 }
 0x804   :  { %v8326_v52 = vpop.f32.mrf.mxu0 }
 0x805   :  { %v8391_v2 = vmax.f32 %v8335_v47, 0.0  ;;  %v8327_v8 = vadd.f32 %v14320_v32, %v8326_v52 }
 0x806   :  { %v11530_v10 = vpop.f32.mrf.mxu0 }
 0x807   :  { %v8338_v61 = vadd.f32 %v11530_v10, %v14320_v32  ;;  %v8389_v6 = vmax.f32 %v8327_v8, 0.0 }
 0x808   :  { %v8329_v27 = vpop.f32.mrf.mxu0 }
 0x809   :  { %v8392_v29 = vmax.f32 %v8338_v61, 0.0  ;;  %v8330_v25 = vadd.f32 %v14320_v32, %v8329_v27  ;;  %v8545_v27 = vpop.permute.xlu1 %8544 }
 0x80b   :  { %v8417_v3 = vpack.c.bf16 %v8392_v29, %v8391_v2  ;;  %v8390_v4 = vmax.f32 %v8330_v25, 0.0 }
 0x80d   :  { %v8416_v45 = vpack.c.bf16 %v8390_v4, %v8389_v6 }
 0x82e   :  { %v11533_v31 = vpop.f32.mrf.mxu0 }
 0x82f   :  { %v8351_v57 = vadd.f32 %v11533_v31, %v14320_v32 }
 0x830   :  { %v8342_v9 = vpop.f32.mrf.mxu0 }
 0x831   :  { %v8343_v20 = vadd.f32 %v14320_v32, %v8342_v9  ;;  %v8395_v42 = vmax.f32 %v8351_v57, 0.0  ;;  %v8547_v9 = vpop.permute.xlu0 %8546 }
 0x832   :  { %v11534_v59 = vpop.f32.mrf.mxu0 }
 0x833   :  { %v8354_v37 = vadd.f32 %v11534_v59, %v14320_v32  ;;  %v8393_v48 = vmax.f32 %v8343_v20, 0.0  ;;  %v8541_v59 = vpop.permute.xlu1 %8540 }
 0x834   :  { %v8345_v39 = vpop.f32.mrf.mxu0 }
 0x835   :  { %v8396_v17 = vmax.f32 %v8354_v37, 0.0  ;;  %v8346_v60 = vadd.f32 %v14320_v32, %v8345_v39  ;;  %v14364_v39 = vld [vmem:[%s14455_s8] sm:$0xff] }
 0x837   :  { %v8419_v62 = vpack.c.bf16 %v8396_v17, %v8395_v42  ;;  %v8394_v33 = vmax.f32 %v8346_v60, 0.0  ;;  %v8543_v60 = vpop.permute.xlu0 %8542 }
 0x839   :  { %v8418_v1 = vpack.c.bf16 %v8394_v33, %v8393_v48  ;;  %11543 = vmatprep.subr.bf16.mxu1 %v8419_v62 }
 0x83a   :  { %11544 = vmatpush3.bf16.msra.mxu1 %v8419_v62 }
 0x83b   :  { %11545 = vmatprep.subr.bf16.mxu1 %v8418_v1 }
 0x83e   :  { %11546 = vmatpush3.bf16.msra.mxu1 %v8418_v1 }
 0x83f   :  { %11547 = vmatprep.subr.bf16.mxu1 %v8417_v3 }
 0x842   :  { %11548 = vmatpush3.bf16.msra.mxu1 %v8417_v3 }
 0x843   :  { %11549 = vmatprep.subr.bf16.mxu1 %v8416_v45 }
 0x846   :  { %11550 = vmatpush3.bf16.msra.mxu1 %v8416_v45 }
 0x849   :  { %11552 = vmatmul.mubr.msk.bf16.vlgmr.msra.gmra.mxu1 %vm8440_vm6, %v11791_v38 }
 0x84a   :  { %11555 = vmatprep.mubr.msk.bf16.mxu1 %vm8440_vm6, %v11792_v12 }
 0x851   :  { %11556 = vmatmul.mubr.msk.bf16.gmra.mxu1 %vm8440_vm6, %v11793_v13 }
 0x852   :  { %11567 = vmatprep.mubr.msk.f32.mxu1 %vm44_vm1, %v14364_v39 }
 0x869   :  { %v11537_v14 = vpop.f32.mrf.mxu0 }
 0x86a   :  { %v8367_v28 = vadd.f32 %v11537_v14, %v14320_v32 }
 0x86b   :  { %v8358_v58 = vpop.f32.mrf.mxu0 }
 0x86c   :  { %v8399_v44 = vmax.f32 %v8367_v28, 0.0  ;;  %v8359_v16 = vadd.f32 %v14320_v32, %v8358_v58  ;;  %v8822_v28 = vld [vmem:[%s14457_s6 + $0x8] sm:$0xff] }
 0x86d   :  { %v11538_v11 = vpop.f32.mrf.mxu0 }
 0x86e   :  { %v8370_v22 = vadd.f32 %v11538_v11, %v14320_v32  ;;  %v8397_v40 = vmax.f32 %v8359_v16, 0.0 }
 0x86f   :  { %v8361_v7 = vpop.f32.mrf.mxu0 }
 0x870   :  { %v8400_v30 = vmax.f32 %v8370_v22, 0.0  ;;  %v8362_v34 = vadd.f32 %v14320_v32, %v8361_v7 }
 0x872   :  { %v8743_v49 = vpack.c.bf16 %v8400_v30, %v8399_v44  ;;  %v8398_v5 = vmax.f32 %v8362_v34, 0.0 }
 0x874   :  { %v8742_v18 = vpack.c.bf16 %v8398_v5, %v8397_v40 }
 0x895   :  { %v11541_v54 = vpop.f32.mrf.mxu0 }
 0x896   :  { %v8383_v19 = vadd.f32 %v11541_v54, %v14320_v32 }
 0x897   :  { %v8374_v24 = vpop.f32.mrf.mxu0 }
 0x898   :  { %v8375_v36 = vadd.f32 %v14320_v32, %v8374_v24  ;;  %v8403_v53 = vmax.f32 %v8383_v19, 0.0 }
 0x899   :  { %v11542_v43 = vpop.f32.mrf.mxu0 }
 0x89a   :  { %v8386_v15 = vadd.f32 %v11542_v43, %v14320_v32  ;;  %v8401_v56 = vmax.f32 %v8375_v36, 0.0 }
 0x89b   :  { %v8377_v55 = vpop.f32.mrf.mxu0 }
 0x89c   :  { %v8404_v23 = vmax.f32 %v8386_v15, 0.0  ;;  %v8378_v21 = vadd.f32 %v14320_v32, %v8377_v55 }
 0x89e   :  { %v8745_v50 = vpack.c.bf16 %v8404_v23, %v8403_v53  ;;  %v8402_v35 = vmax.f32 %v8378_v21, 0.0  ;;  %v17_v21 = vstv %s14456_s11 }
 0x89f   :  { %18 = vst [vmem:[#allocation5] sm:$0x1] %v17_v21 }
 0x8a0   :  { %v8744_v41 = vpack.c.bf16 %v8402_v35, %v8401_v56  ;;  %11577 = vmatprep.subr.bf16.mxu0 %v8745_v50 }
 0x8a1   :  { %11578 = vmatpush3.bf16.msra.mxu0 %v8745_v50 }
 0x8a2   :  { %11579 = vmatprep.subr.bf16.mxu0 %v8744_v41 }
 0x8a5   :  { %11580 = vmatpush3.bf16.msra.mxu0 %v8744_v41  ;;  %v8821_v41 = vld [vmem:[%s14457_s6] sm:$0xff] }
 0x8a6   :  { %11581 = vmatprep.subr.bf16.mxu0 %v8743_v49 }
 0x8a9   :  { %11582 = vmatpush3.bf16.msra.mxu0 %v8743_v49 }
 0x8aa   :  { %11583 = vmatprep.subr.bf16.mxu0 %v8742_v18 }
 0x8ad   :  { %11584 = vmatpush3.bf16.msra.mxu0 %v8742_v18 }
 0x8b0   :  { %11586 = vmatmul.mubr.msk.bf16.vlgmr.msra.gmra.mxu0 %vm8440_vm6, %v11791_v38 }
 0x8b1   :  { %11589 = vmatprep.mubr.msk.bf16.mxu0 %vm8440_vm6, %v11792_v12 }
 0x8b8   :  { %11590 = vmatmul.mubr.msk.bf16.gmra.mxu0 %vm8440_vm6, %v11793_v13 }
 0x909   :  { %v14353_v52 = vpop.f32.mrf.mxu1 }
 0x90b   :  { %v14355_v10 = vpop.f32.mrf.mxu1 }
 0x90d   :  { %v14357_v31 = vpop.f32.mrf.mxu1 }
 0x90f   :  { %v14359_v32 = vpop.f32.mrf.mxu1 }
 0x911   :  { %v11557_v57 = vpop.f32.mrf.mxu1 }
 0x912   :  { %v8554_v20 = vadd.f32 %v11557_v57, %v8545_v27 }
 0x913   :  { %v8503_v37 = vpop.f32.mrf.mxu1 }
 0x914   :  { %v8558_v61 = vmax.f32 %v8554_v20, 0.0  ;;  %v8552_v42 = vadd.f32 %v8541_v59, %v8503_v37 }
 0x915   :  { %v11558_v17 = vpop.f32.mrf.mxu1 }
 0x916   :  { %v8555_v47 = vadd.f32 %v11558_v17, %v8547_v9  ;;  %8570 = vrot.lane.b32.xlu1 %v8558_v61, %s11803_s19  ;;  %v8556_v62 = vmax.f32 %v8552_v42, 0.0  ;;  %v8560_v9 = vld [vmem:[%s14459_s9] sm:$0xff] }
 0x917   :  { %v8506_v48 = vpop.f32.mrf.mxu1  ;;  %v8415_v61 = vld [vmem:[%s14460_s10] sm:$0x1] }
 0x918   :  { %v8559_v33 = vmax.f32 %v8555_v47, 0.0  ;;  %v8553_v29 = vadd.f32 %v8543_v60, %v8506_v48  ;;  %v8661_v17 = vld [vmem:[#allocation5] sm:$0x1] }
 0x91a   :  { %8566 = vrot.lane.b32.xlu1 %v8556_v62, %s11803_s19  ;;  %8572 = vrot.lane.b32.xlu0 %v8559_v33, %s11803_s19  ;;  %v8557_v25 = vmax.f32 %v8553_v29, 0.0 }
 0x91e   :  { %8837 = vrot.lane.b32.xlu1 %v14292_v51, %s11802_s26  ;;  %8568 = vrot.lane.b32.xlu0 %v8557_v25, %s11803_s19 }
 0x922   :  { %8833 = vrot.lane.b32.xlu1 %v14304_v0, %s11802_s26  ;;  %8839 = vrot.lane.b32.xlu0 %v14299_v63, %s11802_s26 }
 0x926   :  { %8835 = vrot.lane.b32.xlu0 %v14313_v26, %s11802_s26  ;;  %v14383_v26 = vld [vmem:[%s14455_s8 + $0x8] sm:$0xff]  ;;  %s11804_s8 = smov 127  }
 0x970   :  { %v11587_v1 = vpop.f32.mrf.mxu0 }
 0x972   :  { %v8780_v2 = vpop.f32.mrf.mxu0 }
 0x974   :  { %v11588_v8 = vpop.f32.mrf.mxu0 }
 0x976   :  { %v8783_v3 = vpop.f32.mrf.mxu0 }
 0x978   :  { %v11591_v6 = vpop.f32.mrf.mxu0 }
 0x97a   :  { %v8796_v51 = vpop.f32.mrf.mxu0 }
 0x97c   :  { %v11592_v63 = vpop.f32.mrf.mxu0 }
 0x97e   :  { %v8799_v24 = vpop.f32.mrf.mxu0 }
 0x988   :  { %v8571_v4 = vpop.permute.xlu1 %8570 }
 0x98c   :  { %v8567_v45 = vpop.permute.xlu1 %8566  ;;  %v8573_v38 = vpop.permute.xlu0 %8572 }
 0x98d   :  { %11559 = vmatprep.subr.mxu1 %v8573_v38 }
 0x98e   :  { %11560 = vmatpush3.msra.mxu1 %v8573_v38 }
 0x98f   :  { %11561 = vmatprep.subr.mxu1 %v8571_v4 }
 0x990   :  { %v8838_v12 = vpop.permute.xlu1 %8837  ;;  %v8569_v0 = vpop.permute.xlu0 %8568  ;;  %11562 = vmatpush3.msra.mxu1 %v8571_v4 }
 0x991   :  { %v8847_v13 = vadd.f32 %v11591_v6, %v8838_v12  ;;  %11563 = vmatprep.subr.mxu1 %v8569_v0 }
 0x992   :  { %11564 = vmatpush3.msra.mxu1 %v8569_v0 }
 0x993   :  { %v8851_v14 = vmax.f32 %v8847_v13, 0.0  ;;  %11565 = vmatprep.subr.mxu1 %v8567_v45 }
 0x994   :  { %v8834_v58 = vpop.permute.xlu1 %8833  ;;  %v8840_v11 = vpop.permute.xlu0 %8839  ;;  %11566 = vmatpush3.msra.mxu1 %v8567_v45 }
 0x995   :  { %v8845_v7 = vadd.f32 %v8834_v58, %v8796_v51  ;;  %v8848_v54 = vadd.f32 %v11592_v63, %v8840_v11  ;;  %8863 = vrot.lane.b32.xlu1 %v8851_v14, %s11803_s19  ;;  %11568 = vmatmul.mubr.msk.f32.vlgmr.msra.gmra.mxu1 %vm44_vm1, %v14383_v26 }
 0x996   :  { %11570 = vmatprep.subr.mxu1 %v11799_v46  ;;  %11574 = vmatprep.mubr.msk.f32.mxu1 %vm11805_vm7, %v11799_v46 }
 0x997   :  { %v8849_v19 = vmax.f32 %v8845_v7, 0.0  ;;  %v8852_v43 = vmax.f32 %v8848_v54, 0.0 }
 0x998   :  { %v8836_v36 = vpop.permute.xlu0 %8835 }
 0x999   :  { %v8846_v15 = vadd.f32 %v8836_v36, %v8799_v24  ;;  %8859 = vrot.lane.b32.xlu1 %v8849_v19, %s11803_s19  ;;  %8865 = vrot.lane.b32.xlu0 %v8852_v43, %s11803_s19 }
 0x99b   :  { %v8850_v55 = vmax.f32 %v8846_v15, 0.0 }
 0x99d   :  { %8815 = vrot.lane.b32.xlu1 %v11588_v8, %s11804_s8  ;;  %8861 = vrot.lane.b32.xlu0 %v8850_v55, %s11803_s19 }
 0x9a1   :  { %8522 = vrot.lane.b32.xlu1 %v14357_v31, %s11804_s8  ;;  %8813 = vrot.lane.b32.xlu0 %v11587_v1, %s11804_s8  ;;  %v8561_v31 = vld [vmem:[%s14459_s9 + $0x8] sm:$0xff] }
 0x9a5   :  { %8520 = vrot.lane.b32.xlu0 %v14353_v52, %s11804_s8 }
 0xa07   :  { %v8864_v22 = vpop.permute.xlu1 %8863 }
 0xa0b   :  { %v8860_v53 = vpop.permute.xlu1 %8859  ;;  %v8866_v23 = vpop.permute.xlu0 %8865 }
 0xa0f   :  { %v8816_v56 = vpop.permute.xlu1 %8815  ;;  %v8862_v50 = vpop.permute.xlu0 %8861 }
 0xa10   :  { %v8820_v35 = vadd.f32 %v8816_v56, %v8783_v3  ;;  %v8948_v3 = vld [vmem:[#allocation5] sm:$0x1] }
 0xa12   :  { %v8824_v30 = vadd.f32 %v8822_v28, %v8820_v35 }
 0xa13   :  { %v8523_v34 = vpop.permute.xlu1 %8522  ;;  %v8814_v44 = vpop.permute.xlu0 %8813 }
 0xa14   :  { %v8527_v16 = vadd.f32 %v8523_v34, %v14359_v32  ;;  %v8819_v49 = vadd.f32 %v8814_v44, %v8780_v2  ;;  %9024 = vrot.lane.b32.xlu1 %v8824_v30, %s11806_s27 }
 0xa16   :  { %v8531_v5 = vadd.f32 %v8822_v28, %v8527_v16  ;;  %v8823_v40 = vadd.f32 %v8821_v41, %v8819_v49 }
 0xa17   :  { %v8521_v18 = vpop.permute.xlu0 %8520 }
 0xa18   :  { %8739 = vst.msk [vmem:[%s14458_s12 + $0x8] sm:$0xff] %vm8737_vm8, %v8531_v5  ;;  %v8526_v52 = vadd.f32 %v8521_v18, %v14355_v10  ;;  %9022 = vrot.lane.b32.xlu0 %v8823_v40, %s11806_s27 }
 0xa1a   :  { %v8530_v27 = vadd.f32 %v8821_v41, %v8526_v52 }
 0xa1c   :  { %8738 = vst.msk [vmem:[%s14458_s12] sm:$0xff] %vm8737_vm8, %v8530_v27 }
 0xa55   :  { %v11569_v32 = vpop.f32.mrf.mxu1 }
 0xa56   :  { %v8656_v57 = vadd.f32 %v11569_v32, %v8561_v31 }
 0xa57   :  { %v8650_v59 = vpop.f32.mrf.mxu1 }
 0xa58   :  { %v8660_v20 = vmax.f32 %v8656_v57, 0.0  ;;  %v8651_v10 = vadd.f32 %v8650_v59, %v8560_v9 }
 0xa5a   :  { %v8659_v37 = vmax.f32 %v8651_v10, 0.0  ;;  %11571 = vmatpush3.msra.mxu1 %v8660_v20 }
 0xa5b   :  { %11572 = vmatprep.subr.mxu1 %v11799_v46 }
 0xa5c   :  { %11573 = vmatpush3.msra.mxu1 %v8659_v37 }
 0xa5d   :  { %11593 = vmatprep.subr.mxu1 %v8866_v23  ;;  %11575 = vmatmul.mubr.msk.f32.vlgmr.msra.gmra.mxu1 %vm8662_vm9, %v8415_v61 }
 0xa5e   :  { %11594 = vmatpush3.msra.mxu1 %v8866_v23  ;;  %11601 = vmatprep.mubr.msk.f32.mxu1 %vm44_vm1, %v14364_v39 }
 0xa5f   :  { %11595 = vmatprep.subr.mxu1 %v8864_v22 }
 0xa60   :  { %11596 = vmatpush3.msra.mxu1 %v8864_v22 }
 0xa61   :  { %11597 = vmatprep.subr.mxu1 %v8862_v50 }
 0xa62   :  { %11598 = vmatpush3.msra.mxu1 %v8862_v50 }
 0xa63   :  { %11599 = vmatprep.subr.mxu1 %v8860_v53 }
 0xa64   :  { %11600 = vmatpush3.msra.mxu1 %v8860_v53 }
 0xa65   :  { %11602 = vmatmul.mubr.msk.f32.vlgmr.msra.gmra.mxu1 %vm44_vm1, %v14383_v26  ;;  %11604 = vmatprep.subr.mxu1 %v11799_v46 }
 0xa66   :  { %11608 = vmatprep.mubr.msk.f32.mxu1 %vm11805_vm7, %v11799_v46 }
 0xa86   :  { %v9025_v42 = vpop.permute.xlu1 %9024 }
 0xa87   :  { %9030 = vst.msk [vmem:[%s14458_s12 + $0x8] sm:$0xff] %vm9028_vm10, %v9025_v42 }
 0xa8a   :  { %v9023_v39 = vpop.permute.xlu0 %9022 }
 0xa8b   :  { %9029 = vst.msk [vmem:[%s14458_s12] sm:$0xff] %vm9028_vm10, %v9023_v39 }
 0xb1d   :  { %v8732_v60 = vpop.f32.mrf.mxu1 }
 0xb1e   :  { %v8733_v47 = vadd.f32 %v8732_v60, %v8661_v17 }
 0xb1f   :  { %v11576_v48 = vpop.f32.mrf.mxu1 }
 0xb20   :  { %11794 = vtanh.f32 %v8733_v47 }
 0xb25   :  { %v11603_v62 = vpop.f32.mrf.mxu1 }
 0xb26   :  { %v8943_v33 = vadd.f32 %v11603_v62, %v8561_v31 }
 0xb27   :  { %v8937_v29 = vpop.f32.mrf.mxu1 }
 0xb28   :  { %v8947_v25 = vmax.f32 %v8943_v33, 0.0  ;;  %v8938_v1 = vadd.f32 %v8937_v29, %v8560_v9 }
 0xb2a   :  { %v8946_v2 = vmax.f32 %v8938_v1, 0.0  ;;  %11605 = vmatpush3.msra.mxu1 %v8947_v25 }
 0xb2b   :  { %11606 = vmatprep.subr.mxu1 %v11799_v46 }
 0xb2c   :  { %11607 = vmatpush3.msra.mxu1 %v8946_v2 }
 0xb2d   :  { %v11795_v8 = vpop.eup %11794  ;;  %11609 = vmatmul.mubr.msk.f32.vlgmr.msra.gmra.mxu1 %vm8662_vm9, %v8415_v61 }
 0xb2e   :  { %8741 = vst.msk [vmem:[%s14458_s12 + $0x10] sm:$0x1] %vm8740_vm11, %v11795_v8 }
 0xbed   :  { %v9015_v4 = vpop.f32.mrf.mxu1 }
 0xbee   :  { %v9016_v6 = vadd.f32 %v9015_v4, %v8948_v3 }
 0xbef   :  { %v11610_v45 = vpop.f32.mrf.mxu1 }
 0xbf0   :  { %11796 = vtanh.f32 %v9016_v6 }
 0xbfd   :  { %v11797_v38 = vpop.eup %11796 }
 0xbfe   :  { %9032 = vrot.lane.b32.xlu0 %v11797_v38, %s11806_s27 }
 0xc70   :  { %v9033_v51 = vpop.permute.xlu0 %9032 }
 0xc71   :  { %9036 = vst.msk [vmem:[%s14458_s12 + $0x10] sm:$0x1] %vm9035_vm12, %v9033_v51 }

</bundles_post_ra>
